<compile_context>
chip_gen: v5e
topology: v5e:2x2
jax: 0.10.0
libtpu: 0.0.40
codegen_flags: <defaults>
</compile_context>

<pallas_src>
import functools

import jax
import jax.numpy as jnp
from jax import lax
from jax.experimental import pallas as pl
from jax.experimental.pallas import tpu as pltpu


def _round_up(x, m):
    return ((x + m - 1) // m) * m


def _lstm_chunk_kernel(nvc_ref, len_ref, x_ref, wih_ref, whh_ref, bias_ref,
                       out_ref, c_scr, gx_scr, *, hidden_pad, chunk_size,
                       unroll):
    """Grid = (batch_blocks, time_chunks).

    One grid step runs `chunk_size` LSTM timesteps:
      1. one fused input-projection GEMM for the whole chunk (bf16 -> f32),
      2. an (partially unrolled) in-kernel loop doing only the recurrent
         h_prev @ W_hh^T per step.
    h lives in the resident output block; c lives in VMEM scratch.
    """
    b_idx = pl.program_id(0)
    c_idx = pl.program_id(1)
    Hp = hidden_pad
    TC = chunk_size

    @pl.when(c_idx == 0)
    def _():
        out_ref[...] = jnp.zeros_like(out_ref)   # h state (resident out block)
        c_scr[...] = jnp.zeros_like(c_scr)

    # Skip chunks that lie entirely past this batch block's longest sequence
    # (pack_padded semantics: state would be frozen anyway).
    @pl.when(c_idx < nvc_ref[b_idx])
    def _():
        tc, bb, ep = x_ref.shape
        gp = gx_scr.shape[-1]

        # Per-chunk input projection: one big MXU GEMM (M = TC*BB) + bias.
        x2d = x_ref[...].reshape(tc * bb, ep)                       # bf16
        gx = jnp.dot(x2d, wih_ref[...], preferred_element_type=jnp.float32)
        gx_scr[...] = (gx + bias_ref[...]).reshape(tc, bb, gp)      # f32

        lens = len_ref[...]                                         # (BB, 1)
        t0 = c_idx * TC

        def step(i, carry):
            del carry
            h_prev = out_ref[...]                                    # (BB, Hp) f32
            c_prev = c_scr[...]

            # Recurrent projection only; bf16 operands, f32 accumulation.
            gates = gx_scr[i] + jnp.dot(
                h_prev.astype(jnp.bfloat16), whh_ref[...],
                preferred_element_type=jnp.float32)                  # (BB, 4*Hp)

            # Gate order [i, f, o, g]: one sigmoid over the 3*Hp slab, one tanh.
            sg = jax.nn.sigmoid(gates[:, :3 * Hp])
            i_g = sg[:, 0 * Hp:1 * Hp]
            f_g = sg[:, 1 * Hp:2 * Hp]
            o_g = sg[:, 2 * Hp:3 * Hp]
            g_g = jnp.tanh(gates[:, 3 * Hp:4 * Hp])

            c_new = f_g * c_prev + i_g * g_g
            h_new = o_g * jnp.tanh(c_new)

            # pack_padded_sequence: freeze state once t >= length[b].
            valid = (t0 + i) < lens                                  # (BB, 1)
            out_ref[...] = jnp.where(valid, h_new, h_prev)
            c_scr[...] = jnp.where(valid, c_new, c_prev)
            return 0

        lax.fori_loop(0, TC, step, 0, unroll=unroll)


def _pick_time_chunk(T, BB, E_pad, G_pad, H_pad, budget_bytes):
    """Largest chunk length (multiple of 8, <=256) fitting the VMEM budget."""
    fixed = (2 * E_pad * G_pad * 2     # W_ih^T bf16 (worst case: double-buf)
             + 2 * H_pad * G_pad * 2   # W_hh^T bf16
             + 2 * G_pad * 4           # bias
             + 2 * BB * 4              # lengths
             + 2 * BB * H_pad * 4      # resident output block (h)
             + BB * H_pad * 4)         # c scratch
    per_t = BB * (2 * E_pad * 2        # x block bf16, double-buffered
                  + G_pad * 4)         # per-chunk gates scratch f32
    tc = (budget_bytes - fixed) // per_t
    tc = int(max(8, min(tc, 256)))
    tc = (tc // 8) * 8
    return min(tc, max(8, _round_up(T, 8)))


def lstm_encoder_forward(tokens, lengths, emb_table, w_ih, w_hh, b_ih, b_hh,
                         *, vmem_budget_bytes=36 * 1024 * 1024):
    """tokens: (B, T) int32, lengths: (B,) int32 (descending, per pack_padded).

    emb_table: (V, E); w_ih: (4H, E); w_hh: (4H, H); b_ih, b_hh: (4H,)
    Returns last_hidden: (B, H) float32.
    """
    B, T = tokens.shape
    H = w_hh.shape[1]
    E = emb_table.shape[1]

    # -------- aligned / padded sizes --------
    H_pad = max(_round_up(H, 128), 128)        # per-gate lane-aligned width
    E_pad = max(_round_up(E, 128), 128)        # contraction dim, lane-aligned
    G_pad = 4 * H_pad

    B_pad8 = max(_round_up(B, 8), 8)
    BB = min(B_pad8, 64)                       # fill more MXU M rows per step
    if B_pad8 > 8 and B_pad8 // BB < 2:        # keep grid[0] >= 2 (v7x 2 TCs)
        BB = max(8, _round_up(B_pad8 // 2, 8))
    B_padded = _round_up(B_pad8, BB)
    n_bblocks = B_padded // BB

    TC = _pick_time_chunk(T, BB, E_pad, G_pad, H_pad, vmem_budget_bytes)
    n_chunks = pl.cdiv(T, TC)
    T_pad = n_chunks * TC

    # -------- glue in plain XLA --------
    # Embedding gather (general row gather stays in XLA).  Pad the TABLE (not
    # the activations) and the tokens so the gather directly produces the
    # padded, time-major, bf16 input stream — no extra activation pad passes.
    emb_p = jnp.pad(emb_table, ((0, 0), (0, E_pad - E))).astype(jnp.bfloat16)
    tok_p = jnp.pad(tokens.astype(jnp.int32),
                    ((0, B_padded - B), (0, T_pad - T)))
    x = jnp.take(emb_p, tok_p.T, axis=0)       # (T_pad, B_padded, E_pad) bf16

    # Weights padded per gate, gate order reordered [i, f, g, o] -> [i, f, o, g]
    # (sigmoid gates contiguous, tanh gate last).
    perm = jnp.array([0, 1, 3, 2], jnp.int32)

    def pack_w(w, in_dim, in_pad):
        w4 = w.reshape(4, H, in_dim)[perm]
        w4 = jnp.pad(w4, ((0, 0), (0, H_pad - H), (0, in_pad - in_dim)))
        return jnp.transpose(w4, (2, 0, 1)).reshape(in_pad, G_pad).astype(
            jnp.bfloat16)

    wih = pack_w(w_ih, E, E_pad)               # (E_pad, G_pad) bf16
    whh = pack_w(w_hh, H, H_pad)               # (H_pad, G_pad) bf16

    bias = (b_ih + b_hh).astype(jnp.float32).reshape(4, H)[perm]
    bias = jnp.pad(bias, ((0, 0), (0, H_pad - H))).reshape(1, G_pad)

    len_p = jnp.pad(lengths.astype(jnp.int32), (0, B_padded - B))
    len_col = len_p.reshape(B_padded, 1)
    # Scalar prefetch: #chunks with at least one valid timestep per batch block.
    block_max = len_p.reshape(n_bblocks, BB).max(axis=1)
    nvc = ((block_max + TC - 1) // TC).astype(jnp.int32)         # (n_bblocks,)

    kernel = functools.partial(
        _lstm_chunk_kernel, hidden_pad=H_pad, chunk_size=TC,
        unroll=(TC if TC <= 16 else 8))

    def build(single_buffer_weights):
        wt_kw = (dict(pipeline_mode=pl.Buffered(1))
                 if single_buffer_weights else {})
        return pl.pallas_call(
            kernel,
            out_shape=jax.ShapeDtypeStruct((B_padded, H_pad), jnp.float32),
            grid_spec=pltpu.PrefetchScalarGridSpec(
                num_scalar_prefetch=1,
                grid=(n_bblocks, n_chunks),
                in_specs=[
                    # lengths
                    pl.BlockSpec((BB, 1), lambda b, c, nvc_r: (b, 0)),
                    # x_emb: clamp time index so fully-masked tail chunks
                    # re-use the previous block (no new DMA).
                    pl.BlockSpec(
                        (TC, BB, E_pad),
                        lambda b, c, nvc_r: (
                            jnp.minimum(c, jnp.maximum(nvc_r[b] - 1, 0)),
                            b, 0)),
                    # W_ih^T / W_hh^T: constant index_map -> single-buffered.
                    pl.BlockSpec((E_pad, G_pad),
                                 lambda b, c, nvc_r: (0, 0), **wt_kw),
                    pl.BlockSpec((H_pad, G_pad),
                                 lambda b, c, nvc_r: (0, 0), **wt_kw),
                    # bias
                    pl.BlockSpec((1, G_pad), lambda b, c, nvc_r: (0, 0)),
                ],
                out_specs=pl.BlockSpec((BB, H_pad), lambda b, c, nvc_r: (b, 0)),
                scratch_shapes=[
                    pltpu.VMEM((BB, H_pad), jnp.float32),        # c state
                    pltpu.VMEM((TC, BB, G_pad), jnp.float32),    # chunk gates
                ],
            ),
            compiler_params=pltpu.CompilerParams(
                # batch blocks are independent (splits across v7x's 2 TCs when
                # B is large); time chunks carry the recurrence.
                dimension_semantics=("parallel", "arbitrary"),
                vmem_limit_bytes=48 * 1024 * 1024),
        )

    args = (nvc, len_col, x, wih, whh, bias)
    try:
        out_padded = build(True)(*args)
    except Exception:
        # pipeline_mode=pl.Buffered(1) not supported on this jax build —
        # fall back to default double buffering (correctness identical).
        out_padded = build(False)(*args)

    return out_padded[:B, :H]


def lstm_encoder_reference(tokens, lengths, emb_table, w_ih, w_hh, b_ih, b_hh):
    """Pure-JAX f32 reference of the PyTorch forward (for verification)."""
    B, T = tokens.shape
    H = w_hh.shape[1]
    x_emb = jnp.take(emb_table, tokens, axis=0)          # (B, T, E)
    bias = b_ih + b_hh

    def step(carry, inp):
        h, c = carry
        x_t, t = inp
        gates = x_t @ w_ih.T + h @ w_hh.T + bias
        i_g = jax.nn.sigmoid(gates[:, 0 * H:1 * H])
        f_g = jax.nn.sigmoid(gates[:, 1 * H:2 * H])
        g_g = jnp.tanh(gates[:, 2 * H:3 * H])
        o_g = jax.nn.sigmoid(gates[:, 3 * H:4 * H])
        c_new = f_g * c + i_g * g_g
        h_new = o_g * jnp.tanh(c_new)
        valid = (t < lengths)[:, None]
        h = jnp.where(valid, h_new, h)
        c = jnp.where(valid, c_new, c)
        return (h, c), None

    h0 = jnp.zeros((B, H), jnp.float32)
    c0 = jnp.zeros((B, H), jnp.float32)
    (h, _), _ = lax.scan(step, (h0, c0),
                         (jnp.transpose(x_emb, (1, 0, 2)), jnp.arange(T)))
    return h


if __name__ == "__main__":
    # Small shapes consistent with the module's forward.
    B, T = 2, 8           # batch, max sequence length
    V, E, H = 20, 32, 32  # vocab, emb_size, hidden_size

    key = jax.random.PRNGKey(0)
    k_emb, k_wih, k_whh, k_bih, k_bhh, k_tok = jax.random.split(key, 6)

    # Deterministic "id_to_vec"-style embedding table + LSTM params.
    emb_table = jax.random.normal(k_emb, (V, E), jnp.float32) * 0.1
    w_ih = jax.random.normal(k_wih, (4 * H, E), jnp.float32) * 0.1
    w_hh = jax.random.normal(k_whh, (4 * H, H), jnp.float32) * 0.1
    b_ih = jax.random.normal(k_bih, (4 * H,), jnp.float32) * 0.1
    b_hh = jax.random.normal(k_bhh, (4 * H,), jnp.float32) * 0.1

    tokens = jax.random.randint(k_tok, (B, T), 0, V, jnp.int32)
    # pack_padded_sequence (enforce_sorted=True) implies descending lengths.
    lengths = jnp.array([8, 5], jnp.int32)

    out = lstm_encoder_forward(tokens, lengths, emb_table, w_ih, w_hh, b_ih, b_hh)
    out = jax.block_until_ready(out)

    ref = lstm_encoder_reference(tokens, lengths, emb_table, w_ih, w_hh, b_ih, b_hh)
    assert out.shape == (B, H)
    # bf16 matmul operands (f32 accumulation) => loosened tolerance vs f32 ref.
    assert jnp.allclose(out, ref, atol=1e-2, rtol=1e-2), "mismatch vs reference"

    print("KERNEL_OK")
</pallas_src>

<mosaic_0001>
module attributes {stable_mosaic.version = 11 : i64} {
  func.func @_lstm_chunk_kernel(%arg0: i32, %arg1: i32, %arg2: memref<1xi32, #tpu.memory_space<smem>>, %arg3: memref<8x1xi32, #tpu.memory_space<vmem>>, %arg4: memref<8x8x128xbf16, #tpu.memory_space<vmem>>, %arg5: memref<128x512xbf16, #tpu.memory_space<vmem>>, %arg6: memref<128x512xbf16, #tpu.memory_space<vmem>>, %arg7: memref<1x512xf32, #tpu.memory_space<vmem>>, %arg8: memref<8x128xf32, #tpu.memory_space<vmem>>, %arg9: memref<8x128xf32, #tpu.memory_space<vmem>>, %arg10: memref<8x8x512xf32, #tpu.memory_space<vmem>>) attributes {dimension_semantics = [#tpu.dimension_semantics<parallel>, #tpu.dimension_semantics<arbitrary>], iteration_bounds = array<i64: 1, 1>, scalar_prefetch = 1 : i64, scratch_operands = 2 : i64, tpu.core_type = #tpu.core_type<tc>, window_params = [{transform_indices = @transform_0, window_bounds = array<i64: 8, 1>}, {transform_indices = @transform_1, window_bounds = array<i64: 8, 8, 128>}, {pipeline_mode = #tpu.pipeline_mode<synchronous>, transform_indices = @transform_2, window_bounds = array<i64: 128, 512>}, {pipeline_mode = #tpu.pipeline_mode<synchronous>, transform_indices = @transform_3, window_bounds = array<i64: 128, 512>}, {pipeline_mode = #tpu.pipeline_mode<synchronous>, transform_indices = @transform_4, window_bounds = array<i64: 1, 512>}, {transform_indices = @transform_5, window_bounds = array<i64: 8, 128>}]} {
    %c0_i32 = arith.constant 0 : i32
    %0 = arith.cmpi eq, %arg1, %c0_i32 : i32
    %1 = arith.extui %0 : i1 to i32
    %c0_i32_0 = arith.constant 0 : i32
    %2 = arith.cmpi ne, %1, %c0_i32_0 : i32
    scf.if %2 {
      %cst = arith.constant 0.000000e+00 : f32
      %8 = vector.broadcast %cst : f32 to vector<8x128xf32>
      %c0 = arith.constant 0 : index
      %c0_2 = arith.constant 0 : index
      %9 = vector.load %arg8[%c0, %c0_2] : memref<8x128xf32, #tpu.memory_space<vmem>>, vector<8x128xf32>
      tpu.vector_store %arg8[%c0, %c0_2], %8 {strides = array<i32>} : memref<8x128xf32, #tpu.memory_space<vmem>>, vector<8x128xf32>,
      %cst_3 = arith.constant 0.000000e+00 : f32
      %10 = vector.broadcast %cst_3 : f32 to vector<8x128xf32>
      %c0_4 = arith.constant 0 : index
      %c0_5 = arith.constant 0 : index
      %11 = vector.load %arg9[%c0_4, %c0_5] : memref<8x128xf32, #tpu.memory_space<vmem>>, vector<8x128xf32>
      tpu.vector_store %arg9[%c0_4, %c0_5], %10 {strides = array<i32>} : memref<8x128xf32, #tpu.memory_space<vmem>>, vector<8x128xf32>,
    } else {
    }
    %3 = arith.index_cast %arg0 : i32 to index
    %4 = memref.load %arg2[%3] : memref<1xi32, #tpu.memory_space<smem>>
    %5 = arith.cmpi slt, %arg1, %4 : i32
    %6 = arith.extui %5 : i1 to i32
    %c0_i32_1 = arith.constant 0 : i32
    %7 = arith.cmpi ne, %6, %c0_i32_1 : i32
    scf.if %7 {
      %c0 = arith.constant 0 : index
      %c0_2 = arith.constant 0 : index
      %c0_3 = arith.constant 0 : index
      %8 = vector.load %arg4[%c0, %c0_2, %c0_3] : memref<8x8x128xbf16, #tpu.memory_space<vmem>>, vector<8x8x128xbf16>
      %9 = vector.shape_cast %8 : vector<8x8x128xbf16> to vector<64x128xbf16>
      %c0_4 = arith.constant 0 : index
      %c0_5 = arith.constant 0 : index
      %10 = vector.load %arg5[%c0_4, %c0_5] : memref<128x512xbf16, #tpu.memory_space<vmem>>, vector<128x512xbf16>
      %cst = arith.constant dense<0.000000e+00> : vector<64x512xf32>
      %11 = tpu.matmul %9, %10, %cst {dimension_numbers = #tpu.dot_dimension_numbers<[1], [0], [0], [1], [0, 0, 1, 1], [], []>} : vector<64x128xbf16>, vector<128x512xbf16>, vector<64x512xf32> -> vector<64x512xf32>
      %c0_6 = arith.constant 0 : index
      %c0_7 = arith.constant 0 : index
      %12 = vector.load %arg7[%c0_6, %c0_7] : memref<1x512xf32, #tpu.memory_space<vmem>>, vector<1x512xf32>
      %13 = vector.broadcast %12 : vector<1x512xf32> to vector<64x512xf32>
      %14 = arith.addf %11, %13 : vector<64x512xf32>
      %15 = vector.shape_cast %14 : vector<64x512xf32> to vector<8x8x512xf32>
      %c0_8 = arith.constant 0 : index
      %c0_9 = arith.constant 0 : index
      %c0_10 = arith.constant 0 : index
      %16 = vector.load %arg10[%c0_8, %c0_9, %c0_10] : memref<8x8x512xf32, #tpu.memory_space<vmem>>, vector<8x8x512xf32>
      tpu.vector_store %arg10[%c0_8, %c0_9, %c0_10], %15 {strides = array<i32>} : memref<8x8x512xf32, #tpu.memory_space<vmem>>, vector<8x8x512xf32>,
      %c0_11 = arith.constant 0 : index
      %c0_12 = arith.constant 0 : index
      %17 = vector.load %arg3[%c0_11, %c0_12] : memref<8x1xi32, #tpu.memory_space<vmem>>, vector<8x1xi32>
      %c8_i32 = arith.constant 8 : i32
      %18 = arith.muli %arg1, %c8_i32 : i32
      %c0_i32_13 = arith.constant 0 : i32
      %c0_14 = arith.constant 0 : index
      %c0_15 = arith.constant 0 : index
      %19 = vector.load %arg8[%c0_14, %c0_15] : memref<8x128xf32, #tpu.memory_space<vmem>>, vector<8x128xf32>
      %c0_16 = arith.constant 0 : index
      %c0_17 = arith.constant 0 : index
      %20 = vector.load %arg9[%c0_16, %c0_17] : memref<8x128xf32, #tpu.memory_space<vmem>>, vector<8x128xf32>
      %21 = arith.index_cast %c0_i32_13 : i32 to index
      %c0_18 = arith.constant 0 : index
      %c0_19 = arith.constant 0 : index
      %22 = vector.load %arg10[%21, %c0_18, %c0_19] : memref<8x8x512xf32, #tpu.memory_space<vmem>>, vector<1x8x512xf32>
      %23 = vector.shape_cast %22 : vector<1x8x512xf32> to vector<8x512xf32>
      %24 = arith.truncf %19 : vector<8x128xf32> to vector<8x128xbf16>
      %c0_20 = arith.constant 0 : index
      %c0_21 = arith.constant 0 : index
      %25 = vector.load %arg6[%c0_20, %c0_21] : memref<128x512xbf16, #tpu.memory_space<vmem>>, vector<128x512xbf16>
      %cst_22 = arith.constant dense<0.000000e+00> : vector<8x512xf32>
      %26 = tpu.matmul %24, %25, %cst_22 {dimension_numbers = #tpu.dot_dimension_numbers<[1], [0], [0], [1], [0, 0, 1, 1], [], []>} : vector<8x128xbf16>, vector<128x512xbf16>, vector<8x512xf32> -> vector<8x512xf32>
      %27 = arith.addf %23, %26 : vector<8x512xf32>
      %28 = vector.extract_strided_slice %27 {offsets = [0, 0], sizes = [8, 384], strides = [1, 1]} : vector<8x512xf32> to vector<8x384xf32>
      %29 = arith.negf %28 : vector<8x384xf32>
      %30 = math.exp %29 : vector<8x384xf32>
      %cst_23 = arith.constant 1.000000e+00 : f32
      %31 = vector.broadcast %cst_23 : f32 to vector<8x384xf32>
      %32 = arith.addf %31, %30 : vector<8x384xf32>
      %33 = arith.divf %31, %32 : vector<8x384xf32>
      %34 = vector.extract_strided_slice %33 {offsets = [0, 0], sizes = [8, 128], strides = [1, 1]} : vector<8x384xf32> to vector<8x128xf32>
      %35 = vector.extract_strided_slice %33 {offsets = [0, 128], sizes = [8, 128], strides = [1, 1]} : vector<8x384xf32> to vector<8x128xf32>
      %36 = vector.extract_strided_slice %33 {offsets = [0, 256], sizes = [8, 128], strides = [1, 1]} : vector<8x384xf32> to vector<8x128xf32>
      %37 = vector.extract_strided_slice %27 {offsets = [0, 384], sizes = [8, 128], strides = [1, 1]} : vector<8x512xf32> to vector<8x128xf32>
      %38 = math.tanh %37 : vector<8x128xf32>
      %39 = arith.mulf %35, %20 : vector<8x128xf32>
      %40 = arith.mulf %34, %38 : vector<8x128xf32>
      %41 = arith.addf %39, %40 : vector<8x128xf32>
      %42 = math.tanh %41 : vector<8x128xf32>
      %43 = arith.mulf %36, %42 : vector<8x128xf32>
      %44 = arith.addi %18, %c0_i32_13 : i32
      %45 = vector.broadcast %44 : i32 to vector<8x1xi32>
      %46 = arith.cmpi slt, %45, %17 : vector<8x1xi32>
      %47 = vector.shape_cast %46 : vector<8x1xi1> to vector<8x1xi1>
      %48 = vector.broadcast %47 : vector<8x1xi1> to vector<8x128xi1>
      %49 = arith.select %48, %43, %19 : vector<8x128xi1>, vector<8x128xf32>
      %c0_24 = arith.constant 0 : index
      %c0_25 = arith.constant 0 : index
      %50 = vector.load %arg8[%c0_24, %c0_25] : memref<8x128xf32, #tpu.memory_space<vmem>>, vector<8x128xf32>
      tpu.vector_store %arg8[%c0_24, %c0_25], %49 {strides = array<i32>} : memref<8x128xf32, #tpu.memory_space<vmem>>, vector<8x128xf32>,
      %51 = vector.shape_cast %46 : vector<8x1xi1> to vector<8x1xi1>
      %52 = vector.broadcast %51 : vector<8x1xi1> to vector<8x128xi1>
      %53 = arith.select %52, %41, %20 : vector<8x128xi1>, vector<8x128xf32>
      %c0_26 = arith.constant 0 : index
      %c0_27 = arith.constant 0 : index
      %54 = vector.load %arg9[%c0_26, %c0_27] : memref<8x128xf32, #tpu.memory_space<vmem>>, vector<8x128xf32>
      tpu.vector_store %arg9[%c0_26, %c0_27], %53 {strides = array<i32>} : memref<8x128xf32, #tpu.memory_space<vmem>>, vector<8x128xf32>,
      %c1_i32 = arith.constant 1 : i32
      %c0_28 = arith.constant 0 : index
      %c0_29 = arith.constant 0 : index
      %55 = vector.load %arg8[%c0_28, %c0_29] : memref<8x128xf32, #tpu.memory_space<vmem>>, vector<8x128xf32>
      %c0_30 = arith.constant 0 : index
      %c0_31 = arith.constant 0 : index
      %56 = vector.load %arg9[%c0_30, %c0_31] : memref<8x128xf32, #tpu.memory_space<vmem>>, vector<8x128xf32>
      %57 = arith.index_cast %c1_i32 : i32 to index
      %c0_32 = arith.constant 0 : index
      %c0_33 = arith.constant 0 : index
      %58 = vector.load %arg10[%57, %c0_32, %c0_33] : memref<8x8x512xf32, #tpu.memory_space<vmem>>, vector<1x8x512xf32>
      %59 = vector.shape_cast %58 : vector<1x8x512xf32> to vector<8x512xf32>
      %60 = arith.truncf %55 : vector<8x128xf32> to vector<8x128xbf16>
      %c0_34 = arith.constant 0 : index
      %c0_35 = arith.constant 0 : index
      %61 = vector.load %arg6[%c0_34, %c0_35] : memref<128x512xbf16, #tpu.memory_space<vmem>>, vector<128x512xbf16>
      %cst_36 = arith.constant dense<0.000000e+00> : vector<8x512xf32>
      %62 = tpu.matmul %60, %61, %cst_36 {dimension_numbers = #tpu.dot_dimension_numbers<[1], [0], [0], [1], [0, 0, 1, 1], [], []>} : vector<8x128xbf16>, vector<128x512xbf16>, vector<8x512xf32> -> vector<8x512xf32>
      %63 = arith.addf %59, %62 : vector<8x512xf32>
      %64 = vector.extract_strided_slice %63 {offsets = [0, 0], sizes = [8, 384], strides = [1, 1]} : vector<8x512xf32> to vector<8x384xf32>
      %65 = arith.negf %64 : vector<8x384xf32>
      %66 = math.exp %65 : vector<8x384xf32>
      %cst_37 = arith.constant 1.000000e+00 : f32
      %67 = vector.broadcast %cst_37 : f32 to vector<8x384xf32>
      %68 = arith.addf %67, %66 : vector<8x384xf32>
      %69 = arith.divf %67, %68 : vector<8x384xf32>
      %70 = vector.extract_strided_slice %69 {offsets = [0, 0], sizes = [8, 128], strides = [1, 1]} : vector<8x384xf32> to vector<8x128xf32>
      %71 = vector.extract_strided_slice %69 {offsets = [0, 128], sizes = [8, 128], strides = [1, 1]} : vector<8x384xf32> to vector<8x128xf32>
      %72 = vector.extract_strided_slice %69 {offsets = [0, 256], sizes = [8, 128], strides = [1, 1]} : vector<8x384xf32> to vector<8x128xf32>
      %73 = vector.extract_strided_slice %63 {offsets = [0, 384], sizes = [8, 128], strides = [1, 1]} : vector<8x512xf32> to vector<8x128xf32>
      %74 = math.tanh %73 : vector<8x128xf32>
      %75 = arith.mulf %71, %56 : vector<8x128xf32>
      %76 = arith.mulf %70, %74 : vector<8x128xf32>
      %77 = arith.addf %75, %76 : vector<8x128xf32>
      %78 = math.tanh %77 : vector<8x128xf32>
      %79 = arith.mulf %72, %78 : vector<8x128xf32>
      %80 = arith.addi %18, %c1_i32 : i32
      %81 = vector.broadcast %80 : i32 to vector<8x1xi32>
      %82 = arith.cmpi slt, %81, %17 : vector<8x1xi32>
      %83 = vector.shape_cast %82 : vector<8x1xi1> to vector<8x1xi1>
      %84 = vector.broadcast %83 : vector<8x1xi1> to vector<8x128xi1>
      %85 = arith.select %84, %79, %55 : vector<8x128xi1>, vector<8x128xf32>
      %c0_38 = arith.constant 0 : index
      %c0_39 = arith.constant 0 : index
      %86 = vector.load %arg8[%c0_38, %c0_39] : memref<8x128xf32, #tpu.memory_space<vmem>>, vector<8x128xf32>
      tpu.vector_store %arg8[%c0_38, %c0_39], %85 {strides = array<i32>} : memref<8x128xf32, #tpu.memory_space<vmem>>, vector<8x128xf32>,
      %87 = vector.shape_cast %82 : vector<8x1xi1> to vector<8x1xi1>
      %88 = vector.broadcast %87 : vector<8x1xi1> to vector<8x128xi1>
      %89 = arith.select %88, %77, %56 : vector<8x128xi1>, vector<8x128xf32>
      %c0_40 = arith.constant 0 : index
      %c0_41 = arith.constant 0 : index
      %90 = vector.load %arg9[%c0_40, %c0_41] : memref<8x128xf32, #tpu.memory_space<vmem>>, vector<8x128xf32>
      tpu.vector_store %arg9[%c0_40, %c0_41], %89 {strides = array<i32>} : memref<8x128xf32, #tpu.memory_space<vmem>>, vector<8x128xf32>,
      %c2_i32 = arith.constant 2 : i32
      %c0_42 = arith.constant 0 : index
      %c0_43 = arith.constant 0 : index
      %91 = vector.load %arg8[%c0_42, %c0_43] : memref<8x128xf32, #tpu.memory_space<vmem>>, vector<8x128xf32>
      %c0_44 = arith.constant 0 : index
      %c0_45 = arith.constant 0 : index
      %92 = vector.load %arg9[%c0_44, %c0_45] : memref<8x128xf32, #tpu.memory_space<vmem>>, vector<8x128xf32>
      %93 = arith.index_cast %c2_i32 : i32 to index
      %c0_46 = arith.constant 0 : index
      %c0_47 = arith.constant 0 : index
      %94 = vector.load %arg10[%93, %c0_46, %c0_47] : memref<8x8x512xf32, #tpu.memory_space<vmem>>, vector<1x8x512xf32>
      %95 = vector.shape_cast %94 : vector<1x8x512xf32> to vector<8x512xf32>
      %96 = arith.truncf %91 : vector<8x128xf32> to vector<8x128xbf16>
      %c0_48 = arith.constant 0 : index
      %c0_49 = arith.constant 0 : index
      %97 = vector.load %arg6[%c0_48, %c0_49] : memref<128x512xbf16, #tpu.memory_space<vmem>>, vector<128x512xbf16>
      %cst_50 = arith.constant dense<0.000000e+00> : vector<8x512xf32>
      %98 = tpu.matmul %96, %97, %cst_50 {dimension_numbers = #tpu.dot_dimension_numbers<[1], [0], [0], [1], [0, 0, 1, 1], [], []>} : vector<8x128xbf16>, vector<128x512xbf16>, vector<8x512xf32> -> vector<8x512xf32>
      %99 = arith.addf %95, %98 : vector<8x512xf32>
      %100 = vector.extract_strided_slice %99 {offsets = [0, 0], sizes = [8, 384], strides = [1, 1]} : vector<8x512xf32> to vector<8x384xf32>
      %101 = arith.negf %100 : vector<8x384xf32>
      %102 = math.exp %101 : vector<8x384xf32>
      %cst_51 = arith.constant 1.000000e+00 : f32
      %103 = vector.broadcast %cst_51 : f32 to vector<8x384xf32>
      %104 = arith.addf %103, %102 : vector<8x384xf32>
      %105 = arith.divf %103, %104 : vector<8x384xf32>
      %106 = vector.extract_strided_slice %105 {offsets = [0, 0], sizes = [8, 128], strides = [1, 1]} : vector<8x384xf32> to vector<8x128xf32>
      %107 = vector.extract_strided_slice %105 {offsets = [0, 128], sizes = [8, 128], strides = [1, 1]} : vector<8x384xf32> to vector<8x128xf32>
      %108 = vector.extract_strided_slice %105 {offsets = [0, 256], sizes = [8, 128], strides = [1, 1]} : vector<8x384xf32> to vector<8x128xf32>
      %109 = vector.extract_strided_slice %99 {offsets = [0, 384], sizes = [8, 128], strides = [1, 1]} : vector<8x512xf32> to vector<8x128xf32>
      %110 = math.tanh %109 : vector<8x128xf32>
      %111 = arith.mulf %107, %92 : vector<8x128xf32>
      %112 = arith.mulf %106, %110 : vector<8x128xf32>
      %113 = arith.addf %111, %112 : vector<8x128xf32>
      %114 = math.tanh %113 : vector<8x128xf32>
      %115 = arith.mulf %108, %114 : vector<8x128xf32>
      %116 = arith.addi %18, %c2_i32 : i32
      %117 = vector.broadcast %116 : i32 to vector<8x1xi32>
      %118 = arith.cmpi slt, %117, %17 : vector<8x1xi32>
      %119 = vector.shape_cast %118 : vector<8x1xi1> to vector<8x1xi1>
      %120 = vector.broadcast %119 : vector<8x1xi1> to vector<8x128xi1>
      %121 = arith.select %120, %115, %91 : vector<8x128xi1>, vector<8x128xf32>
      %c0_52 = arith.constant 0 : index
      %c0_53 = arith.constant 0 : index
      %122 = vector.load %arg8[%c0_52, %c0_53] : memref<8x128xf32, #tpu.memory_space<vmem>>, vector<8x128xf32>
      tpu.vector_store %arg8[%c0_52, %c0_53], %121 {strides = array<i32>} : memref<8x128xf32, #tpu.memory_space<vmem>>, vector<8x128xf32>,
      %123 = vector.shape_cast %118 : vector<8x1xi1> to vector<8x1xi1>
      %124 = vector.broadcast %123 : vector<8x1xi1> to vector<8x128xi1>
      %125 = arith.select %124, %113, %92 : vector<8x128xi1>, vector<8x128xf32>
      %c0_54 = arith.constant 0 : index
      %c0_55 = arith.constant 0 : index
      %126 = vector.load %arg9[%c0_54, %c0_55] : memref<8x128xf32, #tpu.memory_space<vmem>>, vector<8x128xf32>
      tpu.vector_store %arg9[%c0_54, %c0_55], %125 {strides = array<i32>} : memref<8x128xf32, #tpu.memory_space<vmem>>, vector<8x128xf32>,
      %c3_i32 = arith.constant 3 : i32
      %c0_56 = arith.constant 0 : index
      %c0_57 = arith.constant 0 : index
      %127 = vector.load %arg8[%c0_56, %c0_57] : memref<8x128xf32, #tpu.memory_space<vmem>>, vector<8x128xf32>
      %c0_58 = arith.constant 0 : index
      %c0_59 = arith.constant 0 : index
      %128 = vector.load %arg9[%c0_58, %c0_59] : memref<8x128xf32, #tpu.memory_space<vmem>>, vector<8x128xf32>
      %129 = arith.index_cast %c3_i32 : i32 to index
      %c0_60 = arith.constant 0 : index
      %c0_61 = arith.constant 0 : index
      %130 = vector.load %arg10[%129, %c0_60, %c0_61] : memref<8x8x512xf32, #tpu.memory_space<vmem>>, vector<1x8x512xf32>
      %131 = vector.shape_cast %130 : vector<1x8x512xf32> to vector<8x512xf32>
      %132 = arith.truncf %127 : vector<8x128xf32> to vector<8x128xbf16>
      %c0_62 = arith.constant 0 : index
      %c0_63 = arith.constant 0 : index
      %133 = vector.load %arg6[%c0_62, %c0_63] : memref<128x512xbf16, #tpu.memory_space<vmem>>, vector<128x512xbf16>
      %cst_64 = arith.constant dense<0.000000e+00> : vector<8x512xf32>
      %134 = tpu.matmul %132, %133, %cst_64 {dimension_numbers = #tpu.dot_dimension_numbers<[1], [0], [0], [1], [0, 0, 1, 1], [], []>} : vector<8x128xbf16>, vector<128x512xbf16>, vector<8x512xf32> -> vector<8x512xf32>
      %135 = arith.addf %131, %134 : vector<8x512xf32>
      %136 = vector.extract_strided_slice %135 {offsets = [0, 0], sizes = [8, 384], strides = [1, 1]} : vector<8x512xf32> to vector<8x384xf32>
      %137 = arith.negf %136 : vector<8x384xf32>
      %138 = math.exp %137 : vector<8x384xf32>
      %cst_65 = arith.constant 1.000000e+00 : f32
      %139 = vector.broadcast %cst_65 : f32 to vector<8x384xf32>
      %140 = arith.addf %139, %138 : vector<8x384xf32>
      %141 = arith.divf %139, %140 : vector<8x384xf32>
      %142 = vector.extract_strided_slice %141 {offsets = [0, 0], sizes = [8, 128], strides = [1, 1]} : vector<8x384xf32> to vector<8x128xf32>
      %143 = vector.extract_strided_slice %141 {offsets = [0, 128], sizes = [8, 128], strides = [1, 1]} : vector<8x384xf32> to vector<8x128xf32>
      %144 = vector.extract_strided_slice %141 {offsets = [0, 256], sizes = [8, 128], strides = [1, 1]} : vector<8x384xf32> to vector<8x128xf32>
      %145 = vector.extract_strided_slice %135 {offsets = [0, 384], sizes = [8, 128], strides = [1, 1]} : vector<8x512xf32> to vector<8x128xf32>
      %146 = math.tanh %145 : vector<8x128xf32>
      %147 = arith.mulf %143, %128 : vector<8x128xf32>
      %148 = arith.mulf %142, %146 : vector<8x128xf32>
      %149 = arith.addf %147, %148 : vector<8x128xf32>
      %150 = math.tanh %149 : vector<8x128xf32>
      %151 = arith.mulf %144, %150 : vector<8x128xf32>
      %152 = arith.addi %18, %c3_i32 : i32
      %153 = vector.broadcast %152 : i32 to vector<8x1xi32>
      %154 = arith.cmpi slt, %153, %17 : vector<8x1xi32>
      %155 = vector.shape_cast %154 : vector<8x1xi1> to vector<8x1xi1>
      %156 = vector.broadcast %155 : vector<8x1xi1> to vector<8x128xi1>
      %157 = arith.select %156, %151, %127 : vector<8x128xi1>, vector<8x128xf32>
      %c0_66 = arith.constant 0 : index
      %c0_67 = arith.constant 0 : index
      %158 = vector.load %arg8[%c0_66, %c0_67] : memref<8x128xf32, #tpu.memory_space<vmem>>, vector<8x128xf32>
      tpu.vector_store %arg8[%c0_66, %c0_67], %157 {strides = array<i32>} : memref<8x128xf32, #tpu.memory_space<vmem>>, vector<8x128xf32>,
      %159 = vector.shape_cast %154 : vector<8x1xi1> to vector<8x1xi1>
      %160 = vector.broadcast %159 : vector<8x1xi1> to vector<8x128xi1>
      %161 = arith.select %160, %149, %128 : vector<8x128xi1>, vector<8x128xf32>
      %c0_68 = arith.constant 0 : index
      %c0_69 = arith.constant 0 : index
      %162 = vector.load %arg9[%c0_68, %c0_69] : memref<8x128xf32, #tpu.memory_space<vmem>>, vector<8x128xf32>
      tpu.vector_store %arg9[%c0_68, %c0_69], %161 {strides = array<i32>} : memref<8x128xf32, #tpu.memory_space<vmem>>, vector<8x128xf32>,
      %c4_i32 = arith.constant 4 : i32
      %c0_70 = arith.constant 0 : index
      %c0_71 = arith.constant 0 : index
      %163 = vector.load %arg8[%c0_70, %c0_71] : memref<8x128xf32, #tpu.memory_space<vmem>>, vector<8x128xf32>
      %c0_72 = arith.constant 0 : index
      %c0_73 = arith.constant 0 : index
      %164 = vector.load %arg9[%c0_72, %c0_73] : memref<8x128xf32, #tpu.memory_space<vmem>>, vector<8x128xf32>
      %165 = arith.index_cast %c4_i32 : i32 to index
      %c0_74 = arith.constant 0 : index
      %c0_75 = arith.constant 0 : index
      %166 = vector.load %arg10[%165, %c0_74, %c0_75] : memref<8x8x512xf32, #tpu.memory_space<vmem>>, vector<1x8x512xf32>
      %167 = vector.shape_cast %166 : vector<1x8x512xf32> to vector<8x512xf32>
      %168 = arith.truncf %163 : vector<8x128xf32> to vector<8x128xbf16>
      %c0_76 = arith.constant 0 : index
      %c0_77 = arith.constant 0 : index
      %169 = vector.load %arg6[%c0_76, %c0_77] : memref<128x512xbf16, #tpu.memory_space<vmem>>, vector<128x512xbf16>
      %cst_78 = arith.constant dense<0.000000e+00> : vector<8x512xf32>
      %170 = tpu.matmul %168, %169, %cst_78 {dimension_numbers = #tpu.dot_dimension_numbers<[1], [0], [0], [1], [0, 0, 1, 1], [], []>} : vector<8x128xbf16>, vector<128x512xbf16>, vector<8x512xf32> -> vector<8x512xf32>
      %171 = arith.addf %167, %170 : vector<8x512xf32>
      %172 = vector.extract_strided_slice %171 {offsets = [0, 0], sizes = [8, 384], strides = [1, 1]} : vector<8x512xf32> to vector<8x384xf32>
      %173 = arith.negf %172 : vector<8x384xf32>
      %174 = math.exp %173 : vector<8x384xf32>
      %cst_79 = arith.constant 1.000000e+00 : f32
      %175 = vector.broadcast %cst_79 : f32 to vector<8x384xf32>
      %176 = arith.addf %175, %174 : vector<8x384xf32>
      %177 = arith.divf %175, %176 : vector<8x384xf32>
      %178 = vector.extract_strided_slice %177 {offsets = [0, 0], sizes = [8, 128], strides = [1, 1]} : vector<8x384xf32> to vector<8x128xf32>
      %179 = vector.extract_strided_slice %177 {offsets = [0, 128], sizes = [8, 128], strides = [1, 1]} : vector<8x384xf32> to vector<8x128xf32>
      %180 = vector.extract_strided_slice %177 {offsets = [0, 256], sizes = [8, 128], strides = [1, 1]} : vector<8x384xf32> to vector<8x128xf32>
      %181 = vector.extract_strided_slice %171 {offsets = [0, 384], sizes = [8, 128], strides = [1, 1]} : vector<8x512xf32> to vector<8x128xf32>
      %182 = math.tanh %181 : vector<8x128xf32>
      %183 = arith.mulf %179, %164 : vector<8x128xf32>
      %184 = arith.mulf %178, %182 : vector<8x128xf32>
      %185 = arith.addf %183, %184 : vector<8x128xf32>
      %186 = math.tanh %185 : vector<8x128xf32>
      %187 = arith.mulf %180, %186 : vector<8x128xf32>
      %188 = arith.addi %18, %c4_i32 : i32
      %189 = vector.broadcast %188 : i32 to vector<8x1xi32>
      %190 = arith.cmpi slt, %189, %17 : vector<8x1xi32>
      %191 = vector.shape_cast %190 : vector<8x1xi1> to vector<8x1xi1>
      %192 = vector.broadcast %191 : vector<8x1xi1> to vector<8x128xi1>
      %193 = arith.select %192, %187, %163 : vector<8x128xi1>, vector<8x128xf32>
      %c0_80 = arith.constant 0 : index
      %c0_81 = arith.constant 0 : index
      %194 = vector.load %arg8[%c0_80, %c0_81] : memref<8x128xf32, #tpu.memory_space<vmem>>, vector<8x128xf32>
      tpu.vector_store %arg8[%c0_80, %c0_81], %193 {strides = array<i32>} : memref<8x128xf32, #tpu.memory_space<vmem>>, vector<8x128xf32>,
      %195 = vector.shape_cast %190 : vector<8x1xi1> to vector<8x1xi1>
      %196 = vector.broadcast %195 : vector<8x1xi1> to vector<8x128xi1>
      %197 = arith.select %196, %185, %164 : vector<8x128xi1>, vector<8x128xf32>
      %c0_82 = arith.constant 0 : index
      %c0_83 = arith.constant 0 : index
      %198 = vector.load %arg9[%c0_82, %c0_83] : memref<8x128xf32, #tpu.memory_space<vmem>>, vector<8x128xf32>
      tpu.vector_store %arg9[%c0_82, %c0_83], %197 {strides = array<i32>} : memref<8x128xf32, #tpu.memory_space<vmem>>, vector<8x128xf32>,
      %c5_i32 = arith.constant 5 : i32
      %c0_84 = arith.constant 0 : index
      %c0_85 = arith.constant 0 : index
      %199 = vector.load %arg8[%c0_84, %c0_85] : memref<8x128xf32, #tpu.memory_space<vmem>>, vector<8x128xf32>
      %c0_86 = arith.constant 0 : index
      %c0_87 = arith.constant 0 : index
      %200 = vector.load %arg9[%c0_86, %c0_87] : memref<8x128xf32, #tpu.memory_space<vmem>>, vector<8x128xf32>
      %201 = arith.index_cast %c5_i32 : i32 to index
      %c0_88 = arith.constant 0 : index
      %c0_89 = arith.constant 0 : index
      %202 = vector.load %arg10[%201, %c0_88, %c0_89] : memref<8x8x512xf32, #tpu.memory_space<vmem>>, vector<1x8x512xf32>
      %203 = vector.shape_cast %202 : vector<1x8x512xf32> to vector<8x512xf32>
      %204 = arith.truncf %199 : vector<8x128xf32> to vector<8x128xbf16>
      %c0_90 = arith.constant 0 : index
      %c0_91 = arith.constant 0 : index
      %205 = vector.load %arg6[%c0_90, %c0_91] : memref<128x512xbf16, #tpu.memory_space<vmem>>, vector<128x512xbf16>
      %cst_92 = arith.constant dense<0.000000e+00> : vector<8x512xf32>
      %206 = tpu.matmul %204, %205, %cst_92 {dimension_numbers = #tpu.dot_dimension_numbers<[1], [0], [0], [1], [0, 0, 1, 1], [], []>} : vector<8x128xbf16>, vector<128x512xbf16>, vector<8x512xf32> -> vector<8x512xf32>
      %207 = arith.addf %203, %206 : vector<8x512xf32>
      %208 = vector.extract_strided_slice %207 {offsets = [0, 0], sizes = [8, 384], strides = [1, 1]} : vector<8x512xf32> to vector<8x384xf32>
      %209 = arith.negf %208 : vector<8x384xf32>
      %210 = math.exp %209 : vector<8x384xf32>
      %cst_93 = arith.constant 1.000000e+00 : f32
      %211 = vector.broadcast %cst_93 : f32 to vector<8x384xf32>
      %212 = arith.addf %211, %210 : vector<8x384xf32>
      %213 = arith.divf %211, %212 : vector<8x384xf32>
      %214 = vector.extract_strided_slice %213 {offsets = [0, 0], sizes = [8, 128], strides = [1, 1]} : vector<8x384xf32> to vector<8x128xf32>
      %215 = vector.extract_strided_slice %213 {offsets = [0, 128], sizes = [8, 128], strides = [1, 1]} : vector<8x384xf32> to vector<8x128xf32>
      %216 = vector.extract_strided_slice %213 {offsets = [0, 256], sizes = [8, 128], strides = [1, 1]} : vector<8x384xf32> to vector<8x128xf32>
      %217 = vector.extract_strided_slice %207 {offsets = [0, 384], sizes = [8, 128], strides = [1, 1]} : vector<8x512xf32> to vector<8x128xf32>
      %218 = math.tanh %217 : vector<8x128xf32>
      %219 = arith.mulf %215, %200 : vector<8x128xf32>
      %220 = arith.mulf %214, %218 : vector<8x128xf32>
      %221 = arith.addf %219, %220 : vector<8x128xf32>
      %222 = math.tanh %221 : vector<8x128xf32>
      %223 = arith.mulf %216, %222 : vector<8x128xf32>
      %224 = arith.addi %18, %c5_i32 : i32
      %225 = vector.broadcast %224 : i32 to vector<8x1xi32>
      %226 = arith.cmpi slt, %225, %17 : vector<8x1xi32>
      %227 = vector.shape_cast %226 : vector<8x1xi1> to vector<8x1xi1>
      %228 = vector.broadcast %227 : vector<8x1xi1> to vector<8x128xi1>
      %229 = arith.select %228, %223, %199 : vector<8x128xi1>, vector<8x128xf32>
      %c0_94 = arith.constant 0 : index
      %c0_95 = arith.constant 0 : index
      %230 = vector.load %arg8[%c0_94, %c0_95] : memref<8x128xf32, #tpu.memory_space<vmem>>, vector<8x128xf32>
      tpu.vector_store %arg8[%c0_94, %c0_95], %229 {strides = array<i32>} : memref<8x128xf32, #tpu.memory_space<vmem>>, vector<8x128xf32>,
      %231 = vector.shape_cast %226 : vector<8x1xi1> to vector<8x1xi1>
      %232 = vector.broadcast %231 : vector<8x1xi1> to vector<8x128xi1>
      %233 = arith.select %232, %221, %200 : vector<8x128xi1>, vector<8x128xf32>
      %c0_96 = arith.constant 0 : index
      %c0_97 = arith.constant 0 : index
      %234 = vector.load %arg9[%c0_96, %c0_97] : memref<8x128xf32, #tpu.memory_space<vmem>>, vector<8x128xf32>
      tpu.vector_store %arg9[%c0_96, %c0_97], %233 {strides = array<i32>} : memref<8x128xf32, #tpu.memory_space<vmem>>, vector<8x128xf32>,
      %c6_i32 = arith.constant 6 : i32
      %c0_98 = arith.constant 0 : index
      %c0_99 = arith.constant 0 : index
      %235 = vector.load %arg8[%c0_98, %c0_99] : memref<8x128xf32, #tpu.memory_space<vmem>>, vector<8x128xf32>
      %c0_100 = arith.constant 0 : index
      %c0_101 = arith.constant 0 : index
      %236 = vector.load %arg9[%c0_100, %c0_101] : memref<8x128xf32, #tpu.memory_space<vmem>>, vector<8x128xf32>
      %237 = arith.index_cast %c6_i32 : i32 to index
      %c0_102 = arith.constant 0 : index
      %c0_103 = arith.constant 0 : index
      %238 = vector.load %arg10[%237, %c0_102, %c0_103] : memref<8x8x512xf32, #tpu.memory_space<vmem>>, vector<1x8x512xf32>
      %239 = vector.shape_cast %238 : vector<1x8x512xf32> to vector<8x512xf32>
      %240 = arith.truncf %235 : vector<8x128xf32> to vector<8x128xbf16>
      %c0_104 = arith.constant 0 : index
      %c0_105 = arith.constant 0 : index
      %241 = vector.load %arg6[%c0_104, %c0_105] : memref<128x512xbf16, #tpu.memory_space<vmem>>, vector<128x512xbf16>
      %cst_106 = arith.constant dense<0.000000e+00> : vector<8x512xf32>
      %242 = tpu.matmul %240, %241, %cst_106 {dimension_numbers = #tpu.dot_dimension_numbers<[1], [0], [0], [1], [0, 0, 1, 1], [], []>} : vector<8x128xbf16>, vector<128x512xbf16>, vector<8x512xf32> -> vector<8x512xf32>
      %243 = arith.addf %239, %242 : vector<8x512xf32>
      %244 = vector.extract_strided_slice %243 {offsets = [0, 0], sizes = [8, 384], strides = [1, 1]} : vector<8x512xf32> to vector<8x384xf32>
      %245 = arith.negf %244 : vector<8x384xf32>
      %246 = math.exp %245 : vector<8x384xf32>
      %cst_107 = arith.constant 1.000000e+00 : f32
      %247 = vector.broadcast %cst_107 : f32 to vector<8x384xf32>
      %248 = arith.addf %247, %246 : vector<8x384xf32>
      %249 = arith.divf %247, %248 : vector<8x384xf32>
      %250 = vector.extract_strided_slice %249 {offsets = [0, 0], sizes = [8, 128], strides = [1, 1]} : vector<8x384xf32> to vector<8x128xf32>
      %251 = vector.extract_strided_slice %249 {offsets = [0, 128], sizes = [8, 128], strides = [1, 1]} : vector<8x384xf32> to vector<8x128xf32>
      %252 = vector.extract_strided_slice %249 {offsets = [0, 256], sizes = [8, 128], strides = [1, 1]} : vector<8x384xf32> to vector<8x128xf32>
      %253 = vector.extract_strided_slice %243 {offsets = [0, 384], sizes = [8, 128], strides = [1, 1]} : vector<8x512xf32> to vector<8x128xf32>
      %254 = math.tanh %253 : vector<8x128xf32>
      %255 = arith.mulf %251, %236 : vector<8x128xf32>
      %256 = arith.mulf %250, %254 : vector<8x128xf32>
      %257 = arith.addf %255, %256 : vector<8x128xf32>
      %258 = math.tanh %257 : vector<8x128xf32>
      %259 = arith.mulf %252, %258 : vector<8x128xf32>
      %260 = arith.addi %18, %c6_i32 : i32
      %261 = vector.broadcast %260 : i32 to vector<8x1xi32>
      %262 = arith.cmpi slt, %261, %17 : vector<8x1xi32>
      %263 = vector.shape_cast %262 : vector<8x1xi1> to vector<8x1xi1>
      %264 = vector.broadcast %263 : vector<8x1xi1> to vector<8x128xi1>
      %265 = arith.select %264, %259, %235 : vector<8x128xi1>, vector<8x128xf32>
      %c0_108 = arith.constant 0 : index
      %c0_109 = arith.constant 0 : index
      %266 = vector.load %arg8[%c0_108, %c0_109] : memref<8x128xf32, #tpu.memory_space<vmem>>, vector<8x128xf32>
      tpu.vector_store %arg8[%c0_108, %c0_109], %265 {strides = array<i32>} : memref<8x128xf32, #tpu.memory_space<vmem>>, vector<8x128xf32>,
      %267 = vector.shape_cast %262 : vector<8x1xi1> to vector<8x1xi1>
      %268 = vector.broadcast %267 : vector<8x1xi1> to vector<8x128xi1>
      %269 = arith.select %268, %257, %236 : vector<8x128xi1>, vector<8x128xf32>
      %c0_110 = arith.constant 0 : index
      %c0_111 = arith.constant 0 : index
      %270 = vector.load %arg9[%c0_110, %c0_111] : memref<8x128xf32, #tpu.memory_space<vmem>>, vector<8x128xf32>
      tpu.vector_store %arg9[%c0_110, %c0_111], %269 {strides = array<i32>} : memref<8x128xf32, #tpu.memory_space<vmem>>, vector<8x128xf32>,
      %c7_i32 = arith.constant 7 : i32
      %c0_112 = arith.constant 0 : index
      %c0_113 = arith.constant 0 : index
      %271 = vector.load %arg8[%c0_112, %c0_113] : memref<8x128xf32, #tpu.memory_space<vmem>>, vector<8x128xf32>
      %c0_114 = arith.constant 0 : index
      %c0_115 = arith.constant 0 : index
      %272 = vector.load %arg9[%c0_114, %c0_115] : memref<8x128xf32, #tpu.memory_space<vmem>>, vector<8x128xf32>
      %273 = arith.index_cast %c7_i32 : i32 to index
      %c0_116 = arith.constant 0 : index
      %c0_117 = arith.constant 0 : index
      %274 = vector.load %arg10[%273, %c0_116, %c0_117] : memref<8x8x512xf32, #tpu.memory_space<vmem>>, vector<1x8x512xf32>
      %275 = vector.shape_cast %274 : vector<1x8x512xf32> to vector<8x512xf32>
      %276 = arith.truncf %271 : vector<8x128xf32> to vector<8x128xbf16>
      %c0_118 = arith.constant 0 : index
      %c0_119 = arith.constant 0 : index
      %277 = vector.load %arg6[%c0_118, %c0_119] : memref<128x512xbf16, #tpu.memory_space<vmem>>, vector<128x512xbf16>
      %cst_120 = arith.constant dense<0.000000e+00> : vector<8x512xf32>
      %278 = tpu.matmul %276, %277, %cst_120 {dimension_numbers = #tpu.dot_dimension_numbers<[1], [0], [0], [1], [0, 0, 1, 1], [], []>} : vector<8x128xbf16>, vector<128x512xbf16>, vector<8x512xf32> -> vector<8x512xf32>
      %279 = arith.addf %275, %278 : vector<8x512xf32>
      %280 = vector.extract_strided_slice %279 {offsets = [0, 0], sizes = [8, 384], strides = [1, 1]} : vector<8x512xf32> to vector<8x384xf32>
      %281 = arith.negf %280 : vector<8x384xf32>
      %282 = math.exp %281 : vector<8x384xf32>
      %cst_121 = arith.constant 1.000000e+00 : f32
      %283 = vector.broadcast %cst_121 : f32 to vector<8x384xf32>
      %284 = arith.addf %283, %282 : vector<8x384xf32>
      %285 = arith.divf %283, %284 : vector<8x384xf32>
      %286 = vector.extract_strided_slice %285 {offsets = [0, 0], sizes = [8, 128], strides = [1, 1]} : vector<8x384xf32> to vector<8x128xf32>
      %287 = vector.extract_strided_slice %285 {offsets = [0, 128], sizes = [8, 128], strides = [1, 1]} : vector<8x384xf32> to vector<8x128xf32>
      %288 = vector.extract_strided_slice %285 {offsets = [0, 256], sizes = [8, 128], strides = [1, 1]} : vector<8x384xf32> to vector<8x128xf32>
      %289 = vector.extract_strided_slice %279 {offsets = [0, 384], sizes = [8, 128], strides = [1, 1]} : vector<8x512xf32> to vector<8x128xf32>
      %290 = math.tanh %289 : vector<8x128xf32>
      %291 = arith.mulf %287, %272 : vector<8x128xf32>
      %292 = arith.mulf %286, %290 : vector<8x128xf32>
      %293 = arith.addf %291, %292 : vector<8x128xf32>
      %294 = math.tanh %293 : vector<8x128xf32>
      %295 = arith.mulf %288, %294 : vector<8x128xf32>
      %296 = arith.addi %18, %c7_i32 : i32
      %297 = vector.broadcast %296 : i32 to vector<8x1xi32>
      %298 = arith.cmpi slt, %297, %17 : vector<8x1xi32>
      %299 = vector.shape_cast %298 : vector<8x1xi1> to vector<8x1xi1>
      %300 = vector.broadcast %299 : vector<8x1xi1> to vector<8x128xi1>
      %301 = arith.select %300, %295, %271 : vector<8x128xi1>, vector<8x128xf32>
      %c0_122 = arith.constant 0 : index
      %c0_123 = arith.constant 0 : index
      %302 = vector.load %arg8[%c0_122, %c0_123] : memref<8x128xf32, #tpu.memory_space<vmem>>, vector<8x128xf32>
      tpu.vector_store %arg8[%c0_122, %c0_123], %301 {strides = array<i32>} : memref<8x128xf32, #tpu.memory_space<vmem>>, vector<8x128xf32>,
      %303 = vector.shape_cast %298 : vector<8x1xi1> to vector<8x1xi1>
      %304 = vector.broadcast %303 : vector<8x1xi1> to vector<8x128xi1>
      %305 = arith.select %304, %293, %272 : vector<8x128xi1>, vector<8x128xf32>
      %c0_124 = arith.constant 0 : index
      %c0_125 = arith.constant 0 : index
      %306 = vector.load %arg9[%c0_124, %c0_125] : memref<8x128xf32, #tpu.memory_space<vmem>>, vector<8x128xf32>
      tpu.vector_store %arg9[%c0_124, %c0_125], %305 {strides = array<i32>} : memref<8x128xf32, #tpu.memory_space<vmem>>, vector<8x128xf32>,
      %c8_i32_126 = arith.constant 8 : i32
    } else {
    }
    return
  }
  func.func @transform_0(%arg0: i32, %arg1: i32, %arg2: memref<1xi32, #tpu.memory_space<smem>>) -> (i32, i32) {
    %c0_i32 = arith.constant 0 : i32
    %c0_i32_0 = arith.constant 0 : i32
    return %arg0, %c0_i32 : i32, i32
  }
  func.func @transform_1(%arg0: i32, %arg1: i32, %arg2: memref<1xi32, #tpu.memory_space<smem>>) -> (i32, i32, i32) {
    %0 = arith.index_cast %arg0 : i32 to index
    %1 = memref.load %arg2[%0] : memref<1xi32, #tpu.memory_space<smem>>
    %c1_i32 = arith.constant 1 : i32
    %2 = arith.subi %1, %c1_i32 : i32
    %c0_i32 = arith.constant 0 : i32
    %3 = arith.maxsi %2, %c0_i32 : i32
    %4 = arith.minsi %arg1, %3 : i32
    %c0_i32_0 = arith.constant 0 : i32
    %c0_i32_1 = arith.constant 0 : i32
    return %4, %arg0, %c0_i32_0 : i32, i32, i32
  }
  func.func @transform_2(%arg0: i32, %arg1: i32, %arg2: memref<1xi32, #tpu.memory_space<smem>>) -> (i32, i32) {
    %c0_i32 = arith.constant 0 : i32
    %c0_i32_0 = arith.constant 0 : i32
    %c0_i32_1 = arith.constant 0 : i32
    return %c0_i32, %c0_i32_0 : i32, i32
  }
  func.func @transform_3(%arg0: i32, %arg1: i32, %arg2: memref<1xi32, #tpu.memory_space<smem>>) -> (i32, i32) {
    %c0_i32 = arith.constant 0 : i32
    %c0_i32_0 = arith.constant 0 : i32
    %c0_i32_1 = arith.constant 0 : i32
    return %c0_i32, %c0_i32_0 : i32, i32
  }
  func.func @transform_4(%arg0: i32, %arg1: i32, %arg2: memref<1xi32, #tpu.memory_space<smem>>) -> (i32, i32) {
    %c0_i32 = arith.constant 0 : i32
    %c0_i32_0 = arith.constant 0 : i32
    %c0_i32_1 = arith.constant 0 : i32
    return %c0_i32, %c0_i32_0 : i32, i32
  }
  func.func @transform_5(%arg0: i32, %arg1: i32, %arg2: memref<1xi32, #tpu.memory_space<smem>>) -> (i32, i32) {
    %c0_i32 = arith.constant 0 : i32
    %c0_i32_0 = arith.constant 0 : i32
    return %arg0, %c0_i32 : i32, i32
  }
}

module attributes {stable_mosaic.version = 11 : i64} {
  func.func @_lstm_chunk_kernel(%arg0: i32, %arg1: i32, %arg2: memref<1xi32, #tpu.memory_space<smem>>, %arg3: memref<8x1xi32, #tpu.memory_space<vmem>>, %arg4: memref<8x8x128xbf16, #tpu.memory_space<vmem>>, %arg5: memref<128x512xbf16, #tpu.memory_space<vmem>>, %arg6: memref<128x512xbf16, #tpu.memory_space<vmem>>, %arg7: memref<1x512xf32, #tpu.memory_space<vmem>>, %arg8: memref<8x128xf32, #tpu.memory_space<vmem>>, %arg9: memref<8x128xf32, #tpu.memory_space<vmem>>, %arg10: memref<8x8x512xf32, #tpu.memory_space<vmem>>) attributes {dimension_semantics = [#tpu.dimension_semantics<parallel>, #tpu.dimension_semantics<arbitrary>], iteration_bounds = array<i64: 1, 1>, scalar_prefetch = 1 : i64, scratch_operands = 2 : i64, tpu.core_type = #tpu.core_type<tc>, window_params = [{transform_indices = @transform_0, window_bounds = array<i64: 8, 1>}, {transform_indices = @transform_1, window_bounds = array<i64: 8, 8, 128>}, {pipeline_mode = #tpu.pipeline_mode<synchronous>, transform_indices = @transform_2, window_bounds = array<i64: 128, 512>}, {pipeline_mode = #tpu.pipeline_mode<synchronous>, transform_indices = @transform_3, window_bounds = array<i64: 128, 512>}, {pipeline_mode = #tpu.pipeline_mode<synchronous>, transform_indices = @transform_4, window_bounds = array<i64: 1, 512>}, {transform_indices = @transform_5, window_bounds = array<i64: 8, 128>}]} {
    %c0_i32 = arith.constant 0 : i32
    %0 = arith.cmpi eq, %arg1, %c0_i32 : i32
    %1 = arith.extui %0 : i1 to i32
    %c0_i32_0 = arith.constant 0 : i32
    %2 = arith.cmpi ne, %1, %c0_i32_0 : i32
    scf.if %2 {
      %cst = arith.constant 0.000000e+00 : f32
      %8 = vector.broadcast %cst : f32 to vector<8x128xf32>
      %c0 = arith.constant 0 : index
      %c0_2 = arith.constant 0 : index
      %9 = vector.load %arg8[%c0, %c0_2] : memref<8x128xf32, #tpu.memory_space<vmem>>, vector<8x128xf32>
      tpu.vector_store %arg8[%c0, %c0_2], %8 {strides = array<i32>} : memref<8x128xf32, #tpu.memory_space<vmem>>, vector<8x128xf32>,
      %cst_3 = arith.constant 0.000000e+00 : f32
      %10 = vector.broadcast %cst_3 : f32 to vector<8x128xf32>
      %c0_4 = arith.constant 0 : index
      %c0_5 = arith.constant 0 : index
      %11 = vector.load %arg9[%c0_4, %c0_5] : memref<8x128xf32, #tpu.memory_space<vmem>>, vector<8x128xf32>
      tpu.vector_store %arg9[%c0_4, %c0_5], %10 {strides = array<i32>} : memref<8x128xf32, #tpu.memory_space<vmem>>, vector<8x128xf32>,
    } else {
    }
    %3 = arith.index_cast %arg0 : i32 to index
    %4 = memref.load %arg2[%3] : memref<1xi32, #tpu.memory_space<smem>>
    %5 = arith.cmpi slt, %arg1, %4 : i32
    %6 = arith.extui %5 : i1 to i32
    %c0_i32_1 = arith.constant 0 : i32
    %7 = arith.cmpi ne, %6, %c0_i32_1 : i32
    scf.if %7 {
      %c0 = arith.constant 0 : index
      %c0_2 = arith.constant 0 : index
      %c0_3 = arith.constant 0 : index
      %8 = vector.load %arg4[%c0, %c0_2, %c0_3] : memref<8x8x128xbf16, #tpu.memory_space<vmem>>, vector<8x8x128xbf16>
      %9 = vector.shape_cast %8 : vector<8x8x128xbf16> to vector<64x128xbf16>
      %c0_4 = arith.constant 0 : index
      %c0_5 = arith.constant 0 : index
      %10 = vector.load %arg5[%c0_4, %c0_5] : memref<128x512xbf16, #tpu.memory_space<vmem>>, vector<128x512xbf16>
      %cst = arith.constant dense<0.000000e+00> : vector<64x512xf32>
      %11 = tpu.matmul %9, %10, %cst {dimension_numbers = #tpu.dot_dimension_numbers<[1], [0], [0], [1], [0, 0, 1, 1], [], []>} : vector<64x128xbf16>, vector<128x512xbf16>, vector<64x512xf32> -> vector<64x512xf32>
      %c0_6 = arith.constant 0 : index
      %c0_7 = arith.constant 0 : index
      %12 = vector.load %arg7[%c0_6, %c0_7] : memref<1x512xf32, #tpu.memory_space<vmem>>, vector<1x512xf32>
      %13 = vector.broadcast %12 : vector<1x512xf32> to vector<64x512xf32>
      %14 = arith.addf %11, %13 : vector<64x512xf32>
      %15 = vector.shape_cast %14 : vector<64x512xf32> to vector<8x8x512xf32>
      %c0_8 = arith.constant 0 : index
      %c0_9 = arith.constant 0 : index
      %c0_10 = arith.constant 0 : index
      %16 = vector.load %arg10[%c0_8, %c0_9, %c0_10] : memref<8x8x512xf32, #tpu.memory_space<vmem>>, vector<8x8x512xf32>
      tpu.vector_store %arg10[%c0_8, %c0_9, %c0_10], %15 {strides = array<i32>} : memref<8x8x512xf32, #tpu.memory_space<vmem>>, vector<8x8x512xf32>,
      %c0_11 = arith.constant 0 : index
      %c0_12 = arith.constant 0 : index
      %17 = vector.load %arg3[%c0_11, %c0_12] : memref<8x1xi32, #tpu.memory_space<vmem>>, vector<8x1xi32>
      %c8_i32 = arith.constant 8 : i32
      %18 = arith.muli %arg1, %c8_i32 : i32
      %c0_i32_13 = arith.constant 0 : i32
      %c0_14 = arith.constant 0 : index
      %c0_15 = arith.constant 0 : index
      %19 = vector.load %arg8[%c0_14, %c0_15] : memref<8x128xf32, #tpu.memory_space<vmem>>, vector<8x128xf32>
      %c0_16 = arith.constant 0 : index
      %c0_17 = arith.constant 0 : index
      %20 = vector.load %arg9[%c0_16, %c0_17] : memref<8x128xf32, #tpu.memory_space<vmem>>, vector<8x128xf32>
      %21 = arith.index_cast %c0_i32_13 : i32 to index
      %c0_18 = arith.constant 0 : index
      %c0_19 = arith.constant 0 : index
      %22 = vector.load %arg10[%21, %c0_18, %c0_19] : memref<8x8x512xf32, #tpu.memory_space<vmem>>, vector<1x8x512xf32>
      %23 = vector.shape_cast %22 : vector<1x8x512xf32> to vector<8x512xf32>
      %24 = arith.truncf %19 : vector<8x128xf32> to vector<8x128xbf16>
      %c0_20 = arith.constant 0 : index
      %c0_21 = arith.constant 0 : index
      %25 = vector.load %arg6[%c0_20, %c0_21] : memref<128x512xbf16, #tpu.memory_space<vmem>>, vector<128x512xbf16>
      %cst_22 = arith.constant dense<0.000000e+00> : vector<8x512xf32>
      %26 = tpu.matmul %24, %25, %cst_22 {dimension_numbers = #tpu.dot_dimension_numbers<[1], [0], [0], [1], [0, 0, 1, 1], [], []>} : vector<8x128xbf16>, vector<128x512xbf16>, vector<8x512xf32> -> vector<8x512xf32>
      %27 = arith.addf %23, %26 : vector<8x512xf32>
      %28 = vector.extract_strided_slice %27 {offsets = [0, 0], sizes = [8, 384], strides = [1, 1]} : vector<8x512xf32> to vector<8x384xf32>
      %29 = arith.negf %28 : vector<8x384xf32>
      %30 = math.exp %29 : vector<8x384xf32>
      %cst_23 = arith.constant 1.000000e+00 : f32
      %31 = vector.broadcast %cst_23 : f32 to vector<8x384xf32>
      %32 = arith.addf %31, %30 : vector<8x384xf32>
      %33 = arith.divf %31, %32 : vector<8x384xf32>
      %34 = vector.extract_strided_slice %33 {offsets = [0, 0], sizes = [8, 128], strides = [1, 1]} : vector<8x384xf32> to vector<8x128xf32>
      %35 = vector.extract_strided_slice %33 {offsets = [0, 128], sizes = [8, 128], strides = [1, 1]} : vector<8x384xf32> to vector<8x128xf32>
      %36 = vector.extract_strided_slice %33 {offsets = [0, 256], sizes = [8, 128], strides = [1, 1]} : vector<8x384xf32> to vector<8x128xf32>
      %37 = vector.extract_strided_slice %27 {offsets = [0, 384], sizes = [8, 128], strides = [1, 1]} : vector<8x512xf32> to vector<8x128xf32>
      %38 = math.tanh %37 : vector<8x128xf32>
      %39 = arith.mulf %35, %20 : vector<8x128xf32>
      %40 = arith.mulf %34, %38 : vector<8x128xf32>
      %41 = arith.addf %39, %40 : vector<8x128xf32>
      %42 = math.tanh %41 : vector<8x128xf32>
      %43 = arith.mulf %36, %42 : vector<8x128xf32>
      %44 = arith.addi %18, %c0_i32_13 : i32
      %45 = vector.broadcast %44 : i32 to vector<8x1xi32>
      %46 = arith.cmpi slt, %45, %17 : vector<8x1xi32>
      %47 = vector.shape_cast %46 : vector<8x1xi1> to vector<8x1xi1>
      %48 = vector.broadcast %47 : vector<8x1xi1> to vector<8x128xi1>
      %49 = arith.select %48, %43, %19 : vector<8x128xi1>, vector<8x128xf32>
      %c0_24 = arith.constant 0 : index
      %c0_25 = arith.constant 0 : index
      %50 = vector.load %arg8[%c0_24, %c0_25] : memref<8x128xf32, #tpu.memory_space<vmem>>, vector<8x128xf32>
      tpu.vector_store %arg8[%c0_24, %c0_25], %49 {strides = array<i32>} : memref<8x128xf32, #tpu.memory_space<vmem>>, vector<8x128xf32>,
      %51 = vector.shape_cast %46 : vector<8x1xi1> to vector<8x1xi1>
      %52 = vector.broadcast %51 : vector<8x1xi1> to vector<8x128xi1>
      %53 = arith.select %52, %41, %20 : vector<8x128xi1>, vector<8x128xf32>
      %c0_26 = arith.constant 0 : index
      %c0_27 = arith.constant 0 : index
      %54 = vector.load %arg9[%c0_26, %c0_27] : memref<8x128xf32, #tpu.memory_space<vmem>>, vector<8x128xf32>
      tpu.vector_store %arg9[%c0_26, %c0_27], %53 {strides = array<i32>} : memref<8x128xf32, #tpu.memory_space<vmem>>, vector<8x128xf32>,
      %c1_i32 = arith.constant 1 : i32
      %c0_28 = arith.constant 0 : index
      %c0_29 = arith.constant 0 : index
      %55 = vector.load %arg8[%c0_28, %c0_29] : memref<8x128xf32, #tpu.memory_space<vmem>>, vector<8x128xf32>
      %c0_30 = arith.constant 0 : index
      %c0_31 = arith.constant 0 : index
      %56 = vector.load %arg9[%c0_30, %c0_31] : memref<8x128xf32, #tpu.memory_space<vmem>>, vector<8x128xf32>
      %57 = arith.index_cast %c1_i32 : i32 to index
      %c0_32 = arith.constant 0 : index
      %c0_33 = arith.constant 0 : index
      %58 = vector.load %arg10[%57, %c0_32, %c0_33] : memref<8x8x512xf32, #tpu.memory_space<vmem>>, vector<1x8x512xf32>
      %59 = vector.shape_cast %58 : vector<1x8x512xf32> to vector<8x512xf32>
      %60 = arith.truncf %55 : vector<8x128xf32> to vector<8x128xbf16>
      %c0_34 = arith.constant 0 : index
      %c0_35 = arith.constant 0 : index
      %61 = vector.load %arg6[%c0_34, %c0_35] : memref<128x512xbf16, #tpu.memory_space<vmem>>, vector<128x512xbf16>
      %cst_36 = arith.constant dense<0.000000e+00> : vector<8x512xf32>
      %62 = tpu.matmul %60, %61, %cst_36 {dimension_numbers = #tpu.dot_dimension_numbers<[1], [0], [0], [1], [0, 0, 1, 1], [], []>} : vector<8x128xbf16>, vector<128x512xbf16>, vector<8x512xf32> -> vector<8x512xf32>
      %63 = arith.addf %59, %62 : vector<8x512xf32>
      %64 = vector.extract_strided_slice %63 {offsets = [0, 0], sizes = [8, 384], strides = [1, 1]} : vector<8x512xf32> to vector<8x384xf32>
      %65 = arith.negf %64 : vector<8x384xf32>
      %66 = math.exp %65 : vector<8x384xf32>
      %cst_37 = arith.constant 1.000000e+00 : f32
      %67 = vector.broadcast %cst_37 : f32 to vector<8x384xf32>
      %68 = arith.addf %67, %66 : vector<8x384xf32>
      %69 = arith.divf %67, %68 : vector<8x384xf32>
      %70 = vector.extract_strided_slice %69 {offsets = [0, 0], sizes = [8, 128], strides = [1, 1]} : vector<8x384xf32> to vector<8x128xf32>
      %71 = vector.extract_strided_slice %69 {offsets = [0, 128], sizes = [8, 128], strides = [1, 1]} : vector<8x384xf32> to vector<8x128xf32>
      %72 = vector.extract_strided_slice %69 {offsets = [0, 256], sizes = [8, 128], strides = [1, 1]} : vector<8x384xf32> to vector<8x128xf32>
      %73 = vector.extract_strided_slice %63 {offsets = [0, 384], sizes = [8, 128], strides = [1, 1]} : vector<8x512xf32> to vector<8x128xf32>
      %74 = math.tanh %73 : vector<8x128xf32>
      %75 = arith.mulf %71, %56 : vector<8x128xf32>
      %76 = arith.mulf %70, %74 : vector<8x128xf32>
      %77 = arith.addf %75, %76 : vector<8x128xf32>
      %78 = math.tanh %77 : vector<8x128xf32>
      %79 = arith.mulf %72, %78 : vector<8x128xf32>
      %80 = arith.addi %18, %c1_i32 : i32
      %81 = vector.broadcast %80 : i32 to vector<8x1xi32>
      %82 = arith.cmpi slt, %81, %17 : vector<8x1xi32>
      %83 = vector.shape_cast %82 : vector<8x1xi1> to vector<8x1xi1>
      %84 = vector.broadcast %83 : vector<8x1xi1> to vector<8x128xi1>
      %85 = arith.select %84, %79, %55 : vector<8x128xi1>, vector<8x128xf32>
      %c0_38 = arith.constant 0 : index
      %c0_39 = arith.constant 0 : index
      %86 = vector.load %arg8[%c0_38, %c0_39] : memref<8x128xf32, #tpu.memory_space<vmem>>, vector<8x128xf32>
      tpu.vector_store %arg8[%c0_38, %c0_39], %85 {strides = array<i32>} : memref<8x128xf32, #tpu.memory_space<vmem>>, vector<8x128xf32>,
      %87 = vector.shape_cast %82 : vector<8x1xi1> to vector<8x1xi1>
      %88 = vector.broadcast %87 : vector<8x1xi1> to vector<8x128xi1>
      %89 = arith.select %88, %77, %56 : vector<8x128xi1>, vector<8x128xf32>
      %c0_40 = arith.constant 0 : index
      %c0_41 = arith.constant 0 : index
      %90 = vector.load %arg9[%c0_40, %c0_41] : memref<8x128xf32, #tpu.memory_space<vmem>>, vector<8x128xf32>
      tpu.vector_store %arg9[%c0_40, %c0_41], %89 {strides = array<i32>} : memref<8x128xf32, #tpu.memory_space<vmem>>, vector<8x128xf32>,
      %c2_i32 = arith.constant 2 : i32
      %c0_42 = arith.constant 0 : index
      %c0_43 = arith.constant 0 : index
      %91 = vector.load %arg8[%c0_42, %c0_43] : memref<8x128xf32, #tpu.memory_space<vmem>>, vector<8x128xf32>
      %c0_44 = arith.constant 0 : index
      %c0_45 = arith.constant 0 : index
      %92 = vector.load %arg9[%c0_44, %c0_45] : memref<8x128xf32, #tpu.memory_space<vmem>>, vector<8x128xf32>
      %93 = arith.index_cast %c2_i32 : i32 to index
      %c0_46 = arith.constant 0 : index
      %c0_47 = arith.constant 0 : index
      %94 = vector.load %arg10[%93, %c0_46, %c0_47] : memref<8x8x512xf32, #tpu.memory_space<vmem>>, vector<1x8x512xf32>
      %95 = vector.shape_cast %94 : vector<1x8x512xf32> to vector<8x512xf32>
      %96 = arith.truncf %91 : vector<8x128xf32> to vector<8x128xbf16>
      %c0_48 = arith.constant 0 : index
      %c0_49 = arith.constant 0 : index
      %97 = vector.load %arg6[%c0_48, %c0_49] : memref<128x512xbf16, #tpu.memory_space<vmem>>, vector<128x512xbf16>
      %cst_50 = arith.constant dense<0.000000e+00> : vector<8x512xf32>
      %98 = tpu.matmul %96, %97, %cst_50 {dimension_numbers = #tpu.dot_dimension_numbers<[1], [0], [0], [1], [0, 0, 1, 1], [], []>} : vector<8x128xbf16>, vector<128x512xbf16>, vector<8x512xf32> -> vector<8x512xf32>
      %99 = arith.addf %95, %98 : vector<8x512xf32>
      %100 = vector.extract_strided_slice %99 {offsets = [0, 0], sizes = [8, 384], strides = [1, 1]} : vector<8x512xf32> to vector<8x384xf32>
      %101 = arith.negf %100 : vector<8x384xf32>
      %102 = math.exp %101 : vector<8x384xf32>
      %cst_51 = arith.constant 1.000000e+00 : f32
      %103 = vector.broadcast %cst_51 : f32 to vector<8x384xf32>
      %104 = arith.addf %103, %102 : vector<8x384xf32>
      %105 = arith.divf %103, %104 : vector<8x384xf32>
      %106 = vector.extract_strided_slice %105 {offsets = [0, 0], sizes = [8, 128], strides = [1, 1]} : vector<8x384xf32> to vector<8x128xf32>
      %107 = vector.extract_strided_slice %105 {offsets = [0, 128], sizes = [8, 128], strides = [1, 1]} : vector<8x384xf32> to vector<8x128xf32>
      %108 = vector.extract_strided_slice %105 {offsets = [0, 256], sizes = [8, 128], strides = [1, 1]} : vector<8x384xf32> to vector<8x128xf32>
      %109 = vector.extract_strided_slice %99 {offsets = [0, 384], sizes = [8, 128], strides = [1, 1]} : vector<8x512xf32> to vector<8x128xf32>
      %110 = math.tanh %109 : vector<8x128xf32>
      %111 = arith.mulf %107, %92 : vector<8x128xf32>
      %112 = arith.mulf %106, %110 : vector<8x128xf32>
      %113 = arith.addf %111, %112 : vector<8x128xf32>
      %114 = math.tanh %113 : vector<8x128xf32>
      %115 = arith.mulf %108, %114 : vector<8x128xf32>
      %116 = arith.addi %18, %c2_i32 : i32
      %117 = vector.broadcast %116 : i32 to vector<8x1xi32>
      %118 = arith.cmpi slt, %117, %17 : vector<8x1xi32>
      %119 = vector.shape_cast %118 : vector<8x1xi1> to vector<8x1xi1>
      %120 = vector.broadcast %119 : vector<8x1xi1> to vector<8x128xi1>
      %121 = arith.select %120, %115, %91 : vector<8x128xi1>, vector<8x128xf32>
      %c0_52 = arith.constant 0 : index
      %c0_53 = arith.constant 0 : index
      %122 = vector.load %arg8[%c0_52, %c0_53] : memref<8x128xf32, #tpu.memory_space<vmem>>, vector<8x128xf32>
      tpu.vector_store %arg8[%c0_52, %c0_53], %121 {strides = array<i32>} : memref<8x128xf32, #tpu.memory_space<vmem>>, vector<8x128xf32>,
      %123 = vector.shape_cast %118 : vector<8x1xi1> to vector<8x1xi1>
      %124 = vector.broadcast %123 : vector<8x1xi1> to vector<8x128xi1>
      %125 = arith.select %124, %113, %92 : vector<8x128xi1>, vector<8x128xf32>
      %c0_54 = arith.constant 0 : index
      %c0_55 = arith.constant 0 : index
      %126 = vector.load %arg9[%c0_54, %c0_55] : memref<8x128xf32, #tpu.memory_space<vmem>>, vector<8x128xf32>
      tpu.vector_store %arg9[%c0_54, %c0_55], %125 {strides = array<i32>} : memref<8x128xf32, #tpu.memory_space<vmem>>, vector<8x128xf32>,
      %c3_i32 = arith.constant 3 : i32
      %c0_56 = arith.constant 0 : index
      %c0_57 = arith.constant 0 : index
      %127 = vector.load %arg8[%c0_56, %c0_57] : memref<8x128xf32, #tpu.memory_space<vmem>>, vector<8x128xf32>
      %c0_58 = arith.constant 0 : index
      %c0_59 = arith.constant 0 : index
      %128 = vector.load %arg9[%c0_58, %c0_59] : memref<8x128xf32, #tpu.memory_space<vmem>>, vector<8x128xf32>
      %129 = arith.index_cast %c3_i32 : i32 to index
      %c0_60 = arith.constant 0 : index
      %c0_61 = arith.constant 0 : index
      %130 = vector.load %arg10[%129, %c0_60, %c0_61] : memref<8x8x512xf32, #tpu.memory_space<vmem>>, vector<1x8x512xf32>
      %131 = vector.shape_cast %130 : vector<1x8x512xf32> to vector<8x512xf32>
      %132 = arith.truncf %127 : vector<8x128xf32> to vector<8x128xbf16>
      %c0_62 = arith.constant 0 : index
      %c0_63 = arith.constant 0 : index
      %133 = vector.load %arg6[%c0_62, %c0_63] : memref<128x512xbf16, #tpu.memory_space<vmem>>, vector<128x512xbf16>
      %cst_64 = arith.constant dense<0.000000e+00> : vector<8x512xf32>
      %134 = tpu.matmul %132, %133, %cst_64 {dimension_numbers = #tpu.dot_dimension_numbers<[1], [0], [0], [1], [0, 0, 1, 1], [], []>} : vector<8x128xbf16>, vector<128x512xbf16>, vector<8x512xf32> -> vector<8x512xf32>
      %135 = arith.addf %131, %134 : vector<8x512xf32>
      %136 = vector.extract_strided_slice %135 {offsets = [0, 0], sizes = [8, 384], strides = [1, 1]} : vector<8x512xf32> to vector<8x384xf32>
      %137 = arith.negf %136 : vector<8x384xf32>
      %138 = math.exp %137 : vector<8x384xf32>
      %cst_65 = arith.constant 1.000000e+00 : f32
      %139 = vector.broadcast %cst_65 : f32 to vector<8x384xf32>
      %140 = arith.addf %139, %138 : vector<8x384xf32>
      %141 = arith.divf %139, %140 : vector<8x384xf32>
      %142 = vector.extract_strided_slice %141 {offsets = [0, 0], sizes = [8, 128], strides = [1, 1]} : vector<8x384xf32> to vector<8x128xf32>
      %143 = vector.extract_strided_slice %141 {offsets = [0, 128], sizes = [8, 128], strides = [1, 1]} : vector<8x384xf32> to vector<8x128xf32>
      %144 = vector.extract_strided_slice %141 {offsets = [0, 256], sizes = [8, 128], strides = [1, 1]} : vector<8x384xf32> to vector<8x128xf32>
      %145 = vector.extract_strided_slice %135 {offsets = [0, 384], sizes = [8, 128], strides = [1, 1]} : vector<8x512xf32> to vector<8x128xf32>
      %146 = math.tanh %145 : vector<8x128xf32>
      %147 = arith.mulf %143, %128 : vector<8x128xf32>
      %148 = arith.mulf %142, %146 : vector<8x128xf32>
      %149 = arith.addf %147, %148 : vector<8x128xf32>
      %150 = math.tanh %149 : vector<8x128xf32>
      %151 = arith.mulf %144, %150 : vector<8x128xf32>
      %152 = arith.addi %18, %c3_i32 : i32
      %153 = vector.broadcast %152 : i32 to vector<8x1xi32>
      %154 = arith.cmpi slt, %153, %17 : vector<8x1xi32>
      %155 = vector.shape_cast %154 : vector<8x1xi1> to vector<8x1xi1>
      %156 = vector.broadcast %155 : vector<8x1xi1> to vector<8x128xi1>
      %157 = arith.select %156, %151, %127 : vector<8x128xi1>, vector<8x128xf32>
      %c0_66 = arith.constant 0 : index
      %c0_67 = arith.constant 0 : index
      %158 = vector.load %arg8[%c0_66, %c0_67] : memref<8x128xf32, #tpu.memory_space<vmem>>, vector<8x128xf32>
      tpu.vector_store %arg8[%c0_66, %c0_67], %157 {strides = array<i32>} : memref<8x128xf32, #tpu.memory_space<vmem>>, vector<8x128xf32>,
      %159 = vector.shape_cast %154 : vector<8x1xi1> to vector<8x1xi1>
      %160 = vector.broadcast %159 : vector<8x1xi1> to vector<8x128xi1>
      %161 = arith.select %160, %149, %128 : vector<8x128xi1>, vector<8x128xf32>
      %c0_68 = arith.constant 0 : index
      %c0_69 = arith.constant 0 : index
      %162 = vector.load %arg9[%c0_68, %c0_69] : memref<8x128xf32, #tpu.memory_space<vmem>>, vector<8x128xf32>
      tpu.vector_store %arg9[%c0_68, %c0_69], %161 {strides = array<i32>} : memref<8x128xf32, #tpu.memory_space<vmem>>, vector<8x128xf32>,
      %c4_i32 = arith.constant 4 : i32
      %c0_70 = arith.constant 0 : index
      %c0_71 = arith.constant 0 : index
      %163 = vector.load %arg8[%c0_70, %c0_71] : memref<8x128xf32, #tpu.memory_space<vmem>>, vector<8x128xf32>
      %c0_72 = arith.constant 0 : index
      %c0_73 = arith.constant 0 : index
      %164 = vector.load %arg9[%c0_72, %c0_73] : memref<8x128xf32, #tpu.memory_space<vmem>>, vector<8x128xf32>
      %165 = arith.index_cast %c4_i32 : i32 to index
      %c0_74 = arith.constant 0 : index
      %c0_75 = arith.constant 0 : index
      %166 = vector.load %arg10[%165, %c0_74, %c0_75] : memref<8x8x512xf32, #tpu.memory_space<vmem>>, vector<1x8x512xf32>
      %167 = vector.shape_cast %166 : vector<1x8x512xf32> to vector<8x512xf32>
      %168 = arith.truncf %163 : vector<8x128xf32> to vector<8x128xbf16>
      %c0_76 = arith.constant 0 : index
      %c0_77 = arith.constant 0 : index
      %169 = vector.load %arg6[%c0_76, %c0_77] : memref<128x512xbf16, #tpu.memory_space<vmem>>, vector<128x512xbf16>
      %cst_78 = arith.constant dense<0.000000e+00> : vector<8x512xf32>
      %170 = tpu.matmul %168, %169, %cst_78 {dimension_numbers = #tpu.dot_dimension_numbers<[1], [0], [0], [1], [0, 0, 1, 1], [], []>} : vector<8x128xbf16>, vector<128x512xbf16>, vector<8x512xf32> -> vector<8x512xf32>
      %171 = arith.addf %167, %170 : vector<8x512xf32>
      %172 = vector.extract_strided_slice %171 {offsets = [0, 0], sizes = [8, 384], strides = [1, 1]} : vector<8x512xf32> to vector<8x384xf32>
      %173 = arith.negf %172 : vector<8x384xf32>
      %174 = math.exp %173 : vector<8x384xf32>
      %cst_79 = arith.constant 1.000000e+00 : f32
      %175 = vector.broadcast %cst_79 : f32 to vector<8x384xf32>
      %176 = arith.addf %175, %174 : vector<8x384xf32>
      %177 = arith.divf %175, %176 : vector<8x384xf32>
      %178 = vector.extract_strided_slice %177 {offsets = [0, 0], sizes = [8, 128], strides = [1, 1]} : vector<8x384xf32> to vector<8x128xf32>
      %179 = vector.extract_strided_slice %177 {offsets = [0, 128], sizes = [8, 128], strides = [1, 1]} : vector<8x384xf32> to vector<8x128xf32>
      %180 = vector.extract_strided_slice %177 {offsets = [0, 256], sizes = [8, 128], strides = [1, 1]} : vector<8x384xf32> to vector<8x128xf32>
      %181 = vector.extract_strided_slice %171 {offsets = [0, 384], sizes = [8, 128], strides = [1, 1]} : vector<8x512xf32> to vector<8x128xf32>
      %182 = math.tanh %181 : vector<8x128xf32>
      %183 = arith.mulf %179, %164 : vector<8x128xf32>
      %184 = arith.mulf %178, %182 : vector<8x128xf32>
      %185 = arith.addf %183, %184 : vector<8x128xf32>
      %186 = math.tanh %185 : vector<8x128xf32>
      %187 = arith.mulf %180, %186 : vector<8x128xf32>
      %188 = arith.addi %18, %c4_i32 : i32
      %189 = vector.broadcast %188 : i32 to vector<8x1xi32>
      %190 = arith.cmpi slt, %189, %17 : vector<8x1xi32>
      %191 = vector.shape_cast %190 : vector<8x1xi1> to vector<8x1xi1>
      %192 = vector.broadcast %191 : vector<8x1xi1> to vector<8x128xi1>
      %193 = arith.select %192, %187, %163 : vector<8x128xi1>, vector<8x128xf32>
      %c0_80 = arith.constant 0 : index
      %c0_81 = arith.constant 0 : index
      %194 = vector.load %arg8[%c0_80, %c0_81] : memref<8x128xf32, #tpu.memory_space<vmem>>, vector<8x128xf32>
      tpu.vector_store %arg8[%c0_80, %c0_81], %193 {strides = array<i32>} : memref<8x128xf32, #tpu.memory_space<vmem>>, vector<8x128xf32>,
      %195 = vector.shape_cast %190 : vector<8x1xi1> to vector<8x1xi1>
      %196 = vector.broadcast %195 : vector<8x1xi1> to vector<8x128xi1>
      %197 = arith.select %196, %185, %164 : vector<8x128xi1>, vector<8x128xf32>
      %c0_82 = arith.constant 0 : index
      %c0_83 = arith.constant 0 : index
      %198 = vector.load %arg9[%c0_82, %c0_83] : memref<8x128xf32, #tpu.memory_space<vmem>>, vector<8x128xf32>
      tpu.vector_store %arg9[%c0_82, %c0_83], %197 {strides = array<i32>} : memref<8x128xf32, #tpu.memory_space<vmem>>, vector<8x128xf32>,
      %c5_i32 = arith.constant 5 : i32
      %c0_84 = arith.constant 0 : index
      %c0_85 = arith.constant 0 : index
      %199 = vector.load %arg8[%c0_84, %c0_85] : memref<8x128xf32, #tpu.memory_space<vmem>>, vector<8x128xf32>
      %c0_86 = arith.constant 0 : index
      %c0_87 = arith.constant 0 : index
      %200 = vector.load %arg9[%c0_86, %c0_87] : memref<8x128xf32, #tpu.memory_space<vmem>>, vector<8x128xf32>
      %201 = arith.index_cast %c5_i32 : i32 to index
      %c0_88 = arith.constant 0 : index
      %c0_89 = arith.constant 0 : index
      %202 = vector.load %arg10[%201, %c0_88, %c0_89] : memref<8x8x512xf32, #tpu.memory_space<vmem>>, vector<1x8x512xf32>
      %203 = vector.shape_cast %202 : vector<1x8x512xf32> to vector<8x512xf32>
      %204 = arith.truncf %199 : vector<8x128xf32> to vector<8x128xbf16>
      %c0_90 = arith.constant 0 : index
      %c0_91 = arith.constant 0 : index
      %205 = vector.load %arg6[%c0_90, %c0_91] : memref<128x512xbf16, #tpu.memory_space<vmem>>, vector<128x512xbf16>
      %cst_92 = arith.constant dense<0.000000e+00> : vector<8x512xf32>
      %206 = tpu.matmul %204, %205, %cst_92 {dimension_numbers = #tpu.dot_dimension_numbers<[1], [0], [0], [1], [0, 0, 1, 1], [], []>} : vector<8x128xbf16>, vector<128x512xbf16>, vector<8x512xf32> -> vector<8x512xf32>
      %207 = arith.addf %203, %206 : vector<8x512xf32>
      %208 = vector.extract_strided_slice %207 {offsets = [0, 0], sizes = [8, 384], strides = [1, 1]} : vector<8x512xf32> to vector<8x384xf32>
      %209 = arith.negf %208 : vector<8x384xf32>
      %210 = math.exp %209 : vector<8x384xf32>
      %cst_93 = arith.constant 1.000000e+00 : f32
      %211 = vector.broadcast %cst_93 : f32 to vector<8x384xf32>
      %212 = arith.addf %211, %210 : vector<8x384xf32>
      %213 = arith.divf %211, %212 : vector<8x384xf32>
      %214 = vector.extract_strided_slice %213 {offsets = [0, 0], sizes = [8, 128], strides = [1, 1]} : vector<8x384xf32> to vector<8x128xf32>
      %215 = vector.extract_strided_slice %213 {offsets = [0, 128], sizes = [8, 128], strides = [1, 1]} : vector<8x384xf32> to vector<8x128xf32>
      %216 = vector.extract_strided_slice %213 {offsets = [0, 256], sizes = [8, 128], strides = [1, 1]} : vector<8x384xf32> to vector<8x128xf32>
      %217 = vector.extract_strided_slice %207 {offsets = [0, 384], sizes = [8, 128], strides = [1, 1]} : vector<8x512xf32> to vector<8x128xf32>
      %218 = math.tanh %217 : vector<8x128xf32>
      %219 = arith.mulf %215, %200 : vector<8x128xf32>
      %220 = arith.mulf %214, %218 : vector<8x128xf32>
      %221 = arith.addf %219, %220 : vector<8x128xf32>
      %222 = math.tanh %221 : vector<8x128xf32>
      %223 = arith.mulf %216, %222 : vector<8x128xf32>
      %224 = arith.addi %18, %c5_i32 : i32
      %225 = vector.broadcast %224 : i32 to vector<8x1xi32>
      %226 = arith.cmpi slt, %225, %17 : vector<8x1xi32>
      %227 = vector.shape_cast %226 : vector<8x1xi1> to vector<8x1xi1>
      %228 = vector.broadcast %227 : vector<8x1xi1> to vector<8x128xi1>
      %229 = arith.select %228, %223, %199 : vector<8x128xi1>, vector<8x128xf32>
      %c0_94 = arith.constant 0 : index
      %c0_95 = arith.constant 0 : index
      %230 = vector.load %arg8[%c0_94, %c0_95] : memref<8x128xf32, #tpu.memory_space<vmem>>, vector<8x128xf32>
      tpu.vector_store %arg8[%c0_94, %c0_95], %229 {strides = array<i32>} : memref<8x128xf32, #tpu.memory_space<vmem>>, vector<8x128xf32>,
      %231 = vector.shape_cast %226 : vector<8x1xi1> to vector<8x1xi1>
      %232 = vector.broadcast %231 : vector<8x1xi1> to vector<8x128xi1>
      %233 = arith.select %232, %221, %200 : vector<8x128xi1>, vector<8x128xf32>
      %c0_96 = arith.constant 0 : index
      %c0_97 = arith.constant 0 : index
      %234 = vector.load %arg9[%c0_96, %c0_97] : memref<8x128xf32, #tpu.memory_space<vmem>>, vector<8x128xf32>
      tpu.vector_store %arg9[%c0_96, %c0_97], %233 {strides = array<i32>} : memref<8x128xf32, #tpu.memory_space<vmem>>, vector<8x128xf32>,
      %c6_i32 = arith.constant 6 : i32
      %c0_98 = arith.constant 0 : index
      %c0_99 = arith.constant 0 : index
      %235 = vector.load %arg8[%c0_98, %c0_99] : memref<8x128xf32, #tpu.memory_space<vmem>>, vector<8x128xf32>
      %c0_100 = arith.constant 0 : index
      %c0_101 = arith.constant 0 : index
      %236 = vector.load %arg9[%c0_100, %c0_101] : memref<8x128xf32, #tpu.memory_space<vmem>>, vector<8x128xf32>
      %237 = arith.index_cast %c6_i32 : i32 to index
      %c0_102 = arith.constant 0 : index
      %c0_103 = arith.constant 0 : index
      %238 = vector.load %arg10[%237, %c0_102, %c0_103] : memref<8x8x512xf32, #tpu.memory_space<vmem>>, vector<1x8x512xf32>
      %239 = vector.shape_cast %238 : vector<1x8x512xf32> to vector<8x512xf32>
      %240 = arith.truncf %235 : vector<8x128xf32> to vector<8x128xbf16>
      %c0_104 = arith.constant 0 : index
      %c0_105 = arith.constant 0 : index
      %241 = vector.load %arg6[%c0_104, %c0_105] : memref<128x512xbf16, #tpu.memory_space<vmem>>, vector<128x512xbf16>
      %cst_106 = arith.constant dense<0.000000e+00> : vector<8x512xf32>
      %242 = tpu.matmul %240, %241, %cst_106 {dimension_numbers = #tpu.dot_dimension_numbers<[1], [0], [0], [1], [0, 0, 1, 1], [], []>} : vector<8x128xbf16>, vector<128x512xbf16>, vector<8x512xf32> -> vector<8x512xf32>
      %243 = arith.addf %239, %242 : vector<8x512xf32>
      %244 = vector.extract_strided_slice %243 {offsets = [0, 0], sizes = [8, 384], strides = [1, 1]} : vector<8x512xf32> to vector<8x384xf32>
      %245 = arith.negf %244 : vector<8x384xf32>
      %246 = math.exp %245 : vector<8x384xf32>
      %cst_107 = arith.constant 1.000000e+00 : f32
      %247 = vector.broadcast %cst_107 : f32 to vector<8x384xf32>
      %248 = arith.addf %247, %246 : vector<8x384xf32>
      %249 = arith.divf %247, %248 : vector<8x384xf32>
      %250 = vector.extract_strided_slice %249 {offsets = [0, 0], sizes = [8, 128], strides = [1, 1]} : vector<8x384xf32> to vector<8x128xf32>
      %251 = vector.extract_strided_slice %249 {offsets = [0, 128], sizes = [8, 128], strides = [1, 1]} : vector<8x384xf32> to vector<8x128xf32>
      %252 = vector.extract_strided_slice %249 {offsets = [0, 256], sizes = [8, 128], strides = [1, 1]} : vector<8x384xf32> to vector<8x128xf32>
      %253 = vector.extract_strided_slice %243 {offsets = [0, 384], sizes = [8, 128], strides = [1, 1]} : vector<8x512xf32> to vector<8x128xf32>
      %254 = math.tanh %253 : vector<8x128xf32>
      %255 = arith.mulf %251, %236 : vector<8x128xf32>
      %256 = arith.mulf %250, %254 : vector<8x128xf32>
      %257 = arith.addf %255, %256 : vector<8x128xf32>
      %258 = math.tanh %257 : vector<8x128xf32>
      %259 = arith.mulf %252, %258 : vector<8x128xf32>
      %260 = arith.addi %18, %c6_i32 : i32
      %261 = vector.broadcast %260 : i32 to vector<8x1xi32>
      %262 = arith.cmpi slt, %261, %17 : vector<8x1xi32>
      %263 = vector.shape_cast %262 : vector<8x1xi1> to vector<8x1xi1>
      %264 = vector.broadcast %263 : vector<8x1xi1> to vector<8x128xi1>
      %265 = arith.select %264, %259, %235 : vector<8x128xi1>, vector<8x128xf32>
      %c0_108 = arith.constant 0 : index
      %c0_109 = arith.constant 0 : index
      %266 = vector.load %arg8[%c0_108, %c0_109] : memref<8x128xf32, #tpu.memory_space<vmem>>, vector<8x128xf32>
      tpu.vector_store %arg8[%c0_108, %c0_109], %265 {strides = array<i32>} : memref<8x128xf32, #tpu.memory_space<vmem>>, vector<8x128xf32>,
      %267 = vector.shape_cast %262 : vector<8x1xi1> to vector<8x1xi1>
      %268 = vector.broadcast %267 : vector<8x1xi1> to vector<8x128xi1>
      %269 = arith.select %268, %257, %236 : vector<8x128xi1>, vector<8x128xf32>
      %c0_110 = arith.constant 0 : index
      %c0_111 = arith.constant 0 : index
      %270 = vector.load %arg9[%c0_110, %c0_111] : memref<8x128xf32, #tpu.memory_space<vmem>>, vector<8x128xf32>
      tpu.vector_store %arg9[%c0_110, %c0_111], %269 {strides = array<i32>} : memref<8x128xf32, #tpu.memory_space<vmem>>, vector<8x128xf32>,
      %c7_i32 = arith.constant 7 : i32
      %c0_112 = arith.constant 0 : index
      %c0_113 = arith.constant 0 : index
      %271 = vector.load %arg8[%c0_112, %c0_113] : memref<8x128xf32, #tpu.memory_space<vmem>>, vector<8x128xf32>
      %c0_114 = arith.constant 0 : index
      %c0_115 = arith.constant 0 : index
      %272 = vector.load %arg9[%c0_114, %c0_115] : memref<8x128xf32, #tpu.memory_space<vmem>>, vector<8x128xf32>
      %273 = arith.index_cast %c7_i32 : i32 to index
      %c0_116 = arith.constant 0 : index
      %c0_117 = arith.constant 0 : index
      %274 = vector.load %arg10[%273, %c0_116, %c0_117] : memref<8x8x512xf32, #tpu.memory_space<vmem>>, vector<1x8x512xf32>
      %275 = vector.shape_cast %274 : vector<1x8x512xf32> to vector<8x512xf32>
      %276 = arith.truncf %271 : vector<8x128xf32> to vector<8x128xbf16>
      %c0_118 = arith.constant 0 : index
      %c0_119 = arith.constant 0 : index
      %277 = vector.load %arg6[%c0_118, %c0_119] : memref<128x512xbf16, #tpu.memory_space<vmem>>, vector<128x512xbf16>
      %cst_120 = arith.constant dense<0.000000e+00> : vector<8x512xf32>
      %278 = tpu.matmul %276, %277, %cst_120 {dimension_numbers = #tpu.dot_dimension_numbers<[1], [0], [0], [1], [0, 0, 1, 1], [], []>} : vector<8x128xbf16>, vector<128x512xbf16>, vector<8x512xf32> -> vector<8x512xf32>
      %279 = arith.addf %275, %278 : vector<8x512xf32>
      %280 = vector.extract_strided_slice %279 {offsets = [0, 0], sizes = [8, 384], strides = [1, 1]} : vector<8x512xf32> to vector<8x384xf32>
      %281 = arith.negf %280 : vector<8x384xf32>
      %282 = math.exp %281 : vector<8x384xf32>
      %cst_121 = arith.constant 1.000000e+00 : f32
      %283 = vector.broadcast %cst_121 : f32 to vector<8x384xf32>
      %284 = arith.addf %283, %282 : vector<8x384xf32>
      %285 = arith.divf %283, %284 : vector<8x384xf32>
      %286 = vector.extract_strided_slice %285 {offsets = [0, 0], sizes = [8, 128], strides = [1, 1]} : vector<8x384xf32> to vector<8x128xf32>
      %287 = vector.extract_strided_slice %285 {offsets = [0, 128], sizes = [8, 128], strides = [1, 1]} : vector<8x384xf32> to vector<8x128xf32>
      %288 = vector.extract_strided_slice %285 {offsets = [0, 256], sizes = [8, 128], strides = [1, 1]} : vector<8x384xf32> to vector<8x128xf32>
      %289 = vector.extract_strided_slice %279 {offsets = [0, 384], sizes = [8, 128], strides = [1, 1]} : vector<8x512xf32> to vector<8x128xf32>
      %290 = math.tanh %289 : vector<8x128xf32>
      %291 = arith.mulf %287, %272 : vector<8x128xf32>
      %292 = arith.mulf %286, %290 : vector<8x128xf32>
      %293 = arith.addf %291, %292 : vector<8x128xf32>
      %294 = math.tanh %293 : vector<8x128xf32>
      %295 = arith.mulf %288, %294 : vector<8x128xf32>
      %296 = arith.addi %18, %c7_i32 : i32
      %297 = vector.broadcast %296 : i32 to vector<8x1xi32>
      %298 = arith.cmpi slt, %297, %17 : vector<8x1xi32>
      %299 = vector.shape_cast %298 : vector<8x1xi1> to vector<8x1xi1>
      %300 = vector.broadcast %299 : vector<8x1xi1> to vector<8x128xi1>
      %301 = arith.select %300, %295, %271 : vector<8x128xi1>, vector<8x128xf32>
      %c0_122 = arith.constant 0 : index
      %c0_123 = arith.constant 0 : index
      %302 = vector.load %arg8[%c0_122, %c0_123] : memref<8x128xf32, #tpu.memory_space<vmem>>, vector<8x128xf32>
      tpu.vector_store %arg8[%c0_122, %c0_123], %301 {strides = array<i32>} : memref<8x128xf32, #tpu.memory_space<vmem>>, vector<8x128xf32>,
      %303 = vector.shape_cast %298 : vector<8x1xi1> to vector<8x1xi1>
      %304 = vector.broadcast %303 : vector<8x1xi1> to vector<8x128xi1>
      %305 = arith.select %304, %293, %272 : vector<8x128xi1>, vector<8x128xf32>
      %c0_124 = arith.constant 0 : index
      %c0_125 = arith.constant 0 : index
      %306 = vector.load %arg9[%c0_124, %c0_125] : memref<8x128xf32, #tpu.memory_space<vmem>>, vector<8x128xf32>
      tpu.vector_store %arg9[%c0_124, %c0_125], %305 {strides = array<i32>} : memref<8x128xf32, #tpu.memory_space<vmem>>, vector<8x128xf32>,
      %c8_i32_126 = arith.constant 8 : i32
    } else {
    }
    return
  }
  func.func @transform_0(%arg0: i32, %arg1: i32, %arg2: memref<1xi32, #tpu.memory_space<smem>>) -> (i32, i32) {
    %c0_i32 = arith.constant 0 : i32
    %c0_i32_0 = arith.constant 0 : i32
    return %arg0, %c0_i32 : i32, i32
  }
  func.func @transform_1(%arg0: i32, %arg1: i32, %arg2: memref<1xi32, #tpu.memory_space<smem>>) -> (i32, i32, i32) {
    %0 = arith.index_cast %arg0 : i32 to index
    %1 = memref.load %arg2[%0] : memref<1xi32, #tpu.memory_space<smem>>
    %c1_i32 = arith.constant 1 : i32
    %2 = arith.subi %1, %c1_i32 : i32
    %c0_i32 = arith.constant 0 : i32
    %3 = arith.maxsi %2, %c0_i32 : i32
    %4 = arith.minsi %arg1, %3 : i32
    %c0_i32_0 = arith.constant 0 : i32
    %c0_i32_1 = arith.constant 0 : i32
    return %4, %arg0, %c0_i32_0 : i32, i32, i32
  }
  func.func @transform_2(%arg0: i32, %arg1: i32, %arg2: memref<1xi32, #tpu.memory_space<smem>>) -> (i32, i32) {
    %c0_i32 = arith.constant 0 : i32
    %c0_i32_0 = arith.constant 0 : i32
    %c0_i32_1 = arith.constant 0 : i32
    return %c0_i32, %c0_i32_0 : i32, i32
  }
  func.func @transform_3(%arg0: i32, %arg1: i32, %arg2: memref<1xi32, #tpu.memory_space<smem>>) -> (i32, i32) {
    %c0_i32 = arith.constant 0 : i32
    %c0_i32_0 = arith.constant 0 : i32
    %c0_i32_1 = arith.constant 0 : i32
    return %c0_i32, %c0_i32_0 : i32, i32
  }
  func.func @transform_4(%arg0: i32, %arg1: i32, %arg2: memref<1xi32, #tpu.memory_space<smem>>) -> (i32, i32) {
    %c0_i32 = arith.constant 0 : i32
    %c0_i32_0 = arith.constant 0 : i32
    %c0_i32_1 = arith.constant 0 : i32
    return %c0_i32, %c0_i32_0 : i32, i32
  }
  func.func @transform_5(%arg0: i32, %arg1: i32, %arg2: memref<1xi32, #tpu.memory_space<smem>>) -> (i32, i32) {
    %c0_i32 = arith.constant 0 : i32
    %c0_i32_0 = arith.constant 0 : i32
    return %arg0, %c0_i32 : i32, i32
  }
}

</mosaic_0001>

<bundles_post_ra>
// kernel: tpu_custom_call.1
= control target key start
LH: loop header
LB: loop body
LE: loop exit
PB: predicated region body
PF: predicated region fallthrough
CT: control target
= control target key end

     0   :  { %12 = vsyncpa [#allocation7], 0  ;;  %s5213_s0 = inlined_call_operand.<no memory space> [shape: s32[1], index: 0, kind: input, shape index: {}]   ;;  %s5214_s1 = inlined_call_operand.vmem [shape: s32[8,1], index: 1, kind: input, shape index: {}]   ;;  %s5215_s2 = inlined_call_operand.hbm [shape: bf16[8,8,128], index: 2, kind: input, shape index: {}]   ;;  %s5216_s3 = inlined_call_operand.hbm [shape: bf16[128,512], index: 3, kind: input, shape index: {}]   ;;  %s5217_s4 = inlined_call_operand.hbm [shape: bf16[128,512], index: 4, kind: input, shape index: {}]   ;;  %s5218_s5 = inlined_call_operand.vmem [shape: f32[1,512], index: 5, kind: input, shape index: {}]   ;;  %s5219_s6 = inlined_call_operand.hbm [shape: f32[8,128], index: 6, kind: output, shape index: {}]  }
   0x1   :  { %13 = vsyncpa [#allocation10], 0  ;;  %s43_s23 = sshll.u32 %s5216_s3, 4  ;;  %s44_s23 = int_to_ptr.hbm [resolvable:$true] %s43_s23 }
   0x2   :  { %14 = vsyncpa [#allocation8], 0  ;;  %s4893_s24 = smov [#allocation9]   ;;  %s3147_s28 = sadd.s32 4294967295, %s5213_s0 }
   0x3   :  { %s45_s25 = sshll.u32 %s4893_s24, 4  ;;  %s4894_s29 = smov 256   ;;  %s46_s25 = int_to_ptr.vmem [resolvable:$true] %s45_s25 }
   0x4   :  { %s4895_s30 = smov 16   ;;  %p21_p0 = scmp.gt.s32.totalorder %s3147_s28, 0 }
   0x5   :  { %51 = dma.hbm_to_vmem [thread:$0]  %s44_s23, 4096, %s46_s25, [#allocation10], %s4894_s29, %s4894_s29, %s4895_s30  }
   0x6   :  { %s4896_s7 = smov [#allocation6]   ;;  %s5221_s28 = smov (!%p21_p0, %s3147_s28), 0 }
   0x7   :  { %s4947_s8 = sshll.u32 %s4896_s7, 4  ;;  %s5223_s28 = smov (%p21_p0, %s5221_s28), 0  ;;  %s33_s8 = int_to_ptr.vmem [resolvable:$true] %s4947_s8 }
   0x8   :  { %s56_s10 = sshll.u32 %s5217_s4, 4  ;;  %s4356_s11 = sshll.u32 %s5223_s28, 5  ;;  %s57_s10 = int_to_ptr.hbm [resolvable:$true] %s56_s10 }
   0x9   :  { %s29_s14 = scalar_lea.hbm %s5215_s2, %s4356_s11  ;;  %s4897_s15 = smov [#allocation11]  }
   0xa   :  { %s58_s16 = sshll.u32 %s4897_s15, 4  ;;  %s30_s17 = sshll.u32 %s29_s14, 4  ;;  %s59_s16 = int_to_ptr.vmem [resolvable:$true] %s58_s16  ;;  %s31_s17 = int_to_ptr.hbm [resolvable:$true] %s30_s17 }
   0xb   :  { %s4815_s18 = sshra.s32 %s31_s17, 4  ;;  %s4819_s22 = scalar_lea.hbm %s5215_s2, 32  ;;  %s4816_s18 = int_to_ptr.hbm [resolvable:$true] %s4815_s18 }
   0xc   :  { %s4817_s19 = scalar_lea.hbm %s4816_s18, 32  ;;  %p4820_p2 = scmp.lt.s32.totalorder %s4816_s18, %s5215_s2 }
   0xd   :  { %p4818_p1 = scmp.ne.s32.totalorder %s4816_s18, %s4817_s19  ;;  %p4821_p3 = scmp.lt.s32.totalorder %s4819_s22, %s4817_s19 }
   0xf   :  { %p4822_p4 = por %p4821_p3, %p4820_p2 }
  0x11   :  { %p4823_p5 = pnand %p4822_p4, %p4818_p1 }
  0x13   :  { %4826 = shalt.err (!%p4823_p5)
}
  0x14   :  { %s4898_s24 = smov 64   ;;  %s4899_s25 = smov 4  }
  0x15   :  { %38 = dma.hbm_to_vmem [thread:$0]  %s31_s17, 512, %s33_s8, [#allocation7], %s4898_s24, %s4898_s24, %s4899_s25  }
  0x16   :  { %64 = dma.hbm_to_vmem [thread:$0]  %s57_s10, 4096, %s59_s16, [#allocation10], %s4894_s29, %s4894_s29, %s4895_s30  }
  0x17   :  { %4887 = dma.done.wait [#allocation7], 512  }
  0x18   :  { %4888 = vsyncadd [#allocation7], 4294966784 }
  0x19   :  { %4889 = dma.done.wait [#allocation10], 8192  }
  0x1a   :  { %4890 = vsyncadd [#allocation10], 4294959104  ;;  %v4900_v0 = vmov 0.0   ;;  %p3152_p6 = scmp.le.s32.totalorder %s5213_s0, 0 }
  0x1b   :  { %90 = vst [vmem:[#allocation12] sm:$0xff] %v4900_v0 }
  0x1c   :  { %91 = vst [vmem:[#allocation2] sm:$0xff] %v4900_v0  ;;  %96 = sbr.rel (%p3152_p6) target bundleno = 1514 (0x5ea), region = 41 }
  0x21   :  { %v3283_v1 = vld [vmem:[#allocation9 + $0xe0] sm:$0xf]  ;;  %v4391_v2 = vld [vmem:[#allocation9 + $0xec] sm:$0xf0]  ;;  %v4389_v3 = vld [vmem:[#allocation9 + $0xe4] sm:$0xf] }
  0x22   :  { %v3284_v4 = vor.u32 %v4391_v2, %v3283_v1  ;;  %v3285_v5 = vld [vmem:[#allocation9 + $0xf0] sm:$0xf0]  ;;  %v3291_v6 = vld [vmem:[#allocation9 + $0xe8] sm:$0xf]  ;;  %v4392_v7 = vld [vmem:[#allocation9 + $0xf4] sm:$0xf0] }
  0x23   :  { %v3288_v8 = vor.u32 %v4389_v3, %v3285_v5  ;;  %v3292_v9 = vor.u32 %v4392_v7, %v3291_v6  ;;  %v4390_v10 = vld [vmem:[#allocation9 + $0xec] sm:$0xf]  ;;  %v3293_v11 = vld [vmem:[#allocation9 + $0xf8] sm:$0xf0]  ;;  %v3267_v12 = vld [vmem:[#allocation9 + $0xc0] sm:$0xf] }
  0x24   :  { %331 = vmatpush.bf16.msra.mxu0 %v3284_v4  ;;  %v3296_v13 = vor.u32 %v4390_v10, %v3293_v11  ;;  %v4387_v14 = vld [vmem:[#allocation9 + $0xcc] sm:$0xf0]  ;;  %v4385_v15 = vld [vmem:[#allocation9 + $0xc4] sm:$0xf]  ;;  %v3269_v16 = vld [vmem:[#allocation9 + $0xd0] sm:$0xf0] }
  0x25   :  { %360 = vmatpush.bf16.msra.mxu1 %v3288_v8  ;;  %389 = vmatpush.bf16.msra.mxu2 %v3292_v9  ;;  %v3268_v17 = vor.u32 %v4387_v14, %v3267_v12  ;;  %v3272_v18 = vor.u32 %v4385_v15, %v3269_v16  ;;  %v3275_v19 = vld [vmem:[#allocation9 + $0xc8] sm:$0xf]  ;;  %v4388_v20 = vld [vmem:[#allocation9 + $0xd4] sm:$0xf0]  ;;  %v4386_v21 = vld [vmem:[#allocation9 + $0xcc] sm:$0xf] }
  0x26   :  { %418 = vmatpush.bf16.msra.mxu3 %v3296_v13  ;;  %v3276_v22 = vor.u32 %v4388_v20, %v3275_v19  ;;  %v3277_v23 = vld [vmem:[#allocation9 + $0xd8] sm:$0xf0]  ;;  %v3251_v24 = vld [vmem:[#allocation9 + $0xa0] sm:$0xf]  ;;  %v4383_v25 = vld [vmem:[#allocation9 + $0xac] sm:$0xf0] }
  0x27   :  { %v3280_v26 = vor.u32 %v4386_v21, %v3277_v23  ;;  %v4381_v27 = vld [vmem:[#allocation9 + $0xa4] sm:$0xf]  ;;  %v3253_v28 = vld [vmem:[#allocation9 + $0xb0] sm:$0xf0]  ;;  %v3259_v29 = vld [vmem:[#allocation9 + $0xa8] sm:$0xf]  ;;  %v3252_v30 = vor.u32 %v4383_v25, %v3251_v24 }
  0x28   :  { %332 = vmatpush.bf16.msra.mxu0 %v3268_v17  ;;  %v4384_v31 = vld [vmem:[#allocation9 + $0xb4] sm:$0xf0]  ;;  %v4382_v32 = vld [vmem:[#allocation9 + $0xac] sm:$0xf]  ;;  %v3261_v33 = vld [vmem:[#allocation9 + $0xb8] sm:$0xf0]  ;;  %v3256_v34 = vor.u32 %v4381_v27, %v3253_v28 }
  0x29   :  { %361 = vmatpush.bf16.msra.mxu1 %v3272_v18  ;;  %390 = vmatpush.bf16.msra.mxu2 %v3276_v22  ;;  %v3260_v35 = vor.u32 %v4384_v31, %v3259_v29  ;;  %v3235_v36 = vld [vmem:[#allocation9 + $0x80] sm:$0xf]  ;;  %v4379_v37 = vld [vmem:[#allocation9 + $0x8c] sm:$0xf0]  ;;  %v4377_v38 = vld [vmem:[#allocation9 + $0x84] sm:$0xf]  ;;  %v3264_v39 = vor.u32 %v4382_v32, %v3261_v33 }
  0x2a   :  { %419 = vmatpush.bf16.msra.mxu3 %v3280_v26  ;;  %v3237_v40 = vld [vmem:[#allocation9 + $0x90] sm:$0xf0]  ;;  %v3243_v41 = vld [vmem:[#allocation9 + $0x88] sm:$0xf]  ;;  %v4380_v42 = vld [vmem:[#allocation9 + $0x94] sm:$0xf0]  ;;  %v3236_v45 = vor.u32 %v4379_v37, %v3235_v36 }
  0x2b   :  { %v4378_v43 = vld [vmem:[#allocation9 + $0x8c] sm:$0xf]  ;;  %v3245_v44 = vld [vmem:[#allocation9 + $0x98] sm:$0xf0]  ;;  %v3240_v46 = vor.u32 %v4377_v38, %v3237_v40  ;;  %v3244_v47 = vor.u32 %v4380_v42, %v3243_v41  ;;  %v3219_v48 = vld [vmem:[#allocation9 + $0x60] sm:$0xf] }
  0x2c   :  { %333 = vmatpush.bf16.msra.mxu0 %v3252_v30  ;;  %v4375_v49 = vld [vmem:[#allocation9 + $0x6c] sm:$0xf0]  ;;  %v4373_v50 = vld [vmem:[#allocation9 + $0x64] sm:$0xf]  ;;  %v3248_v51 = vor.u32 %v4378_v43, %v3245_v44  ;;  %v3221_v52 = vld [vmem:[#allocation9 + $0x70] sm:$0xf0] }
  0x2d   :  { %362 = vmatpush.bf16.msra.mxu1 %v3256_v34  ;;  %391 = vmatpush.bf16.msra.mxu2 %v3260_v35  ;;  %v3227_v53 = vld [vmem:[#allocation9 + $0x68] sm:$0xf]  ;;  %v4376_v54 = vld [vmem:[#allocation9 + $0x74] sm:$0xf0]  ;;  %v4374_v55 = vld [vmem:[#allocation9 + $0x6c] sm:$0xf]  ;;  %v3220_v57 = vor.u32 %v4375_v49, %v3219_v48  ;;  %v3224_v58 = vor.u32 %v4373_v50, %v3221_v52 }
  0x2e   :  { %420 = vmatpush.bf16.msra.mxu3 %v3264_v39  ;;  %v3229_v56 = vld [vmem:[#allocation9 + $0x78] sm:$0xf0]  ;;  %v3228_v59 = vor.u32 %v4376_v54, %v3227_v53  ;;  %v3203_v60 = vld [vmem:[#allocation9 + $0x40] sm:$0xf]  ;;  %v4371_v61 = vld [vmem:[#allocation9 + $0x4c] sm:$0xf0] }
  0x2f   :  { %v4369_v62 = vld [vmem:[#allocation9 + $0x44] sm:$0xf]  ;;  %v3232_v63 = vor.u32 %v4374_v55, %v3229_v56  ;;  %v3205_v0 = vld [vmem:[#allocation9 + $0x50] sm:$0xf0]  ;;  %v3211_v1 = vld [vmem:[#allocation9 + $0x48] sm:$0xf]  ;;  %v3204_v5 = vor.u32 %v4371_v61, %v3203_v60 }
  0x30   :  { %334 = vmatpush.bf16.msra.mxu0 %v3236_v45  ;;  %v4372_v2 = vld [vmem:[#allocation9 + $0x54] sm:$0xf0]  ;;  %v4370_v3 = vld [vmem:[#allocation9 + $0x4c] sm:$0xf]  ;;  %v3213_v4 = vld [vmem:[#allocation9 + $0x58] sm:$0xf0]  ;;  %v3208_v6 = vor.u32 %v4369_v62, %v3205_v0 }
  0x31   :  { %363 = vmatpush.bf16.msra.mxu1 %v3240_v46  ;;  %392 = vmatpush.bf16.msra.mxu2 %v3244_v47  ;;  %v3212_v7 = vor.u32 %v4372_v2, %v3211_v1  ;;  %v3187_v8 = vld [vmem:[#allocation9 + $0x20] sm:$0xf]  ;;  %v4367_v9 = vld [vmem:[#allocation9 + $0x2c] sm:$0xf0]  ;;  %v4365_v10 = vld [vmem:[#allocation9 + $0x24] sm:$0xf]  ;;  %v3216_v11 = vor.u32 %v4370_v3, %v3213_v4 }
  0x32   :  { %421 = vmatpush.bf16.msra.mxu3 %v3248_v51  ;;  %v3189_v12 = vld [vmem:[#allocation9 + $0x30] sm:$0xf0]  ;;  %v3195_v13 = vld [vmem:[#allocation9 + $0x28] sm:$0xf]  ;;  %v4368_v14 = vld [vmem:[#allocation9 + $0x34] sm:$0xf0]  ;;  %v3188_v17 = vor.u32 %v4367_v9, %v3187_v8 }
  0x33   :  { %v4366_v15 = vld [vmem:[#allocation9 + $0x2c] sm:$0xf]  ;;  %v3197_v16 = vld [vmem:[#allocation9 + $0x38] sm:$0xf0]  ;;  %v3171_v18 = vld [vmem:[#allocation9] sm:$0xf]  ;;  %v3192_v19 = vor.u32 %v4365_v10, %v3189_v12  ;;  %v3196_v20 = vor.u32 %v4368_v14, %v3195_v13 }
  0x34   :  { %335 = vmatpush.bf16.msra.mxu0 %v3220_v57  ;;  %v4363_v21 = vld [vmem:[#allocation9 + $0xc] sm:$0xf0]  ;;  %v4361_v22 = vld [vmem:[#allocation9 + $0x4] sm:$0xf]  ;;  %v3173_v23 = vld [vmem:[#allocation9 + $0x10] sm:$0xf0]  ;;  %v3200_v24 = vor.u32 %v4366_v15, %v3197_v16 }
  0x35   :  { %364 = vmatpush.bf16.msra.mxu1 %v3224_v58  ;;  %393 = vmatpush.bf16.msra.mxu2 %v3228_v59  ;;  %v3179_v25 = vld [vmem:[#allocation9 + $0x8] sm:$0xf]  ;;  %v4364_v26 = vld [vmem:[#allocation9 + $0x14] sm:$0xf0]  ;;  %v4362_v27 = vld [vmem:[#allocation9 + $0xc] sm:$0xf]  ;;  %v3172_v31 = vor.u32 %v4363_v21, %v3171_v18  ;;  %v3176_v34 = vor.u32 %v4361_v22, %v3173_v23 }
  0x36   :  { %422 = vmatpush.bf16.msra.mxu3 %v3232_v63  ;;  %v3181_v28 = vld [vmem:[#allocation9 + $0x18] sm:$0xf0]  ;;  %v3411_v29 = vld [vmem:[#allocation11 + $0xe0] sm:$0xf]  ;;  %v4423_v30 = vld [vmem:[#allocation11 + $0xec] sm:$0xf0]  ;;  %v3180_v35 = vor.u32 %v4364_v26, %v3179_v25 }
  0x37   :  { %v4421_v32 = vld [vmem:[#allocation11 + $0xe4] sm:$0xf]  ;;  %v3413_v33 = vld [vmem:[#allocation11 + $0xf0] sm:$0xf0]  ;;  %v3184_v37 = vor.u32 %v4362_v27, %v3181_v28  ;;  %v3412_v38 = vor.u32 %v4423_v30, %v3411_v29  ;;  %v3419_v39 = vld [vmem:[#allocation11 + $0xe8] sm:$0xf] }
  0x38   :  { %336 = vmatpush.bf16.msra.mxu0 %v3204_v5  ;;  %v4357_v36 = vld [vmem:[#allocation6] sm:$0xff]  ;;  %v4424_v40 = vld [vmem:[#allocation11 + $0xf4] sm:$0xf0]  ;;  %v3416_v42 = vor.u32 %v4421_v32, %v3413_v33  ;;  %v4419_v43 = vld [vmem:[#allocation11 + $0xcc] sm:$0xf0] }
  0x39   :  { %365 = vmatpush.bf16.msra.mxu1 %v3208_v6  ;;  %394 = vmatpush.bf16.msra.mxu2 %v3212_v7  ;;  %v3395_v41 = vld [vmem:[#allocation11 + $0xc0] sm:$0xf]  ;;  %v4422_v44 = vld [vmem:[#allocation11 + $0xec] sm:$0xf]  ;;  %v3421_v45 = vld [vmem:[#allocation11 + $0xf8] sm:$0xf0]  ;;  %v3420_v48 = vor.u32 %v4424_v40, %v3419_v39 }
  0x3a   :  { %423 = vmatpush.bf16.msra.mxu3 %v3216_v11  ;;  %v4417_v46 = vld [vmem:[#allocation11 + $0xc4] sm:$0xf]  ;;  %v3397_v47 = vld [vmem:[#allocation11 + $0xd0] sm:$0xf0]  ;;  %v3396_v49 = vor.u32 %v4419_v43, %v3395_v41  ;;  %v3403_v50 = vld [vmem:[#allocation11 + $0xc8] sm:$0xf]  ;;  %v3424_v52 = vor.u32 %v4422_v44, %v3421_v45 }
  0x3b   :  { %v4420_v51 = vld [vmem:[#allocation11 + $0xd4] sm:$0xf0]  ;;  %v3379_v53 = vld [vmem:[#allocation11 + $0xa0] sm:$0xf]  ;;  %v3400_v54 = vor.u32 %v4417_v46, %v3397_v47  ;;  %v4415_v55 = vld [vmem:[#allocation11 + $0xac] sm:$0xf0] }
  0x3c   :  { %337 = vmatpush.bf16.msra.mxu0 %v3188_v17  ;;  %v4418_v56 = vld [vmem:[#allocation11 + $0xcc] sm:$0xf]  ;;  %v3405_v57 = vld [vmem:[#allocation11 + $0xd8] sm:$0xf0]  ;;  %v4413_v58 = vld [vmem:[#allocation11 + $0xa4] sm:$0xf]  ;;  %v3404_v60 = vor.u32 %v4420_v51, %v3403_v50  ;;  %v3380_v61 = vor.u32 %v4415_v55, %v3379_v53 }
  0x3d   :  { %366 = vmatpush.bf16.msra.mxu1 %v3192_v19  ;;  %395 = vmatpush.bf16.msra.mxu2 %v3196_v20  ;;  %v3381_v59 = vld [vmem:[#allocation11 + $0xb0] sm:$0xf0]  ;;  %v3387_v62 = vld [vmem:[#allocation11 + $0xa8] sm:$0xf]  ;;  %v4416_v63 = vld [vmem:[#allocation11 + $0xb4] sm:$0xf0]  ;;  %v3408_v0 = vor.u32 %v4418_v56, %v3405_v57 }
  0x3e   :  { %424 = vmatpush.bf16.msra.mxu3 %v3200_v24  ;;  %v3363_v1 = vld [vmem:[#allocation11 + $0x80] sm:$0xf]  ;;  %v3384_v2 = vor.u32 %v4413_v58, %v3381_v59  ;;  %v4411_v3 = vld [vmem:[#allocation11 + $0x8c] sm:$0xf0]  ;;  %v4414_v4 = vld [vmem:[#allocation11 + $0xac] sm:$0xf]  ;;  %v3388_v8 = vor.u32 %v4416_v63, %v3387_v62 }
  0x3f   :  { %v3389_v5 = vld [vmem:[#allocation11 + $0xb8] sm:$0xf0]  ;;  %v4409_v6 = vld [vmem:[#allocation11 + $0x84] sm:$0xf]  ;;  %v3365_v7 = vld [vmem:[#allocation11 + $0x90] sm:$0xf0]  ;;  %v3364_v9 = vor.u32 %v4411_v3, %v3363_v1 }
  0x40   :  { %338 = vmatpush.bf16.msra.mxu0 %v3172_v31  ;;  %v3371_v10 = vld [vmem:[#allocation11 + $0x88] sm:$0xf]  ;;  %v4412_v11 = vld [vmem:[#allocation11 + $0x94] sm:$0xf0]  ;;  %v3392_v12 = vor.u32 %v4414_v4, %v3389_v5  ;;  %v3347_v13 = vld [vmem:[#allocation11 + $0x60] sm:$0xf]  ;;  %v3368_v14 = vor.u32 %v4409_v6, %v3365_v7 }
  0x41   :  { %367 = vmatpush.bf16.msra.mxu1 %v3176_v34  ;;  %396 = vmatpush.bf16.msra.mxu2 %v3180_v35  ;;  %v4407_v15 = vld [vmem:[#allocation11 + $0x6c] sm:$0xf0]  ;;  %v4410_v16 = vld [vmem:[#allocation11 + $0x8c] sm:$0xf]  ;;  %v3373_v17 = vld [vmem:[#allocation11 + $0x98] sm:$0xf0]  ;;  %v3372_v21 = vor.u32 %v4412_v11, %v3371_v10 }
  0x42   :  { %425 = vmatpush.bf16.msra.mxu3 %v3184_v37  ;;  %v4405_v18 = vld [vmem:[#allocation11 + $0x64] sm:$0xf]  ;;  %v3349_v19 = vld [vmem:[#allocation11 + $0x70] sm:$0xf0]  ;;  %v4358_v20 = vld [vmem:[#allocation6 + $0x8] sm:$0xff]  ;;  %v3348_v22 = vor.u32 %v4407_v15, %v3347_v13  ;;  %v3376_v25 = vor.u32 %v4410_v16, %v3373_v17  ;;  %v4901_v5 = vmov 0  }
  0x43   :  { %339 = vmatmul.bf16.vlgmr.msra.gmra.mxu0 %v4357_v36  ;;  %v3355_v23 = vld [vmem:[#allocation11 + $0x68] sm:$0xf]  ;;  %v4408_v24 = vld [vmem:[#allocation11 + $0x74] sm:$0xf0]  ;;  %v3331_v26 = vld [vmem:[#allocation11 + $0x40] sm:$0xf]  ;;  %v3352_v27 = vor.u32 %v4405_v18, %v3349_v19  ;;  %4659 = vset.pattern.permute.xlu0 %v4901_v5 }
  0x44   :  { %680 = vmatpush.bf16.msrb.mxu0 %v3412_v38  ;;  %368 = vmatmul.bf16.vlgmr.msra.gmra.mxu1 %v4357_v36  ;;  %v4403_v28 = vld [vmem:[#allocation11 + $0x4c] sm:$0xf0]  ;;  %v4406_v29 = vld [vmem:[#allocation11 + $0x6c] sm:$0xf]  ;;  %v3357_v30 = vld [vmem:[#allocation11 + $0x78] sm:$0xf0]  ;;  %v3356_v33 = vor.u32 %v4408_v24, %v3355_v23 }
  0x45   :  { %693 = vmatpush.bf16.msrb.mxu1 %v3416_v42  ;;  %397 = vmatmul.bf16.vlgmr.msra.gmra.mxu2 %v4357_v36  ;;  %v4401_v31 = vld [vmem:[#allocation11 + $0x44] sm:$0xf]  ;;  %v3333_v32 = vld [vmem:[#allocation11 + $0x50] sm:$0xf0]  ;;  %v3332_v34 = vor.u32 %v4403_v28, %v3331_v26  ;;  %v3339_v35 = vld [vmem:[#allocation11 + $0x48] sm:$0xf]  ;;  %v3360_v37 = vor.u32 %v4406_v29, %v3357_v30 }
  0x46   :  { %426 = vmatmul.bf16.vlgmr.msra.gmra.mxu3 %v4357_v36  ;;  %706 = vmatpush.bf16.msrb.mxu2 %v3420_v48  ;;  %v4404_v36 = vld [vmem:[#allocation11 + $0x54] sm:$0xf0]  ;;  %v3336_v38 = vor.u32 %v4401_v31, %v3333_v32  ;;  %v3315_v40 = vld [vmem:[#allocation11 + $0x20] sm:$0xf]  ;;  %v4399_v41 = vld [vmem:[#allocation11 + $0x2c] sm:$0xf0] }
  0x47   :  { %719 = vmatpush.bf16.msrb.mxu3 %v3424_v52  ;;  %v3340_v39 = vor.u32 %v4404_v36, %v3339_v35  ;;  %v4397_v42 = vld [vmem:[#allocation11 + $0x24] sm:$0xf]  ;;  %v3316_v43 = vor.u32 %v4399_v41, %v3315_v40  ;;  %v3317_v44 = vld [vmem:[#allocation11 + $0x30] sm:$0xf0]  ;;  %v3323_v45 = vld [vmem:[#allocation11 + $0x28] sm:$0xf]  ;;  %4660 = vset.pattern.permute.xlu1 %v4901_v5 }
  0x48   :  { %681 = vmatpush.bf16.msrb.mxu0 %v3396_v49  ;;  %v4400_v46 = vld [vmem:[#allocation11 + $0x34] sm:$0xf0]  ;;  %v3320_v47 = vor.u32 %v4397_v42, %v3317_v44  ;;  %v4402_v48 = vld [vmem:[#allocation11 + $0x4c] sm:$0xf]  ;;  %v3341_v49 = vld [vmem:[#allocation11 + $0x58] sm:$0xf0]  ;;  %4661 = vset.pattern.permute.xlu2 %v4901_v5 }
  0x49   :  { %694 = vmatpush.bf16.msrb.mxu1 %v3400_v54  ;;  %v3299_v50 = vld [vmem:[#allocation11] sm:$0xf]  ;;  %v3344_v51 = vor.u32 %v4402_v48, %v3341_v49  ;;  %v4395_v52 = vld [vmem:[#allocation11 + $0xc] sm:$0xf0]  ;;  %v4393_v53 = vld [vmem:[#allocation11 + $0x4] sm:$0xf]  ;;  %v3324_v55 = vor.u32 %v4400_v46, %v3323_v45 }
  0x4a   :  { %707 = vmatpush.bf16.msrb.mxu2 %v3404_v60  ;;  %v3301_v54 = vld [vmem:[#allocation11 + $0x10] sm:$0xf0]  ;;  %v4398_v56 = vld [vmem:[#allocation11 + $0x2c] sm:$0xf]  ;;  %v3325_v57 = vld [vmem:[#allocation11 + $0x38] sm:$0xf0]  ;;  %v3300_v58 = vor.u32 %v4395_v52, %v3299_v50 }
  0x4b   :  { %720 = vmatpush.bf16.msrb.mxu3 %v3408_v0  ;;  %v3328_v59 = vor.u32 %v4398_v56, %v3325_v57  ;;  %v3307_v60 = vld [vmem:[#allocation11 + $0x8] sm:$0xf]  ;;  %v3304_v62 = vor.u32 %v4393_v53, %v3301_v54  ;;  %v4394_v63 = vld [vmem:[#allocation11 + $0xc] sm:$0xf]  ;;  %v3309_v0 = vld [vmem:[#allocation11 + $0x18] sm:$0xf0] }
  0x4c   :  { %682 = vmatpush.bf16.msrb.mxu0 %v3380_v61  ;;  %v4396_v61 = vld [vmem:[#allocation11 + $0x14] sm:$0xf0]  ;;  %v4359_v3 = vld [vmem:[#allocation6 + $0x10] sm:$0xff]  ;;  %v4982_v10 = vld [vmem:[#allocation12] sm:$0xff] }
  0x4d   :  { %695 = vmatpush.bf16.msrb.mxu1 %v3384_v2  ;;  %v3308_v1 = vor.u32 %v4396_v61, %v3307_v60  ;;  %v3312_v2 = vor.u32 %v4394_v63, %v3309_v0  ;;  %v4971_v4 = vld [vmem:[%s5214_s1] sm:$0xff]  ;;  %v487_v11 = vpack.c.bf16 %v4982_v10, %v4982_v10  ;;  %v4453_v60 = vld [vmem:[#allocation11 + $0xe4] sm:$0xf] }
  0x4e   :  { %708 = vmatpush.bf16.msrb.mxu2 %v3388_v8  ;;  %vm3428_vm0 = vcmp.gt.s32.totalorder %v4971_v4, 0  ;;  %vm3560_vm1 = vcmp.gt.s32.totalorder %v4971_v4, 1  ;;  %v4360_v8 = vld [vmem:[#allocation6 + $0x18] sm:$0xff]  ;;  %vm4220_vm2 = vcmp.gt.s32.totalorder %v4971_v4, 6 }
  0x4f   :  { %721 = vmatpush.bf16.msrb.mxu3 %v3392_v12  ;;  %v801_v6 = vsel %vm3428_vm0, 1, %v4901_v5  ;;  %v1132_v7 = vsel %vm3560_vm1, 1, %v4901_v5  ;;  %vm3692_vm0 = vcmp.gt.s32.totalorder %v4971_v4, 2  ;;  %vm3824_vm1 = vcmp.gt.s32.totalorder %v4971_v4, 3 }
  0x50   :  { %683 = vmatpush.bf16.msrb.mxu0 %v3364_v9  ;;  %803 = vperm.xlu0 %4659, %v801_v6   ;;  %v2787_v9 = vsel %vm4220_vm2, 1, %v4901_v5 }
  0x51   :  { %696 = vmatpush.bf16.msrb.mxu1 %v3368_v14  ;;  %v137_v14 = vld [vmem:[%s5218_s5] sm:$0xf] }
  0x52   :  { %709 = vmatpush.bf16.msrb.mxu2 %v3372_v21  ;;  %v4993_v15 = vperm.slane %v137_v14, 0  ;;  %v4997_v17 = vperm.slane %v137_v14, 1  ;;  %v5007_v23 = vperm.slane %v137_v14, 3  ;;  %v5009_v24 = vperm.slane %v137_v14, 2  ;;  %v4454_v14 = vld [vmem:[#allocation11 + $0xec] sm:$0xf] }
  0x53   :  { %722 = vmatpush.bf16.msrb.mxu3 %v3376_v25  ;;  %344 = vmatmul.bf16.gmra.mxu0 %v4358_v20 }
  0x54   :  { %684 = vmatpush.bf16.msrb.mxu0 %v3348_v22  ;;  %373 = vmatmul.bf16.gmra.mxu1 %v4358_v20 }
  0x55   :  { %697 = vmatpush.bf16.msrb.mxu1 %v3352_v27  ;;  %402 = vmatmul.bf16.gmra.mxu2 %v4358_v20 }
  0x56   :  { %431 = vmatmul.bf16.gmra.mxu3 %v4358_v20  ;;  %710 = vmatpush.bf16.msrb.mxu2 %v3356_v33 }
  0x57   :  { %723 = vmatpush.bf16.msrb.mxu3 %v3360_v37 }
  0x58   :  { %685 = vmatpush.bf16.msrb.mxu0 %v3332_v34  ;;  %1134 = vperm.xlu0 %4659, %v1132_v7  }
  0x59   :  { %698 = vmatpush.bf16.msrb.mxu1 %v3336_v38 }
  0x5a   :  { %711 = vmatpush.bf16.msrb.mxu2 %v3340_v39 }
  0x5b   :  { %724 = vmatpush.bf16.msrb.mxu3 %v3344_v51 }
  0x5c   :  { %686 = vmatpush.bf16.msrb.mxu0 %v3316_v43 }
  0x5d   :  { %699 = vmatpush.bf16.msrb.mxu1 %v3320_v47 }
  0x5e   :  { %712 = vmatpush.bf16.msrb.mxu2 %v3324_v55 }
  0x5f   :  { %725 = vmatpush.bf16.msrb.mxu3 %v3328_v59  ;;  %v4455_v59 = vld [vmem:[#allocation11 + $0xec] sm:$0xf0] }
  0x60   :  { %687 = vmatpush.bf16.msrb.mxu0 %v3300_v58  ;;  %2789 = vperm.xlu0 %4659, %v2787_v9   ;;  %v3543_v58 = vld [vmem:[#allocation11 + $0xe0] sm:$0xf] }
  0x61   :  { %700 = vmatpush.bf16.msrb.mxu1 %v3304_v62  ;;  %v3544_v0 = vor.u32 %v4455_v59, %v3543_v58 }
  0x62   :  { %713 = vmatpush.bf16.msrb.mxu2 %v3308_v1  ;;  %v3545_v1 = vld [vmem:[#allocation11 + $0xf0] sm:$0xf0] }
  0x63   :  { %726 = vmatpush.bf16.msrb.mxu3 %v3312_v2  ;;  %349 = vmatmul.bf16.gmra.mxu0 %v4359_v3  ;;  %v3551_v2 = vld [vmem:[#allocation11 + $0xe8] sm:$0xf]  ;;  %v3548_v9 = vor.u32 %v4453_v60, %v3545_v1  ;;  %v4448_v1 = vld [vmem:[#allocation11 + $0xb4] sm:$0xf0] }
  0x64   :  { %378 = vmatmul.bf16.gmra.mxu1 %v4359_v3  ;;  %1010 = vmatpush.bf16.msra.mxu0 %v3544_v0  ;;  %v3519_v0 = vld [vmem:[#allocation11 + $0xa8] sm:$0xf] }
  0x65   :  { %407 = vmatmul.bf16.gmra.mxu2 %v4359_v3  ;;  %1023 = vmatpush.bf16.msra.mxu1 %v3548_v9 }
  0x66   :  { %436 = vmatmul.bf16.gmra.mxu3 %v4359_v3  ;;  %v4456_v3 = vld [vmem:[#allocation11 + $0xf4] sm:$0xf0] }
  0x73   :  { %354 = vmatmul.bf16.gmra.mxu0 %v4360_v8 }
  0x74   :  { %383 = vmatmul.bf16.gmra.mxu1 %v4360_v8 }
  0x75   :  { %412 = vmatmul.bf16.gmra.mxu2 %v4360_v8 }
  0x76   :  { %441 = vmatmul.bf16.gmra.mxu3 %v4360_v8 }
  0x83   :  { %688 = vmatmul.bf16.vlgmr.msrb.gmra.mxu0 %v487_v11 }
  0x84   :  { %701 = vmatmul.bf16.vlgmr.msrb.gmra.mxu1 %v487_v11 }
  0x85   :  { %714 = vmatmul.bf16.vlgmr.msrb.gmra.mxu2 %v487_v11 }
  0x86   :  { %727 = vmatmul.bf16.vlgmr.msrb.gmra.mxu3 %v487_v11  ;;  %v3552_v11 = vor.u32 %v4456_v3, %v3551_v2 }
  0x88   :  { %1036 = vmatpush.bf16.msra.mxu2 %v3552_v11  ;;  %v3520_v11 = vor.u32 %v4448_v1, %v3519_v0 }
  0xc0   :  { %v4986_v12 = vpop.f32.mrf.mxu0 }
  0xc1   :  { %v4988_v13 = vpop.f32.mrf.mxu1 }
  0xc8   :  { %v4995_v16 = vpop.f32.mrf.mxu2  ;;  %v342_v19 = vpop.f32.mrf.mxu0 }
  0xc9   :  { %v4999_v18 = vpop.f32.mrf.mxu3  ;;  %v5002_v20 = vadd.f32 %v342_v19, %v4993_v15  ;;  %v371_v21 = vpop.f32.mrf.mxu1  ;;  %v3553_v19 = vld [vmem:[#allocation11 + $0xf8] sm:$0xf0] }
  0xca   :  { %v5005_v22 = vadd.f32 %v371_v21, %v4997_v17 }
  0xd0   :  { %v400_v25 = vpop.f32.mrf.mxu2  ;;  %v345_v28 = vpop.f32.mrf.mxu0 }
  0xd1   :  { %v5012_v26 = vadd.f32 %v400_v25, %v5009_v24  ;;  %v429_v27 = vpop.f32.mrf.mxu3  ;;  %v5018_v30 = vadd.f32 %v345_v28, %v4993_v15  ;;  %v374_v31 = vpop.f32.mrf.mxu1  ;;  %v3556_v25 = vor.u32 %v4454_v14, %v3553_v19  ;;  %v4451_v28 = vld [vmem:[#allocation11 + $0xcc] sm:$0xf0]  ;;  %v4446_v14 = vld [vmem:[#allocation11 + $0xac] sm:$0xf]  ;;  %v3521_v19 = vld [vmem:[#allocation11 + $0xb8] sm:$0xf0] }
  0xd2   :  { %v5015_v29 = vadd.f32 %v429_v27, %v5007_v23  ;;  %v5021_v32 = vadd.f32 %v374_v31, %v4997_v17  ;;  %v3527_v27 = vld [vmem:[#allocation11 + $0xc0] sm:$0xf]  ;;  %v4449_v31 = vld [vmem:[#allocation11 + $0xc4] sm:$0xf] }
  0xd3   :  { %1049 = vmatpush.bf16.msra.mxu3 %v3556_v25 }
  0xd8   :  { %v403_v33 = vpop.f32.mrf.mxu2  ;;  %v347_v36 = vpop.f32.mrf.mxu0 }
  0xd9   :  { %v5024_v34 = vadd.f32 %v403_v33, %v5009_v24  ;;  %v432_v35 = vpop.f32.mrf.mxu3  ;;  %v5030_v38 = vadd.f32 %v347_v36, %v4993_v15  ;;  %v376_v39 = vpop.f32.mrf.mxu1  ;;  %v3528_v33 = vor.u32 %v4451_v28, %v3527_v27  ;;  %v3535_v36 = vld [vmem:[#allocation11 + $0xc8] sm:$0xf]  ;;  %v3524_v27 = vor.u32 %v4446_v14, %v3521_v19  ;;  %v3495_v28 = vld [vmem:[#allocation11 + $0x80] sm:$0xf] }
  0xda   :  { %v5027_v37 = vadd.f32 %v432_v35, %v5007_v23  ;;  %v5033_v40 = vadd.f32 %v376_v39, %v4997_v17  ;;  %v3529_v35 = vld [vmem:[#allocation11 + $0xd0] sm:$0xf0]  ;;  %v4452_v39 = vld [vmem:[#allocation11 + $0xd4] sm:$0xf0] }
  0xdb   :  { %1011 = vmatpush.bf16.msra.mxu0 %v3528_v33  ;;  %v4441_v33 = vld [vmem:[#allocation11 + $0x84] sm:$0xf] }
  0xe0   :  { %v405_v41 = vpop.f32.mrf.mxu2  ;;  %v350_v44 = vpop.f32.mrf.mxu0 }
  0xe1   :  { %v5036_v42 = vadd.f32 %v405_v41, %v5009_v24  ;;  %v434_v43 = vpop.f32.mrf.mxu3  ;;  %v5042_v46 = vadd.f32 %v350_v44, %v4993_v15  ;;  %v379_v47 = vpop.f32.mrf.mxu1  ;;  %v3532_v41 = vor.u32 %v4449_v31, %v3529_v35  ;;  %v4450_v44 = vld [vmem:[#allocation11 + $0xcc] sm:$0xf]  ;;  %v4443_v31 = vld [vmem:[#allocation11 + $0x8c] sm:$0xf0] }
  0xe2   :  { %v5039_v45 = vadd.f32 %v434_v43, %v5007_v23  ;;  %v5045_v48 = vadd.f32 %v379_v47, %v4997_v17  ;;  %v3536_v43 = vor.u32 %v4452_v39, %v3535_v36  ;;  %v3537_v47 = vld [vmem:[#allocation11 + $0xd8] sm:$0xf0]  ;;  %v3496_v35 = vor.u32 %v4443_v31, %v3495_v28  ;;  %v3497_v36 = vld [vmem:[#allocation11 + $0x90] sm:$0xf0]  ;;  %v3503_v39 = vld [vmem:[#allocation11 + $0x88] sm:$0xf] }
  0xe3   :  { %1024 = vmatpush.bf16.msra.mxu1 %v3532_v41  ;;  %v4444_v41 = vld [vmem:[#allocation11 + $0x94] sm:$0xf0]  ;;  %v4438_v28 = vld [vmem:[#allocation11 + $0x6c] sm:$0xf]  ;;  %v3489_v31 = vld [vmem:[#allocation11 + $0x78] sm:$0xf0] }
  0xe4   :  { %1037 = vmatpush.bf16.msra.mxu2 %v3536_v43  ;;  %v3500_v43 = vor.u32 %v4441_v33, %v3497_v36  ;;  %v3492_v33 = vor.u32 %v4438_v28, %v3489_v31  ;;  %v3463_v36 = vld [vmem:[#allocation11 + $0x40] sm:$0xf]  ;;  %v3455_v28 = vld [vmem:[#allocation11 + $0x28] sm:$0xf] }
  0xe8   :  { %v408_v49 = vpop.f32.mrf.mxu2  ;;  %v352_v52 = vpop.f32.mrf.mxu0  ;;  %1038 = vmatpush.bf16.msra.mxu2 %v3520_v11  ;;  %v3487_v11 = vld [vmem:[#allocation11 + $0x68] sm:$0xf] }
  0xe9   :  { %v5048_v50 = vadd.f32 %v408_v49, %v5009_v24  ;;  %v437_v51 = vpop.f32.mrf.mxu3  ;;  %v5054_v54 = vadd.f32 %v352_v52, %v4993_v15  ;;  %v381_v55 = vpop.f32.mrf.mxu1  ;;  %v3540_v49 = vor.u32 %v4450_v44, %v3537_v47  ;;  %v3511_v52 = vld [vmem:[#allocation11 + $0xa0] sm:$0xf]  ;;  %v3504_v44 = vor.u32 %v4444_v41, %v3503_v39  ;;  %v4442_v47 = vld [vmem:[#allocation11 + $0x8c] sm:$0xf]  ;;  %v4435_v39 = vld [vmem:[#allocation11 + $0x4c] sm:$0xf0] }
  0xea   :  { %v5051_v53 = vadd.f32 %v437_v51, %v5007_v23  ;;  %v5057_v56 = vadd.f32 %v381_v55, %v4997_v17  ;;  %v4447_v55 = vld [vmem:[#allocation11 + $0xac] sm:$0xf0] }
  0xeb   :  { %1050 = vmatpush.bf16.msra.mxu3 %v3540_v49  ;;  %v3505_v49 = vld [vmem:[#allocation11 + $0x98] sm:$0xf0] }
  0xec   :  { %1039 = vmatpush.bf16.msra.mxu2 %v3504_v44  ;;  %v4433_v44 = vld [vmem:[#allocation11 + $0x44] sm:$0xf] }
  0xef   :  { %1051 = vmatpush.bf16.msra.mxu3 %v3524_v27  ;;  %v4440_v27 = vld [vmem:[#allocation11 + $0x74] sm:$0xf0] }
  0xf0   :  { %v410_v57 = vpop.f32.mrf.mxu2  ;;  %v355_v63 = vpop.f32.mrf.mxu0 }
  0xf1   :  { %v5060_v61 = vadd.f32 %v410_v57, %v5009_v24  ;;  %v439_v62 = vpop.f32.mrf.mxu3  ;;  %v5066_v7 = vadd.f32 %v355_v63, %v4993_v15  ;;  %v384_v8 = vpop.f32.mrf.mxu1  ;;  %v4445_v57 = vld [vmem:[#allocation11 + $0xa4] sm:$0xf]  ;;  %v3513_v63 = vld [vmem:[#allocation11 + $0xb0] sm:$0xf0] }
  0xf2   :  { %v5063_v6 = vadd.f32 %v439_v62, %v5007_v23  ;;  %v5069_v21 = vadd.f32 %v384_v8, %v4997_v17  ;;  %v3512_v62 = vor.u32 %v4447_v55, %v3511_v52  ;;  %v3516_v9 = vor.u32 %v4445_v57, %v3513_v63  ;;  %v3479_v57 = vld [vmem:[#allocation11 + $0x60] sm:$0xf] }
  0xf3   :  { %v341_v52 = vadd.f32 %v4986_v12, %v4993_v15 }
  0xf4   :  { %1012 = vmatpush.bf16.msra.mxu0 %v3512_v62  ;;  %1025 = vmatpush.bf16.msra.mxu1 %v3516_v9  ;;  %v3481_v9 = vld [vmem:[#allocation11 + $0x70] sm:$0xf0] }
  0xf8   :  { %v413_v51 = vpop.f32.mrf.mxu2  ;;  %v357_v60 = vpop.f32.mrf.mxu0  ;;  %1013 = vmatpush.bf16.msra.mxu0 %v3496_v35  ;;  %1026 = vmatpush.bf16.msra.mxu1 %v3500_v43  ;;  %v3464_v43 = vor.u32 %v4435_v39, %v3463_v36 }
  0xf9   :  { %v5072_v58 = vadd.f32 %v413_v51, %v5009_v24  ;;  %v442_v59 = vpop.f32.mrf.mxu3  ;;  %v5078_v3 = vadd.f32 %v357_v60, %v4993_v15  ;;  %v386_v8 = vpop.f32.mrf.mxu1  ;;  %v3508_v51 = vor.u32 %v4442_v47, %v3505_v49  ;;  %v370_v60 = vadd.f32 %v4988_v13, %v4997_v17  ;;  %v3465_v47 = vld [vmem:[#allocation11 + $0x50] sm:$0xf0]  ;;  %v3471_v49 = vld [vmem:[#allocation11 + $0x48] sm:$0xf] }
  0xfa   :  { %v5075_v2 = vadd.f32 %v442_v59, %v5007_v23  ;;  %v5081_v25 = vadd.f32 %v386_v8, %v4997_v17  ;;  %v4439_v59 = vld [vmem:[#allocation11 + $0x6c] sm:$0xf0]  ;;  %v4437_v8 = vld [vmem:[#allocation11 + $0x64] sm:$0xf]  ;;  %v3488_v17 = vor.u32 %v4440_v27, %v3487_v11  ;;  %v3449_v27 = vld [vmem:[#allocation11 + $0x30] sm:$0xf0] }
  0xfb   :  { %1052 = vmatpush.bf16.msra.mxu3 %v3508_v51  ;;  %v3480_v1 = vor.u32 %v4439_v59, %v3479_v57  ;;  %v3484_v19 = vor.u32 %v4437_v8, %v3481_v9  ;;  %v4436_v51 = vld [vmem:[#allocation11 + $0x54] sm:$0xf0]  ;;  %v4434_v59 = vld [vmem:[#allocation11 + $0x4c] sm:$0xf]  ;;  %v4431_v8 = vld [vmem:[#allocation11 + $0x2c] sm:$0xf0] }
  0xfc   :  { %1040 = vmatpush.bf16.msra.mxu2 %v3488_v17  ;;  %v3472_v57 = vor.u32 %v4436_v51, %v3471_v49  ;;  %v4429_v9 = vld [vmem:[#allocation11 + $0x24] sm:$0xf]  ;;  %v4430_v17 = vld [vmem:[#allocation11 + $0x2c] sm:$0xf] }
  0xfd   :  { %1014 = vmatpush.bf16.msra.mxu0 %v3480_v1  ;;  %1027 = vmatpush.bf16.msra.mxu1 %v3484_v19  ;;  %v3447_v1 = vld [vmem:[#allocation11 + $0x20] sm:$0xf]  ;;  %v3452_v31 = vor.u32 %v4429_v9, %v3449_v27 }
  0xfe   :  { %v3448_v19 = vor.u32 %v4431_v8, %v3447_v1  ;;  %v3441_v1 = vld [vmem:[#allocation11 + $0x18] sm:$0xf0] }
  0xff   :  { %1053 = vmatpush.bf16.msra.mxu3 %v3492_v33  ;;  %v3457_v33 = vld [vmem:[#allocation11 + $0x38] sm:$0xf0] }
 0x100   :  { %v415_v55 = vpop.f32.mrf.mxu2  ;;  %v689_v0 = vpop.f32.mrf.mxu0  ;;  %1041 = vmatpush.bf16.msra.mxu2 %v3472_v57  ;;  %v3460_v36 = vor.u32 %v4430_v17, %v3457_v33 }
 0x101   :  { %v5088_v62 = vadd.f32 %v415_v55, %v5009_v24  ;;  %v444_v63 = vpop.f32.mrf.mxu3  ;;  %v732_v15 = vadd.f32 %v689_v0, %v341_v52  ;;  %v702_v14 = vpop.f32.mrf.mxu1  ;;  %v399_v52 = vadd.f32 %v4995_v16, %v5009_v24  ;;  %1015 = vmatpush.bf16.msra.mxu0 %v3464_v43  ;;  %v3468_v55 = vor.u32 %v4433_v44, %v3465_v47  ;;  %v4432_v16 = vld [vmem:[#allocation11 + $0x34] sm:$0xf0]  ;;  %v4427_v43 = vld [vmem:[#allocation11 + $0xc] sm:$0xf0]  ;;  %v4425_v44 = vld [vmem:[#allocation11 + $0x4] sm:$0xf] }
 0x102   :  { %v5091_v12 = vadd.f32 %v444_v63, %v5007_v23  ;;  %v733_v13 = vadd.f32 %v702_v14, %v370_v60  ;;  %v3473_v60 = vld [vmem:[#allocation11 + $0x58] sm:$0xf0] }
 0x103   :  { %v3425_v35 = vmul.f32 -1.442695, %v732_v15  ;;  %v3476_v0 = vor.u32 %v4434_v59, %v3473_v60  ;;  %1028 = vmatpush.bf16.msra.mxu1 %v3468_v55  ;;  %v3439_v59 = vld [vmem:[#allocation11 + $0x8] sm:$0xf]  ;;  %v4428_v60 = vld [vmem:[#allocation11 + $0x14] sm:$0xf0] }
 0x104   :  { %v3426_v41 = vmul.f32 -1.442695, %v733_v13  ;;  %v3456_v13 = vor.u32 %v4432_v16, %v3455_v28  ;;  %v3440_v9 = vor.u32 %v4428_v60, %v3439_v59 }
 0x105   :  { %4662 = vpow2.f32 %v3425_v35  ;;  %1054 = vmatpush.bf16.msra.mxu3 %v3476_v0  ;;  %1016 = vmatpush.bf16.msra.mxu0 %v3448_v19  ;;  %v428_v19 = vadd.f32 %v4999_v18, %v5007_v23 }
 0x106   :  { %4664 = vpow2.f32 %v3426_v41  ;;  %v3431_v41 = vld [vmem:[#allocation11] sm:$0xf]  ;;  %1042 = vmatpush.bf16.msra.mxu2 %v3456_v13 }
 0x107   :  { %1029 = vmatpush.bf16.msra.mxu1 %v3452_v31  ;;  %v3432_v51 = vor.u32 %v4427_v43, %v3431_v41 }
 0x108   :  { %v715_v63 = vpop.f32.mrf.mxu2  ;;  %v691_v14 = vpop.f32.mrf.mxu0 }
 0x109   :  { %v734_v11 = vadd.f32 %v715_v63, %v399_v52  ;;  %v728_v15 = vpop.f32.mrf.mxu3  ;;  %v704_v24 = vpop.f32.mrf.mxu1  ;;  %v3433_v52 = vld [vmem:[#allocation11 + $0x10] sm:$0xf0]  ;;  %1055 = vmatpush.bf16.msra.mxu3 %v3460_v36  ;;  %1017 = vmatpush.bf16.msra.mxu0 %v3432_v51  ;;  %v4426_v63 = vld [vmem:[#allocation11 + $0xc] sm:$0xf] }
 0x10a   :  { %v3436_v57 = vor.u32 %v4425_v44, %v3433_v52  ;;  %1043 = vmatpush.bf16.msra.mxu2 %v3440_v9  ;;  %v735_v16 = vadd.f32 %v728_v15, %v428_v19 }
 0x10b   :  { %v3427_v35 = vmul.f32 -1.442695, %v734_v11  ;;  %v4663_v39 = vpop.eup %4662  ;;  %v3444_v11 = vor.u32 %v4426_v63, %v3441_v1 }
 0x10c   :  { %v4665_v47 = vpop.eup %4664  ;;  %v745_v49 = vadd.f32 1.0, %v4663_v39  ;;  %1030 = vmatpush.bf16.msra.mxu1 %v3436_v57  ;;  %v482_v57 = vld [vmem:[#allocation2] sm:$0xff] }
 0x10d   :  { %4666 = vpow2.f32 %v3427_v35  ;;  %v746_v55 = vadd.f32 1.0, %v4665_v47  ;;  %1056 = vmatpush.bf16.msra.mxu3 %v3444_v11  ;;  %v804_v11 = vpop.permute.xlu0 %803 }
 0x10e   :  { %4668 = vrcp.f32 %v745_v49  ;;  %v759_v35 = vand.u32 2147483648, %v745_v49  ;;  %v757_v39 = vand.u32 2147483647, %v745_v49  ;;  %vm753_vm5 = vweird.f32 %v745_v49 }
 0x10f   :  { %4670 = vrcp.f32 %v746_v55  ;;  %v774_v41 = vand.u32 2147483648, %v746_v55  ;;  %v772_v18 = vand.u32 2147483647, %v746_v55  ;;  %vm768_vm7 = vweird.f32 %v746_v55 }
 0x110   :  { %v717_v0 = vpop.f32.mrf.mxu2  ;;  %v760_v15 = vor.u32 1.1754944e-38, %v759_v35  ;;  %vm758_vm8 = vcmp.eq.f32.partialorder %v757_v39, 8.507059e+37  ;;  %vm805_vm11 = vcmp.eq.s32.totalorder %v804_v11, 1 }
 0x111   :  { %v730_v8 = vpop.f32.mrf.mxu3  ;;  %v775_v59 = vor.u32 1.1754944e-38, %v774_v41  ;;  %vm773_vm10 = vcmp.eq.f32.partialorder %v772_v18, 8.507059e+37  ;;  %v3675_v41 = vld [vmem:[#allocation11 + $0xe0] sm:$0xf] }
 0x113   :  { %v4667_v14 = vpop.eup %4666 }
 0x114   :  { %v747_v27 = vadd.f32 1.0, %v4667_v14  ;;  %v4669_v28 = vpop.eup %4668 }
 0x115   :  { %v4671_v24 = vpop.eup %4670  ;;  %v749_v31 = vmul.f32 %v4669_v28, %v745_v49  ;;  %vm754_vm3 = vweird.f32 %v4669_v28 }
 0x116   :  { %4672 = vrcp.f32 %v747_v27  ;;  %v764_v13 = vmul.f32 %v4671_v24, %v746_v55  ;;  %vm769_vm4 = vweird.f32 %v4671_v24  ;;  %vm755_vm6 = vmor %vm753_vm5, %vm754_vm3  ;;  %v789_v55 = vand.u32 2147483648, %v747_v27 }
 0x117   :  { %v750_v17 = vsub.f32 1.0, %v749_v31  ;;  %4674 = vtanh.f32 %v735_v16  ;;  %vm770_vm9 = vmor %vm768_vm7, %vm769_vm4  ;;  %vm783_vm13 = vweird.f32 %v747_v27  ;;  %v787_v31 = vand.u32 2147483647, %v747_v27 }
 0x118   :  { %v765_v33 = vsub.f32 1.0, %v764_v13 }
 0x119   :  { %v751_v36 = vmul.f32 %v4669_v28, %v750_v17  ;;  %vm788_vm15 = vcmp.eq.f32.partialorder %v787_v31, 8.507059e+37  ;;  %v4479_v31 = vld [vmem:[#allocation11 + $0xac] sm:$0xf0] }
 0x11a   :  { %v766_v43 = vmul.f32 %v4671_v24, %v765_v33 }
 0x11b   :  { %v752_v44 = vadd.f32 %v4669_v28, %v751_v36 }
 0x11c   :  { %v4673_v23 = vpop.eup %4672  ;;  %v767_v51 = vadd.f32 %v4671_v24, %v766_v43  ;;  %v4485_v43 = vld [vmem:[#allocation11 + $0xe4] sm:$0xf] }
 0x11d   :  { %v779_v47 = vmul.f32 %v4673_v23, %v747_v27  ;;  %v756_v52 = vsel %vm755_vm6, %v4669_v28, %v752_v44  ;;  %v4675_v60 = vpop.eup %4674  ;;  %vm784_vm12 = vweird.f32 %v4673_v23  ;;  %v4487_v27 = vld [vmem:[#allocation11 + $0xec] sm:$0xf0]  ;;  %v3683_v44 = vld [vmem:[#allocation11 + $0xe8] sm:$0xf] }
 0x11e   :  { %v761_v0 = vsel %vm758_vm8, %v760_v15, %v756_v52  ;;  %v771_v1 = vsel %vm770_vm9, %v4671_v24, %v767_v51  ;;  %vm785_vm14 = vmor %vm783_vm13, %vm784_vm12  ;;  %v790_v24 = vor.u32 1.1754944e-38, %v789_v55  ;;  %v3676_v18 = vor.u32 %v4487_v27, %v3675_v41  ;;  %v4486_v52 = vld [vmem:[#allocation11 + $0xec] sm:$0xf]  ;;  %v3643_v55 = vld [vmem:[#allocation11 + $0xa0] sm:$0xf] }
 0x11f   :  { %v780_v63 = vsub.f32 1.0, %v779_v47  ;;  %v795_v8 = vmul.f32 %v4675_v60, %v761_v0  ;;  %v776_v9 = vsel %vm773_vm10, %v775_v59, %v771_v1  ;;  %v4488_v47 = vld [vmem:[#allocation11 + $0xf4] sm:$0xf0]  ;;  %v3659_v59 = vld [vmem:[#allocation11 + $0xc0] sm:$0xf]  ;;  %vm4352_vm9 = vcmp.gt.s32.totalorder %v4971_v4, 7 }
 0x120   :  { %v794_v49 = vmul.f32 %v776_v9, %v482_v57  ;;  %v3684_v51 = vor.u32 %v4488_v47, %v3683_v44  ;;  %1341 = vmatpush.bf16.msrb.mxu0 %v3676_v18  ;;  %v4483_v60 = vld [vmem:[#allocation11 + $0xcc] sm:$0xf0]  ;;  %v3661_v1 = vld [vmem:[#allocation11 + $0xd0] sm:$0xf0]  ;;  %v4484_v9 = vld [vmem:[#allocation11 + $0xd4] sm:$0xf0] }
 0x121   :  { %v781_v14 = vmul.f32 %v4673_v23, %v780_v63  ;;  %v4481_v63 = vld [vmem:[#allocation11 + $0xc4] sm:$0xf]  ;;  %v3660_v0 = vor.u32 %v4483_v60, %v3659_v59  ;;  %v4478_v27 = vld [vmem:[#allocation11 + $0xac] sm:$0xf]  ;;  %v4475_v44 = vld [vmem:[#allocation11 + $0x8c] sm:$0xf0] }
 0x122   :  { %v796_v19 = vadd.f32 %v795_v8, %v794_v49  ;;  %1367 = vmatpush.bf16.msrb.mxu2 %v3684_v51  ;;  %v3667_v8 = vld [vmem:[#allocation11 + $0xc8] sm:$0xf]  ;;  %v3664_v11 = vor.u32 %v4481_v63, %v3661_v1  ;;  %v4482_v49 = vld [vmem:[#allocation11 + $0xcc] sm:$0xf]  ;;  %v4473_v47 = vld [vmem:[#allocation11 + $0x84] sm:$0xf] }
 0x123   :  { %v782_v16 = vadd.f32 %v4673_v23, %v781_v14  ;;  %v3668_v14 = vor.u32 %v4484_v9, %v3667_v8  ;;  %v3629_v51 = vld [vmem:[#allocation11 + $0x90] sm:$0xf0]  ;;  %v4474_v60 = vld [vmem:[#allocation11 + $0x8c] sm:$0xf]  ;;  %v3637_v63 = vld [vmem:[#allocation11 + $0x98] sm:$0xf0] }
 0x124   :  { %4676 = vtanh.f32 %v796_v19  ;;  %v5098_v28 = vsel %vm805_vm11, %v796_v19, %v482_v57  ;;  %v3685_v57 = vld [vmem:[#allocation11 + $0xf8] sm:$0xf0]  ;;  %1342 = vmatpush.bf16.msrb.mxu0 %v3660_v0  ;;  %v3640_v0 = vor.u32 %v4474_v60, %v3637_v63  ;;  %v3611_v1 = vld [vmem:[#allocation11 + $0x60] sm:$0xf]  ;;  %v4471_v8 = vld [vmem:[#allocation11 + $0x6c] sm:$0xf0] }
 0x125   :  { %v786_v13 = vsel %vm785_vm14, %v4673_v23, %v782_v16  ;;  %v3677_v23 = vld [vmem:[#allocation11 + $0xf0] sm:$0xf0]  ;;  %v3669_v19 = vld [vmem:[#allocation11 + $0xd8] sm:$0xf0]  ;;  %v4469_v9 = vld [vmem:[#allocation11 + $0x64] sm:$0xf] }
 0x126   :  { %v791_v33 = vsel %vm788_vm15, %v790_v24, %v786_v13  ;;  %v3680_v15 = vor.u32 %v4485_v43, %v3677_v23  ;;  %v3672_v16 = vor.u32 %v4482_v49, %v3669_v19  ;;  %1368 = vmatpush.bf16.msrb.mxu2 %v3668_v14  ;;  %v4477_v13 = vld [vmem:[#allocation11 + $0xa4] sm:$0xf]  ;;  %v3644_v24 = vor.u32 %v4479_v31, %v3643_v55  ;;  %v3653_v43 = vld [vmem:[#allocation11 + $0xb8] sm:$0xf0]  ;;  %v3627_v23 = vld [vmem:[#allocation11 + $0x80] sm:$0xf] }
 0x127   :  { %v3656_v18 = vor.u32 %v4478_v27, %v3653_v43  ;;  %v3612_v49 = vor.u32 %v4471_v8, %v3611_v1  ;;  %v3613_v19 = vld [vmem:[#allocation11 + $0x70] sm:$0xf0]  ;;  %v4472_v55 = vld [vmem:[#allocation11 + $0x74] sm:$0xf0]  ;;  %v3595_v43 = vld [vmem:[#allocation11 + $0x40] sm:$0xf] }
 0x128   :  { %1354 = vmatpush.bf16.msrb.mxu1 %v3680_v15  ;;  %1343 = vmatpush.bf16.msrb.mxu0 %v3644_v24  ;;  %v3628_v15 = vor.u32 %v4475_v44, %v3627_v23  ;;  %v3616_v24 = vor.u32 %v4469_v9, %v3613_v19  ;;  %v4465_v23 = vld [vmem:[#allocation11 + $0x44] sm:$0xf]  ;;  %v3597_v44 = vld [vmem:[#allocation11 + $0x50] sm:$0xf0]  ;;  %v3579_v63 = vld [vmem:[#allocation11 + $0x20] sm:$0xf] }
 0x129   :  { %v4461_v1 = vld [vmem:[#allocation11 + $0x24] sm:$0xf]  ;;  %v3587_v19 = vld [vmem:[#allocation11 + $0x28] sm:$0xf] }
 0x12a   :  { %v4677_v17 = vpop.eup %4676 }
 0x12b   :  { %v798_v35 = vmul.f32 %v4677_v17, %v791_v33  ;;  %v3645_v17 = vld [vmem:[#allocation11 + $0xb0] sm:$0xf0]  ;;  %v3651_v33 = vld [vmem:[#allocation11 + $0xa8] sm:$0xf] }
 0x12c   :  { %1355 = vmatpush.bf16.msrb.mxu1 %v3664_v11  ;;  %1344 = vmatpush.bf16.msrb.mxu0 %v3628_v15  ;;  %v3603_v15 = vld [vmem:[#allocation11 + $0x48] sm:$0xf] }
 0x12d   :  { %v5102_v36 = vsel %vm805_vm11, %v798_v35, %v4982_v10  ;;  %v3688_v10 = vor.u32 %v4486_v52, %v3685_v57  ;;  %v4480_v35 = vld [vmem:[#allocation11 + $0xb4] sm:$0xf0]  ;;  %v3635_v52 = vld [vmem:[#allocation11 + $0x88] sm:$0xf] }
 0x12e   :  { %v817_v39 = vpack.c.bf16 %v5102_v36, %v5102_v36  ;;  %v3652_v41 = vor.u32 %v4480_v35, %v3651_v33  ;;  %v4476_v57 = vld [vmem:[#allocation11 + $0x94] sm:$0xf0]  ;;  %v4470_v33 = vld [vmem:[#allocation11 + $0x6c] sm:$0xf]  ;;  %v3621_v35 = vld [vmem:[#allocation11 + $0x78] sm:$0xf0] }
 0x12f   :  { %1380 = vmatpush.bf16.msrb.mxu3 %v3688_v10  ;;  %v3632_v10 = vor.u32 %v4473_v47, %v3629_v51  ;;  %v3636_v59 = vor.u32 %v4476_v57, %v3635_v52  ;;  %v4466_v51 = vld [vmem:[#allocation11 + $0x4c] sm:$0xf]  ;;  %v3605_v57 = vld [vmem:[#allocation11 + $0x58] sm:$0xf0] }
 0x130   :  { %1018 = vmatmul.bf16.vlgmr.msra.gmra.mxu0 %v817_v39  ;;  %1031 = vmatmul.bf16.vlgmr.msra.gmra.mxu1 %v817_v39  ;;  %v3608_v60 = vor.u32 %v4466_v51, %v3605_v57  ;;  %v3573_v51 = vld [vmem:[#allocation11 + $0x18] sm:$0xf0] }
 0x131   :  { %1044 = vmatmul.bf16.vlgmr.msra.gmra.mxu2 %v817_v39  ;;  %1057 = vmatmul.bf16.vlgmr.msra.gmra.mxu3 %v817_v39  ;;  %v3648_v39 = vor.u32 %v4477_v13, %v3645_v17 }
 0x132   :  { %1369 = vmatpush.bf16.msrb.mxu2 %v3652_v41  ;;  %1345 = vmatpush.bf16.msrb.mxu0 %v3612_v49  ;;  %v3581_v49 = vld [vmem:[#allocation11 + $0x30] sm:$0xf0] }
 0x133   :  { %1381 = vmatpush.bf16.msrb.mxu3 %v3672_v16  ;;  %1356 = vmatpush.bf16.msrb.mxu1 %v3648_v39  ;;  %v3619_v16 = vld [vmem:[#allocation11 + $0x68] sm:$0xf]  ;;  %v3624_v39 = vor.u32 %v4470_v33, %v3621_v35 }
 0x134   :  { %v3620_v17 = vor.u32 %v4472_v55, %v3619_v16  ;;  %v4464_v16 = vld [vmem:[#allocation11 + $0x34] sm:$0xf0]  ;;  %v3584_v55 = vor.u32 %v4461_v1, %v3581_v49 }
 0x136   :  { %1370 = vmatpush.bf16.msrb.mxu2 %v3636_v59 }
 0x137   :  { %1382 = vmatpush.bf16.msrb.mxu3 %v3656_v18  ;;  %1357 = vmatpush.bf16.msrb.mxu1 %v3632_v10  ;;  %v4467_v18 = vld [vmem:[#allocation11 + $0x4c] sm:$0xf0] }
 0x138   :  { %v3596_v47 = vor.u32 %v4467_v18, %v3595_v43 }
 0x13a   :  { %1371 = vmatpush.bf16.msrb.mxu2 %v3620_v17  ;;  %1346 = vmatpush.bf16.msrb.mxu0 %v3596_v47 }
 0x13b   :  { %1383 = vmatpush.bf16.msrb.mxu3 %v3640_v0  ;;  %1358 = vmatpush.bf16.msrb.mxu1 %v3616_v24  ;;  %v4463_v0 = vld [vmem:[#allocation11 + $0x2c] sm:$0xf0]  ;;  %v3589_v24 = vld [vmem:[#allocation11 + $0x38] sm:$0xf0] }
 0x13f   :  { %1384 = vmatpush.bf16.msrb.mxu3 %v3624_v39  ;;  %v3563_v39 = vld [vmem:[#allocation11] sm:$0xf] }
 0x143   :  { %1385 = vmatpush.bf16.msrb.mxu3 %v3608_v60 }
 0x1ad   :  { %v1019_v11 = vpop.f32.mrf.mxu0  ;;  %v1032_v14 = vpop.f32.mrf.mxu1 }
 0x1ae   :  { %v1062_v31 = vadd.f32 %v1019_v11, %v5002_v20  ;;  %v1063_v13 = vadd.f32 %v1032_v14, %v5005_v22  ;;  %v3600_v20 = vor.u32 %v4465_v23, %v3597_v44  ;;  %v4468_v22 = vld [vmem:[#allocation11 + $0x54] sm:$0xf0]  ;;  %v3580_v14 = vor.u32 %v4463_v0, %v3579_v63  ;;  %v3565_v23 = vld [vmem:[#allocation11 + $0x10] sm:$0xf0]  ;;  %v3571_v44 = vld [vmem:[#allocation11 + $0x8] sm:$0xf] }
 0x1af   :  { %v3604_v52 = vor.u32 %v4468_v22, %v3603_v15  ;;  %v4460_v15 = vld [vmem:[#allocation11 + $0x14] sm:$0xf0]  ;;  %v4458_v22 = vld [vmem:[#allocation11 + $0xc] sm:$0xf]  ;;  %v1463_v0 = vsel %vm3692_vm0, 1, %v4901_v5 }
 0x1b0   :  { %v3557_v41 = vmul.f32 -1.442695, %v1062_v31  ;;  %v3558_v27 = vmul.f32 -1.442695, %v1063_v13  ;;  %1359 = vmatpush.bf16.msrb.mxu1 %v3600_v20  ;;  %v3588_v31 = vor.u32 %v4464_v16, %v3587_v19  ;;  %v4462_v13 = vld [vmem:[#allocation11 + $0x2c] sm:$0xf]  ;;  %1347 = vmatpush.bf16.msrb.mxu0 %v3580_v14  ;;  %v3576_v60 = vor.u32 %v4458_v22, %v3573_v51 }
 0x1b1   :  { %1372 = vmatpush.bf16.msrb.mxu2 %v3604_v52  ;;  %v3592_v33 = vor.u32 %v4462_v13, %v3589_v24  ;;  %1465 = vperm.xlu1 %4660, %v1463_v0  }
 0x1b2   :  { %4678 = vpow2.f32 %v3557_v41  ;;  %v4459_v41 = vld [vmem:[#allocation11 + $0xc] sm:$0xf0] }
 0x1b3   :  { %4680 = vpow2.f32 %v3558_v27  ;;  %v3564_v18 = vor.u32 %v4459_v41, %v3563_v39  ;;  %1386 = vmatpush.bf16.msrb.mxu3 %v3592_v33 }
 0x1b4   :  { %v1045_v10 = vpop.f32.mrf.mxu2  ;;  %v1058_v59 = vpop.f32.mrf.mxu3  ;;  %1360 = vmatpush.bf16.msrb.mxu1 %v3584_v55 }
 0x1b5   :  { %v1064_v8 = vadd.f32 %v1045_v10, %v5012_v26  ;;  %v1021_v9 = vpop.f32.mrf.mxu0  ;;  %v1034_v11 = vpop.f32.mrf.mxu1  ;;  %v4457_v26 = vld [vmem:[#allocation11 + $0x4] sm:$0xf]  ;;  %1373 = vmatpush.bf16.msrb.mxu2 %v3588_v31  ;;  %1348 = vmatpush.bf16.msrb.mxu0 %v3564_v18  ;;  %v3572_v10 = vor.u32 %v4460_v15, %v3571_v44  ;;  %v1794_v31 = vsel %vm3824_vm1, 1, %v4901_v5 }
 0x1b6   :  { %v3568_v20 = vor.u32 %v4457_v26, %v3565_v23  ;;  %v1065_v9 = vadd.f32 %v1058_v59, %v5015_v29 }
 0x1b7   :  { %v3559_v17 = vmul.f32 -1.442695, %v1064_v8  ;;  %1387 = vmatpush.bf16.msrb.mxu3 %v3576_v60 }
 0x1b8   :  { %v4679_v35 = vpop.eup %4678  ;;  %1361 = vmatpush.bf16.msrb.mxu1 %v3568_v20 }
 0x1b9   :  { %v4681_v27 = vpop.eup %4680  ;;  %v1075_v43 = vadd.f32 1.0, %v4679_v35  ;;  %4682 = vpow2.f32 %v3559_v17  ;;  %1374 = vmatpush.bf16.msrb.mxu2 %v3572_v10  ;;  %1796 = vperm.xlu1 %4660, %v1794_v31  }
 0x1ba   :  { %v1076_v47 = vadd.f32 1.0, %v4681_v27 }
 0x1bb   :  { %4684 = vrcp.f32 %v1075_v43  ;;  %v1089_v55 = vand.u32 2147483648, %v1075_v43  ;;  %v1087_v17 = vand.u32 2147483647, %v1075_v43  ;;  %vm1083_vm4 = vweird.f32 %v1075_v43 }
 0x1bc   :  { %4686 = vrcp.f32 %v1076_v47  ;;  %v1047_v52 = vpop.f32.mrf.mxu2  ;;  %v1060_v57 = vpop.f32.mrf.mxu3  ;;  %v1104_v13 = vand.u32 2147483648, %v1076_v47  ;;  %v1102_v35 = vand.u32 2147483647, %v1076_v47  ;;  %vm1098_vm5 = vweird.f32 %v1076_v47 }
 0x1bd   :  { %v1090_v41 = vor.u32 1.1754944e-38, %v1089_v55  ;;  %vm1088_vm8 = vcmp.eq.f32.partialorder %v1087_v17, 8.507059e+37  ;;  %v3118_v52 = vsel %vm4352_vm9, 1, %v4901_v5  ;;  %v1135_v57 = vpop.permute.xlu0 %1134  ;;  %v4517_v55 = vld [vmem:[#allocation11 + $0xe4] sm:$0xf] }
 0x1be   :  { %v1105_v27 = vor.u32 1.1754944e-38, %v1104_v13  ;;  %vm1103_vm10 = vcmp.eq.f32.partialorder %v1102_v35, 8.507059e+37  ;;  %vm1136_vm11 = vcmp.eq.s32.totalorder %v1135_v57, 1  ;;  %v3809_v13 = vld [vmem:[#allocation11 + $0xf0] sm:$0xf0] }
 0x1bf   :  { %v4683_v63 = vpop.eup %4682  ;;  %v4520_v17 = vld [vmem:[#allocation11 + $0xf4] sm:$0xf0]  ;;  %v4509_v57 = vld [vmem:[#allocation11 + $0xa4] sm:$0xf] }
 0x1c0   :  { %v1077_v1 = vadd.f32 1.0, %v4683_v63 }
 0x1c1   :  { %v4685_v8 = vpop.eup %4684  ;;  %3120 = vperm.xlu1 %4660, %v3118_v52   ;;  %v4511_v52 = vld [vmem:[#allocation11 + $0xac] sm:$0xf0] }
 0x1c2   :  { %v4687_v11 = vpop.eup %4686  ;;  %v1079_v14 = vmul.f32 %v4685_v8, %v1075_v43  ;;  %4688 = vrcp.f32 %v1077_v1  ;;  %vm1084_vm2 = vweird.f32 %v4685_v8  ;;  %v1119_v63 = vand.u32 2147483648, %v1077_v1 }
 0x1c3   :  { %v1094_v49 = vmul.f32 %v4687_v11, %v1076_v47  ;;  %4690 = vtanh.f32 %v1065_v9  ;;  %vm1099_vm3 = vweird.f32 %v4687_v11  ;;  %vm1085_vm6 = vmor %vm1083_vm4, %vm1084_vm2  ;;  %vm1113_vm13 = vweird.f32 %v1077_v1 }
 0x1c4   :  { %v1080_v19 = vsub.f32 1.0, %v1079_v14  ;;  %vm1100_vm7 = vmor %vm1098_vm5, %vm1099_vm3  ;;  %v1117_v0 = vand.u32 2147483647, %v1077_v1  ;;  %v1120_v9 = vor.u32 1.1754944e-38, %v1119_v63  ;;  %v3783_v63 = vld [vmem:[#allocation11 + $0xa8] sm:$0xf] }
 0x1c5   :  { %v1095_v16 = vsub.f32 1.0, %v1094_v49 }
 0x1c6   :  { %v1081_v24 = vmul.f32 %v4685_v8, %v1080_v19  ;;  %vm1118_vm15 = vcmp.eq.f32.partialorder %v1117_v0, 8.507059e+37  ;;  %v4512_v0 = vld [vmem:[#allocation11 + $0xb4] sm:$0xf0] }
 0x1c7   :  { %v1096_v33 = vmul.f32 %v4687_v11, %v1095_v16 }
 0x1c8   :  { %v4689_v29 = vpop.eup %4688  ;;  %v1082_v59 = vadd.f32 %v4685_v8, %v1081_v24  ;;  %v3815_v24 = vld [vmem:[#allocation11 + $0xe8] sm:$0xf] }
 0x1c9   :  { %v1109_v39 = vmul.f32 %v4689_v29, %v1077_v1  ;;  %v1097_v26 = vadd.f32 %v4687_v11, %v1096_v33  ;;  %v4691_v23 = vpop.eup %4690  ;;  %vm1114_vm12 = vweird.f32 %v4689_v29  ;;  %v4519_v1 = vld [vmem:[#allocation11 + $0xec] sm:$0xf0]  ;;  %v3812_v33 = vor.u32 %v4517_v55, %v3809_v13  ;;  %v3767_v13 = vld [vmem:[#allocation11 + $0x88] sm:$0xf] }
 0x1ca   :  { %v1086_v18 = vsel %vm1085_vm6, %v4685_v8, %v1082_v59  ;;  %vm1115_vm14 = vmor %vm1113_vm13, %vm1114_vm12  ;;  %v3816_v35 = vor.u32 %v4520_v17, %v3815_v24  ;;  %v3817_v59 = vld [vmem:[#allocation11 + $0xf8] sm:$0xf0]  ;;  %v4508_v24 = vld [vmem:[#allocation11 + $0x94] sm:$0xf0] }
 0x1cb   :  { %v1110_v44 = vsub.f32 1.0, %v1109_v39  ;;  %v1091_v20 = vsel %vm1088_vm8, %v1090_v41, %v1086_v18  ;;  %v1101_v15 = vsel %vm1100_vm7, %v4687_v11, %v1097_v26  ;;  %1685 = vmatpush.bf16.msra.mxu1 %v3812_v33  ;;  %v3791_v39 = vld [vmem:[#allocation11 + $0xc0] sm:$0xf]  ;;  %v4515_v41 = vld [vmem:[#allocation11 + $0xcc] sm:$0xf0]  ;;  %v3768_v33 = vor.u32 %v4508_v24, %v3767_v13 }
 0x1cc   :  { %v1106_v22 = vsel %vm1103_vm10, %v1105_v27, %v1101_v15  ;;  %v1125_v51 = vmul.f32 %v4691_v23, %v1091_v20  ;;  %1698 = vmatpush.bf16.msra.mxu2 %v3816_v35  ;;  %v4513_v26 = vld [vmem:[#allocation11 + $0xc4] sm:$0xf]  ;;  %v3792_v27 = vor.u32 %v4515_v41, %v3791_v39  ;;  %v3793_v18 = vld [vmem:[#allocation11 + $0xd0] sm:$0xf0]  ;;  %v3799_v23 = vld [vmem:[#allocation11 + $0xc8] sm:$0xf] }
 0x1cd   :  { %v1111_v43 = vmul.f32 %v4689_v29, %v1110_v44  ;;  %v1124_v47 = vmul.f32 %v1106_v22, %v5098_v28  ;;  %v4516_v44 = vld [vmem:[#allocation11 + $0xd4] sm:$0xf0]  ;;  %v3796_v20 = vor.u32 %v4513_v26, %v3793_v18  ;;  %v4514_v22 = vld [vmem:[#allocation11 + $0xcc] sm:$0xf]  ;;  %v4503_v39 = vld [vmem:[#allocation11 + $0x6c] sm:$0xf0] }
 0x1ce   :  { %v3800_v15 = vor.u32 %v4516_v44, %v3799_v23  ;;  %v4506_v35 = vld [vmem:[#allocation11 + $0x8c] sm:$0xf]  ;;  %v4501_v41 = vld [vmem:[#allocation11 + $0x64] sm:$0xf]  ;;  %v3745_v23 = vld [vmem:[#allocation11 + $0x70] sm:$0xf0] }
 0x1cf   :  { %v1126_v10 = vadd.f32 %v1125_v51, %v1124_v47  ;;  %v1112_v60 = vadd.f32 %v4689_v29, %v1111_v43  ;;  %v3801_v51 = vld [vmem:[#allocation11 + $0xd8] sm:$0xf0]  ;;  %1686 = vmatpush.bf16.msra.mxu1 %v3796_v20  ;;  %v3775_v47 = vld [vmem:[#allocation11 + $0xa0] sm:$0xf]  ;;  %v3751_v44 = vld [vmem:[#allocation11 + $0x68] sm:$0xf] }
 0x1d0   :  { %v3804_v43 = vor.u32 %v4514_v22, %v3801_v51  ;;  %1699 = vmatpush.bf16.msra.mxu2 %v3800_v15  ;;  %v4504_v20 = vld [vmem:[#allocation11 + $0x74] sm:$0xf0]  ;;  %v3748_v51 = vor.u32 %v4501_v41, %v3745_v23  ;;  %v3711_v13 = vld [vmem:[#allocation11 + $0x20] sm:$0xf]  ;;  %v4495_v24 = vld [vmem:[#allocation11 + $0x2c] sm:$0xf0] }
 0x1d1   :  { %4692 = vtanh.f32 %v1126_v10  ;;  %v5119_v4 = vsel %vm1136_vm11, %v1126_v10, %v5098_v28  ;;  %v1116_v8 = vsel %vm1115_vm14, %v4689_v29, %v1112_v60  ;;  %v3807_v28 = vld [vmem:[#allocation11 + $0xe0] sm:$0xf]  ;;  %v4518_v29 = vld [vmem:[#allocation11 + $0xec] sm:$0xf]  ;;  %v3776_v10 = vor.u32 %v4511_v52, %v3775_v47  ;;  %v3777_v60 = vld [vmem:[#allocation11 + $0xb0] sm:$0xf0] }
 0x1d2   :  { %v1121_v14 = vsel %vm1118_vm15, %v1120_v9, %v1116_v8  ;;  %v3808_v31 = vor.u32 %v4519_v1, %v3807_v28  ;;  %v3780_v8 = vor.u32 %v4509_v57, %v3777_v60  ;;  %v3784_v9 = vor.u32 %v4512_v0, %v3783_v63  ;;  %v4507_v28 = vld [vmem:[#allocation11 + $0x8c] sm:$0xf0]  ;;  %v4505_v1 = vld [vmem:[#allocation11 + $0x84] sm:$0xf]  ;;  %v4502_v47 = vld [vmem:[#allocation11 + $0x6c] sm:$0xf] }
 0x1d3   :  { %v3753_v52 = vld [vmem:[#allocation11 + $0x78] sm:$0xf0]  ;;  %v3727_v63 = vld [vmem:[#allocation11 + $0x40] sm:$0xf]  ;;  %v4499_v0 = vld [vmem:[#allocation11 + $0x4c] sm:$0xf0] }
 0x1d4   :  { %1672 = vmatpush.bf16.msra.mxu0 %v3808_v31  ;;  %1687 = vmatpush.bf16.msra.mxu1 %v3780_v8  ;;  %v3761_v31 = vld [vmem:[#allocation11 + $0x90] sm:$0xf0]  ;;  %v3756_v57 = vor.u32 %v4502_v47, %v3753_v52  ;;  %v4497_v8 = vld [vmem:[#allocation11 + $0x44] sm:$0xf]  ;;  %v4496_v41 = vld [vmem:[#allocation11 + $0x34] sm:$0xf0] }
 0x1d5   :  { %1700 = vmatpush.bf16.msra.mxu2 %v3784_v9  ;;  %v3764_v17 = vor.u32 %v4505_v1, %v3761_v31  ;;  %v3728_v9 = vor.u32 %v4499_v0, %v3727_v63  ;;  %v3721_v23 = vld [vmem:[#allocation11 + $0x38] sm:$0xf0]  ;;  %v3703_v63 = vld [vmem:[#allocation11 + $0x8] sm:$0xf]  ;;  %v4492_v0 = vld [vmem:[#allocation11 + $0x14] sm:$0xf0] }
 0x1d7   :  { %v4693_v11 = vpop.eup %4692 }
 0x1d8   :  { %v1128_v49 = vmul.f32 %v4693_v11, %v1121_v14  ;;  %1673 = vmatpush.bf16.msra.mxu0 %v3792_v27  ;;  %v4510_v11 = vld [vmem:[#allocation11 + $0xac] sm:$0xf]  ;;  %v3785_v14 = vld [vmem:[#allocation11 + $0xb8] sm:$0xf0]  ;;  %1688 = vmatpush.bf16.msra.mxu1 %v3764_v17  ;;  %v4493_v17 = vld [vmem:[#allocation11 + $0x24] sm:$0xf] }
 0x1d9   :  { %1701 = vmatpush.bf16.msra.mxu2 %v3768_v33 }
 0x1da   :  { %v5123_v19 = vsel %vm1136_vm11, %v1128_v49, %v5102_v36  ;;  %v3820_v36 = vor.u32 %v4518_v29, %v3817_v59  ;;  %v3788_v49 = vor.u32 %v4510_v11, %v3785_v14  ;;  %v3769_v29 = vld [vmem:[#allocation11 + $0x98] sm:$0xf0]  ;;  %v3729_v11 = vld [vmem:[#allocation11 + $0x50] sm:$0xf0]  ;;  %v4500_v14 = vld [vmem:[#allocation11 + $0x54] sm:$0xf0] }
 0x1db   :  { %v1148_v16 = vpack.c.bf16 %v5123_v19, %v5123_v19  ;;  %v3772_v59 = vor.u32 %v4506_v35, %v3769_v29 }
 0x1dc   :  { %1711 = vmatpush.bf16.msra.mxu3 %v3820_v36  ;;  %1674 = vmatpush.bf16.msra.mxu0 %v3776_v10  ;;  %v3743_v36 = vld [vmem:[#allocation11 + $0x60] sm:$0xf] }
 0x1dd   :  { %1349 = vmatmul.bf16.vlgmr.msrb.gmra.mxu0 %v1148_v16  ;;  %1362 = vmatmul.bf16.vlgmr.msrb.gmra.mxu1 %v1148_v16  ;;  %v3744_v18 = vor.u32 %v4503_v39, %v3743_v36  ;;  %v3713_v36 = vld [vmem:[#allocation11 + $0x30] sm:$0xf0]  ;;  %v3719_v39 = vld [vmem:[#allocation11 + $0x28] sm:$0xf] }
 0x1de   :  { %1375 = vmatmul.bf16.vlgmr.msrb.gmra.mxu2 %v1148_v16  ;;  %1388 = vmatmul.bf16.vlgmr.msrb.gmra.mxu3 %v1148_v16  ;;  %v3759_v16 = vld [vmem:[#allocation11 + $0x80] sm:$0xf] }
 0x1df   :  { %v3760_v55 = vor.u32 %v4507_v28, %v3759_v16  ;;  %1689 = vmatpush.bf16.msra.mxu1 %v3748_v51  ;;  %v4498_v16 = vld [vmem:[#allocation11 + $0x4c] sm:$0xf]  ;;  %v3737_v28 = vld [vmem:[#allocation11 + $0x58] sm:$0xf0]  ;;  %v4491_v51 = vld [vmem:[#allocation11 + $0xc] sm:$0xf0] }
 0x1e0   :  { %1712 = vmatpush.bf16.msra.mxu3 %v3804_v43  ;;  %v3752_v43 = vor.u32 %v4504_v20, %v3751_v44  ;;  %v3740_v31 = vor.u32 %v4498_v16, %v3737_v28 }
 0x1e1   :  { %1675 = vmatpush.bf16.msra.mxu0 %v3760_v55 }
 0x1e2   :  { %1702 = vmatpush.bf16.msra.mxu2 %v3752_v43 }
 0x1e4   :  { %1713 = vmatpush.bf16.msra.mxu3 %v3788_v49 }
 0x1e5   :  { %1676 = vmatpush.bf16.msra.mxu0 %v3744_v18  ;;  %v4494_v18 = vld [vmem:[#allocation11 + $0x2c] sm:$0xf] }
 0x1e6   :  { %v3724_v20 = vor.u32 %v4494_v18, %v3721_v23 }
 0x1e8   :  { %1714 = vmatpush.bf16.msra.mxu3 %v3772_v59  ;;  %v3712_v59 = vor.u32 %v4495_v24, %v3711_v13 }
 0x1e9   :  { %1677 = vmatpush.bf16.msra.mxu0 %v3728_v9 }
 0x1ec   :  { %1715 = vmatpush.bf16.msra.mxu3 %v3756_v57  ;;  %v3697_v57 = vld [vmem:[#allocation11 + $0x10] sm:$0xf0] }
 0x1ed   :  { %1678 = vmatpush.bf16.msra.mxu0 %v3712_v59 }
 0x1f0   :  { %1716 = vmatpush.bf16.msra.mxu3 %v3740_v31 }
 0x1f4   :  { %1717 = vmatpush.bf16.msra.mxu3 %v3724_v20 }
 0x25a   :  { %v1350_v26 = vpop.f32.mrf.mxu0  ;;  %v1363_v27 = vpop.f32.mrf.mxu1 }
 0x25b   :  { %v1393_v15 = vadd.f32 %v1350_v26, %v5018_v30  ;;  %v1394_v22 = vadd.f32 %v1363_v27, %v5021_v32  ;;  %v3735_v30 = vld [vmem:[#allocation11 + $0x48] sm:$0xf]  ;;  %v3732_v32 = vor.u32 %v4497_v8, %v3729_v11  ;;  %v3716_v26 = vor.u32 %v4493_v17, %v3713_v36  ;;  %v4490_v8 = vld [vmem:[#allocation11 + $0xc] sm:$0xf] }
 0x25c   :  { %v3736_v49 = vor.u32 %v4500_v14, %v3735_v30  ;;  %v3720_v27 = vor.u32 %v4496_v41, %v3719_v39  ;;  %v3705_v30 = vld [vmem:[#allocation11 + $0x18] sm:$0xf0]  ;;  %v3704_v14 = vor.u32 %v4492_v0, %v3703_v63 }
 0x25d   :  { %v3689_v10 = vmul.f32 -1.442695, %v1393_v15  ;;  %v3690_v60 = vmul.f32 -1.442695, %v1394_v22  ;;  %1690 = vmatpush.bf16.msra.mxu1 %v3732_v32  ;;  %v3695_v22 = vld [vmem:[#allocation11] sm:$0xf]  ;;  %v3708_v32 = vor.u32 %v4490_v8, %v3705_v30 }
 0x25e   :  { %1703 = vmatpush.bf16.msra.mxu2 %v3736_v49  ;;  %v3696_v52 = vor.u32 %v4491_v51, %v3695_v22 }
 0x25f   :  { %4694 = vpow2.f32 %v3689_v10  ;;  %1718 = vmatpush.bf16.msra.mxu3 %v3708_v32 }
 0x260   :  { %4696 = vpow2.f32 %v3690_v60  ;;  %1679 = vmatpush.bf16.msra.mxu0 %v3696_v52  ;;  %v1466_v52 = vpop.permute.xlu1 %1465 }
 0x261   :  { %v1376_v1 = vpop.f32.mrf.mxu2  ;;  %v1389_v55 = vpop.f32.mrf.mxu3  ;;  %1691 = vmatpush.bf16.msra.mxu1 %v3716_v26  ;;  %vm1467_vm8 = vcmp.eq.s32.totalorder %v1466_v52, 1  ;;  %v3909_v52 = vld [vmem:[#allocation11 + $0xb0] sm:$0xf0] }
 0x262   :  { %v1395_v33 = vadd.f32 %v1376_v1, %v5024_v34  ;;  %v1352_v35 = vpop.f32.mrf.mxu0  ;;  %v1365_v29 = vpop.f32.mrf.mxu1  ;;  %v4489_v34 = vld [vmem:[#allocation11 + $0x4] sm:$0xf]  ;;  %1704 = vmatpush.bf16.msra.mxu2 %v3720_v27  ;;  %v1396_v1 = vadd.f32 %v1389_v55, %v5027_v37 }
 0x263   :  { %v3700_v60 = vor.u32 %v4489_v34, %v3697_v57 }
 0x264   :  { %v3691_v44 = vmul.f32 -1.442695, %v1395_v33 }
 0x265   :  { %v4695_v15 = vpop.eup %4694  ;;  %1692 = vmatpush.bf16.msra.mxu1 %v3700_v60 }
 0x266   :  { %v4697_v43 = vpop.eup %4696  ;;  %v1406_v47 = vadd.f32 1.0, %v4695_v15  ;;  %4698 = vpow2.f32 %v3691_v44  ;;  %1705 = vmatpush.bf16.msra.mxu2 %v3704_v14 }
 0x267   :  { %v1407_v10 = vadd.f32 1.0, %v4697_v43 }
 0x268   :  { %4700 = vrcp.f32 %v1406_v47  ;;  %v1420_v35 = vand.u32 2147483648, %v1406_v47  ;;  %v1418_v59 = vand.u32 2147483647, %v1406_v47  ;;  %vm1414_vm2 = vweird.f32 %v1406_v47 }
 0x269   :  { %4702 = vrcp.f32 %v1407_v10  ;;  %v1378_v9 = vpop.f32.mrf.mxu2  ;;  %v1391_v11 = vpop.f32.mrf.mxu3  ;;  %v1435_v36 = vand.u32 2147483648, %v1407_v10  ;;  %v1433_v41 = vand.u32 2147483647, %v1407_v10  ;;  %vm1429_vm4 = vweird.f32 %v1407_v10 }
 0x26a   :  { %v1421_v37 = vor.u32 1.1754944e-38, %v1420_v35  ;;  %vm1419_vm5 = vcmp.eq.f32.partialorder %v1418_v59, 8.507059e+37  ;;  %v3949_v59 = vld [vmem:[#allocation11 + $0xf8] sm:$0xf0] }
 0x26b   :  { %v1436_v44 = vor.u32 1.1754944e-38, %v1435_v36  ;;  %vm1434_vm7 = vcmp.eq.f32.partialorder %v1433_v41, 8.507059e+37  ;;  %v3923_v36 = vld [vmem:[#allocation11 + $0xc0] sm:$0xf]  ;;  %v4545_v41 = vld [vmem:[#allocation11 + $0xc4] sm:$0xf] }
 0x26c   :  { %v4699_v49 = vpop.eup %4698 }
 0x26d   :  { %v1408_v16 = vadd.f32 1.0, %v4699_v49 }
 0x26e   :  { %v4701_v28 = vpop.eup %4700 }
 0x26f   :  { %v4703_v31 = vpop.eup %4702  ;;  %v1410_v13 = vmul.f32 %v4701_v28, %v1406_v47  ;;  %4704 = vrcp.f32 %v1408_v16  ;;  %vm1415_vm0 = vweird.f32 %v4701_v28  ;;  %vm1444_vm10 = vweird.f32 %v1408_v16 }
 0x270   :  { %v1425_v24 = vmul.f32 %v4703_v31, %v1407_v10  ;;  %4706 = vtanh.f32 %v1396_v1  ;;  %vm1430_vm1 = vweird.f32 %v4703_v31  ;;  %vm1416_vm3 = vmor %vm1414_vm2, %vm1415_vm0  ;;  %v1450_v10 = vand.u32 2147483648, %v1408_v16  ;;  %v4549_v1 = vld [vmem:[#allocation11 + $0xe4] sm:$0xf] }
 0x271   :  { %v1411_v17 = vsub.f32 1.0, %v1410_v13  ;;  %vm1431_vm6 = vmor %vm1429_vm4, %vm1430_vm1  ;;  %v1448_v8 = vand.u32 2147483647, %v1408_v16  ;;  %v3941_v13 = vld [vmem:[#allocation11 + $0xf0] sm:$0xf0] }
 0x272   :  { %v1426_v33 = vsub.f32 1.0, %v1425_v24  ;;  %v1451_v11 = vor.u32 1.1754944e-38, %v1450_v10  ;;  %v3947_v24 = vld [vmem:[#allocation11 + $0xe8] sm:$0xf]  ;;  %v4542_v10 = vld [vmem:[#allocation11 + $0xac] sm:$0xf] }
 0x273   :  { %v1412_v29 = vmul.f32 %v4701_v28, %v1411_v17  ;;  %vm1449_vm12 = vcmp.eq.f32.partialorder %v1448_v8, 8.507059e+37  ;;  %v4552_v17 = vld [vmem:[#allocation11 + $0xf4] sm:$0xf0]  ;;  %v3917_v8 = vld [vmem:[#allocation11 + $0xb8] sm:$0xf0] }
 0x274   :  { %v1427_v39 = vmul.f32 %v4703_v31, %v1426_v33  ;;  %v3944_v33 = vor.u32 %v4549_v1, %v3941_v13  ;;  %v3948_v35 = vor.u32 %v4552_v17, %v3947_v24  ;;  %v4538_v13 = vld [vmem:[#allocation11 + $0x8c] sm:$0xf]  ;;  %v3901_v24 = vld [vmem:[#allocation11 + $0x98] sm:$0xf0] }
 0x275   :  { %v4705_v26 = vpop.eup %4704  ;;  %v1413_v27 = vadd.f32 %v4701_v28, %v1412_v29  ;;  %v4550_v29 = vld [vmem:[#allocation11 + $0xec] sm:$0xf]  ;;  %v3904_v17 = vor.u32 %v4538_v13, %v3901_v24  ;;  %v3851_v13 = vld [vmem:[#allocation11 + $0x28] sm:$0xf]  ;;  %v4528_v24 = vld [vmem:[#allocation11 + $0x34] sm:$0xf0] }
 0x276   :  { %v1440_v18 = vmul.f32 %v4705_v26, %v1408_v16  ;;  %v1428_v55 = vadd.f32 %v4703_v31, %v1427_v39  ;;  %v4707_v20 = vpop.eup %4706  ;;  %vm1445_vm9 = vweird.f32 %v4705_v26  ;;  %v4551_v16 = vld [vmem:[#allocation11 + $0xec] sm:$0xf0]  ;;  %2016 = vmatpush.bf16.msrb.mxu1 %v3944_v33  ;;  %2029 = vmatpush.bf16.msrb.mxu2 %v3948_v35  ;;  %v3875_v33 = vld [vmem:[#allocation11 + $0x60] sm:$0xf] }
 0x277   :  { %v1417_v23 = vsel %vm1416_vm3, %v4701_v28, %v1413_v27  ;;  %vm1446_vm11 = vmor %vm1444_vm10, %vm1445_vm9  ;;  %v4547_v39 = vld [vmem:[#allocation11 + $0xcc] sm:$0xf0]  ;;  %v3925_v27 = vld [vmem:[#allocation11 + $0xd0] sm:$0xf0] }
 0x278   :  { %v1441_v15 = vsub.f32 1.0, %v1440_v18  ;;  %v1422_v22 = vsel %vm1419_vm5, %v1421_v37, %v1417_v23  ;;  %v1432_v51 = vsel %vm1431_vm6, %v4703_v31, %v1428_v55  ;;  %v3931_v18 = vld [vmem:[#allocation11 + $0xc8] sm:$0xf]  ;;  %v4548_v37 = vld [vmem:[#allocation11 + $0xd4] sm:$0xf0]  ;;  %v3928_v55 = vor.u32 %v4545_v41, %v3925_v27 }
 0x279   :  { %v1456_v34 = vmul.f32 %v4707_v20, %v1422_v22  ;;  %v1437_v43 = vsel %vm1434_vm7, %v1436_v44, %v1432_v51  ;;  %v3932_v23 = vor.u32 %v4548_v37, %v3931_v18  ;;  %v4546_v44 = vld [vmem:[#allocation11 + $0xcc] sm:$0xf]  ;;  %v3933_v20 = vld [vmem:[#allocation11 + $0xd8] sm:$0xf0]  ;;  %v3907_v22 = vld [vmem:[#allocation11 + $0xa0] sm:$0xf] }
 0x27a   :  { %v1442_v57 = vmul.f32 %v4705_v26, %v1441_v15  ;;  %v1455_v47 = vmul.f32 %v1437_v43, %v5119_v4  ;;  %v3936_v15 = vor.u32 %v4546_v44, %v3933_v20  ;;  %2017 = vmatpush.bf16.msrb.mxu1 %v3928_v55  ;;  %v4543_v51 = vld [vmem:[#allocation11 + $0xac] sm:$0xf0]  ;;  %v3883_v41 = vld [vmem:[#allocation11 + $0x68] sm:$0xf]  ;;  %v3885_v44 = vld [vmem:[#allocation11 + $0x78] sm:$0xf0] }
 0x27b   :  { %2030 = vmatpush.bf16.msrb.mxu2 %v3932_v23  ;;  %v3908_v43 = vor.u32 %v4543_v51, %v3907_v22  ;;  %v4535_v35 = vld [vmem:[#allocation11 + $0x6c] sm:$0xf0]  ;;  %v4534_v23 = vld [vmem:[#allocation11 + $0x6c] sm:$0xf]  ;;  %v3859_v51 = vld [vmem:[#allocation11 + $0x40] sm:$0xf] }
 0x27c   :  { %v1457_v60 = vadd.f32 %v1456_v34, %v1455_v47  ;;  %v1443_v63 = vadd.f32 %v4705_v26, %v1442_v57  ;;  %v4541_v34 = vld [vmem:[#allocation11 + $0xa4] sm:$0xf]  ;;  %v3915_v57 = vld [vmem:[#allocation11 + $0xa8] sm:$0xf]  ;;  %v4544_v47 = vld [vmem:[#allocation11 + $0xb4] sm:$0xf0]  ;;  %v3888_v20 = vor.u32 %v4534_v23, %v3885_v44 }
 0x27e   :  { %4708 = vtanh.f32 %v1457_v60  ;;  %v5134_v0 = vsel %vm1467_vm8, %v1457_v60, %v5119_v4  ;;  %v1447_v9 = vsel %vm1446_vm11, %v4705_v26, %v1443_v63  ;;  %v3939_v4 = vld [vmem:[#allocation11 + $0xe0] sm:$0xf]  ;;  %v3924_v26 = vor.u32 %v4547_v39, %v3923_v36  ;;  %v3877_v39 = vld [vmem:[#allocation11 + $0x70] sm:$0xf0] }
 0x27f   :  { %v1452_v14 = vsel %vm1449_vm12, %v1451_v11, %v1447_v9  ;;  %v3940_v31 = vor.u32 %v4551_v16, %v3939_v4  ;;  %v3912_v60 = vor.u32 %v4541_v34, %v3909_v52  ;;  %v3916_v63 = vor.u32 %v4544_v47, %v3915_v57  ;;  %v3891_v11 = vld [vmem:[#allocation11 + $0x80] sm:$0xf]  ;;  %v3899_v4 = vld [vmem:[#allocation11 + $0x88] sm:$0xf]  ;;  %v4540_v16 = vld [vmem:[#allocation11 + $0x94] sm:$0xf0] }
 0x280   :  { %v3920_v9 = vor.u32 %v4542_v10, %v3917_v8  ;;  %v3876_v36 = vor.u32 %v4535_v35, %v3875_v33  ;;  %v4531_v34 = vld [vmem:[#allocation11 + $0x4c] sm:$0xf0]  ;;  %v3861_v52 = vld [vmem:[#allocation11 + $0x50] sm:$0xf0]  ;;  %v3867_v47 = vld [vmem:[#allocation11 + $0x48] sm:$0xf]  ;;  %v3852_v33 = vor.u32 %v4528_v24, %v3851_v13 }
 0x281   :  { %2003 = vmatpush.bf16.msrb.mxu0 %v3940_v31  ;;  %2018 = vmatpush.bf16.msrb.mxu1 %v3912_v60  ;;  %v3900_v31 = vor.u32 %v4540_v16, %v3899_v4  ;;  %v3860_v57 = vor.u32 %v4531_v34, %v3859_v51  ;;  %v4530_v60 = vld [vmem:[#allocation11 + $0x4c] sm:$0xf]  ;;  %v3869_v10 = vld [vmem:[#allocation11 + $0x58] sm:$0xf0] }
 0x282   :  { %2031 = vmatpush.bf16.msrb.mxu2 %v3916_v63  ;;  %v4526_v35 = vld [vmem:[#allocation11 + $0x2c] sm:$0xf] }
 0x284   :  { %v4709_v30 = vpop.eup %4708 }
 0x285   :  { %v1459_v32 = vmul.f32 %v4709_v30, %v1452_v14  ;;  %2004 = vmatpush.bf16.msrb.mxu0 %v3924_v26  ;;  %v4539_v30 = vld [vmem:[#allocation11 + $0x8c] sm:$0xf0]  ;;  %v4537_v14 = vld [vmem:[#allocation11 + $0x84] sm:$0xf]  ;;  %v4536_v26 = vld [vmem:[#allocation11 + $0x74] sm:$0xf0] }
 0x286   :  { %2032 = vmatpush.bf16.msrb.mxu2 %v3900_v31  ;;  %v3884_v55 = vor.u32 %v4536_v26, %v3883_v41  ;;  %v3845_v31 = vld [vmem:[#allocation11 + $0x30] sm:$0xf0]  ;;  %v4523_v41 = vld [vmem:[#allocation11 + $0xc] sm:$0xf0] }
 0x287   :  { %v5138_v49 = vsel %vm1467_vm8, %v1459_v32, %v5123_v19  ;;  %v3952_v19 = vor.u32 %v4550_v29, %v3949_v59  ;;  %v3892_v32 = vor.u32 %v4539_v30, %v3891_v11  ;;  %v4533_v29 = vld [vmem:[#allocation11 + $0x64] sm:$0xf]  ;;  %v3872_v11 = vor.u32 %v4530_v60, %v3869_v10  ;;  %v3843_v30 = vld [vmem:[#allocation11 + $0x20] sm:$0xf] }
 0x288   :  { %v1479_v28 = vpack.c.bf16 %v5138_v49, %v5138_v49  ;;  %v3880_v37 = vor.u32 %v4533_v29, %v3877_v39  ;;  %v3853_v29 = vld [vmem:[#allocation11 + $0x38] sm:$0xf0]  ;;  %v3827_v39 = vld [vmem:[#allocation11] sm:$0xf] }
 0x289   :  { %2042 = vmatpush.bf16.msrb.mxu3 %v3952_v19  ;;  %2005 = vmatpush.bf16.msrb.mxu0 %v3908_v43  ;;  %v4529_v43 = vld [vmem:[#allocation11 + $0x44] sm:$0xf] }
 0x28a   :  { %1680 = vmatmul.bf16.vlgmr.msra.gmra.mxu0 %v1479_v28  ;;  %1693 = vmatmul.bf16.vlgmr.msra.gmra.mxu1 %v1479_v28 }
 0x28b   :  { %1706 = vmatmul.bf16.vlgmr.msra.gmra.mxu2 %v1479_v28  ;;  %1719 = vmatmul.bf16.vlgmr.msra.gmra.mxu3 %v1479_v28  ;;  %v3893_v28 = vld [vmem:[#allocation11 + $0x90] sm:$0xf0] }
 0x28c   :  { %v3896_v1 = vor.u32 %v4537_v14, %v3893_v28  ;;  %2033 = vmatpush.bf16.msrb.mxu2 %v3884_v55  ;;  %v4527_v14 = vld [vmem:[#allocation11 + $0x2c] sm:$0xf0]  ;;  %v3835_v55 = vld [vmem:[#allocation11 + $0x8] sm:$0xf] }
 0x28d   :  { %2043 = vmatpush.bf16.msrb.mxu3 %v3936_v15  ;;  %2006 = vmatpush.bf16.msrb.mxu0 %v3892_v32  ;;  %v4525_v32 = vld [vmem:[#allocation11 + $0x24] sm:$0xf] }
 0x28e   :  { %2019 = vmatpush.bf16.msrb.mxu1 %v3896_v1  ;;  %v3844_v1 = vor.u32 %v4527_v14, %v3843_v30 }
 0x291   :  { %2044 = vmatpush.bf16.msrb.mxu3 %v3920_v9  ;;  %2007 = vmatpush.bf16.msrb.mxu0 %v3876_v36 }
 0x292   :  { %2020 = vmatpush.bf16.msrb.mxu1 %v3880_v37  ;;  %v3829_v37 = vld [vmem:[#allocation11 + $0x10] sm:$0xf0] }
 0x295   :  { %2045 = vmatpush.bf16.msrb.mxu3 %v3904_v17  ;;  %2008 = vmatpush.bf16.msrb.mxu0 %v3860_v57  ;;  %v3848_v17 = vor.u32 %v4525_v32, %v3845_v31  ;;  %v4790_v57 = vld [vmem:[%s5214_s1] sm:$0xff] }
 0x296   :  { %vm3956_vm13 = vcmp.gt.s32.totalorder %v4790_v57, 4  ;;  %vm4088_vm14 = vcmp.gt.s32.totalorder %v4790_v57, 5  ;;  %v4583_v57 = vld [vmem:[#allocation11 + $0xec] sm:$0xf0] }
 0x299   :  { %2046 = vmatpush.bf16.msrb.mxu3 %v3888_v20  ;;  %2009 = vmatpush.bf16.msrb.mxu0 %v3844_v1  ;;  %v4524_v20 = vld [vmem:[#allocation11 + $0x14] sm:$0xf0] }
 0x29d   :  { %2047 = vmatpush.bf16.msrb.mxu3 %v3872_v11 }
 0x307   :  { %v1681_v59 = vpop.f32.mrf.mxu0  ;;  %v1694_v19 = vpop.f32.mrf.mxu1 }
 0x308   :  { %v1724_v27 = vadd.f32 %v1681_v59, %v5030_v38  ;;  %v1725_v18 = vadd.f32 %v1694_v19, %v5033_v40  ;;  %v3864_v38 = vor.u32 %v4529_v43, %v3861_v52  ;;  %v4532_v40 = vld [vmem:[#allocation11 + $0x54] sm:$0xf0]  ;;  %v3856_v19 = vor.u32 %v4526_v35, %v3853_v29 }
 0x309   :  { %v3868_v63 = vor.u32 %v4532_v40, %v3867_v47  ;;  %v3836_v43 = vor.u32 %v4524_v20, %v3835_v55  ;;  %v2125_v47 = vsel %vm3956_vm13, 1, %v4901_v5 }
 0x30a   :  { %v3821_v15 = vmul.f32 -1.442695, %v1724_v27  ;;  %v3822_v22 = vmul.f32 -1.442695, %v1725_v18  ;;  %2021 = vmatpush.bf16.msrb.mxu1 %v3864_v38  ;;  %v3828_v18 = vor.u32 %v4523_v41, %v3827_v39  ;;  %2048 = vmatpush.bf16.msrb.mxu3 %v3856_v19 }
 0x30b   :  { %2034 = vmatpush.bf16.msrb.mxu2 %v3868_v63  ;;  %2127 = vperm.xlu2 %4661, %v2125_v47  }
 0x30c   :  { %4710 = vpow2.f32 %v3821_v15  ;;  %v4522_v15 = vld [vmem:[#allocation11 + $0xc] sm:$0xf]  ;;  %2010 = vmatpush.bf16.msrb.mxu0 %v3828_v18 }
 0x30d   :  { %4712 = vpow2.f32 %v3822_v22  ;;  %v3837_v22 = vld [vmem:[#allocation11 + $0x18] sm:$0xf0] }
 0x30e   :  { %v1707_v8 = vpop.f32.mrf.mxu2  ;;  %v1720_v9 = vpop.f32.mrf.mxu3  ;;  %2022 = vmatpush.bf16.msrb.mxu1 %v3848_v17  ;;  %v3840_v52 = vor.u32 %v4522_v15, %v3837_v22 }
 0x30f   :  { %v1726_v28 = vadd.f32 %v1707_v8, %v5036_v42  ;;  %v1683_v4 = vpop.f32.mrf.mxu0  ;;  %v1696_v16 = vpop.f32.mrf.mxu1  ;;  %v4521_v42 = vld [vmem:[#allocation11 + $0x4] sm:$0xf]  ;;  %2035 = vmatpush.bf16.msrb.mxu2 %v3852_v33  ;;  %v1727_v63 = vadd.f32 %v1720_v9, %v5039_v45 }
 0x310   :  { %v3832_v44 = vor.u32 %v4521_v42, %v3829_v37  ;;  %2049 = vmatpush.bf16.msrb.mxu3 %v3840_v52 }
 0x311   :  { %v3823_v59 = vmul.f32 -1.442695, %v1726_v28  ;;  %v2456_v28 = vsel %vm4088_vm14, 1, %v4901_v5 }
 0x312   :  { %v4711_v36 = vpop.eup %4710  ;;  %2023 = vmatpush.bf16.msrb.mxu1 %v3832_v44 }
 0x313   :  { %v4713_v26 = vpop.eup %4712  ;;  %v1737_v27 = vadd.f32 1.0, %v4711_v36  ;;  %4714 = vpow2.f32 %v3823_v59  ;;  %2036 = vmatpush.bf16.msrb.mxu2 %v3836_v43  ;;  %2458 = vperm.xlu2 %4661, %v2456_v28   ;;  %v4577_v28 = vld [vmem:[#allocation11 + $0xc4] sm:$0xf] }
 0x314   :  { %v1738_v23 = vadd.f32 1.0, %v4713_v26 }
 0x315   :  { %4716 = vrcp.f32 %v1737_v27  ;;  %v1751_v32 = vand.u32 2147483648, %v1737_v27  ;;  %v1749_v1 = vand.u32 2147483647, %v1737_v27  ;;  %vm1745_vm1 = vweird.f32 %v1737_v27 }
 0x316   :  { %4718 = vrcp.f32 %v1738_v23  ;;  %v1709_v51 = vpop.f32.mrf.mxu2  ;;  %v1722_v34 = vpop.f32.mrf.mxu3  ;;  %v1766_v4 = vand.u32 2147483648, %v1738_v23  ;;  %v1764_v13 = vand.u32 2147483647, %v1738_v23  ;;  %vm1760_vm2 = vweird.f32 %v1738_v23 }
 0x317   :  { %v1752_v17 = vor.u32 1.1754944e-38, %v1751_v32  ;;  %vm1750_vm5 = vcmp.eq.f32.partialorder %v1749_v1, 8.507059e+37  ;;  %v4579_v32 = vld [vmem:[#allocation11 + $0xcc] sm:$0xf0]  ;;  %v4063_v1 = vld [vmem:[#allocation11 + $0xc8] sm:$0xf] }
 0x318   :  { %v1767_v35 = vor.u32 1.1754944e-38, %v1766_v4  ;;  %vm1765_vm6 = vcmp.eq.f32.partialorder %v1764_v13, 8.507059e+37 }
 0x319   :  { %v4715_v38 = vpop.eup %4714 }
 0x31a   :  { %v1739_v40 = vadd.f32 1.0, %v4715_v38  ;;  %v4581_v38 = vld [vmem:[#allocation11 + $0xe4] sm:$0xf] }
 0x31b   :  { %v4717_v60 = vpop.eup %4716 }
 0x31c   :  { %v4719_v10 = vpop.eup %4718  ;;  %v1741_v8 = vmul.f32 %v4717_v60, %v1737_v27  ;;  %4720 = vrcp.f32 %v1739_v40  ;;  %vm1746_vm15 = vweird.f32 %v4717_v60  ;;  %v1797_v27 = vpop.permute.xlu1 %1796  ;;  %v1781_v55 = vand.u32 2147483648, %v1739_v40 }
 0x31d   :  { %v1756_v11 = vmul.f32 %v4719_v10, %v1738_v23  ;;  %4722 = vtanh.f32 %v1727_v63  ;;  %vm1761_vm0 = vweird.f32 %v4719_v10  ;;  %vm1747_vm3 = vmor %vm1745_vm1, %vm1746_vm15  ;;  %vm1798_vm7 = vcmp.eq.s32.totalorder %v1797_v27, 1  ;;  %v4584_v63 = vld [vmem:[#allocation11 + $0xf4] sm:$0xf0] }
 0x31e   :  { %v1742_v30 = vsub.f32 1.0, %v1741_v8  ;;  %vm1762_vm4 = vmor %vm1760_vm2, %vm1761_vm0  ;;  %vm1775_vm9 = vweird.f32 %v1739_v40  ;;  %v1779_v44 = vand.u32 2147483647, %v1739_v40  ;;  %v1782_v15 = vor.u32 1.1754944e-38, %v1781_v55  ;;  %v4569_v55 = vld [vmem:[#allocation11 + $0x84] sm:$0xf] }
 0x31f   :  { %v1757_v14 = vsub.f32 1.0, %v1756_v11  ;;  %v4582_v11 = vld [vmem:[#allocation11 + $0xec] sm:$0xf] }
 0x320   :  { %v1743_v16 = vmul.f32 %v4717_v60, %v1742_v30  ;;  %vm1780_vm11 = vcmp.eq.f32.partialorder %v1779_v44, 8.507059e+37  ;;  %v4081_v30 = vld [vmem:[#allocation11 + $0xf8] sm:$0xf0] }
 0x321   :  { %v1758_v31 = vmul.f32 %v4719_v10, %v1757_v14  ;;  %v4055_v14 = vld [vmem:[#allocation11 + $0xc0] sm:$0xf] }
 0x322   :  { %v4721_v24 = vpop.eup %4720  ;;  %v1744_v45 = vadd.f32 %v4717_v60, %v1743_v16  ;;  %v4056_v4 = vor.u32 %v4579_v32, %v4055_v14  ;;  %v4057_v16 = vld [vmem:[#allocation11 + $0xd0] sm:$0xf0] }
 0x323   :  { %v1771_v9 = vmul.f32 %v4721_v24, %v1739_v40  ;;  %v1759_v33 = vadd.f32 %v4719_v10, %v1758_v31  ;;  %v4723_v5 = vpop.eup %4722  ;;  %vm1776_vm8 = vweird.f32 %v4721_v24  ;;  %v4073_v40 = vld [vmem:[#allocation11 + $0xf0] sm:$0xf0]  ;;  %v4580_v31 = vld [vmem:[#allocation11 + $0xd4] sm:$0xf0]  ;;  %v4060_v13 = vor.u32 %v4577_v28, %v4057_v16  ;;  %v4017_v16 = vld [vmem:[#allocation11 + $0x78] sm:$0xf0] }
 0x324   :  { %v1748_v29 = vsel %vm1747_vm3, %v4717_v60, %v1744_v45  ;;  %vm1777_vm10 = vmor %vm1775_vm9, %vm1776_vm8  ;;  %v4079_v60 = vld [vmem:[#allocation11 + $0xe8] sm:$0xf]  ;;  %v4578_v45 = vld [vmem:[#allocation11 + $0xcc] sm:$0xf] }
 0x325   :  { %v1772_v59 = vsub.f32 1.0, %v1771_v9  ;;  %v1753_v19 = vsel %vm1750_vm5, %v1752_v17, %v1748_v29  ;;  %v1763_v36 = vsel %vm1762_vm4, %v4719_v10, %v1759_v33  ;;  %v4076_v10 = vor.u32 %v4581_v38, %v4073_v40  ;;  %v4065_v9 = vld [vmem:[#allocation11 + $0xd8] sm:$0xf0]  ;;  %v4039_v33 = vld [vmem:[#allocation11 + $0xa0] sm:$0xf] }
 0x326   :  { %v1768_v39 = vsel %vm1765_vm6, %v1767_v35, %v1763_v36  ;;  %v1787_v41 = vmul.f32 %v4723_v5, %v1753_v19  ;;  %v4080_v8 = vor.u32 %v4584_v63, %v4079_v60  ;;  %v4068_v17 = vor.u32 %v4578_v45, %v4065_v9  ;;  %v4575_v35 = vld [vmem:[#allocation11 + $0xac] sm:$0xf0]  ;;  %v4573_v29 = vld [vmem:[#allocation11 + $0xa4] sm:$0xf]  ;;  %v4047_v19 = vld [vmem:[#allocation11 + $0xa8] sm:$0xf] }
 0x327   :  { %v1773_v42 = vmul.f32 %v4721_v24, %v1772_v59  ;;  %v1786_v26 = vmul.f32 %v1768_v39, %v5134_v0  ;;  %2347 = vmatpush.bf16.msra.mxu1 %v4076_v10  ;;  %v4040_v5 = vor.u32 %v4575_v35, %v4039_v33  ;;  %v4041_v59 = vld [vmem:[#allocation11 + $0xb0] sm:$0xf0]  ;;  %v4576_v36 = vld [vmem:[#allocation11 + $0xb4] sm:$0xf0]  ;;  %v4007_v38 = vld [vmem:[#allocation11 + $0x60] sm:$0xf] }
 0x328   :  { %2360 = vmatpush.bf16.msra.mxu2 %v4080_v8  ;;  %v4044_v39 = vor.u32 %v4573_v29, %v4041_v59  ;;  %v4565_v40 = vld [vmem:[#allocation11 + $0x64] sm:$0xf]  ;;  %v4009_v8 = vld [vmem:[#allocation11 + $0x70] sm:$0xf0]  ;;  %v4563_v45 = vld [vmem:[#allocation11 + $0x4c] sm:$0xf0] }
 0x329   :  { %v1788_v18 = vadd.f32 %v1787_v41, %v1786_v26  ;;  %v1774_v37 = vadd.f32 %v4721_v24, %v1773_v42  ;;  %v4048_v41 = vor.u32 %v4576_v36, %v4047_v19  ;;  %v4574_v42 = vld [vmem:[#allocation11 + $0xac] sm:$0xf]  ;;  %v4049_v26 = vld [vmem:[#allocation11 + $0xb8] sm:$0xf0]  ;;  %v4012_v32 = vor.u32 %v4565_v40, %v4009_v8  ;;  %v4561_v9 = vld [vmem:[#allocation11 + $0x44] sm:$0xf] }
 0x32a   :  { %v4052_v27 = vor.u32 %v4574_v42, %v4049_v26  ;;  %v3993_v33 = vld [vmem:[#allocation11 + $0x50] sm:$0xf0]  ;;  %v4564_v35 = vld [vmem:[#allocation11 + $0x54] sm:$0xf0]  ;;  %v4001_v59 = vld [vmem:[#allocation11 + $0x58] sm:$0xf0] }
 0x32b   :  { %4724 = vtanh.f32 %v1788_v18  ;;  %v5153_v23 = vsel %vm1798_vm7, %v1788_v18, %v5134_v0  ;;  %v1778_v20 = vsel %vm1777_vm10, %v4721_v24, %v1774_v37  ;;  %v4071_v0 = vld [vmem:[#allocation11 + $0xe0] sm:$0xf]  ;;  %v4064_v24 = vor.u32 %v4580_v31, %v4063_v1  ;;  %2348 = vmatpush.bf16.msra.mxu1 %v4060_v13  ;;  %v4571_v37 = vld [vmem:[#allocation11 + $0x8c] sm:$0xf0]  ;;  %v4557_v26 = vld [vmem:[#allocation11 + $0x24] sm:$0xf] }
 0x32c   :  { %v1783_v51 = vsel %vm1780_vm11, %v1782_v15, %v1778_v20  ;;  %v4072_v47 = vor.u32 %v4583_v57, %v4071_v0  ;;  %v4023_v18 = vld [vmem:[#allocation11 + $0x80] sm:$0xf]  ;;  %v4025_v20 = vld [vmem:[#allocation11 + $0x90] sm:$0xf0]  ;;  %v4031_v15 = vld [vmem:[#allocation11 + $0x88] sm:$0xf] }
 0x32d   :  { %2361 = vmatpush.bf16.msra.mxu2 %v4064_v24  ;;  %v4024_v44 = vor.u32 %v4571_v37, %v4023_v18  ;;  %v4033_v0 = vld [vmem:[#allocation11 + $0x98] sm:$0xf0]  ;;  %v3991_v24 = vld [vmem:[#allocation11 + $0x40] sm:$0xf]  ;;  %v4559_v42 = vld [vmem:[#allocation11 + $0x2c] sm:$0xf0] }
 0x32e   :  { %2334 = vmatpush.bf16.msra.mxu0 %v4072_v47  ;;  %v4567_v47 = vld [vmem:[#allocation11 + $0x6c] sm:$0xf0]  ;;  %v3961_v8 = vld [vmem:[#allocation11 + $0x10] sm:$0xf0] }
 0x32f   :  { %2349 = vmatpush.bf16.msra.mxu1 %v4044_v39  ;;  %v4008_v10 = vor.u32 %v4567_v47, %v4007_v38  ;;  %v3959_v47 = vld [vmem:[#allocation11] sm:$0xf]  ;;  %v4555_v40 = vld [vmem:[#allocation11 + $0xc] sm:$0xf0] }
 0x331   :  { %v4725_v22 = vpop.eup %4724  ;;  %2362 = vmatpush.bf16.msra.mxu2 %v4048_v41  ;;  %v3975_v41 = vld [vmem:[#allocation11 + $0x20] sm:$0xf] }
 0x332   :  { %v1790_v34 = vmul.f32 %v4725_v22, %v1783_v51  ;;  %2335 = vmatpush.bf16.msra.mxu0 %v4056_v4  ;;  %v4572_v22 = vld [vmem:[#allocation11 + $0x94] sm:$0xf0]  ;;  %v4028_v51 = vor.u32 %v4569_v55, %v4025_v20  ;;  %v4566_v4 = vld [vmem:[#allocation11 + $0x6c] sm:$0xf]  ;;  %v3976_v55 = vor.u32 %v4559_v42, %v3975_v41  ;;  %v3983_v20 = vld [vmem:[#allocation11 + $0x28] sm:$0xf] }
 0x333   :  { %v4020_v1 = vor.u32 %v4566_v4, %v4017_v16 }
 0x334   :  { %v5156_v43 = vsel %vm1798_vm7, %v1790_v34, %v5138_v49  ;;  %v4084_v49 = vor.u32 %v4582_v11, %v4081_v30  ;;  %v4032_v34 = vor.u32 %v4572_v22, %v4031_v15  ;;  %2350 = vmatpush.bf16.msra.mxu1 %v4028_v51  ;;  %v4015_v11 = vld [vmem:[#allocation11 + $0x68] sm:$0xf]  ;;  %v4568_v30 = vld [vmem:[#allocation11 + $0x74] sm:$0xf0] }
 0x335   :  { %v1810_v52 = vpack.c.bf16 %v5156_v43, %v5156_v43  ;;  %v4016_v28 = vor.u32 %v4568_v30, %v4015_v11  ;;  %v4560_v15 = vld [vmem:[#allocation11 + $0x34] sm:$0xf0]  ;;  %v3967_v11 = vld [vmem:[#allocation11 + $0x8] sm:$0xf] }
 0x336   :  { %2373 = vmatpush.bf16.msra.mxu3 %v4084_v49  ;;  %2336 = vmatpush.bf16.msra.mxu0 %v4040_v5  ;;  %v4562_v5 = vld [vmem:[#allocation11 + $0x4c] sm:$0xf]  ;;  %v3984_v51 = vor.u32 %v4560_v15, %v3983_v20 }
 0x337   :  { %2011 = vmatmul.bf16.vlgmr.msrb.gmra.mxu0 %v1810_v52  ;;  %2024 = vmatmul.bf16.vlgmr.msrb.gmra.mxu1 %v1810_v52  ;;  %v4004_v39 = vor.u32 %v4562_v5, %v4001_v59 }
 0x338   :  { %2037 = vmatmul.bf16.vlgmr.msrb.gmra.mxu2 %v1810_v52  ;;  %2050 = vmatmul.bf16.vlgmr.msrb.gmra.mxu3 %v1810_v52  ;;  %v4570_v52 = vld [vmem:[#allocation11 + $0x8c] sm:$0xf] }
 0x339   :  { %v4036_v57 = vor.u32 %v4570_v52, %v4033_v0  ;;  %2363 = vmatpush.bf16.msra.mxu2 %v4032_v34  ;;  %2351 = vmatpush.bf16.msra.mxu1 %v4012_v32  ;;  %v4558_v34 = vld [vmem:[#allocation11 + $0x2c] sm:$0xf]  ;;  %v3985_v52 = vld [vmem:[#allocation11 + $0x38] sm:$0xf0] }
 0x33a   :  { %2374 = vmatpush.bf16.msra.mxu3 %v4068_v17  ;;  %2337 = vmatpush.bf16.msra.mxu0 %v4024_v44  ;;  %v3992_v17 = vor.u32 %v4563_v45, %v3991_v24  ;;  %v3977_v44 = vld [vmem:[#allocation11 + $0x30] sm:$0xf0]  ;;  %v4554_v32 = vld [vmem:[#allocation11 + $0xc] sm:$0xf] }
 0x33b   :  { %v3980_v22 = vor.u32 %v4557_v26, %v3977_v44 }
 0x33d   :  { %2364 = vmatpush.bf16.msra.mxu2 %v4016_v28  ;;  %v3969_v28 = vld [vmem:[#allocation11 + $0x18] sm:$0xf0] }
 0x33e   :  { %2375 = vmatpush.bf16.msra.mxu3 %v4052_v27  ;;  %2338 = vmatpush.bf16.msra.mxu0 %v4008_v10  ;;  %v3960_v10 = vor.u32 %v4555_v40, %v3959_v47 }
 0x342   :  { %2376 = vmatpush.bf16.msra.mxu3 %v4036_v57  ;;  %2339 = vmatpush.bf16.msra.mxu0 %v3992_v17  ;;  %v3988_v57 = vor.u32 %v4558_v34, %v3985_v52 }
 0x346   :  { %2377 = vmatpush.bf16.msra.mxu3 %v4020_v1  ;;  %2340 = vmatpush.bf16.msra.mxu0 %v3976_v55 }
 0x34a   :  { %2378 = vmatpush.bf16.msra.mxu3 %v4004_v39  ;;  %2341 = vmatpush.bf16.msra.mxu0 %v3960_v10 }
 0x34e   :  { %2379 = vmatpush.bf16.msra.mxu3 %v3988_v57 }
 0x365   :  { %v2128_v15 = vpop.permute.xlu2 %2127 }
 0x366   :  { %vm2129_vm4 = vcmp.eq.s32.totalorder %v2128_v15, 1  ;;  %v4181_v15 = vld [vmem:[#allocation11 + $0xb8] sm:$0xf0] }
 0x3b4   :  { %v2012_v60 = vpop.f32.mrf.mxu0  ;;  %v2025_v63 = vpop.f32.mrf.mxu1 }
 0x3b5   :  { %v2055_v49 = vadd.f32 %v2012_v60, %v5042_v46  ;;  %v2056_v14 = vadd.f32 %v2025_v63, %v5045_v48  ;;  %v3999_v46 = vld [vmem:[#allocation11 + $0x48] sm:$0xf]  ;;  %v3996_v48 = vor.u32 %v4561_v9, %v3993_v33 }
 0x3b6   :  { %v4000_v29 = vor.u32 %v4564_v35, %v3999_v46 }
 0x3b7   :  { %v3953_v31 = vmul.f32 -1.442695, %v2055_v49  ;;  %v3954_v13 = vmul.f32 -1.442695, %v2056_v14  ;;  %2352 = vmatpush.bf16.msra.mxu1 %v3996_v48  ;;  %v4556_v14 = vld [vmem:[#allocation11 + $0x14] sm:$0xf0] }
 0x3b8   :  { %2365 = vmatpush.bf16.msra.mxu2 %v4000_v29  ;;  %v3968_v1 = vor.u32 %v4556_v14, %v3967_v11  ;;  %v4615_v14 = vld [vmem:[#allocation11 + $0xec] sm:$0xf0] }
 0x3b9   :  { %4726 = vpow2.f32 %v3953_v31  ;;  %v3972_v31 = vor.u32 %v4554_v32, %v3969_v28  ;;  %v4613_v32 = vld [vmem:[#allocation11 + $0xe4] sm:$0xf] }
 0x3ba   :  { %4728 = vpow2.f32 %v3954_v13 }
 0x3bb   :  { %v2038_v19 = vpop.f32.mrf.mxu2  ;;  %v2051_v36 = vpop.f32.mrf.mxu3  ;;  %2353 = vmatpush.bf16.msra.mxu1 %v3980_v22  ;;  %2380 = vmatpush.bf16.msra.mxu3 %v3972_v31 }
 0x3bc   :  { %v2057_v27 = vadd.f32 %v2038_v19, %v5048_v50  ;;  %v2014_v18 = vpop.f32.mrf.mxu0  ;;  %v2027_v37 = vpop.f32.mrf.mxu1  ;;  %v4553_v50 = vld [vmem:[#allocation11 + $0x4] sm:$0xf]  ;;  %2366 = vmatpush.bf16.msra.mxu2 %v3984_v51  ;;  %v2058_v9 = vadd.f32 %v2051_v36, %v5051_v53 }
 0x3bd   :  { %v3964_v49 = vor.u32 %v4553_v50, %v3961_v8 }
 0x3be   :  { %v3955_v0 = vmul.f32 -1.442695, %v2057_v27 }
 0x3bf   :  { %v4727_v38 = vpop.eup %4726  ;;  %2354 = vmatpush.bf16.msra.mxu1 %v3964_v49 }
 0x3c0   :  { %v4729_v60 = vpop.eup %4728  ;;  %v2068_v63 = vadd.f32 1.0, %v4727_v38  ;;  %4730 = vpow2.f32 %v3955_v0  ;;  %2367 = vmatpush.bf16.msra.mxu2 %v3968_v1  ;;  %v4616_v1 = vld [vmem:[#allocation11 + $0xf4] sm:$0xf0] }
 0x3c1   :  { %v2069_v30 = vadd.f32 1.0, %v4729_v60 }
 0x3c2   :  { %4732 = vrcp.f32 %v2068_v63  ;;  %v2082_v29 = vand.u32 2147483648, %v2068_v63  ;;  %v2080_v59 = vand.u32 2147483647, %v2068_v63  ;;  %vm2076_vm14 = vweird.f32 %v2068_v63 }
 0x3c3   :  { %4734 = vrcp.f32 %v2069_v30  ;;  %v2040_v4 = vpop.f32.mrf.mxu2  ;;  %v2053_v16 = vpop.f32.mrf.mxu3  ;;  %v2097_v19 = vand.u32 2147483648, %v2069_v30  ;;  %v2095_v41 = vand.u32 2147483647, %v2069_v30  ;;  %vm2091_vm0 = vweird.f32 %v2069_v30 }
 0x3c4   :  { %v2083_v53 = vor.u32 1.1754944e-38, %v2082_v29  ;;  %vm2081_vm1 = vcmp.eq.f32.partialorder %v2080_v59, 8.507059e+37  ;;  %v4205_v4 = vld [vmem:[#allocation11 + $0xf0] sm:$0xf0]  ;;  %v4211_v16 = vld [vmem:[#allocation11 + $0xe8] sm:$0xf] }
 0x3c5   :  { %v2098_v37 = vor.u32 1.1754944e-38, %v2097_v19  ;;  %vm2096_vm3 = vcmp.eq.f32.partialorder %v2095_v41, 8.507059e+37  ;;  %v4208_v31 = vor.u32 %v4613_v32, %v4205_v4  ;;  %v4612_v29 = vld [vmem:[#allocation11 + $0xd4] sm:$0xf0]  ;;  %v4610_v19 = vld [vmem:[#allocation11 + $0xcc] sm:$0xf] }
 0x3c6   :  { %v4731_v13 = vpop.eup %4730  ;;  %v4141_v4 = vld [vmem:[#allocation11 + $0x70] sm:$0xf0] }
 0x3c7   :  { %v2070_v24 = vadd.f32 1.0, %v4731_v13  ;;  %v4212_v13 = vor.u32 %v4616_v1, %v4211_v16  ;;  %2678 = vmatpush.bf16.msrb.mxu1 %v4208_v31  ;;  %v4147_v16 = vld [vmem:[#allocation11 + $0x68] sm:$0xf]  ;;  %v4600_v1 = vld [vmem:[#allocation11 + $0x74] sm:$0xf0] }
 0x3c8   :  { %v4733_v45 = vpop.eup %4732 }
 0x3c9   :  { %v4735_v17 = vpop.eup %4734  ;;  %v2072_v33 = vmul.f32 %v4733_v45, %v2068_v63  ;;  %4736 = vrcp.f32 %v2070_v24  ;;  %vm2077_vm12 = vweird.f32 %v4733_v45  ;;  %v2112_v47 = vand.u32 2147483648, %v2070_v24  ;;  %2691 = vmatpush.bf16.msrb.mxu2 %v4212_v13 }
 0x3ca   :  { %v2087_v46 = vmul.f32 %v4735_v17, %v2069_v30  ;;  %4738 = vtanh.f32 %v2058_v9  ;;  %vm2092_vm13 = vweird.f32 %v4735_v17  ;;  %vm2078_vm15 = vmor %vm2076_vm14, %vm2077_vm12  ;;  %vm2106_vm6 = vweird.f32 %v2070_v24  ;;  %v4187_v9 = vld [vmem:[#allocation11 + $0xc0] sm:$0xf] }
 0x3cb   :  { %v2073_v35 = vsub.f32 1.0, %v2072_v33  ;;  %vm2093_vm2 = vmor %vm2091_vm0, %vm2092_vm13  ;;  %v2110_v50 = vand.u32 2147483647, %v2070_v24  ;;  %v2113_v63 = vor.u32 1.1754944e-38, %v2112_v47  ;;  %v4609_v33 = vld [vmem:[#allocation11 + $0xc4] sm:$0xf] }
 0x3cc   :  { %v2088_v48 = vsub.f32 1.0, %v2087_v46  ;;  %v4604_v47 = vld [vmem:[#allocation11 + $0x94] sm:$0xf0] }
 0x3cd   :  { %v2074_v5 = vmul.f32 %v4733_v45, %v2073_v35  ;;  %vm2111_vm8 = vcmp.eq.f32.partialorder %v2110_v50, 8.507059e+37  ;;  %v4189_v35 = vld [vmem:[#allocation11 + $0xd0] sm:$0xf0] }
 0x3ce   :  { %v2089_v39 = vmul.f32 %v4735_v17, %v2088_v48  ;;  %v4195_v48 = vld [vmem:[#allocation11 + $0xc8] sm:$0xf] }
 0x3cf   :  { %v4737_v42 = vpop.eup %4736  ;;  %v2075_v26 = vadd.f32 %v4733_v45, %v2074_v5  ;;  %v4192_v5 = vor.u32 %v4609_v33, %v4189_v35  ;;  %v4196_v59 = vor.u32 %v4612_v29, %v4195_v48  ;;  %v4123_v35 = vld [vmem:[#allocation11 + $0x40] sm:$0xf]  ;;  %v4595_v48 = vld [vmem:[#allocation11 + $0x4c] sm:$0xf0]  ;;  %v4593_v29 = vld [vmem:[#allocation11 + $0x44] sm:$0xf] }
 0x3d0   :  { %v2102_v27 = vmul.f32 %v4737_v42, %v2070_v24  ;;  %v2090_v36 = vadd.f32 %v4735_v17, %v2089_v39  ;;  %v4739_v55 = vpop.eup %4738  ;;  %vm2107_vm5 = vweird.f32 %v4737_v42  ;;  %v4614_v24 = vld [vmem:[#allocation11 + $0xec] sm:$0xf]  ;;  %v4197_v39 = vld [vmem:[#allocation11 + $0xd8] sm:$0xf0] }
 0x3d1   :  { %v2079_v18 = vsel %vm2078_vm15, %v4733_v45, %v2075_v26  ;;  %vm2108_vm7 = vmor %vm2106_vm6, %vm2107_vm5  ;;  %v4213_v45 = vld [vmem:[#allocation11 + $0xf8] sm:$0xf0]  ;;  %v4200_v41 = vor.u32 %v4610_v19, %v4197_v39  ;;  %2679 = vmatpush.bf16.msrb.mxu1 %v4192_v5  ;;  %2692 = vmatpush.bf16.msrb.mxu2 %v4196_v59  ;;  %v4607_v26 = vld [vmem:[#allocation11 + $0xac] sm:$0xf0]  ;;  %v4124_v59 = vor.u32 %v4595_v48, %v4123_v35 }
 0x3d2   :  { %v2103_v44 = vsub.f32 1.0, %v2102_v27  ;;  %v2084_v20 = vsel %vm2081_vm1, %v2083_v53, %v2079_v18  ;;  %v2094_v22 = vsel %vm2093_vm2, %v4735_v17, %v2090_v36  ;;  %v4611_v17 = vld [vmem:[#allocation11 + $0xcc] sm:$0xf0]  ;;  %v4605_v27 = vld [vmem:[#allocation11 + $0xa4] sm:$0xf] }
 0x3d3   :  { %v2118_v51 = vmul.f32 %v4739_v55, %v2084_v20  ;;  %v2099_v34 = vsel %vm2096_vm3, %v2098_v37, %v2094_v22  ;;  %v4188_v46 = vor.u32 %v4611_v17, %v4187_v9  ;;  %v4173_v36 = vld [vmem:[#allocation11 + $0xb0] sm:$0xf0]  ;;  %v4179_v18 = vld [vmem:[#allocation11 + $0xa8] sm:$0xf]  ;;  %v4608_v37 = vld [vmem:[#allocation11 + $0xb4] sm:$0xf0] }
 0x3d4   :  { %v2104_v52 = vmul.f32 %v4737_v42, %v2103_v44  ;;  %v2117_v0 = vmul.f32 %v2099_v34, %v5153_v23  ;;  %v4176_v55 = vor.u32 %v4605_v27, %v4173_v36  ;;  %v4180_v44 = vor.u32 %v4608_v37, %v4179_v18  ;;  %v4606_v20 = vld [vmem:[#allocation11 + $0xac] sm:$0xf]  ;;  %v4603_v34 = vld [vmem:[#allocation11 + $0x8c] sm:$0xf0]  ;;  %v4149_v9 = vld [vmem:[#allocation11 + $0x78] sm:$0xf0] }
 0x3d5   :  { %v4184_v22 = vor.u32 %v4606_v20, %v4181_v15  ;;  %v4125_v5 = vld [vmem:[#allocation11 + $0x50] sm:$0xf0]  ;;  %v4131_v19 = vld [vmem:[#allocation11 + $0x48] sm:$0xf]  ;;  %v4594_v39 = vld [vmem:[#allocation11 + $0x4c] sm:$0xf] }
 0x3d6   :  { %v2119_v57 = vadd.f32 %v2118_v51, %v2117_v0  ;;  %v2105_v38 = vadd.f32 %v4737_v42, %v2104_v52  ;;  %2680 = vmatpush.bf16.msrb.mxu1 %v4176_v55  ;;  %2693 = vmatpush.bf16.msrb.mxu2 %v4180_v44  ;;  %v4155_v51 = vld [vmem:[#allocation11 + $0x80] sm:$0xf]  ;;  %v4601_v52 = vld [vmem:[#allocation11 + $0x84] sm:$0xf]  ;;  %v4591_v18 = vld [vmem:[#allocation11 + $0x2c] sm:$0xf0] }
 0x3d7   :  { %v4156_v0 = vor.u32 %v4603_v34, %v4155_v51  ;;  %v4107_v36 = vld [vmem:[#allocation11 + $0x20] sm:$0xf]  ;;  %v4589_v37 = vld [vmem:[#allocation11 + $0x24] sm:$0xf]  ;;  %v4115_v51 = vld [vmem:[#allocation11 + $0x28] sm:$0xf] }
 0x3d8   :  { %4740 = vtanh.f32 %v2119_v57  ;;  %v5167_v40 = vsel %vm2129_vm4, %v2119_v57, %v5153_v23  ;;  %v2109_v60 = vsel %vm2108_vm7, %v4737_v42, %v2105_v38  ;;  %v4203_v23 = vld [vmem:[#allocation11 + $0xe0] sm:$0xf]  ;;  %v4157_v57 = vld [vmem:[#allocation11 + $0x90] sm:$0xf0]  ;;  %v4163_v38 = vld [vmem:[#allocation11 + $0x88] sm:$0xf]  ;;  %v4108_v15 = vor.u32 %v4591_v18, %v4107_v36 }
 0x3d9   :  { %v2114_v8 = vsel %vm2111_vm8, %v2113_v63, %v2109_v60  ;;  %v4204_v28 = vor.u32 %v4615_v14, %v4203_v23  ;;  %v4171_v42 = vld [vmem:[#allocation11 + $0xa0] sm:$0xf]  ;;  %v4160_v50 = vor.u32 %v4601_v52, %v4157_v57  ;;  %v4164_v60 = vor.u32 %v4604_v47, %v4163_v38  ;;  %v4602_v63 = vld [vmem:[#allocation11 + $0x8c] sm:$0xf]  ;;  %v4597_v23 = vld [vmem:[#allocation11 + $0x64] sm:$0xf] }
 0x3da   :  { %v4172_v53 = vor.u32 %v4607_v26, %v4171_v42  ;;  %v4133_v42 = vld [vmem:[#allocation11 + $0x58] sm:$0xf0]  ;;  %v4592_v34 = vld [vmem:[#allocation11 + $0x34] sm:$0xf0]  ;;  %v4590_v57 = vld [vmem:[#allocation11 + $0x2c] sm:$0xf] }
 0x3db   :  { %2665 = vmatpush.bf16.msrb.mxu0 %v4204_v28  ;;  %2681 = vmatpush.bf16.msrb.mxu1 %v4160_v50  ;;  %v4117_v38 = vld [vmem:[#allocation11 + $0x38] sm:$0xf0] }
 0x3dc   :  { %2694 = vmatpush.bf16.msrb.mxu2 %v4164_v60  ;;  %v4120_v50 = vor.u32 %v4590_v57, %v4117_v38 }
 0x3de   :  { %v4741_v10 = vpop.eup %4740 }
 0x3df   :  { %v2121_v11 = vmul.f32 %v4741_v10, %v2114_v8  ;;  %2666 = vmatpush.bf16.msrb.mxu0 %v4188_v46  ;;  %v4165_v10 = vld [vmem:[#allocation11 + $0x98] sm:$0xf0] }
 0x3e0   :  { %v4168_v8 = vor.u32 %v4602_v63, %v4165_v10  ;;  %v4091_v63 = vld [vmem:[#allocation11] sm:$0xf]  ;;  %v4587_v10 = vld [vmem:[#allocation11 + $0xc] sm:$0xf0] }
 0x3e1   :  { %v5171_v30 = vsel %vm2129_vm4, %v2121_v11, %v5156_v43  ;;  %v4216_v43 = vor.u32 %v4614_v24, %v4213_v45  ;;  %v4139_v11 = vld [vmem:[#allocation11 + $0x60] sm:$0xf]  ;;  %v4144_v24 = vor.u32 %v4597_v23, %v4141_v4  ;;  %v4148_v45 = vor.u32 %v4600_v1, %v4147_v16  ;;  %v4093_v23 = vld [vmem:[#allocation11 + $0x10] sm:$0xf0]  ;;  %v4588_v4 = vld [vmem:[#allocation11 + $0x14] sm:$0xf0] }
 0x3e2   :  { %v2141_v49 = vpack.c.bf16 %v5171_v30, %v5171_v30  ;;  %v4586_v16 = vld [vmem:[#allocation11 + $0xc] sm:$0xf]  ;;  %v4101_v1 = vld [vmem:[#allocation11 + $0x18] sm:$0xf0] }
 0x3e3   :  { %2704 = vmatpush.bf16.msrb.mxu3 %v4216_v43  ;;  %2667 = vmatpush.bf16.msrb.mxu0 %v4172_v53  ;;  %v4598_v43 = vld [vmem:[#allocation11 + $0x6c] sm:$0xf]  ;;  %v4136_v53 = vor.u32 %v4594_v39, %v4133_v42 }
 0x3e4   :  { %2342 = vmatmul.bf16.vlgmr.msra.gmra.mxu0 %v2141_v49  ;;  %2355 = vmatmul.bf16.vlgmr.msra.gmra.mxu1 %v2141_v49  ;;  %v4152_v17 = vor.u32 %v4598_v43, %v4149_v9 }
 0x3e5   :  { %2368 = vmatmul.bf16.vlgmr.msra.gmra.mxu2 %v2141_v49  ;;  %2381 = vmatmul.bf16.vlgmr.msra.gmra.mxu3 %v2141_v49  ;;  %v4599_v49 = vld [vmem:[#allocation11 + $0x6c] sm:$0xf0] }
 0x3e6   :  { %v4140_v28 = vor.u32 %v4599_v49, %v4139_v11  ;;  %2682 = vmatpush.bf16.msrb.mxu1 %v4144_v24  ;;  %2695 = vmatpush.bf16.msrb.mxu2 %v4148_v45  ;;  %v4092_v49 = vor.u32 %v4587_v10, %v4091_v63  ;;  %v4104_v45 = vor.u32 %v4586_v16, %v4101_v1  ;;  %v4648_v16 = vld [vmem:[#allocation11 + $0xf4] sm:$0xf0] }
 0x3e7   :  { %2705 = vmatpush.bf16.msrb.mxu3 %v4200_v41  ;;  %2668 = vmatpush.bf16.msrb.mxu0 %v4156_v0  ;;  %v4116_v0 = vor.u32 %v4592_v34, %v4115_v51  ;;  %v2459_v51 = vpop.permute.xlu2 %2458 }
 0x3e8   :  { %vm2460_vm1 = vcmp.eq.s32.totalorder %v2459_v51, 1  ;;  %v4295_v51 = vld [vmem:[#allocation11 + $0x88] sm:$0xf] }
 0x3eb   :  { %2706 = vmatpush.bf16.msrb.mxu3 %v4184_v22  ;;  %2669 = vmatpush.bf16.msrb.mxu0 %v4140_v28  ;;  %v4109_v22 = vld [vmem:[#allocation11 + $0x30] sm:$0xf0] }
 0x3ec   :  { %v4112_v52 = vor.u32 %v4589_v37, %v4109_v22 }
 0x3ef   :  { %2707 = vmatpush.bf16.msrb.mxu3 %v4168_v8  ;;  %2670 = vmatpush.bf16.msrb.mxu0 %v4124_v59 }
 0x3f3   :  { %2708 = vmatpush.bf16.msrb.mxu3 %v4152_v17  ;;  %2671 = vmatpush.bf16.msrb.mxu0 %v4108_v15 }
 0x3f7   :  { %2709 = vmatpush.bf16.msrb.mxu3 %v4136_v53  ;;  %2672 = vmatpush.bf16.msrb.mxu0 %v4092_v49 }
 0x3fb   :  { %2710 = vmatpush.bf16.msrb.mxu3 %v4120_v50 }
 0x3ff   :  { %2711 = vmatpush.bf16.msrb.mxu3 %v4104_v45  ;;  %v4319_v45 = vld [vmem:[#allocation11 + $0xc0] sm:$0xf] }
 0x461   :  { %v2343_v14 = vpop.f32.mrf.mxu0  ;;  %v2356_v32 = vpop.f32.mrf.mxu1 }
 0x462   :  { %v2386_v31 = vadd.f32 %v2343_v14, %v5054_v54  ;;  %v2387_v13 = vadd.f32 %v2356_v32, %v5057_v56  ;;  %v4128_v54 = vor.u32 %v4593_v29, %v4125_v5  ;;  %v4596_v56 = vld [vmem:[#allocation11 + $0x54] sm:$0xf0]  ;;  %v4099_v14 = vld [vmem:[#allocation11 + $0x8] sm:$0xf] }
 0x463   :  { %v4132_v41 = vor.u32 %v4596_v56, %v4131_v19  ;;  %v4100_v24 = vor.u32 %v4588_v4, %v4099_v14  ;;  %v4645_v14 = vld [vmem:[#allocation11 + $0xe4] sm:$0xf]  ;;  %v4343_v4 = vld [vmem:[#allocation11 + $0xe8] sm:$0xf] }
 0x464   :  { %v4085_v33 = vmul.f32 -1.442695, %v2386_v31  ;;  %v4086_v46 = vmul.f32 -1.442695, %v2387_v13  ;;  %2683 = vmatpush.bf16.msrb.mxu1 %v4128_v54 }
 0x465   :  { %2696 = vmatpush.bf16.msrb.mxu2 %v4132_v41 }
 0x466   :  { %4742 = vpow2.f32 %v4085_v33 }
 0x467   :  { %4744 = vpow2.f32 %v4086_v46 }
 0x468   :  { %v2369_v26 = vpop.f32.mrf.mxu2  ;;  %v2382_v27 = vpop.f32.mrf.mxu3  ;;  %2684 = vmatpush.bf16.msrb.mxu1 %v4112_v52 }
 0x469   :  { %v2388_v55 = vadd.f32 %v2369_v26, %v5060_v61  ;;  %v2345_v44 = vpop.f32.mrf.mxu0  ;;  %v2358_v20 = vpop.f32.mrf.mxu1  ;;  %v4585_v61 = vld [vmem:[#allocation11 + $0x4] sm:$0xf]  ;;  %2697 = vmatpush.bf16.msrb.mxu2 %v4116_v0  ;;  %v2389_v33 = vadd.f32 %v2382_v27, %v5063_v6 }
 0x46a   :  { %v4096_v28 = vor.u32 %v4585_v61, %v4093_v23  ;;  %v4647_v23 = vld [vmem:[#allocation11 + $0xec] sm:$0xf0] }
 0x46b   :  { %v4087_v47 = vmul.f32 -1.442695, %v2388_v55 }
 0x46c   :  { %v4743_v60 = vpop.eup %4742  ;;  %2685 = vmatpush.bf16.msrb.mxu1 %v4096_v28  ;;  %v4337_v28 = vld [vmem:[#allocation11 + $0xf0] sm:$0xf0] }
 0x46d   :  { %v4745_v8 = vpop.eup %4744  ;;  %v2399_v11 = vadd.f32 1.0, %v4743_v60  ;;  %4746 = vpow2.f32 %v4087_v47  ;;  %2698 = vmatpush.bf16.msrb.mxu2 %v4100_v24  ;;  %v4340_v1 = vor.u32 %v4645_v14, %v4337_v28  ;;  %v4345_v24 = vld [vmem:[#allocation11 + $0xf8] sm:$0xf0]  ;;  %v4632_v14 = vld [vmem:[#allocation11 + $0x74] sm:$0xf0] }
 0x46e   :  { %v2400_v32 = vadd.f32 1.0, %v4745_v8 }
 0x46f   :  { %4748 = vrcp.f32 %v2399_v11  ;;  %v2413_v59 = vand.u32 2147483648, %v2399_v11  ;;  %v2411_v56 = vand.u32 2147483647, %v2399_v11  ;;  %vm2407_vm11 = vweird.f32 %v2399_v11 }
 0x470   :  { %4750 = vrcp.f32 %v2400_v32  ;;  %v2371_v31 = vpop.f32.mrf.mxu2  ;;  %v2384_v13 = vpop.f32.mrf.mxu3  ;;  %v2428_v54 = vand.u32 2147483648, %v2400_v32  ;;  %v2426_v41 = vand.u32 2147483647, %v2400_v32  ;;  %vm2422_vm12 = vweird.f32 %v2400_v32  ;;  %3009 = vmatpush.bf16.msra.mxu1 %v4340_v1  ;;  %v4630_v1 = vld [vmem:[#allocation11 + $0x6c] sm:$0xf] }
 0x471   :  { %v2414_v27 = vor.u32 1.1754944e-38, %v2413_v59  ;;  %vm2412_vm15 = vcmp.eq.f32.partialorder %v2411_v56, 8.507059e+37  ;;  %v4344_v31 = vor.u32 %v4648_v16, %v4343_v4  ;;  %v4646_v13 = vld [vmem:[#allocation11 + $0xec] sm:$0xf]  ;;  %v4329_v59 = vld [vmem:[#allocation11 + $0xd8] sm:$0xf0] }
 0x472   :  { %v2429_v36 = vor.u32 1.1754944e-38, %v2428_v54  ;;  %vm2427_vm0 = vcmp.eq.f32.partialorder %v2426_v41, 8.507059e+37  ;;  %v4639_v56 = vld [vmem:[#allocation11 + $0xac] sm:$0xf0] }
 0x473   :  { %v4747_v43 = vpop.eup %4746  ;;  %3022 = vmatpush.bf16.msra.mxu2 %v4344_v31  ;;  %v4281_v31 = vld [vmem:[#allocation11 + $0x78] sm:$0xf0] }
 0x474   :  { %v2401_v9 = vadd.f32 1.0, %v4747_v43  ;;  %v4643_v43 = vld [vmem:[#allocation11 + $0xcc] sm:$0xf0] }
 0x475   :  { %v4749_v17 = vpop.eup %4748 }
 0x476   :  { %v4751_v46 = vpop.eup %4750  ;;  %v2403_v35 = vmul.f32 %v4749_v17, %v2399_v11  ;;  %4752 = vrcp.f32 %v2401_v9  ;;  %vm2408_vm9 = vweird.f32 %v4749_v17  ;;  %v2443_v38 = vand.u32 2147483648, %v2401_v9 }
 0x477   :  { %v2418_v48 = vmul.f32 %v4751_v46, %v2400_v32  ;;  %4754 = vtanh.f32 %v2389_v33  ;;  %vm2423_vm10 = vweird.f32 %v4751_v46  ;;  %vm2409_vm13 = vmor %vm2407_vm11, %vm2408_vm9  ;;  %vm2437_vm3 = vweird.f32 %v2401_v9  ;;  %v4321_v33 = vld [vmem:[#allocation11 + $0xd0] sm:$0xf0] }
 0x478   :  { %v2404_v29 = vsub.f32 1.0, %v2403_v35  ;;  %vm2424_vm14 = vmor %vm2422_vm12, %vm2423_vm10  ;;  %v2441_v50 = vand.u32 2147483647, %v2401_v9  ;;  %v2444_v63 = vor.u32 1.1754944e-38, %v2443_v38  ;;  %v4644_v35 = vld [vmem:[#allocation11 + $0xd4] sm:$0xf0] }
 0x479   :  { %v2419_v5 = vsub.f32 1.0, %v2418_v48  ;;  %v4297_v38 = vld [vmem:[#allocation11 + $0x98] sm:$0xf0] }
 0x47a   :  { %v2405_v19 = vmul.f32 %v4749_v17, %v2404_v29  ;;  %vm2442_vm5 = vcmp.eq.f32.partialorder %v2441_v50, 8.507059e+37 }
 0x47b   :  { %v2420_v39 = vmul.f32 %v4751_v46, %v2419_v5  ;;  %v4642_v5 = vld [vmem:[#allocation11 + $0xcc] sm:$0xf] }
 0x47c   :  { %v4753_v42 = vpop.eup %4752  ;;  %v2406_v26 = vadd.f32 %v4749_v17, %v2405_v19  ;;  %v4332_v54 = vor.u32 %v4642_v5, %v4329_v59  ;;  %v4303_v19 = vld [vmem:[#allocation11 + $0xa0] sm:$0xf] }
 0x47d   :  { %v2433_v6 = vmul.f32 %v4753_v42, %v2401_v9  ;;  %v2421_v53 = vadd.f32 %v4751_v46, %v2420_v39  ;;  %v4755_v37 = vpop.eup %4754  ;;  %vm2438_vm2 = vweird.f32 %v4753_v42  ;;  %v4641_v9 = vld [vmem:[#allocation11 + $0xc4] sm:$0xf]  ;;  %v4304_v41 = vor.u32 %v4639_v56, %v4303_v19  ;;  %v4239_v19 = vld [vmem:[#allocation11 + $0x20] sm:$0xf]  ;;  %v4623_v56 = vld [vmem:[#allocation11 + $0x2c] sm:$0xf0] }
 0x47e   :  { %v2410_v18 = vsel %vm2409_vm13, %v4749_v17, %v2406_v26  ;;  %vm2439_vm4 = vmor %vm2437_vm3, %vm2438_vm2  ;;  %v4320_v17 = vor.u32 %v4643_v43, %v4319_v45  ;;  %v4324_v48 = vor.u32 %v4641_v9, %v4321_v33  ;;  %v4637_v39 = vld [vmem:[#allocation11 + $0xa4] sm:$0xf]  ;;  %v4311_v26 = vld [vmem:[#allocation11 + $0xa8] sm:$0xf] }
 0x47f   :  { %v2434_v55 = vsub.f32 1.0, %v2433_v6  ;;  %v2415_v44 = vsel %vm2412_vm15, %v2414_v27, %v2410_v18  ;;  %v2425_v20 = vsel %vm2424_vm14, %v4751_v46, %v2421_v53  ;;  %v4327_v46 = vld [vmem:[#allocation11 + $0xc8] sm:$0xf]  ;;  %v4640_v6 = vld [vmem:[#allocation11 + $0xb4] sm:$0xf0] }
 0x480   :  { %v2430_v15 = vsel %vm2427_vm0, %v2429_v36, %v2425_v20  ;;  %v2449_v22 = vmul.f32 %v4755_v37, %v2415_v44  ;;  %v4328_v29 = vor.u32 %v4644_v35, %v4327_v46  ;;  %3010 = vmatpush.bf16.msra.mxu1 %v4324_v48  ;;  %v4312_v53 = vor.u32 %v4640_v6, %v4311_v26  ;;  %v4638_v36 = vld [vmem:[#allocation11 + $0xac] sm:$0xf]  ;;  %v4313_v18 = vld [vmem:[#allocation11 + $0xb8] sm:$0xf0]  ;;  %v4635_v44 = vld [vmem:[#allocation11 + $0x8c] sm:$0xf0] }
 0x481   :  { %v2435_v34 = vmul.f32 %v4753_v42, %v2434_v55  ;;  %v2448_v52 = vmul.f32 %v2430_v15, %v5167_v40  ;;  %v4316_v37 = vor.u32 %v4638_v36, %v4313_v18  ;;  %v4287_v55 = vld [vmem:[#allocation11 + $0x80] sm:$0xf]  ;;  %v4633_v20 = vld [vmem:[#allocation11 + $0x84] sm:$0xf]  ;;  %v4627_v43 = vld [vmem:[#allocation11 + $0x4c] sm:$0xf0]  ;;  %v4240_v6 = vor.u32 %v4623_v56, %v4239_v19 }
 0x482   :  { %3023 = vmatpush.bf16.msra.mxu2 %v4328_v29  ;;  %v4288_v15 = vor.u32 %v4635_v44, %v4287_v55  ;;  %v4255_v45 = vld [vmem:[#allocation11 + $0x40] sm:$0xf]  ;;  %v4625_v9 = vld [vmem:[#allocation11 + $0x44] sm:$0xf]  ;;  %v4263_v46 = vld [vmem:[#allocation11 + $0x48] sm:$0xf] }
 0x483   :  { %v2450_v0 = vadd.f32 %v2449_v22, %v2448_v52  ;;  %v2436_v57 = vadd.f32 %v4753_v42, %v2435_v34  ;;  %v4289_v22 = vld [vmem:[#allocation11 + $0x90] sm:$0xf0]  ;;  %v4636_v34 = vld [vmem:[#allocation11 + $0x94] sm:$0xf0]  ;;  %v4256_v33 = vor.u32 %v4627_v43, %v4255_v45  ;;  %v4626_v35 = vld [vmem:[#allocation11 + $0x4c] sm:$0xf] }
 0x484   :  { %v4292_v52 = vor.u32 %v4633_v20, %v4289_v22  ;;  %v4265_v29 = vld [vmem:[#allocation11 + $0x58] sm:$0xf0]  ;;  %v4624_v36 = vld [vmem:[#allocation11 + $0x34] sm:$0xf0]  ;;  %v4622_v55 = vld [vmem:[#allocation11 + $0x2c] sm:$0xf] }
 0x485   :  { %4756 = vtanh.f32 %v2450_v0  ;;  %v5181_v47 = vsel %vm2460_vm1, %v2450_v0, %v5167_v40  ;;  %v2440_v60 = vsel %vm2439_vm4, %v4753_v42, %v2436_v57  ;;  %v4335_v40 = vld [vmem:[#allocation11 + $0xe0] sm:$0xf]  ;;  %v4305_v42 = vld [vmem:[#allocation11 + $0xb0] sm:$0xf0]  ;;  %v4296_v0 = vor.u32 %v4636_v34, %v4295_v51  ;;  %v4634_v57 = vld [vmem:[#allocation11 + $0x8c] sm:$0xf] }
 0x486   :  { %v2445_v61 = vsel %vm2442_vm5, %v2444_v63, %v2440_v60  ;;  %v4336_v32 = vor.u32 %v4647_v23, %v4335_v40  ;;  %v4308_v27 = vor.u32 %v4637_v39, %v4305_v42  ;;  %3024 = vmatpush.bf16.msra.mxu2 %v4312_v53  ;;  %v4300_v50 = vor.u32 %v4634_v57, %v4297_v38  ;;  %v4271_v60 = vld [vmem:[#allocation11 + $0x60] sm:$0xf]  ;;  %v4631_v63 = vld [vmem:[#allocation11 + $0x6c] sm:$0xf0]  ;;  %v4273_v40 = vld [vmem:[#allocation11 + $0x70] sm:$0xf0] }
 0x487   :  { %v4279_v23 = vld [vmem:[#allocation11 + $0x68] sm:$0xf]  ;;  %v4621_v39 = vld [vmem:[#allocation11 + $0x24] sm:$0xf]  ;;  %v4249_v44 = vld [vmem:[#allocation11 + $0x38] sm:$0xf0] }
 0x488   :  { %2996 = vmatpush.bf16.msra.mxu0 %v4336_v32  ;;  %3011 = vmatpush.bf16.msra.mxu1 %v4308_v27  ;;  %v4280_v16 = vor.u32 %v4632_v14, %v4279_v23  ;;  %v4241_v27 = vld [vmem:[#allocation11 + $0x30] sm:$0xf0]  ;;  %v4247_v53 = vld [vmem:[#allocation11 + $0x28] sm:$0xf]  ;;  %v4223_v51 = vld [vmem:[#allocation11] sm:$0xf] }
 0x489   :  { %v4244_v18 = vor.u32 %v4621_v39, %v4241_v27  ;;  %v4619_v34 = vld [vmem:[#allocation11 + $0xc] sm:$0xf0]  ;;  %v4225_v38 = vld [vmem:[#allocation11 + $0x10] sm:$0xf0] }
 0x48a   :  { %3025 = vmatpush.bf16.msra.mxu2 %v4296_v0  ;;  %v4224_v57 = vor.u32 %v4619_v34, %v4223_v51 }
 0x48b   :  { %v4757_v10 = vpop.eup %4756 }
 0x48c   :  { %v2452_v8 = vmul.f32 %v4757_v10, %v2445_v61  ;;  %2997 = vmatpush.bf16.msra.mxu0 %v4320_v17  ;;  %3012 = vmatpush.bf16.msra.mxu1 %v4292_v52  ;;  %v4629_v10 = vld [vmem:[#allocation11 + $0x64] sm:$0xf]  ;;  %v4257_v17 = vld [vmem:[#allocation11 + $0x50] sm:$0xf0] }
 0x48d   :  { %v4276_v4 = vor.u32 %v4629_v10, %v4273_v40  ;;  %v4620_v10 = vld [vmem:[#allocation11 + $0x14] sm:$0xf0] }
 0x48e   :  { %v5184_v11 = vsel %vm2460_vm1, %v2452_v8, %v5171_v30  ;;  %v4348_v30 = vor.u32 %v4646_v13, %v4345_v24  ;;  %v4284_v13 = vor.u32 %v4630_v1, %v4281_v31  ;;  %3026 = vmatpush.bf16.msra.mxu2 %v4280_v16 }
 0x48f   :  { %v2472_v49 = vpack.c.bf16 %v5184_v11, %v5184_v11 }
 0x490   :  { %3035 = vmatpush.bf16.msra.mxu3 %v4348_v30  ;;  %2998 = vmatpush.bf16.msra.mxu0 %v4304_v41 }
 0x491   :  { %2673 = vmatmul.bf16.vlgmr.msrb.gmra.mxu0 %v2472_v49  ;;  %2686 = vmatmul.bf16.vlgmr.msrb.gmra.mxu1 %v2472_v49 }
 0x492   :  { %2699 = vmatmul.bf16.vlgmr.msrb.gmra.mxu2 %v2472_v49  ;;  %2712 = vmatmul.bf16.vlgmr.msrb.gmra.mxu3 %v2472_v49  ;;  %v4272_v49 = vor.u32 %v4631_v63, %v4271_v60 }
 0x493   :  { %3013 = vmatpush.bf16.msra.mxu1 %v4276_v4 }
 0x494   :  { %3036 = vmatpush.bf16.msra.mxu3 %v4332_v54  ;;  %2999 = vmatpush.bf16.msra.mxu0 %v4288_v15  ;;  %v4268_v54 = vor.u32 %v4626_v35, %v4265_v29  ;;  %v4252_v15 = vor.u32 %v4622_v55, %v4249_v44 }
 0x498   :  { %3037 = vmatpush.bf16.msra.mxu3 %v4316_v37  ;;  %3000 = vmatpush.bf16.msra.mxu0 %v4272_v49  ;;  %v4248_v37 = vor.u32 %v4624_v36, %v4247_v53 }
 0x49c   :  { %3038 = vmatpush.bf16.msra.mxu3 %v4300_v50  ;;  %3001 = vmatpush.bf16.msra.mxu0 %v4256_v33  ;;  %v4231_v50 = vld [vmem:[#allocation11 + $0x8] sm:$0xf] }
 0x49d   :  { %v4232_v23 = vor.u32 %v4620_v10, %v4231_v50 }
 0x4a0   :  { %3039 = vmatpush.bf16.msra.mxu3 %v4284_v13  ;;  %3002 = vmatpush.bf16.msra.mxu0 %v4240_v6 }
 0x4a4   :  { %3040 = vmatpush.bf16.msra.mxu3 %v4268_v54  ;;  %3003 = vmatpush.bf16.msra.mxu0 %v4224_v57 }
 0x4a8   :  { %3041 = vmatpush.bf16.msra.mxu3 %v4252_v15 }
 0x50e   :  { %v2674_v61 = vpop.f32.mrf.mxu0  ;;  %v2687_v8 = vpop.f32.mrf.mxu1 }
 0x50f   :  { %v2717_v32 = vadd.f32 %v2674_v61, %v5066_v7  ;;  %v2718_v28 = vadd.f32 %v2687_v8, %v5069_v21  ;;  %v4260_v7 = vor.u32 %v4625_v9, %v4257_v17  ;;  %v4628_v21 = vld [vmem:[#allocation11 + $0x54] sm:$0xf0]  ;;  %v4618_v61 = vld [vmem:[#allocation11 + $0xc] sm:$0xf]  ;;  %v4233_v8 = vld [vmem:[#allocation11 + $0x18] sm:$0xf0] }
 0x510   :  { %v4264_v48 = vor.u32 %v4628_v21, %v4263_v46  ;;  %v4236_v14 = vor.u32 %v4618_v61, %v4233_v8 }
 0x511   :  { %v4217_v24 = vmul.f32 -1.442695, %v2717_v32  ;;  %v4218_v30 = vmul.f32 -1.442695, %v2718_v28  ;;  %3014 = vmatpush.bf16.msra.mxu1 %v4260_v7 }
 0x512   :  { %3027 = vmatpush.bf16.msra.mxu2 %v4264_v48  ;;  %3042 = vmatpush.bf16.msra.mxu3 %v4236_v14 }
 0x513   :  { %4758 = vpow2.f32 %v4217_v24 }
 0x514   :  { %4760 = vpow2.f32 %v4218_v30 }
 0x515   :  { %v2700_v5 = vpop.f32.mrf.mxu2  ;;  %v2713_v59 = vpop.f32.mrf.mxu3  ;;  %3015 = vmatpush.bf16.msra.mxu1 %v4244_v18 }
 0x516   :  { %v2719_v41 = vadd.f32 %v2700_v5, %v5072_v58  ;;  %v2676_v42 = vpop.f32.mrf.mxu0  ;;  %v2689_v26 = vpop.f32.mrf.mxu1  ;;  %v4617_v58 = vld [vmem:[#allocation11 + $0x4] sm:$0xf]  ;;  %3028 = vmatpush.bf16.msra.mxu2 %v4248_v37  ;;  %v2720_v16 = vadd.f32 %v2713_v59, %v5075_v2 }
 0x517   :  { %v4228_v63 = vor.u32 %v4617_v58, %v4225_v38  ;;  %v2790_v42 = vpop.permute.xlu0 %2789 }
 0x518   :  { %v4219_v20 = vmul.f32 -1.442695, %v2719_v41  ;;  %vm2791_vm14 = vcmp.eq.s32.totalorder %v2790_v42, 1 }
 0x519   :  { %v4759_v22 = vpop.eup %4758  ;;  %3016 = vmatpush.bf16.msra.mxu1 %v4228_v63 }
 0x51a   :  { %v4761_v52 = vpop.eup %4760  ;;  %v2730_v0 = vadd.f32 1.0, %v4759_v22  ;;  %4762 = vpow2.f32 %v4219_v20  ;;  %3029 = vmatpush.bf16.msra.mxu2 %v4232_v23 }
 0x51b   :  { %v2731_v60 = vadd.f32 1.0, %v4761_v52 }
 0x51c   :  { %4764 = vrcp.f32 %v2730_v0  ;;  %v2744_v45 = vand.u32 2147483648, %v2730_v0  ;;  %v2742_v17 = vand.u32 2147483647, %v2730_v0  ;;  %vm2738_vm8 = vweird.f32 %v2730_v0 }
 0x51d   :  { %4766 = vrcp.f32 %v2731_v60  ;;  %v2702_v49 = vpop.f32.mrf.mxu2  ;;  %v2715_v40 = vpop.f32.mrf.mxu3  ;;  %v2759_v43 = vand.u32 2147483648, %v2731_v60  ;;  %v2757_v7 = vand.u32 2147483647, %v2731_v60  ;;  %vm2753_vm9 = vweird.f32 %v2731_v60 }
 0x51e   :  { %v2745_v35 = vor.u32 1.1754944e-38, %v2744_v45  ;;  %vm2743_vm12 = vcmp.eq.f32.partialorder %v2742_v17, 8.507059e+37 }
 0x51f   :  { %v2760_v29 = vor.u32 1.1754944e-38, %v2759_v43  ;;  %vm2758_vm13 = vcmp.eq.f32.partialorder %v2757_v7, 8.507059e+37 }
 0x520   :  { %v4763_v32 = vpop.eup %4762 }
 0x521   :  { %v2732_v28 = vadd.f32 1.0, %v4763_v32 }
 0x522   :  { %v4765_v4 = vpop.eup %4764 }
 0x523   :  { %v4767_v1 = vpop.eup %4766  ;;  %v2734_v31 = vmul.f32 %v4765_v4, %v2730_v0  ;;  %4768 = vrcp.f32 %v2732_v28  ;;  %vm2739_vm6 = vweird.f32 %v4765_v4  ;;  %v2774_v36 = vand.u32 2147483648, %v2732_v28 }
 0x524   :  { %v2749_v13 = vmul.f32 %v4767_v1, %v2731_v60  ;;  %4770 = vtanh.f32 %v2720_v16  ;;  %vm2754_vm7 = vweird.f32 %v4767_v1  ;;  %vm2740_vm10 = vmor %vm2738_vm8, %vm2739_vm6  ;;  %vm2768_vm0 = vweird.f32 %v2732_v28 }
 0x525   :  { %v2735_v24 = vsub.f32 1.0, %v2734_v31  ;;  %vm2755_vm11 = vmor %vm2753_vm9, %vm2754_vm7  ;;  %v2772_v37 = vand.u32 2147483647, %v2732_v28  ;;  %v2775_v44 = vor.u32 1.1754944e-38, %v2774_v36 }
 0x526   :  { %v2750_v30 = vsub.f32 1.0, %v2749_v13 }
 0x527   :  { %v2736_v9 = vmul.f32 %v4765_v4, %v2735_v24  ;;  %vm2773_vm2 = vcmp.eq.f32.partialorder %v2772_v37, 8.507059e+37 }
 0x528   :  { %v2751_v33 = vmul.f32 %v4767_v1, %v2750_v30 }
 0x529   :  { %v4769_v46 = vpop.eup %4768  ;;  %v2737_v21 = vadd.f32 %v4765_v4, %v2736_v9 }
 0x52a   :  { %v2764_v2 = vmul.f32 %v4769_v46, %v2732_v28  ;;  %v2752_v48 = vadd.f32 %v4767_v1, %v2751_v33  ;;  %v4771_v59 = vpop.eup %4770  ;;  %vm2769_vm15 = vweird.f32 %v4769_v46 }
 0x52b   :  { %v2741_v5 = vsel %vm2740_vm10, %v4765_v4, %v2737_v21  ;;  %vm2770_vm1 = vmor %vm2768_vm0, %vm2769_vm15 }
 0x52c   :  { %v2765_v54 = vsub.f32 1.0, %v2764_v2  ;;  %v2746_v19 = vsel %vm2743_vm12, %v2745_v35, %v2741_v5  ;;  %v2756_v56 = vsel %vm2755_vm11, %v4767_v1, %v2752_v48 }
 0x52d   :  { %v2761_v39 = vsel %vm2758_vm13, %v2760_v29, %v2756_v56  ;;  %v2780_v41 = vmul.f32 %v4771_v59, %v2746_v19  ;;  %v3121_v56 = vpop.permute.xlu1 %3120 }
 0x52e   :  { %v2766_v26 = vmul.f32 %v4769_v46, %v2765_v54  ;;  %v2779_v6 = vmul.f32 %v2761_v39, %v5181_v47  ;;  %vm3122_vm11 = vcmp.eq.s32.totalorder %v3121_v56, 1 }
 0x530   :  { %v2781_v27 = vadd.f32 %v2780_v41, %v2779_v6  ;;  %v2767_v53 = vadd.f32 %v4769_v46, %v2766_v26 }
 0x532   :  { %4772 = vtanh.f32 %v2781_v27  ;;  %v5194_v18 = vsel %vm2791_vm14, %v2781_v27, %v5181_v47  ;;  %v2771_v55 = vsel %vm2770_vm1, %v4769_v46, %v2767_v53 }
 0x533   :  { %v2776_v15 = vsel %vm2773_vm2, %v2775_v44, %v2771_v55 }
 0x538   :  { %v4773_v20 = vpop.eup %4772 }
 0x539   :  { %v2783_v22 = vmul.f32 %v4773_v20, %v2776_v15 }
 0x53b   :  { %v5197_v51 = vsel %vm2791_vm14, %v2783_v22, %v5184_v11 }
 0x53c   :  { %v2803_v34 = vpack.c.bf16 %v5197_v51, %v5197_v51 }
 0x53e   :  { %3004 = vmatmul.bf16.vlgmr.msra.gmra.mxu0 %v2803_v34  ;;  %3017 = vmatmul.bf16.vlgmr.msra.gmra.mxu1 %v2803_v34 }
 0x53f   :  { %3030 = vmatmul.bf16.vlgmr.msra.gmra.mxu2 %v2803_v34  ;;  %3043 = vmatmul.bf16.vlgmr.msra.gmra.mxu3 %v2803_v34 }
 0x5bb   :  { %v3005_v47 = vpop.f32.mrf.mxu0  ;;  %v3018_v58 = vpop.f32.mrf.mxu1 }
 0x5bc   :  { %v3048_v52 = vadd.f32 %v3005_v47, %v5078_v3  ;;  %v3049_v0 = vadd.f32 %v3018_v58, %v5081_v25 }
 0x5be   :  { %v4349_v57 = vmul.f32 -1.442695, %v3048_v52  ;;  %v4350_v38 = vmul.f32 -1.442695, %v3049_v0 }
 0x5c0   :  { %4774 = vpow2.f32 %v4349_v57 }
 0x5c1   :  { %4776 = vpow2.f32 %v4350_v38 }
 0x5c2   :  { %v3031_v50 = vpop.f32.mrf.mxu2  ;;  %v3044_v11 = vpop.f32.mrf.mxu3 }
 0x5c3   :  { %v3050_v60 = vadd.f32 %v3031_v50, %v5088_v62  ;;  %v3007_v63 = vpop.f32.mrf.mxu0  ;;  %v3020_v10 = vpop.f32.mrf.mxu1  ;;  %v3051_v4 = vadd.f32 %v3044_v11, %v5091_v12 }
 0x5c5   :  { %v4351_v61 = vmul.f32 -1.442695, %v3050_v60 }
 0x5c6   :  { %v4775_v8 = vpop.eup %4774 }
 0x5c7   :  { %v4777_v49 = vpop.eup %4776  ;;  %v3061_v40 = vadd.f32 1.0, %v4775_v8  ;;  %4778 = vpow2.f32 %v4351_v61 }
 0x5c8   :  { %v3062_v23 = vadd.f32 1.0, %v4777_v49 }
 0x5c9   :  { %4780 = vrcp.f32 %v3061_v40  ;;  %v3075_v24 = vand.u32 2147483648, %v3061_v40  ;;  %v3073_v43 = vand.u32 2147483647, %v3061_v40  ;;  %vm3069_vm5 = vweird.f32 %v3061_v40 }
 0x5ca   :  { %4782 = vrcp.f32 %v3062_v23  ;;  %v3033_v3 = vpop.f32.mrf.mxu2  ;;  %v3046_v25 = vpop.f32.mrf.mxu3  ;;  %v3090_v30 = vand.u32 2147483648, %v3062_v23  ;;  %v3088_v17 = vand.u32 2147483647, %v3062_v23  ;;  %vm3084_vm6 = vweird.f32 %v3062_v23 }
 0x5cb   :  { %v3076_v46 = vor.u32 1.1754944e-38, %v3075_v24  ;;  %vm3074_vm9 = vcmp.eq.f32.partialorder %v3073_v43, 8.507059e+37 }
 0x5cc   :  { %v3091_v2 = vor.u32 1.1754944e-38, %v3090_v30  ;;  %vm3089_vm10 = vcmp.eq.f32.partialorder %v3088_v17, 8.507059e+37 }
 0x5cd   :  { %v4779_v14 = vpop.eup %4778 }
 0x5ce   :  { %v3063_v32 = vadd.f32 1.0, %v4779_v14 }
 0x5cf   :  { %v4781_v28 = vpop.eup %4780 }
 0x5d0   :  { %v4783_v16 = vpop.eup %4782  ;;  %v3065_v1 = vmul.f32 %v4781_v28, %v3061_v40  ;;  %4784 = vrcp.f32 %v3063_v32  ;;  %vm3070_vm3 = vweird.f32 %v4781_v28  ;;  %v3105_v6 = vand.u32 2147483648, %v3063_v32 }
 0x5d1   :  { %v3080_v62 = vmul.f32 %v4783_v16, %v3062_v23  ;;  %4786 = vtanh.f32 %v3051_v4  ;;  %vm3085_vm4 = vweird.f32 %v4783_v16  ;;  %vm3071_vm7 = vmor %vm3069_vm5, %vm3070_vm3  ;;  %vm3099_vm13 = vweird.f32 %v3063_v32 }
 0x5d2   :  { %v3066_v31 = vsub.f32 1.0, %v3065_v1  ;;  %vm3086_vm8 = vmor %vm3084_vm6, %vm3085_vm4  ;;  %v3103_v53 = vand.u32 2147483647, %v3063_v32  ;;  %v3106_v37 = vor.u32 1.1754944e-38, %v3105_v6 }
 0x5d3   :  { %v3081_v13 = vsub.f32 1.0, %v3080_v62 }
 0x5d4   :  { %v3067_v45 = vmul.f32 %v4781_v28, %v3066_v31  ;;  %vm3104_vm15 = vcmp.eq.f32.partialorder %v3103_v53, 8.507059e+37 }
 0x5d5   :  { %v3082_v9 = vmul.f32 %v4783_v16, %v3081_v13 }
 0x5d6   :  { %v4785_v33 = vpop.eup %4784  ;;  %v3068_v7 = vadd.f32 %v4781_v28, %v3067_v45 }
 0x5d7   :  { %v3095_v12 = vmul.f32 %v4785_v33, %v3063_v32  ;;  %v3083_v21 = vadd.f32 %v4783_v16, %v3082_v9  ;;  %v4787_v48 = vpop.eup %4786  ;;  %vm3100_vm12 = vweird.f32 %v4785_v33 }
 0x5d8   :  { %v3072_v35 = vsel %vm3071_vm7, %v4781_v28, %v3068_v7  ;;  %vm3101_vm14 = vmor %vm3099_vm13, %vm3100_vm12 }
 0x5d9   :  { %v3096_v29 = vsub.f32 1.0, %v3095_v12  ;;  %v3077_v5 = vsel %vm3074_vm9, %v3076_v46, %v3072_v35  ;;  %v3087_v59 = vsel %vm3086_vm8, %v4783_v16, %v3083_v21 }
 0x5da   :  { %v3092_v54 = vsel %vm3089_vm10, %v3091_v2, %v3087_v59  ;;  %v3111_v19 = vmul.f32 %v4787_v48, %v3077_v5 }
 0x5db   :  { %v3097_v39 = vmul.f32 %v4785_v33, %v3096_v29  ;;  %v3110_v41 = vmul.f32 %v3092_v54, %v5194_v18 }
 0x5dd   :  { %v3112_v42 = vadd.f32 %v3111_v19, %v3110_v41  ;;  %v3098_v26 = vadd.f32 %v4785_v33, %v3097_v39 }
 0x5df   :  { %4788 = vtanh.f32 %v3112_v42  ;;  %v3125_v27 = vsel %vm3122_vm11, %v3112_v42, %v5194_v18  ;;  %v3102_v36 = vsel %vm3101_vm14, %v4785_v33, %v3098_v26 }
 0x5e0   :  { %3126 = vst [vmem:[#allocation2] sm:$0xff] %v3125_v27  ;;  %v3107_v44 = vsel %vm3104_vm15, %v3106_v37, %v3102_v36 }
 0x5e5   :  { %v4789_v55 = vpop.eup %4788 }
 0x5e6   :  { %v3114_v20 = vmul.f32 %v4789_v55, %v3107_v44 }
 0x5e8   :  { %v3123_v15 = vsel %vm3122_vm11, %v3114_v20, %v5197_v51 }
 0x5e9   :  { %3124 = vst [vmem:[#allocation12] sm:$0xff] %v3123_v15 }
 0x5ea PF:  { %s3134_s8 = sshll.u32 %s5219_s6, 4  ;;  %s4902_s3 = smov [#allocation12]   ;;  %s3135_s8 = int_to_ptr.hbm [resolvable:$true] %s3134_s8 }
 0x5eb   :  { %s3132_s9 = sshll.u32 %s4902_s3, 4  ;;  %s3133_s9 = int_to_ptr.vmem [resolvable:$true] %s3132_s9 }
 0x5ec   :  { %3137 = dma.vmem_to_hbm [thread:$0]  %s3133_s9, 128, %s3135_s8, [#allocation8]  }
 0x5ed   :  { %4891 = dma.done.wait [#allocation8], 128  }
 0x5ee   :  { %4892 = vsyncadd [#allocation8], 4294967168 }
 0x5ef   :  { %3142 = vsyncpa [#allocation7], 1 }
 0x5f0   :  { %3143 = vsyncpa [#allocation10], 1 }
 0x5f1   :  { %3144 = vsyncpa [#allocation8], 1 }

// kernel: tpu_custom_call.1
= control target key start
LH: loop header
LB: loop body
LE: loop exit
PB: predicated region body
PF: predicated region fallthrough
CT: control target
= control target key end

     0   :  { %12 = vsyncpa [#allocation7], 0  ;;  %s5213_s0 = inlined_call_operand.<no memory space> [shape: s32[1], index: 0, kind: input, shape index: {}]   ;;  %s5214_s1 = inlined_call_operand.vmem [shape: s32[8,1], index: 1, kind: input, shape index: {}]   ;;  %s5215_s2 = inlined_call_operand.hbm [shape: bf16[8,8,128], index: 2, kind: input, shape index: {}]   ;;  %s5216_s3 = inlined_call_operand.hbm [shape: bf16[128,512], index: 3, kind: input, shape index: {}]   ;;  %s5217_s4 = inlined_call_operand.hbm [shape: bf16[128,512], index: 4, kind: input, shape index: {}]   ;;  %s5218_s5 = inlined_call_operand.vmem [shape: f32[1,512], index: 5, kind: input, shape index: {}]   ;;  %s5219_s6 = inlined_call_operand.hbm [shape: f32[8,128], index: 6, kind: output, shape index: {}]  }
   0x1   :  { %13 = vsyncpa [#allocation10], 0  ;;  %s43_s23 = sshll.u32 %s5216_s3, 4  ;;  %s44_s23 = int_to_ptr.hbm [resolvable:$true] %s43_s23 }
   0x2   :  { %14 = vsyncpa [#allocation8], 0  ;;  %s4893_s24 = smov [#allocation9]   ;;  %s3147_s28 = sadd.s32 4294967295, %s5213_s0 }
   0x3   :  { %s45_s25 = sshll.u32 %s4893_s24, 4  ;;  %s4894_s29 = smov 256   ;;  %s46_s25 = int_to_ptr.vmem [resolvable:$true] %s45_s25 }
   0x4   :  { %s4895_s30 = smov 16   ;;  %p21_p0 = scmp.gt.s32.totalorder %s3147_s28, 0 }
   0x5   :  { %51 = dma.hbm_to_vmem [thread:$0]  %s44_s23, 4096, %s46_s25, [#allocation10], %s4894_s29, %s4894_s29, %s4895_s30  }
   0x6   :  { %s4896_s7 = smov [#allocation6]   ;;  %s5221_s28 = smov (!%p21_p0, %s3147_s28), 0 }
   0x7   :  { %s4947_s8 = sshll.u32 %s4896_s7, 4  ;;  %s5223_s28 = smov (%p21_p0, %s5221_s28), 0  ;;  %s33_s8 = int_to_ptr.vmem [resolvable:$true] %s4947_s8 }
   0x8   :  { %s56_s10 = sshll.u32 %s5217_s4, 4  ;;  %s4356_s11 = sshll.u32 %s5223_s28, 5  ;;  %s57_s10 = int_to_ptr.hbm [resolvable:$true] %s56_s10 }
   0x9   :  { %s29_s14 = scalar_lea.hbm %s5215_s2, %s4356_s11  ;;  %s4897_s15 = smov [#allocation11]  }
   0xa   :  { %s58_s16 = sshll.u32 %s4897_s15, 4  ;;  %s30_s17 = sshll.u32 %s29_s14, 4  ;;  %s59_s16 = int_to_ptr.vmem [resolvable:$true] %s58_s16  ;;  %s31_s17 = int_to_ptr.hbm [resolvable:$true] %s30_s17 }
   0xb   :  { %s4815_s18 = sshra.s32 %s31_s17, 4  ;;  %s4819_s22 = scalar_lea.hbm %s5215_s2, 32  ;;  %s4816_s18 = int_to_ptr.hbm [resolvable:$true] %s4815_s18 }
   0xc   :  { %s4817_s19 = scalar_lea.hbm %s4816_s18, 32  ;;  %p4820_p2 = scmp.lt.s32.totalorder %s4816_s18, %s5215_s2 }
   0xd   :  { %p4818_p1 = scmp.ne.s32.totalorder %s4816_s18, %s4817_s19  ;;  %p4821_p3 = scmp.lt.s32.totalorder %s4819_s22, %s4817_s19 }
   0xf   :  { %p4822_p4 = por %p4821_p3, %p4820_p2 }
  0x11   :  { %p4823_p5 = pnand %p4822_p4, %p4818_p1 }
  0x13   :  { %4826 = shalt.err (!%p4823_p5)
}
  0x14   :  { %s4898_s24 = smov 64   ;;  %s4899_s25 = smov 4  }
  0x15   :  { %38 = dma.hbm_to_vmem [thread:$0]  %s31_s17, 512, %s33_s8, [#allocation7], %s4898_s24, %s4898_s24, %s4899_s25  }
  0x16   :  { %64 = dma.hbm_to_vmem [thread:$0]  %s57_s10, 4096, %s59_s16, [#allocation10], %s4894_s29, %s4894_s29, %s4895_s30  }
  0x17   :  { %4887 = dma.done.wait [#allocation7], 512  }
  0x18   :  { %4888 = vsyncadd [#allocation7], 4294966784 }
  0x19   :  { %4889 = dma.done.wait [#allocation10], 8192  }
  0x1a   :  { %4890 = vsyncadd [#allocation10], 4294959104  ;;  %v4900_v0 = vmov 0.0   ;;  %p3152_p6 = scmp.le.s32.totalorder %s5213_s0, 0 }
  0x1b   :  { %90 = vst [vmem:[#allocation12] sm:$0xff] %v4900_v0 }
  0x1c   :  { %91 = vst [vmem:[#allocation2] sm:$0xff] %v4900_v0  ;;  %96 = sbr.rel (%p3152_p6) target bundleno = 1514 (0x5ea), region = 41 }
  0x21   :  { %v3283_v1 = vld [vmem:[#allocation9 + $0xe0] sm:$0xf]  ;;  %v4391_v2 = vld [vmem:[#allocation9 + $0xec] sm:$0xf0]  ;;  %v4389_v3 = vld [vmem:[#allocation9 + $0xe4] sm:$0xf] }
  0x22   :  { %v3284_v4 = vor.u32 %v4391_v2, %v3283_v1  ;;  %v3285_v5 = vld [vmem:[#allocation9 + $0xf0] sm:$0xf0]  ;;  %v3291_v6 = vld [vmem:[#allocation9 + $0xe8] sm:$0xf]  ;;  %v4392_v7 = vld [vmem:[#allocation9 + $0xf4] sm:$0xf0] }
  0x23   :  { %v3288_v8 = vor.u32 %v4389_v3, %v3285_v5  ;;  %v3292_v9 = vor.u32 %v4392_v7, %v3291_v6  ;;  %v4390_v10 = vld [vmem:[#allocation9 + $0xec] sm:$0xf]  ;;  %v3293_v11 = vld [vmem:[#allocation9 + $0xf8] sm:$0xf0]  ;;  %v3267_v12 = vld [vmem:[#allocation9 + $0xc0] sm:$0xf] }
  0x24   :  { %331 = vmatpush.bf16.msra.mxu0 %v3284_v4  ;;  %v3296_v13 = vor.u32 %v4390_v10, %v3293_v11  ;;  %v4387_v14 = vld [vmem:[#allocation9 + $0xcc] sm:$0xf0]  ;;  %v4385_v15 = vld [vmem:[#allocation9 + $0xc4] sm:$0xf]  ;;  %v3269_v16 = vld [vmem:[#allocation9 + $0xd0] sm:$0xf0] }
  0x25   :  { %360 = vmatpush.bf16.msra.mxu1 %v3288_v8  ;;  %389 = vmatpush.bf16.msra.mxu2 %v3292_v9  ;;  %v3268_v17 = vor.u32 %v4387_v14, %v3267_v12  ;;  %v3272_v18 = vor.u32 %v4385_v15, %v3269_v16  ;;  %v3275_v19 = vld [vmem:[#allocation9 + $0xc8] sm:$0xf]  ;;  %v4388_v20 = vld [vmem:[#allocation9 + $0xd4] sm:$0xf0]  ;;  %v4386_v21 = vld [vmem:[#allocation9 + $0xcc] sm:$0xf] }
  0x26   :  { %418 = vmatpush.bf16.msra.mxu3 %v3296_v13  ;;  %v3276_v22 = vor.u32 %v4388_v20, %v3275_v19  ;;  %v3277_v23 = vld [vmem:[#allocation9 + $0xd8] sm:$0xf0]  ;;  %v3251_v24 = vld [vmem:[#allocation9 + $0xa0] sm:$0xf]  ;;  %v4383_v25 = vld [vmem:[#allocation9 + $0xac] sm:$0xf0] }
  0x27   :  { %v3280_v26 = vor.u32 %v4386_v21, %v3277_v23  ;;  %v4381_v27 = vld [vmem:[#allocation9 + $0xa4] sm:$0xf]  ;;  %v3253_v28 = vld [vmem:[#allocation9 + $0xb0] sm:$0xf0]  ;;  %v3259_v29 = vld [vmem:[#allocation9 + $0xa8] sm:$0xf]  ;;  %v3252_v30 = vor.u32 %v4383_v25, %v3251_v24 }
  0x28   :  { %332 = vmatpush.bf16.msra.mxu0 %v3268_v17  ;;  %v4384_v31 = vld [vmem:[#allocation9 + $0xb4] sm:$0xf0]  ;;  %v4382_v32 = vld [vmem:[#allocation9 + $0xac] sm:$0xf]  ;;  %v3261_v33 = vld [vmem:[#allocation9 + $0xb8] sm:$0xf0]  ;;  %v3256_v34 = vor.u32 %v4381_v27, %v3253_v28 }
  0x29   :  { %361 = vmatpush.bf16.msra.mxu1 %v3272_v18  ;;  %390 = vmatpush.bf16.msra.mxu2 %v3276_v22  ;;  %v3260_v35 = vor.u32 %v4384_v31, %v3259_v29  ;;  %v3235_v36 = vld [vmem:[#allocation9 + $0x80] sm:$0xf]  ;;  %v4379_v37 = vld [vmem:[#allocation9 + $0x8c] sm:$0xf0]  ;;  %v4377_v38 = vld [vmem:[#allocation9 + $0x84] sm:$0xf]  ;;  %v3264_v39 = vor.u32 %v4382_v32, %v3261_v33 }
  0x2a   :  { %419 = vmatpush.bf16.msra.mxu3 %v3280_v26  ;;  %v3237_v40 = vld [vmem:[#allocation9 + $0x90] sm:$0xf0]  ;;  %v3243_v41 = vld [vmem:[#allocation9 + $0x88] sm:$0xf]  ;;  %v4380_v42 = vld [vmem:[#allocation9 + $0x94] sm:$0xf0]  ;;  %v3236_v45 = vor.u32 %v4379_v37, %v3235_v36 }
  0x2b   :  { %v4378_v43 = vld [vmem:[#allocation9 + $0x8c] sm:$0xf]  ;;  %v3245_v44 = vld [vmem:[#allocation9 + $0x98] sm:$0xf0]  ;;  %v3240_v46 = vor.u32 %v4377_v38, %v3237_v40  ;;  %v3244_v47 = vor.u32 %v4380_v42, %v3243_v41  ;;  %v3219_v48 = vld [vmem:[#allocation9 + $0x60] sm:$0xf] }
  0x2c   :  { %333 = vmatpush.bf16.msra.mxu0 %v3252_v30  ;;  %v4375_v49 = vld [vmem:[#allocation9 + $0x6c] sm:$0xf0]  ;;  %v4373_v50 = vld [vmem:[#allocation9 + $0x64] sm:$0xf]  ;;  %v3248_v51 = vor.u32 %v4378_v43, %v3245_v44  ;;  %v3221_v52 = vld [vmem:[#allocation9 + $0x70] sm:$0xf0] }
  0x2d   :  { %362 = vmatpush.bf16.msra.mxu1 %v3256_v34  ;;  %391 = vmatpush.bf16.msra.mxu2 %v3260_v35  ;;  %v3227_v53 = vld [vmem:[#allocation9 + $0x68] sm:$0xf]  ;;  %v4376_v54 = vld [vmem:[#allocation9 + $0x74] sm:$0xf0]  ;;  %v4374_v55 = vld [vmem:[#allocation9 + $0x6c] sm:$0xf]  ;;  %v3220_v57 = vor.u32 %v4375_v49, %v3219_v48  ;;  %v3224_v58 = vor.u32 %v4373_v50, %v3221_v52 }
  0x2e   :  { %420 = vmatpush.bf16.msra.mxu3 %v3264_v39  ;;  %v3229_v56 = vld [vmem:[#allocation9 + $0x78] sm:$0xf0]  ;;  %v3228_v59 = vor.u32 %v4376_v54, %v3227_v53  ;;  %v3203_v60 = vld [vmem:[#allocation9 + $0x40] sm:$0xf]  ;;  %v4371_v61 = vld [vmem:[#allocation9 + $0x4c] sm:$0xf0] }
  0x2f   :  { %v4369_v62 = vld [vmem:[#allocation9 + $0x44] sm:$0xf]  ;;  %v3232_v63 = vor.u32 %v4374_v55, %v3229_v56  ;;  %v3205_v0 = vld [vmem:[#allocation9 + $0x50] sm:$0xf0]  ;;  %v3211_v1 = vld [vmem:[#allocation9 + $0x48] sm:$0xf]  ;;  %v3204_v5 = vor.u32 %v4371_v61, %v3203_v60 }
  0x30   :  { %334 = vmatpush.bf16.msra.mxu0 %v3236_v45  ;;  %v4372_v2 = vld [vmem:[#allocation9 + $0x54] sm:$0xf0]  ;;  %v4370_v3 = vld [vmem:[#allocation9 + $0x4c] sm:$0xf]  ;;  %v3213_v4 = vld [vmem:[#allocation9 + $0x58] sm:$0xf0]  ;;  %v3208_v6 = vor.u32 %v4369_v62, %v3205_v0 }
  0x31   :  { %363 = vmatpush.bf16.msra.mxu1 %v3240_v46  ;;  %392 = vmatpush.bf16.msra.mxu2 %v3244_v47  ;;  %v3212_v7 = vor.u32 %v4372_v2, %v3211_v1  ;;  %v3187_v8 = vld [vmem:[#allocation9 + $0x20] sm:$0xf]  ;;  %v4367_v9 = vld [vmem:[#allocation9 + $0x2c] sm:$0xf0]  ;;  %v4365_v10 = vld [vmem:[#allocation9 + $0x24] sm:$0xf]  ;;  %v3216_v11 = vor.u32 %v4370_v3, %v3213_v4 }
  0x32   :  { %421 = vmatpush.bf16.msra.mxu3 %v3248_v51  ;;  %v3189_v12 = vld [vmem:[#allocation9 + $0x30] sm:$0xf0]  ;;  %v3195_v13 = vld [vmem:[#allocation9 + $0x28] sm:$0xf]  ;;  %v4368_v14 = vld [vmem:[#allocation9 + $0x34] sm:$0xf0]  ;;  %v3188_v17 = vor.u32 %v4367_v9, %v3187_v8 }
  0x33   :  { %v4366_v15 = vld [vmem:[#allocation9 + $0x2c] sm:$0xf]  ;;  %v3197_v16 = vld [vmem:[#allocation9 + $0x38] sm:$0xf0]  ;;  %v3171_v18 = vld [vmem:[#allocation9] sm:$0xf]  ;;  %v3192_v19 = vor.u32 %v4365_v10, %v3189_v12  ;;  %v3196_v20 = vor.u32 %v4368_v14, %v3195_v13 }
  0x34   :  { %335 = vmatpush.bf16.msra.mxu0 %v3220_v57  ;;  %v4363_v21 = vld [vmem:[#allocation9 + $0xc] sm:$0xf0]  ;;  %v4361_v22 = vld [vmem:[#allocation9 + $0x4] sm:$0xf]  ;;  %v3173_v23 = vld [vmem:[#allocation9 + $0x10] sm:$0xf0]  ;;  %v3200_v24 = vor.u32 %v4366_v15, %v3197_v16 }
  0x35   :  { %364 = vmatpush.bf16.msra.mxu1 %v3224_v58  ;;  %393 = vmatpush.bf16.msra.mxu2 %v3228_v59  ;;  %v3179_v25 = vld [vmem:[#allocation9 + $0x8] sm:$0xf]  ;;  %v4364_v26 = vld [vmem:[#allocation9 + $0x14] sm:$0xf0]  ;;  %v4362_v27 = vld [vmem:[#allocation9 + $0xc] sm:$0xf]  ;;  %v3172_v31 = vor.u32 %v4363_v21, %v3171_v18  ;;  %v3176_v34 = vor.u32 %v4361_v22, %v3173_v23 }
  0x36   :  { %422 = vmatpush.bf16.msra.mxu3 %v3232_v63  ;;  %v3181_v28 = vld [vmem:[#allocation9 + $0x18] sm:$0xf0]  ;;  %v3411_v29 = vld [vmem:[#allocation11 + $0xe0] sm:$0xf]  ;;  %v4423_v30 = vld [vmem:[#allocation11 + $0xec] sm:$0xf0]  ;;  %v3180_v35 = vor.u32 %v4364_v26, %v3179_v25 }
  0x37   :  { %v4421_v32 = vld [vmem:[#allocation11 + $0xe4] sm:$0xf]  ;;  %v3413_v33 = vld [vmem:[#allocation11 + $0xf0] sm:$0xf0]  ;;  %v3184_v37 = vor.u32 %v4362_v27, %v3181_v28  ;;  %v3412_v38 = vor.u32 %v4423_v30, %v3411_v29  ;;  %v3419_v39 = vld [vmem:[#allocation11 + $0xe8] sm:$0xf] }
  0x38   :  { %336 = vmatpush.bf16.msra.mxu0 %v3204_v5  ;;  %v4357_v36 = vld [vmem:[#allocation6] sm:$0xff]  ;;  %v4424_v40 = vld [vmem:[#allocation11 + $0xf4] sm:$0xf0]  ;;  %v3416_v42 = vor.u32 %v4421_v32, %v3413_v33  ;;  %v4419_v43 = vld [vmem:[#allocation11 + $0xcc] sm:$0xf0] }
  0x39   :  { %365 = vmatpush.bf16.msra.mxu1 %v3208_v6  ;;  %394 = vmatpush.bf16.msra.mxu2 %v3212_v7  ;;  %v3395_v41 = vld [vmem:[#allocation11 + $0xc0] sm:$0xf]  ;;  %v4422_v44 = vld [vmem:[#allocation11 + $0xec] sm:$0xf]  ;;  %v3421_v45 = vld [vmem:[#allocation11 + $0xf8] sm:$0xf0]  ;;  %v3420_v48 = vor.u32 %v4424_v40, %v3419_v39 }
  0x3a   :  { %423 = vmatpush.bf16.msra.mxu3 %v3216_v11  ;;  %v4417_v46 = vld [vmem:[#allocation11 + $0xc4] sm:$0xf]  ;;  %v3397_v47 = vld [vmem:[#allocation11 + $0xd0] sm:$0xf0]  ;;  %v3396_v49 = vor.u32 %v4419_v43, %v3395_v41  ;;  %v3403_v50 = vld [vmem:[#allocation11 + $0xc8] sm:$0xf]  ;;  %v3424_v52 = vor.u32 %v4422_v44, %v3421_v45 }
  0x3b   :  { %v4420_v51 = vld [vmem:[#allocation11 + $0xd4] sm:$0xf0]  ;;  %v3379_v53 = vld [vmem:[#allocation11 + $0xa0] sm:$0xf]  ;;  %v3400_v54 = vor.u32 %v4417_v46, %v3397_v47  ;;  %v4415_v55 = vld [vmem:[#allocation11 + $0xac] sm:$0xf0] }
  0x3c   :  { %337 = vmatpush.bf16.msra.mxu0 %v3188_v17  ;;  %v4418_v56 = vld [vmem:[#allocation11 + $0xcc] sm:$0xf]  ;;  %v3405_v57 = vld [vmem:[#allocation11 + $0xd8] sm:$0xf0]  ;;  %v4413_v58 = vld [vmem:[#allocation11 + $0xa4] sm:$0xf]  ;;  %v3404_v60 = vor.u32 %v4420_v51, %v3403_v50  ;;  %v3380_v61 = vor.u32 %v4415_v55, %v3379_v53 }
  0x3d   :  { %366 = vmatpush.bf16.msra.mxu1 %v3192_v19  ;;  %395 = vmatpush.bf16.msra.mxu2 %v3196_v20  ;;  %v3381_v59 = vld [vmem:[#allocation11 + $0xb0] sm:$0xf0]  ;;  %v3387_v62 = vld [vmem:[#allocation11 + $0xa8] sm:$0xf]  ;;  %v4416_v63 = vld [vmem:[#allocation11 + $0xb4] sm:$0xf0]  ;;  %v3408_v0 = vor.u32 %v4418_v56, %v3405_v57 }
  0x3e   :  { %424 = vmatpush.bf16.msra.mxu3 %v3200_v24  ;;  %v3363_v1 = vld [vmem:[#allocation11 + $0x80] sm:$0xf]  ;;  %v3384_v2 = vor.u32 %v4413_v58, %v3381_v59  ;;  %v4411_v3 = vld [vmem:[#allocation11 + $0x8c] sm:$0xf0]  ;;  %v4414_v4 = vld [vmem:[#allocation11 + $0xac] sm:$0xf]  ;;  %v3388_v8 = vor.u32 %v4416_v63, %v3387_v62 }
  0x3f   :  { %v3389_v5 = vld [vmem:[#allocation11 + $0xb8] sm:$0xf0]  ;;  %v4409_v6 = vld [vmem:[#allocation11 + $0x84] sm:$0xf]  ;;  %v3365_v7 = vld [vmem:[#allocation11 + $0x90] sm:$0xf0]  ;;  %v3364_v9 = vor.u32 %v4411_v3, %v3363_v1 }
  0x40   :  { %338 = vmatpush.bf16.msra.mxu0 %v3172_v31  ;;  %v3371_v10 = vld [vmem:[#allocation11 + $0x88] sm:$0xf]  ;;  %v4412_v11 = vld [vmem:[#allocation11 + $0x94] sm:$0xf0]  ;;  %v3392_v12 = vor.u32 %v4414_v4, %v3389_v5  ;;  %v3347_v13 = vld [vmem:[#allocation11 + $0x60] sm:$0xf]  ;;  %v3368_v14 = vor.u32 %v4409_v6, %v3365_v7 }
  0x41   :  { %367 = vmatpush.bf16.msra.mxu1 %v3176_v34  ;;  %396 = vmatpush.bf16.msra.mxu2 %v3180_v35  ;;  %v4407_v15 = vld [vmem:[#allocation11 + $0x6c] sm:$0xf0]  ;;  %v4410_v16 = vld [vmem:[#allocation11 + $0x8c] sm:$0xf]  ;;  %v3373_v17 = vld [vmem:[#allocation11 + $0x98] sm:$0xf0]  ;;  %v3372_v21 = vor.u32 %v4412_v11, %v3371_v10 }
  0x42   :  { %425 = vmatpush.bf16.msra.mxu3 %v3184_v37  ;;  %v4405_v18 = vld [vmem:[#allocation11 + $0x64] sm:$0xf]  ;;  %v3349_v19 = vld [vmem:[#allocation11 + $0x70] sm:$0xf0]  ;;  %v4358_v20 = vld [vmem:[#allocation6 + $0x8] sm:$0xff]  ;;  %v3348_v22 = vor.u32 %v4407_v15, %v3347_v13  ;;  %v3376_v25 = vor.u32 %v4410_v16, %v3373_v17  ;;  %v4901_v5 = vmov 0  }
  0x43   :  { %339 = vmatmul.bf16.vlgmr.msra.gmra.mxu0 %v4357_v36  ;;  %v3355_v23 = vld [vmem:[#allocation11 + $0x68] sm:$0xf]  ;;  %v4408_v24 = vld [vmem:[#allocation11 + $0x74] sm:$0xf0]  ;;  %v3331_v26 = vld [vmem:[#allocation11 + $0x40] sm:$0xf]  ;;  %v3352_v27 = vor.u32 %v4405_v18, %v3349_v19  ;;  %4659 = vset.pattern.permute.xlu0 %v4901_v5 }
  0x44   :  { %680 = vmatpush.bf16.msrb.mxu0 %v3412_v38  ;;  %368 = vmatmul.bf16.vlgmr.msra.gmra.mxu1 %v4357_v36  ;;  %v4403_v28 = vld [vmem:[#allocation11 + $0x4c] sm:$0xf0]  ;;  %v4406_v29 = vld [vmem:[#allocation11 + $0x6c] sm:$0xf]  ;;  %v3357_v30 = vld [vmem:[#allocation11 + $0x78] sm:$0xf0]  ;;  %v3356_v33 = vor.u32 %v4408_v24, %v3355_v23 }
  0x45   :  { %693 = vmatpush.bf16.msrb.mxu1 %v3416_v42  ;;  %397 = vmatmul.bf16.vlgmr.msra.gmra.mxu2 %v4357_v36  ;;  %v4401_v31 = vld [vmem:[#allocation11 + $0x44] sm:$0xf]  ;;  %v3333_v32 = vld [vmem:[#allocation11 + $0x50] sm:$0xf0]  ;;  %v3332_v34 = vor.u32 %v4403_v28, %v3331_v26  ;;  %v3339_v35 = vld [vmem:[#allocation11 + $0x48] sm:$0xf]  ;;  %v3360_v37 = vor.u32 %v4406_v29, %v3357_v30 }
  0x46   :  { %426 = vmatmul.bf16.vlgmr.msra.gmra.mxu3 %v4357_v36  ;;  %706 = vmatpush.bf16.msrb.mxu2 %v3420_v48  ;;  %v4404_v36 = vld [vmem:[#allocation11 + $0x54] sm:$0xf0]  ;;  %v3336_v38 = vor.u32 %v4401_v31, %v3333_v32  ;;  %v3315_v40 = vld [vmem:[#allocation11 + $0x20] sm:$0xf]  ;;  %v4399_v41 = vld [vmem:[#allocation11 + $0x2c] sm:$0xf0] }
  0x47   :  { %719 = vmatpush.bf16.msrb.mxu3 %v3424_v52  ;;  %v3340_v39 = vor.u32 %v4404_v36, %v3339_v35  ;;  %v4397_v42 = vld [vmem:[#allocation11 + $0x24] sm:$0xf]  ;;  %v3316_v43 = vor.u32 %v4399_v41, %v3315_v40  ;;  %v3317_v44 = vld [vmem:[#allocation11 + $0x30] sm:$0xf0]  ;;  %v3323_v45 = vld [vmem:[#allocation11 + $0x28] sm:$0xf]  ;;  %4660 = vset.pattern.permute.xlu1 %v4901_v5 }
  0x48   :  { %681 = vmatpush.bf16.msrb.mxu0 %v3396_v49  ;;  %v4400_v46 = vld [vmem:[#allocation11 + $0x34] sm:$0xf0]  ;;  %v3320_v47 = vor.u32 %v4397_v42, %v3317_v44  ;;  %v4402_v48 = vld [vmem:[#allocation11 + $0x4c] sm:$0xf]  ;;  %v3341_v49 = vld [vmem:[#allocation11 + $0x58] sm:$0xf0]  ;;  %4661 = vset.pattern.permute.xlu2 %v4901_v5 }
  0x49   :  { %694 = vmatpush.bf16.msrb.mxu1 %v3400_v54  ;;  %v3299_v50 = vld [vmem:[#allocation11] sm:$0xf]  ;;  %v3344_v51 = vor.u32 %v4402_v48, %v3341_v49  ;;  %v4395_v52 = vld [vmem:[#allocation11 + $0xc] sm:$0xf0]  ;;  %v4393_v53 = vld [vmem:[#allocation11 + $0x4] sm:$0xf]  ;;  %v3324_v55 = vor.u32 %v4400_v46, %v3323_v45 }
  0x4a   :  { %707 = vmatpush.bf16.msrb.mxu2 %v3404_v60  ;;  %v3301_v54 = vld [vmem:[#allocation11 + $0x10] sm:$0xf0]  ;;  %v4398_v56 = vld [vmem:[#allocation11 + $0x2c] sm:$0xf]  ;;  %v3325_v57 = vld [vmem:[#allocation11 + $0x38] sm:$0xf0]  ;;  %v3300_v58 = vor.u32 %v4395_v52, %v3299_v50 }
  0x4b   :  { %720 = vmatpush.bf16.msrb.mxu3 %v3408_v0  ;;  %v3328_v59 = vor.u32 %v4398_v56, %v3325_v57  ;;  %v3307_v60 = vld [vmem:[#allocation11 + $0x8] sm:$0xf]  ;;  %v3304_v62 = vor.u32 %v4393_v53, %v3301_v54  ;;  %v4394_v63 = vld [vmem:[#allocation11 + $0xc] sm:$0xf]  ;;  %v3309_v0 = vld [vmem:[#allocation11 + $0x18] sm:$0xf0] }
  0x4c   :  { %682 = vmatpush.bf16.msrb.mxu0 %v3380_v61  ;;  %v4396_v61 = vld [vmem:[#allocation11 + $0x14] sm:$0xf0]  ;;  %v4359_v3 = vld [vmem:[#allocation6 + $0x10] sm:$0xff]  ;;  %v4982_v10 = vld [vmem:[#allocation12] sm:$0xff] }
  0x4d   :  { %695 = vmatpush.bf16.msrb.mxu1 %v3384_v2  ;;  %v3308_v1 = vor.u32 %v4396_v61, %v3307_v60  ;;  %v3312_v2 = vor.u32 %v4394_v63, %v3309_v0  ;;  %v4971_v4 = vld [vmem:[%s5214_s1] sm:$0xff]  ;;  %v487_v11 = vpack.c.bf16 %v4982_v10, %v4982_v10  ;;  %v4453_v60 = vld [vmem:[#allocation11 + $0xe4] sm:$0xf] }
  0x4e   :  { %708 = vmatpush.bf16.msrb.mxu2 %v3388_v8  ;;  %vm3428_vm0 = vcmp.gt.s32.totalorder %v4971_v4, 0  ;;  %vm3560_vm1 = vcmp.gt.s32.totalorder %v4971_v4, 1  ;;  %v4360_v8 = vld [vmem:[#allocation6 + $0x18] sm:$0xff]  ;;  %vm4220_vm2 = vcmp.gt.s32.totalorder %v4971_v4, 6 }
  0x4f   :  { %721 = vmatpush.bf16.msrb.mxu3 %v3392_v12  ;;  %v801_v6 = vsel %vm3428_vm0, 1, %v4901_v5  ;;  %v1132_v7 = vsel %vm3560_vm1, 1, %v4901_v5  ;;  %vm3692_vm0 = vcmp.gt.s32.totalorder %v4971_v4, 2  ;;  %vm3824_vm1 = vcmp.gt.s32.totalorder %v4971_v4, 3 }
  0x50   :  { %683 = vmatpush.bf16.msrb.mxu0 %v3364_v9  ;;  %803 = vperm.xlu0 %4659, %v801_v6   ;;  %v2787_v9 = vsel %vm4220_vm2, 1, %v4901_v5 }
  0x51   :  { %696 = vmatpush.bf16.msrb.mxu1 %v3368_v14  ;;  %v137_v14 = vld [vmem:[%s5218_s5] sm:$0xf] }
  0x52   :  { %709 = vmatpush.bf16.msrb.mxu2 %v3372_v21  ;;  %v4993_v15 = vperm.slane %v137_v14, 0  ;;  %v4997_v17 = vperm.slane %v137_v14, 1  ;;  %v5007_v23 = vperm.slane %v137_v14, 3  ;;  %v5009_v24 = vperm.slane %v137_v14, 2  ;;  %v4454_v14 = vld [vmem:[#allocation11 + $0xec] sm:$0xf] }
  0x53   :  { %722 = vmatpush.bf16.msrb.mxu3 %v3376_v25  ;;  %344 = vmatmul.bf16.gmra.mxu0 %v4358_v20 }
  0x54   :  { %684 = vmatpush.bf16.msrb.mxu0 %v3348_v22  ;;  %373 = vmatmul.bf16.gmra.mxu1 %v4358_v20 }
  0x55   :  { %697 = vmatpush.bf16.msrb.mxu1 %v3352_v27  ;;  %402 = vmatmul.bf16.gmra.mxu2 %v4358_v20 }
  0x56   :  { %431 = vmatmul.bf16.gmra.mxu3 %v4358_v20  ;;  %710 = vmatpush.bf16.msrb.mxu2 %v3356_v33 }
  0x57   :  { %723 = vmatpush.bf16.msrb.mxu3 %v3360_v37 }
  0x58   :  { %685 = vmatpush.bf16.msrb.mxu0 %v3332_v34  ;;  %1134 = vperm.xlu0 %4659, %v1132_v7  }
  0x59   :  { %698 = vmatpush.bf16.msrb.mxu1 %v3336_v38 }
  0x5a   :  { %711 = vmatpush.bf16.msrb.mxu2 %v3340_v39 }
  0x5b   :  { %724 = vmatpush.bf16.msrb.mxu3 %v3344_v51 }
  0x5c   :  { %686 = vmatpush.bf16.msrb.mxu0 %v3316_v43 }
  0x5d   :  { %699 = vmatpush.bf16.msrb.mxu1 %v3320_v47 }
  0x5e   :  { %712 = vmatpush.bf16.msrb.mxu2 %v3324_v55 }
  0x5f   :  { %725 = vmatpush.bf16.msrb.mxu3 %v3328_v59  ;;  %v4455_v59 = vld [vmem:[#allocation11 + $0xec] sm:$0xf0] }
  0x60   :  { %687 = vmatpush.bf16.msrb.mxu0 %v3300_v58  ;;  %2789 = vperm.xlu0 %4659, %v2787_v9   ;;  %v3543_v58 = vld [vmem:[#allocation11 + $0xe0] sm:$0xf] }
  0x61   :  { %700 = vmatpush.bf16.msrb.mxu1 %v3304_v62  ;;  %v3544_v0 = vor.u32 %v4455_v59, %v3543_v58 }
  0x62   :  { %713 = vmatpush.bf16.msrb.mxu2 %v3308_v1  ;;  %v3545_v1 = vld [vmem:[#allocation11 + $0xf0] sm:$0xf0] }
  0x63   :  { %726 = vmatpush.bf16.msrb.mxu3 %v3312_v2  ;;  %349 = vmatmul.bf16.gmra.mxu0 %v4359_v3  ;;  %v3551_v2 = vld [vmem:[#allocation11 + $0xe8] sm:$0xf]  ;;  %v3548_v9 = vor.u32 %v4453_v60, %v3545_v1  ;;  %v4448_v1 = vld [vmem:[#allocation11 + $0xb4] sm:$0xf0] }
  0x64   :  { %378 = vmatmul.bf16.gmra.mxu1 %v4359_v3  ;;  %1010 = vmatpush.bf16.msra.mxu0 %v3544_v0  ;;  %v3519_v0 = vld [vmem:[#allocation11 + $0xa8] sm:$0xf] }
  0x65   :  { %407 = vmatmul.bf16.gmra.mxu2 %v4359_v3  ;;  %1023 = vmatpush.bf16.msra.mxu1 %v3548_v9 }
  0x66   :  { %436 = vmatmul.bf16.gmra.mxu3 %v4359_v3  ;;  %v4456_v3 = vld [vmem:[#allocation11 + $0xf4] sm:$0xf0] }
  0x73   :  { %354 = vmatmul.bf16.gmra.mxu0 %v4360_v8 }
  0x74   :  { %383 = vmatmul.bf16.gmra.mxu1 %v4360_v8 }
  0x75   :  { %412 = vmatmul.bf16.gmra.mxu2 %v4360_v8 }
  0x76   :  { %441 = vmatmul.bf16.gmra.mxu3 %v4360_v8 }
  0x83   :  { %688 = vmatmul.bf16.vlgmr.msrb.gmra.mxu0 %v487_v11 }
  0x84   :  { %701 = vmatmul.bf16.vlgmr.msrb.gmra.mxu1 %v487_v11 }
  0x85   :  { %714 = vmatmul.bf16.vlgmr.msrb.gmra.mxu2 %v487_v11 }
  0x86   :  { %727 = vmatmul.bf16.vlgmr.msrb.gmra.mxu3 %v487_v11  ;;  %v3552_v11 = vor.u32 %v4456_v3, %v3551_v2 }
  0x88   :  { %1036 = vmatpush.bf16.msra.mxu2 %v3552_v11  ;;  %v3520_v11 = vor.u32 %v4448_v1, %v3519_v0 }
  0xc0   :  { %v4986_v12 = vpop.f32.mrf.mxu0 }
  0xc1   :  { %v4988_v13 = vpop.f32.mrf.mxu1 }
  0xc8   :  { %v4995_v16 = vpop.f32.mrf.mxu2  ;;  %v342_v19 = vpop.f32.mrf.mxu0 }
  0xc9   :  { %v4999_v18 = vpop.f32.mrf.mxu3  ;;  %v5002_v20 = vadd.f32 %v342_v19, %v4993_v15  ;;  %v371_v21 = vpop.f32.mrf.mxu1  ;;  %v3553_v19 = vld [vmem:[#allocation11 + $0xf8] sm:$0xf0] }
  0xca   :  { %v5005_v22 = vadd.f32 %v371_v21, %v4997_v17 }
  0xd0   :  { %v400_v25 = vpop.f32.mrf.mxu2  ;;  %v345_v28 = vpop.f32.mrf.mxu0 }
  0xd1   :  { %v5012_v26 = vadd.f32 %v400_v25, %v5009_v24  ;;  %v429_v27 = vpop.f32.mrf.mxu3  ;;  %v5018_v30 = vadd.f32 %v345_v28, %v4993_v15  ;;  %v374_v31 = vpop.f32.mrf.mxu1  ;;  %v3556_v25 = vor.u32 %v4454_v14, %v3553_v19  ;;  %v4451_v28 = vld [vmem:[#allocation11 + $0xcc] sm:$0xf0]  ;;  %v4446_v14 = vld [vmem:[#allocation11 + $0xac] sm:$0xf]  ;;  %v3521_v19 = vld [vmem:[#allocation11 + $0xb8] sm:$0xf0] }
  0xd2   :  { %v5015_v29 = vadd.f32 %v429_v27, %v5007_v23  ;;  %v5021_v32 = vadd.f32 %v374_v31, %v4997_v17  ;;  %v3527_v27 = vld [vmem:[#allocation11 + $0xc0] sm:$0xf]  ;;  %v4449_v31 = vld [vmem:[#allocation11 + $0xc4] sm:$0xf] }
  0xd3   :  { %1049 = vmatpush.bf16.msra.mxu3 %v3556_v25 }
  0xd8   :  { %v403_v33 = vpop.f32.mrf.mxu2  ;;  %v347_v36 = vpop.f32.mrf.mxu0 }
  0xd9   :  { %v5024_v34 = vadd.f32 %v403_v33, %v5009_v24  ;;  %v432_v35 = vpop.f32.mrf.mxu3  ;;  %v5030_v38 = vadd.f32 %v347_v36, %v4993_v15  ;;  %v376_v39 = vpop.f32.mrf.mxu1  ;;  %v3528_v33 = vor.u32 %v4451_v28, %v3527_v27  ;;  %v3535_v36 = vld [vmem:[#allocation11 + $0xc8] sm:$0xf]  ;;  %v3524_v27 = vor.u32 %v4446_v14, %v3521_v19  ;;  %v3495_v28 = vld [vmem:[#allocation11 + $0x80] sm:$0xf] }
  0xda   :  { %v5027_v37 = vadd.f32 %v432_v35, %v5007_v23  ;;  %v5033_v40 = vadd.f32 %v376_v39, %v4997_v17  ;;  %v3529_v35 = vld [vmem:[#allocation11 + $0xd0] sm:$0xf0]  ;;  %v4452_v39 = vld [vmem:[#allocation11 + $0xd4] sm:$0xf0] }
  0xdb   :  { %1011 = vmatpush.bf16.msra.mxu0 %v3528_v33  ;;  %v4441_v33 = vld [vmem:[#allocation11 + $0x84] sm:$0xf] }
  0xe0   :  { %v405_v41 = vpop.f32.mrf.mxu2  ;;  %v350_v44 = vpop.f32.mrf.mxu0 }
  0xe1   :  { %v5036_v42 = vadd.f32 %v405_v41, %v5009_v24  ;;  %v434_v43 = vpop.f32.mrf.mxu3  ;;  %v5042_v46 = vadd.f32 %v350_v44, %v4993_v15  ;;  %v379_v47 = vpop.f32.mrf.mxu1  ;;  %v3532_v41 = vor.u32 %v4449_v31, %v3529_v35  ;;  %v4450_v44 = vld [vmem:[#allocation11 + $0xcc] sm:$0xf]  ;;  %v4443_v31 = vld [vmem:[#allocation11 + $0x8c] sm:$0xf0] }
  0xe2   :  { %v5039_v45 = vadd.f32 %v434_v43, %v5007_v23  ;;  %v5045_v48 = vadd.f32 %v379_v47, %v4997_v17  ;;  %v3536_v43 = vor.u32 %v4452_v39, %v3535_v36  ;;  %v3537_v47 = vld [vmem:[#allocation11 + $0xd8] sm:$0xf0]  ;;  %v3496_v35 = vor.u32 %v4443_v31, %v3495_v28  ;;  %v3497_v36 = vld [vmem:[#allocation11 + $0x90] sm:$0xf0]  ;;  %v3503_v39 = vld [vmem:[#allocation11 + $0x88] sm:$0xf] }
  0xe3   :  { %1024 = vmatpush.bf16.msra.mxu1 %v3532_v41  ;;  %v4444_v41 = vld [vmem:[#allocation11 + $0x94] sm:$0xf0]  ;;  %v4438_v28 = vld [vmem:[#allocation11 + $0x6c] sm:$0xf]  ;;  %v3489_v31 = vld [vmem:[#allocation11 + $0x78] sm:$0xf0] }
  0xe4   :  { %1037 = vmatpush.bf16.msra.mxu2 %v3536_v43  ;;  %v3500_v43 = vor.u32 %v4441_v33, %v3497_v36  ;;  %v3492_v33 = vor.u32 %v4438_v28, %v3489_v31  ;;  %v3463_v36 = vld [vmem:[#allocation11 + $0x40] sm:$0xf]  ;;  %v3455_v28 = vld [vmem:[#allocation11 + $0x28] sm:$0xf] }
  0xe8   :  { %v408_v49 = vpop.f32.mrf.mxu2  ;;  %v352_v52 = vpop.f32.mrf.mxu0  ;;  %1038 = vmatpush.bf16.msra.mxu2 %v3520_v11  ;;  %v3487_v11 = vld [vmem:[#allocation11 + $0x68] sm:$0xf] }
  0xe9   :  { %v5048_v50 = vadd.f32 %v408_v49, %v5009_v24  ;;  %v437_v51 = vpop.f32.mrf.mxu3  ;;  %v5054_v54 = vadd.f32 %v352_v52, %v4993_v15  ;;  %v381_v55 = vpop.f32.mrf.mxu1  ;;  %v3540_v49 = vor.u32 %v4450_v44, %v3537_v47  ;;  %v3511_v52 = vld [vmem:[#allocation11 + $0xa0] sm:$0xf]  ;;  %v3504_v44 = vor.u32 %v4444_v41, %v3503_v39  ;;  %v4442_v47 = vld [vmem:[#allocation11 + $0x8c] sm:$0xf]  ;;  %v4435_v39 = vld [vmem:[#allocation11 + $0x4c] sm:$0xf0] }
  0xea   :  { %v5051_v53 = vadd.f32 %v437_v51, %v5007_v23  ;;  %v5057_v56 = vadd.f32 %v381_v55, %v4997_v17  ;;  %v4447_v55 = vld [vmem:[#allocation11 + $0xac] sm:$0xf0] }
  0xeb   :  { %1050 = vmatpush.bf16.msra.mxu3 %v3540_v49  ;;  %v3505_v49 = vld [vmem:[#allocation11 + $0x98] sm:$0xf0] }
  0xec   :  { %1039 = vmatpush.bf16.msra.mxu2 %v3504_v44  ;;  %v4433_v44 = vld [vmem:[#allocation11 + $0x44] sm:$0xf] }
  0xef   :  { %1051 = vmatpush.bf16.msra.mxu3 %v3524_v27  ;;  %v4440_v27 = vld [vmem:[#allocation11 + $0x74] sm:$0xf0] }
  0xf0   :  { %v410_v57 = vpop.f32.mrf.mxu2  ;;  %v355_v63 = vpop.f32.mrf.mxu0 }
  0xf1   :  { %v5060_v61 = vadd.f32 %v410_v57, %v5009_v24  ;;  %v439_v62 = vpop.f32.mrf.mxu3  ;;  %v5066_v7 = vadd.f32 %v355_v63, %v4993_v15  ;;  %v384_v8 = vpop.f32.mrf.mxu1  ;;  %v4445_v57 = vld [vmem:[#allocation11 + $0xa4] sm:$0xf]  ;;  %v3513_v63 = vld [vmem:[#allocation11 + $0xb0] sm:$0xf0] }
  0xf2   :  { %v5063_v6 = vadd.f32 %v439_v62, %v5007_v23  ;;  %v5069_v21 = vadd.f32 %v384_v8, %v4997_v17  ;;  %v3512_v62 = vor.u32 %v4447_v55, %v3511_v52  ;;  %v3516_v9 = vor.u32 %v4445_v57, %v3513_v63  ;;  %v3479_v57 = vld [vmem:[#allocation11 + $0x60] sm:$0xf] }
  0xf3   :  { %v341_v52 = vadd.f32 %v4986_v12, %v4993_v15 }
  0xf4   :  { %1012 = vmatpush.bf16.msra.mxu0 %v3512_v62  ;;  %1025 = vmatpush.bf16.msra.mxu1 %v3516_v9  ;;  %v3481_v9 = vld [vmem:[#allocation11 + $0x70] sm:$0xf0] }
  0xf8   :  { %v413_v51 = vpop.f32.mrf.mxu2  ;;  %v357_v60 = vpop.f32.mrf.mxu0  ;;  %1013 = vmatpush.bf16.msra.mxu0 %v3496_v35  ;;  %1026 = vmatpush.bf16.msra.mxu1 %v3500_v43  ;;  %v3464_v43 = vor.u32 %v4435_v39, %v3463_v36 }
  0xf9   :  { %v5072_v58 = vadd.f32 %v413_v51, %v5009_v24  ;;  %v442_v59 = vpop.f32.mrf.mxu3  ;;  %v5078_v3 = vadd.f32 %v357_v60, %v4993_v15  ;;  %v386_v8 = vpop.f32.mrf.mxu1  ;;  %v3508_v51 = vor.u32 %v4442_v47, %v3505_v49  ;;  %v370_v60 = vadd.f32 %v4988_v13, %v4997_v17  ;;  %v3465_v47 = vld [vmem:[#allocation11 + $0x50] sm:$0xf0]  ;;  %v3471_v49 = vld [vmem:[#allocation11 + $0x48] sm:$0xf] }
  0xfa   :  { %v5075_v2 = vadd.f32 %v442_v59, %v5007_v23  ;;  %v5081_v25 = vadd.f32 %v386_v8, %v4997_v17  ;;  %v4439_v59 = vld [vmem:[#allocation11 + $0x6c] sm:$0xf0]  ;;  %v4437_v8 = vld [vmem:[#allocation11 + $0x64] sm:$0xf]  ;;  %v3488_v17 = vor.u32 %v4440_v27, %v3487_v11  ;;  %v3449_v27 = vld [vmem:[#allocation11 + $0x30] sm:$0xf0] }
  0xfb   :  { %1052 = vmatpush.bf16.msra.mxu3 %v3508_v51  ;;  %v3480_v1 = vor.u32 %v4439_v59, %v3479_v57  ;;  %v3484_v19 = vor.u32 %v4437_v8, %v3481_v9  ;;  %v4436_v51 = vld [vmem:[#allocation11 + $0x54] sm:$0xf0]  ;;  %v4434_v59 = vld [vmem:[#allocation11 + $0x4c] sm:$0xf]  ;;  %v4431_v8 = vld [vmem:[#allocation11 + $0x2c] sm:$0xf0] }
  0xfc   :  { %1040 = vmatpush.bf16.msra.mxu2 %v3488_v17  ;;  %v3472_v57 = vor.u32 %v4436_v51, %v3471_v49  ;;  %v4429_v9 = vld [vmem:[#allocation11 + $0x24] sm:$0xf]  ;;  %v4430_v17 = vld [vmem:[#allocation11 + $0x2c] sm:$0xf] }
  0xfd   :  { %1014 = vmatpush.bf16.msra.mxu0 %v3480_v1  ;;  %1027 = vmatpush.bf16.msra.mxu1 %v3484_v19  ;;  %v3447_v1 = vld [vmem:[#allocation11 + $0x20] sm:$0xf]  ;;  %v3452_v31 = vor.u32 %v4429_v9, %v3449_v27 }
  0xfe   :  { %v3448_v19 = vor.u32 %v4431_v8, %v3447_v1  ;;  %v3441_v1 = vld [vmem:[#allocation11 + $0x18] sm:$0xf0] }
  0xff   :  { %1053 = vmatpush.bf16.msra.mxu3 %v3492_v33  ;;  %v3457_v33 = vld [vmem:[#allocation11 + $0x38] sm:$0xf0] }
 0x100   :  { %v415_v55 = vpop.f32.mrf.mxu2  ;;  %v689_v0 = vpop.f32.mrf.mxu0  ;;  %1041 = vmatpush.bf16.msra.mxu2 %v3472_v57  ;;  %v3460_v36 = vor.u32 %v4430_v17, %v3457_v33 }
 0x101   :  { %v5088_v62 = vadd.f32 %v415_v55, %v5009_v24  ;;  %v444_v63 = vpop.f32.mrf.mxu3  ;;  %v732_v15 = vadd.f32 %v689_v0, %v341_v52  ;;  %v702_v14 = vpop.f32.mrf.mxu1  ;;  %v399_v52 = vadd.f32 %v4995_v16, %v5009_v24  ;;  %1015 = vmatpush.bf16.msra.mxu0 %v3464_v43  ;;  %v3468_v55 = vor.u32 %v4433_v44, %v3465_v47  ;;  %v4432_v16 = vld [vmem:[#allocation11 + $0x34] sm:$0xf0]  ;;  %v4427_v43 = vld [vmem:[#allocation11 + $0xc] sm:$0xf0]  ;;  %v4425_v44 = vld [vmem:[#allocation11 + $0x4] sm:$0xf] }
 0x102   :  { %v5091_v12 = vadd.f32 %v444_v63, %v5007_v23  ;;  %v733_v13 = vadd.f32 %v702_v14, %v370_v60  ;;  %v3473_v60 = vld [vmem:[#allocation11 + $0x58] sm:$0xf0] }
 0x103   :  { %v3425_v35 = vmul.f32 -1.442695, %v732_v15  ;;  %v3476_v0 = vor.u32 %v4434_v59, %v3473_v60  ;;  %1028 = vmatpush.bf16.msra.mxu1 %v3468_v55  ;;  %v3439_v59 = vld [vmem:[#allocation11 + $0x8] sm:$0xf]  ;;  %v4428_v60 = vld [vmem:[#allocation11 + $0x14] sm:$0xf0] }
 0x104   :  { %v3426_v41 = vmul.f32 -1.442695, %v733_v13  ;;  %v3456_v13 = vor.u32 %v4432_v16, %v3455_v28  ;;  %v3440_v9 = vor.u32 %v4428_v60, %v3439_v59 }
 0x105   :  { %4662 = vpow2.f32 %v3425_v35  ;;  %1054 = vmatpush.bf16.msra.mxu3 %v3476_v0  ;;  %1016 = vmatpush.bf16.msra.mxu0 %v3448_v19  ;;  %v428_v19 = vadd.f32 %v4999_v18, %v5007_v23 }
 0x106   :  { %4664 = vpow2.f32 %v3426_v41  ;;  %v3431_v41 = vld [vmem:[#allocation11] sm:$0xf]  ;;  %1042 = vmatpush.bf16.msra.mxu2 %v3456_v13 }
 0x107   :  { %1029 = vmatpush.bf16.msra.mxu1 %v3452_v31  ;;  %v3432_v51 = vor.u32 %v4427_v43, %v3431_v41 }
 0x108   :  { %v715_v63 = vpop.f32.mrf.mxu2  ;;  %v691_v14 = vpop.f32.mrf.mxu0 }
 0x109   :  { %v734_v11 = vadd.f32 %v715_v63, %v399_v52  ;;  %v728_v15 = vpop.f32.mrf.mxu3  ;;  %v704_v24 = vpop.f32.mrf.mxu1  ;;  %v3433_v52 = vld [vmem:[#allocation11 + $0x10] sm:$0xf0]  ;;  %1055 = vmatpush.bf16.msra.mxu3 %v3460_v36  ;;  %1017 = vmatpush.bf16.msra.mxu0 %v3432_v51  ;;  %v4426_v63 = vld [vmem:[#allocation11 + $0xc] sm:$0xf] }
 0x10a   :  { %v3436_v57 = vor.u32 %v4425_v44, %v3433_v52  ;;  %1043 = vmatpush.bf16.msra.mxu2 %v3440_v9  ;;  %v735_v16 = vadd.f32 %v728_v15, %v428_v19 }
 0x10b   :  { %v3427_v35 = vmul.f32 -1.442695, %v734_v11  ;;  %v4663_v39 = vpop.eup %4662  ;;  %v3444_v11 = vor.u32 %v4426_v63, %v3441_v1 }
 0x10c   :  { %v4665_v47 = vpop.eup %4664  ;;  %v745_v49 = vadd.f32 1.0, %v4663_v39  ;;  %1030 = vmatpush.bf16.msra.mxu1 %v3436_v57  ;;  %v482_v57 = vld [vmem:[#allocation2] sm:$0xff] }
 0x10d   :  { %4666 = vpow2.f32 %v3427_v35  ;;  %v746_v55 = vadd.f32 1.0, %v4665_v47  ;;  %1056 = vmatpush.bf16.msra.mxu3 %v3444_v11  ;;  %v804_v11 = vpop.permute.xlu0 %803 }
 0x10e   :  { %4668 = vrcp.f32 %v745_v49  ;;  %v759_v35 = vand.u32 2147483648, %v745_v49  ;;  %v757_v39 = vand.u32 2147483647, %v745_v49  ;;  %vm753_vm5 = vweird.f32 %v745_v49 }
 0x10f   :  { %4670 = vrcp.f32 %v746_v55  ;;  %v774_v41 = vand.u32 2147483648, %v746_v55  ;;  %v772_v18 = vand.u32 2147483647, %v746_v55  ;;  %vm768_vm7 = vweird.f32 %v746_v55 }
 0x110   :  { %v717_v0 = vpop.f32.mrf.mxu2  ;;  %v760_v15 = vor.u32 1.1754944e-38, %v759_v35  ;;  %vm758_vm8 = vcmp.eq.f32.partialorder %v757_v39, 8.507059e+37  ;;  %vm805_vm11 = vcmp.eq.s32.totalorder %v804_v11, 1 }
 0x111   :  { %v730_v8 = vpop.f32.mrf.mxu3  ;;  %v775_v59 = vor.u32 1.1754944e-38, %v774_v41  ;;  %vm773_vm10 = vcmp.eq.f32.partialorder %v772_v18, 8.507059e+37  ;;  %v3675_v41 = vld [vmem:[#allocation11 + $0xe0] sm:$0xf] }
 0x113   :  { %v4667_v14 = vpop.eup %4666 }
 0x114   :  { %v747_v27 = vadd.f32 1.0, %v4667_v14  ;;  %v4669_v28 = vpop.eup %4668 }
 0x115   :  { %v4671_v24 = vpop.eup %4670  ;;  %v749_v31 = vmul.f32 %v4669_v28, %v745_v49  ;;  %vm754_vm3 = vweird.f32 %v4669_v28 }
 0x116   :  { %4672 = vrcp.f32 %v747_v27  ;;  %v764_v13 = vmul.f32 %v4671_v24, %v746_v55  ;;  %vm769_vm4 = vweird.f32 %v4671_v24  ;;  %vm755_vm6 = vmor %vm753_vm5, %vm754_vm3  ;;  %v789_v55 = vand.u32 2147483648, %v747_v27 }
 0x117   :  { %v750_v17 = vsub.f32 1.0, %v749_v31  ;;  %4674 = vtanh.f32 %v735_v16  ;;  %vm770_vm9 = vmor %vm768_vm7, %vm769_vm4  ;;  %vm783_vm13 = vweird.f32 %v747_v27  ;;  %v787_v31 = vand.u32 2147483647, %v747_v27 }
 0x118   :  { %v765_v33 = vsub.f32 1.0, %v764_v13 }
 0x119   :  { %v751_v36 = vmul.f32 %v4669_v28, %v750_v17  ;;  %vm788_vm15 = vcmp.eq.f32.partialorder %v787_v31, 8.507059e+37  ;;  %v4479_v31 = vld [vmem:[#allocation11 + $0xac] sm:$0xf0] }
 0x11a   :  { %v766_v43 = vmul.f32 %v4671_v24, %v765_v33 }
 0x11b   :  { %v752_v44 = vadd.f32 %v4669_v28, %v751_v36 }
 0x11c   :  { %v4673_v23 = vpop.eup %4672  ;;  %v767_v51 = vadd.f32 %v4671_v24, %v766_v43  ;;  %v4485_v43 = vld [vmem:[#allocation11 + $0xe4] sm:$0xf] }
 0x11d   :  { %v779_v47 = vmul.f32 %v4673_v23, %v747_v27  ;;  %v756_v52 = vsel %vm755_vm6, %v4669_v28, %v752_v44  ;;  %v4675_v60 = vpop.eup %4674  ;;  %vm784_vm12 = vweird.f32 %v4673_v23  ;;  %v4487_v27 = vld [vmem:[#allocation11 + $0xec] sm:$0xf0]  ;;  %v3683_v44 = vld [vmem:[#allocation11 + $0xe8] sm:$0xf] }
 0x11e   :  { %v761_v0 = vsel %vm758_vm8, %v760_v15, %v756_v52  ;;  %v771_v1 = vsel %vm770_vm9, %v4671_v24, %v767_v51  ;;  %vm785_vm14 = vmor %vm783_vm13, %vm784_vm12  ;;  %v790_v24 = vor.u32 1.1754944e-38, %v789_v55  ;;  %v3676_v18 = vor.u32 %v4487_v27, %v3675_v41  ;;  %v4486_v52 = vld [vmem:[#allocation11 + $0xec] sm:$0xf]  ;;  %v3643_v55 = vld [vmem:[#allocation11 + $0xa0] sm:$0xf] }
 0x11f   :  { %v780_v63 = vsub.f32 1.0, %v779_v47  ;;  %v795_v8 = vmul.f32 %v4675_v60, %v761_v0  ;;  %v776_v9 = vsel %vm773_vm10, %v775_v59, %v771_v1  ;;  %v4488_v47 = vld [vmem:[#allocation11 + $0xf4] sm:$0xf0]  ;;  %v3659_v59 = vld [vmem:[#allocation11 + $0xc0] sm:$0xf]  ;;  %vm4352_vm9 = vcmp.gt.s32.totalorder %v4971_v4, 7 }
 0x120   :  { %v794_v49 = vmul.f32 %v776_v9, %v482_v57  ;;  %v3684_v51 = vor.u32 %v4488_v47, %v3683_v44  ;;  %1341 = vmatpush.bf16.msrb.mxu0 %v3676_v18  ;;  %v4483_v60 = vld [vmem:[#allocation11 + $0xcc] sm:$0xf0]  ;;  %v3661_v1 = vld [vmem:[#allocation11 + $0xd0] sm:$0xf0]  ;;  %v4484_v9 = vld [vmem:[#allocation11 + $0xd4] sm:$0xf0] }
 0x121   :  { %v781_v14 = vmul.f32 %v4673_v23, %v780_v63  ;;  %v4481_v63 = vld [vmem:[#allocation11 + $0xc4] sm:$0xf]  ;;  %v3660_v0 = vor.u32 %v4483_v60, %v3659_v59  ;;  %v4478_v27 = vld [vmem:[#allocation11 + $0xac] sm:$0xf]  ;;  %v4475_v44 = vld [vmem:[#allocation11 + $0x8c] sm:$0xf0] }
 0x122   :  { %v796_v19 = vadd.f32 %v795_v8, %v794_v49  ;;  %1367 = vmatpush.bf16.msrb.mxu2 %v3684_v51  ;;  %v3667_v8 = vld [vmem:[#allocation11 + $0xc8] sm:$0xf]  ;;  %v3664_v11 = vor.u32 %v4481_v63, %v3661_v1  ;;  %v4482_v49 = vld [vmem:[#allocation11 + $0xcc] sm:$0xf]  ;;  %v4473_v47 = vld [vmem:[#allocation11 + $0x84] sm:$0xf] }
 0x123   :  { %v782_v16 = vadd.f32 %v4673_v23, %v781_v14  ;;  %v3668_v14 = vor.u32 %v4484_v9, %v3667_v8  ;;  %v3629_v51 = vld [vmem:[#allocation11 + $0x90] sm:$0xf0]  ;;  %v4474_v60 = vld [vmem:[#allocation11 + $0x8c] sm:$0xf]  ;;  %v3637_v63 = vld [vmem:[#allocation11 + $0x98] sm:$0xf0] }
 0x124   :  { %4676 = vtanh.f32 %v796_v19  ;;  %v5098_v28 = vsel %vm805_vm11, %v796_v19, %v482_v57  ;;  %v3685_v57 = vld [vmem:[#allocation11 + $0xf8] sm:$0xf0]  ;;  %1342 = vmatpush.bf16.msrb.mxu0 %v3660_v0  ;;  %v3640_v0 = vor.u32 %v4474_v60, %v3637_v63  ;;  %v3611_v1 = vld [vmem:[#allocation11 + $0x60] sm:$0xf]  ;;  %v4471_v8 = vld [vmem:[#allocation11 + $0x6c] sm:$0xf0] }
 0x125   :  { %v786_v13 = vsel %vm785_vm14, %v4673_v23, %v782_v16  ;;  %v3677_v23 = vld [vmem:[#allocation11 + $0xf0] sm:$0xf0]  ;;  %v3669_v19 = vld [vmem:[#allocation11 + $0xd8] sm:$0xf0]  ;;  %v4469_v9 = vld [vmem:[#allocation11 + $0x64] sm:$0xf] }
 0x126   :  { %v791_v33 = vsel %vm788_vm15, %v790_v24, %v786_v13  ;;  %v3680_v15 = vor.u32 %v4485_v43, %v3677_v23  ;;  %v3672_v16 = vor.u32 %v4482_v49, %v3669_v19  ;;  %1368 = vmatpush.bf16.msrb.mxu2 %v3668_v14  ;;  %v4477_v13 = vld [vmem:[#allocation11 + $0xa4] sm:$0xf]  ;;  %v3644_v24 = vor.u32 %v4479_v31, %v3643_v55  ;;  %v3653_v43 = vld [vmem:[#allocation11 + $0xb8] sm:$0xf0]  ;;  %v3627_v23 = vld [vmem:[#allocation11 + $0x80] sm:$0xf] }
 0x127   :  { %v3656_v18 = vor.u32 %v4478_v27, %v3653_v43  ;;  %v3612_v49 = vor.u32 %v4471_v8, %v3611_v1  ;;  %v3613_v19 = vld [vmem:[#allocation11 + $0x70] sm:$0xf0]  ;;  %v4472_v55 = vld [vmem:[#allocation11 + $0x74] sm:$0xf0]  ;;  %v3595_v43 = vld [vmem:[#allocation11 + $0x40] sm:$0xf] }
 0x128   :  { %1354 = vmatpush.bf16.msrb.mxu1 %v3680_v15  ;;  %1343 = vmatpush.bf16.msrb.mxu0 %v3644_v24  ;;  %v3628_v15 = vor.u32 %v4475_v44, %v3627_v23  ;;  %v3616_v24 = vor.u32 %v4469_v9, %v3613_v19  ;;  %v4465_v23 = vld [vmem:[#allocation11 + $0x44] sm:$0xf]  ;;  %v3597_v44 = vld [vmem:[#allocation11 + $0x50] sm:$0xf0]  ;;  %v3579_v63 = vld [vmem:[#allocation11 + $0x20] sm:$0xf] }
 0x129   :  { %v4461_v1 = vld [vmem:[#allocation11 + $0x24] sm:$0xf]  ;;  %v3587_v19 = vld [vmem:[#allocation11 + $0x28] sm:$0xf] }
 0x12a   :  { %v4677_v17 = vpop.eup %4676 }
 0x12b   :  { %v798_v35 = vmul.f32 %v4677_v17, %v791_v33  ;;  %v3645_v17 = vld [vmem:[#allocation11 + $0xb0] sm:$0xf0]  ;;  %v3651_v33 = vld [vmem:[#allocation11 + $0xa8] sm:$0xf] }
 0x12c   :  { %1355 = vmatpush.bf16.msrb.mxu1 %v3664_v11  ;;  %1344 = vmatpush.bf16.msrb.mxu0 %v3628_v15  ;;  %v3603_v15 = vld [vmem:[#allocation11 + $0x48] sm:$0xf] }
 0x12d   :  { %v5102_v36 = vsel %vm805_vm11, %v798_v35, %v4982_v10  ;;  %v3688_v10 = vor.u32 %v4486_v52, %v3685_v57  ;;  %v4480_v35 = vld [vmem:[#allocation11 + $0xb4] sm:$0xf0]  ;;  %v3635_v52 = vld [vmem:[#allocation11 + $0x88] sm:$0xf] }
 0x12e   :  { %v817_v39 = vpack.c.bf16 %v5102_v36, %v5102_v36  ;;  %v3652_v41 = vor.u32 %v4480_v35, %v3651_v33  ;;  %v4476_v57 = vld [vmem:[#allocation11 + $0x94] sm:$0xf0]  ;;  %v4470_v33 = vld [vmem:[#allocation11 + $0x6c] sm:$0xf]  ;;  %v3621_v35 = vld [vmem:[#allocation11 + $0x78] sm:$0xf0] }
 0x12f   :  { %1380 = vmatpush.bf16.msrb.mxu3 %v3688_v10  ;;  %v3632_v10 = vor.u32 %v4473_v47, %v3629_v51  ;;  %v3636_v59 = vor.u32 %v4476_v57, %v3635_v52  ;;  %v4466_v51 = vld [vmem:[#allocation11 + $0x4c] sm:$0xf]  ;;  %v3605_v57 = vld [vmem:[#allocation11 + $0x58] sm:$0xf0] }
 0x130   :  { %1018 = vmatmul.bf16.vlgmr.msra.gmra.mxu0 %v817_v39  ;;  %1031 = vmatmul.bf16.vlgmr.msra.gmra.mxu1 %v817_v39  ;;  %v3608_v60 = vor.u32 %v4466_v51, %v3605_v57  ;;  %v3573_v51 = vld [vmem:[#allocation11 + $0x18] sm:$0xf0] }
 0x131   :  { %1044 = vmatmul.bf16.vlgmr.msra.gmra.mxu2 %v817_v39  ;;  %1057 = vmatmul.bf16.vlgmr.msra.gmra.mxu3 %v817_v39  ;;  %v3648_v39 = vor.u32 %v4477_v13, %v3645_v17 }
 0x132   :  { %1369 = vmatpush.bf16.msrb.mxu2 %v3652_v41  ;;  %1345 = vmatpush.bf16.msrb.mxu0 %v3612_v49  ;;  %v3581_v49 = vld [vmem:[#allocation11 + $0x30] sm:$0xf0] }
 0x133   :  { %1381 = vmatpush.bf16.msrb.mxu3 %v3672_v16  ;;  %1356 = vmatpush.bf16.msrb.mxu1 %v3648_v39  ;;  %v3619_v16 = vld [vmem:[#allocation11 + $0x68] sm:$0xf]  ;;  %v3624_v39 = vor.u32 %v4470_v33, %v3621_v35 }
 0x134   :  { %v3620_v17 = vor.u32 %v4472_v55, %v3619_v16  ;;  %v4464_v16 = vld [vmem:[#allocation11 + $0x34] sm:$0xf0]  ;;  %v3584_v55 = vor.u32 %v4461_v1, %v3581_v49 }
 0x136   :  { %1370 = vmatpush.bf16.msrb.mxu2 %v3636_v59 }
 0x137   :  { %1382 = vmatpush.bf16.msrb.mxu3 %v3656_v18  ;;  %1357 = vmatpush.bf16.msrb.mxu1 %v3632_v10  ;;  %v4467_v18 = vld [vmem:[#allocation11 + $0x4c] sm:$0xf0] }
 0x138   :  { %v3596_v47 = vor.u32 %v4467_v18, %v3595_v43 }
 0x13a   :  { %1371 = vmatpush.bf16.msrb.mxu2 %v3620_v17  ;;  %1346 = vmatpush.bf16.msrb.mxu0 %v3596_v47 }
 0x13b   :  { %1383 = vmatpush.bf16.msrb.mxu3 %v3640_v0  ;;  %1358 = vmatpush.bf16.msrb.mxu1 %v3616_v24  ;;  %v4463_v0 = vld [vmem:[#allocation11 + $0x2c] sm:$0xf0]  ;;  %v3589_v24 = vld [vmem:[#allocation11 + $0x38] sm:$0xf0] }
 0x13f   :  { %1384 = vmatpush.bf16.msrb.mxu3 %v3624_v39  ;;  %v3563_v39 = vld [vmem:[#allocation11] sm:$0xf] }
 0x143   :  { %1385 = vmatpush.bf16.msrb.mxu3 %v3608_v60 }
 0x1ad   :  { %v1019_v11 = vpop.f32.mrf.mxu0  ;;  %v1032_v14 = vpop.f32.mrf.mxu1 }
 0x1ae   :  { %v1062_v31 = vadd.f32 %v1019_v11, %v5002_v20  ;;  %v1063_v13 = vadd.f32 %v1032_v14, %v5005_v22  ;;  %v3600_v20 = vor.u32 %v4465_v23, %v3597_v44  ;;  %v4468_v22 = vld [vmem:[#allocation11 + $0x54] sm:$0xf0]  ;;  %v3580_v14 = vor.u32 %v4463_v0, %v3579_v63  ;;  %v3565_v23 = vld [vmem:[#allocation11 + $0x10] sm:$0xf0]  ;;  %v3571_v44 = vld [vmem:[#allocation11 + $0x8] sm:$0xf] }
 0x1af   :  { %v3604_v52 = vor.u32 %v4468_v22, %v3603_v15  ;;  %v4460_v15 = vld [vmem:[#allocation11 + $0x14] sm:$0xf0]  ;;  %v4458_v22 = vld [vmem:[#allocation11 + $0xc] sm:$0xf]  ;;  %v1463_v0 = vsel %vm3692_vm0, 1, %v4901_v5 }
 0x1b0   :  { %v3557_v41 = vmul.f32 -1.442695, %v1062_v31  ;;  %v3558_v27 = vmul.f32 -1.442695, %v1063_v13  ;;  %1359 = vmatpush.bf16.msrb.mxu1 %v3600_v20  ;;  %v3588_v31 = vor.u32 %v4464_v16, %v3587_v19  ;;  %v4462_v13 = vld [vmem:[#allocation11 + $0x2c] sm:$0xf]  ;;  %1347 = vmatpush.bf16.msrb.mxu0 %v3580_v14  ;;  %v3576_v60 = vor.u32 %v4458_v22, %v3573_v51 }
 0x1b1   :  { %1372 = vmatpush.bf16.msrb.mxu2 %v3604_v52  ;;  %v3592_v33 = vor.u32 %v4462_v13, %v3589_v24  ;;  %1465 = vperm.xlu1 %4660, %v1463_v0  }
 0x1b2   :  { %4678 = vpow2.f32 %v3557_v41  ;;  %v4459_v41 = vld [vmem:[#allocation11 + $0xc] sm:$0xf0] }
 0x1b3   :  { %4680 = vpow2.f32 %v3558_v27  ;;  %v3564_v18 = vor.u32 %v4459_v41, %v3563_v39  ;;  %1386 = vmatpush.bf16.msrb.mxu3 %v3592_v33 }
 0x1b4   :  { %v1045_v10 = vpop.f32.mrf.mxu2  ;;  %v1058_v59 = vpop.f32.mrf.mxu3  ;;  %1360 = vmatpush.bf16.msrb.mxu1 %v3584_v55 }
 0x1b5   :  { %v1064_v8 = vadd.f32 %v1045_v10, %v5012_v26  ;;  %v1021_v9 = vpop.f32.mrf.mxu0  ;;  %v1034_v11 = vpop.f32.mrf.mxu1  ;;  %v4457_v26 = vld [vmem:[#allocation11 + $0x4] sm:$0xf]  ;;  %1373 = vmatpush.bf16.msrb.mxu2 %v3588_v31  ;;  %1348 = vmatpush.bf16.msrb.mxu0 %v3564_v18  ;;  %v3572_v10 = vor.u32 %v4460_v15, %v3571_v44  ;;  %v1794_v31 = vsel %vm3824_vm1, 1, %v4901_v5 }
 0x1b6   :  { %v3568_v20 = vor.u32 %v4457_v26, %v3565_v23  ;;  %v1065_v9 = vadd.f32 %v1058_v59, %v5015_v29 }
 0x1b7   :  { %v3559_v17 = vmul.f32 -1.442695, %v1064_v8  ;;  %1387 = vmatpush.bf16.msrb.mxu3 %v3576_v60 }
 0x1b8   :  { %v4679_v35 = vpop.eup %4678  ;;  %1361 = vmatpush.bf16.msrb.mxu1 %v3568_v20 }
 0x1b9   :  { %v4681_v27 = vpop.eup %4680  ;;  %v1075_v43 = vadd.f32 1.0, %v4679_v35  ;;  %4682 = vpow2.f32 %v3559_v17  ;;  %1374 = vmatpush.bf16.msrb.mxu2 %v3572_v10  ;;  %1796 = vperm.xlu1 %4660, %v1794_v31  }
 0x1ba   :  { %v1076_v47 = vadd.f32 1.0, %v4681_v27 }
 0x1bb   :  { %4684 = vrcp.f32 %v1075_v43  ;;  %v1089_v55 = vand.u32 2147483648, %v1075_v43  ;;  %v1087_v17 = vand.u32 2147483647, %v1075_v43  ;;  %vm1083_vm4 = vweird.f32 %v1075_v43 }
 0x1bc   :  { %4686 = vrcp.f32 %v1076_v47  ;;  %v1047_v52 = vpop.f32.mrf.mxu2  ;;  %v1060_v57 = vpop.f32.mrf.mxu3  ;;  %v1104_v13 = vand.u32 2147483648, %v1076_v47  ;;  %v1102_v35 = vand.u32 2147483647, %v1076_v47  ;;  %vm1098_vm5 = vweird.f32 %v1076_v47 }
 0x1bd   :  { %v1090_v41 = vor.u32 1.1754944e-38, %v1089_v55  ;;  %vm1088_vm8 = vcmp.eq.f32.partialorder %v1087_v17, 8.507059e+37  ;;  %v3118_v52 = vsel %vm4352_vm9, 1, %v4901_v5  ;;  %v1135_v57 = vpop.permute.xlu0 %1134  ;;  %v4517_v55 = vld [vmem:[#allocation11 + $0xe4] sm:$0xf] }
 0x1be   :  { %v1105_v27 = vor.u32 1.1754944e-38, %v1104_v13  ;;  %vm1103_vm10 = vcmp.eq.f32.partialorder %v1102_v35, 8.507059e+37  ;;  %vm1136_vm11 = vcmp.eq.s32.totalorder %v1135_v57, 1  ;;  %v3809_v13 = vld [vmem:[#allocation11 + $0xf0] sm:$0xf0] }
 0x1bf   :  { %v4683_v63 = vpop.eup %4682  ;;  %v4520_v17 = vld [vmem:[#allocation11 + $0xf4] sm:$0xf0]  ;;  %v4509_v57 = vld [vmem:[#allocation11 + $0xa4] sm:$0xf] }
 0x1c0   :  { %v1077_v1 = vadd.f32 1.0, %v4683_v63 }
 0x1c1   :  { %v4685_v8 = vpop.eup %4684  ;;  %3120 = vperm.xlu1 %4660, %v3118_v52   ;;  %v4511_v52 = vld [vmem:[#allocation11 + $0xac] sm:$0xf0] }
 0x1c2   :  { %v4687_v11 = vpop.eup %4686  ;;  %v1079_v14 = vmul.f32 %v4685_v8, %v1075_v43  ;;  %4688 = vrcp.f32 %v1077_v1  ;;  %vm1084_vm2 = vweird.f32 %v4685_v8  ;;  %v1119_v63 = vand.u32 2147483648, %v1077_v1 }
 0x1c3   :  { %v1094_v49 = vmul.f32 %v4687_v11, %v1076_v47  ;;  %4690 = vtanh.f32 %v1065_v9  ;;  %vm1099_vm3 = vweird.f32 %v4687_v11  ;;  %vm1085_vm6 = vmor %vm1083_vm4, %vm1084_vm2  ;;  %vm1113_vm13 = vweird.f32 %v1077_v1 }
 0x1c4   :  { %v1080_v19 = vsub.f32 1.0, %v1079_v14  ;;  %vm1100_vm7 = vmor %vm1098_vm5, %vm1099_vm3  ;;  %v1117_v0 = vand.u32 2147483647, %v1077_v1  ;;  %v1120_v9 = vor.u32 1.1754944e-38, %v1119_v63  ;;  %v3783_v63 = vld [vmem:[#allocation11 + $0xa8] sm:$0xf] }
 0x1c5   :  { %v1095_v16 = vsub.f32 1.0, %v1094_v49 }
 0x1c6   :  { %v1081_v24 = vmul.f32 %v4685_v8, %v1080_v19  ;;  %vm1118_vm15 = vcmp.eq.f32.partialorder %v1117_v0, 8.507059e+37  ;;  %v4512_v0 = vld [vmem:[#allocation11 + $0xb4] sm:$0xf0] }
 0x1c7   :  { %v1096_v33 = vmul.f32 %v4687_v11, %v1095_v16 }
 0x1c8   :  { %v4689_v29 = vpop.eup %4688  ;;  %v1082_v59 = vadd.f32 %v4685_v8, %v1081_v24  ;;  %v3815_v24 = vld [vmem:[#allocation11 + $0xe8] sm:$0xf] }
 0x1c9   :  { %v1109_v39 = vmul.f32 %v4689_v29, %v1077_v1  ;;  %v1097_v26 = vadd.f32 %v4687_v11, %v1096_v33  ;;  %v4691_v23 = vpop.eup %4690  ;;  %vm1114_vm12 = vweird.f32 %v4689_v29  ;;  %v4519_v1 = vld [vmem:[#allocation11 + $0xec] sm:$0xf0]  ;;  %v3812_v33 = vor.u32 %v4517_v55, %v3809_v13  ;;  %v3767_v13 = vld [vmem:[#allocation11 + $0x88] sm:$0xf] }
 0x1ca   :  { %v1086_v18 = vsel %vm1085_vm6, %v4685_v8, %v1082_v59  ;;  %vm1115_vm14 = vmor %vm1113_vm13, %vm1114_vm12  ;;  %v3816_v35 = vor.u32 %v4520_v17, %v3815_v24  ;;  %v3817_v59 = vld [vmem:[#allocation11 + $0xf8] sm:$0xf0]  ;;  %v4508_v24 = vld [vmem:[#allocation11 + $0x94] sm:$0xf0] }
 0x1cb   :  { %v1110_v44 = vsub.f32 1.0, %v1109_v39  ;;  %v1091_v20 = vsel %vm1088_vm8, %v1090_v41, %v1086_v18  ;;  %v1101_v15 = vsel %vm1100_vm7, %v4687_v11, %v1097_v26  ;;  %1685 = vmatpush.bf16.msra.mxu1 %v3812_v33  ;;  %v3791_v39 = vld [vmem:[#allocation11 + $0xc0] sm:$0xf]  ;;  %v4515_v41 = vld [vmem:[#allocation11 + $0xcc] sm:$0xf0]  ;;  %v3768_v33 = vor.u32 %v4508_v24, %v3767_v13 }
 0x1cc   :  { %v1106_v22 = vsel %vm1103_vm10, %v1105_v27, %v1101_v15  ;;  %v1125_v51 = vmul.f32 %v4691_v23, %v1091_v20  ;;  %1698 = vmatpush.bf16.msra.mxu2 %v3816_v35  ;;  %v4513_v26 = vld [vmem:[#allocation11 + $0xc4] sm:$0xf]  ;;  %v3792_v27 = vor.u32 %v4515_v41, %v3791_v39  ;;  %v3793_v18 = vld [vmem:[#allocation11 + $0xd0] sm:$0xf0]  ;;  %v3799_v23 = vld [vmem:[#allocation11 + $0xc8] sm:$0xf] }
 0x1cd   :  { %v1111_v43 = vmul.f32 %v4689_v29, %v1110_v44  ;;  %v1124_v47 = vmul.f32 %v1106_v22, %v5098_v28  ;;  %v4516_v44 = vld [vmem:[#allocation11 + $0xd4] sm:$0xf0]  ;;  %v3796_v20 = vor.u32 %v4513_v26, %v3793_v18  ;;  %v4514_v22 = vld [vmem:[#allocation11 + $0xcc] sm:$0xf]  ;;  %v4503_v39 = vld [vmem:[#allocation11 + $0x6c] sm:$0xf0] }
 0x1ce   :  { %v3800_v15 = vor.u32 %v4516_v44, %v3799_v23  ;;  %v4506_v35 = vld [vmem:[#allocation11 + $0x8c] sm:$0xf]  ;;  %v4501_v41 = vld [vmem:[#allocation11 + $0x64] sm:$0xf]  ;;  %v3745_v23 = vld [vmem:[#allocation11 + $0x70] sm:$0xf0] }
 0x1cf   :  { %v1126_v10 = vadd.f32 %v1125_v51, %v1124_v47  ;;  %v1112_v60 = vadd.f32 %v4689_v29, %v1111_v43  ;;  %v3801_v51 = vld [vmem:[#allocation11 + $0xd8] sm:$0xf0]  ;;  %1686 = vmatpush.bf16.msra.mxu1 %v3796_v20  ;;  %v3775_v47 = vld [vmem:[#allocation11 + $0xa0] sm:$0xf]  ;;  %v3751_v44 = vld [vmem:[#allocation11 + $0x68] sm:$0xf] }
 0x1d0   :  { %v3804_v43 = vor.u32 %v4514_v22, %v3801_v51  ;;  %1699 = vmatpush.bf16.msra.mxu2 %v3800_v15  ;;  %v4504_v20 = vld [vmem:[#allocation11 + $0x74] sm:$0xf0]  ;;  %v3748_v51 = vor.u32 %v4501_v41, %v3745_v23  ;;  %v3711_v13 = vld [vmem:[#allocation11 + $0x20] sm:$0xf]  ;;  %v4495_v24 = vld [vmem:[#allocation11 + $0x2c] sm:$0xf0] }
 0x1d1   :  { %4692 = vtanh.f32 %v1126_v10  ;;  %v5119_v4 = vsel %vm1136_vm11, %v1126_v10, %v5098_v28  ;;  %v1116_v8 = vsel %vm1115_vm14, %v4689_v29, %v1112_v60  ;;  %v3807_v28 = vld [vmem:[#allocation11 + $0xe0] sm:$0xf]  ;;  %v4518_v29 = vld [vmem:[#allocation11 + $0xec] sm:$0xf]  ;;  %v3776_v10 = vor.u32 %v4511_v52, %v3775_v47  ;;  %v3777_v60 = vld [vmem:[#allocation11 + $0xb0] sm:$0xf0] }
 0x1d2   :  { %v1121_v14 = vsel %vm1118_vm15, %v1120_v9, %v1116_v8  ;;  %v3808_v31 = vor.u32 %v4519_v1, %v3807_v28  ;;  %v3780_v8 = vor.u32 %v4509_v57, %v3777_v60  ;;  %v3784_v9 = vor.u32 %v4512_v0, %v3783_v63  ;;  %v4507_v28 = vld [vmem:[#allocation11 + $0x8c] sm:$0xf0]  ;;  %v4505_v1 = vld [vmem:[#allocation11 + $0x84] sm:$0xf]  ;;  %v4502_v47 = vld [vmem:[#allocation11 + $0x6c] sm:$0xf] }
 0x1d3   :  { %v3753_v52 = vld [vmem:[#allocation11 + $0x78] sm:$0xf0]  ;;  %v3727_v63 = vld [vmem:[#allocation11 + $0x40] sm:$0xf]  ;;  %v4499_v0 = vld [vmem:[#allocation11 + $0x4c] sm:$0xf0] }
 0x1d4   :  { %1672 = vmatpush.bf16.msra.mxu0 %v3808_v31  ;;  %1687 = vmatpush.bf16.msra.mxu1 %v3780_v8  ;;  %v3761_v31 = vld [vmem:[#allocation11 + $0x90] sm:$0xf0]  ;;  %v3756_v57 = vor.u32 %v4502_v47, %v3753_v52  ;;  %v4497_v8 = vld [vmem:[#allocation11 + $0x44] sm:$0xf]  ;;  %v4496_v41 = vld [vmem:[#allocation11 + $0x34] sm:$0xf0] }
 0x1d5   :  { %1700 = vmatpush.bf16.msra.mxu2 %v3784_v9  ;;  %v3764_v17 = vor.u32 %v4505_v1, %v3761_v31  ;;  %v3728_v9 = vor.u32 %v4499_v0, %v3727_v63  ;;  %v3721_v23 = vld [vmem:[#allocation11 + $0x38] sm:$0xf0]  ;;  %v3703_v63 = vld [vmem:[#allocation11 + $0x8] sm:$0xf]  ;;  %v4492_v0 = vld [vmem:[#allocation11 + $0x14] sm:$0xf0] }
 0x1d7   :  { %v4693_v11 = vpop.eup %4692 }
 0x1d8   :  { %v1128_v49 = vmul.f32 %v4693_v11, %v1121_v14  ;;  %1673 = vmatpush.bf16.msra.mxu0 %v3792_v27  ;;  %v4510_v11 = vld [vmem:[#allocation11 + $0xac] sm:$0xf]  ;;  %v3785_v14 = vld [vmem:[#allocation11 + $0xb8] sm:$0xf0]  ;;  %1688 = vmatpush.bf16.msra.mxu1 %v3764_v17  ;;  %v4493_v17 = vld [vmem:[#allocation11 + $0x24] sm:$0xf] }
 0x1d9   :  { %1701 = vmatpush.bf16.msra.mxu2 %v3768_v33 }
 0x1da   :  { %v5123_v19 = vsel %vm1136_vm11, %v1128_v49, %v5102_v36  ;;  %v3820_v36 = vor.u32 %v4518_v29, %v3817_v59  ;;  %v3788_v49 = vor.u32 %v4510_v11, %v3785_v14  ;;  %v3769_v29 = vld [vmem:[#allocation11 + $0x98] sm:$0xf0]  ;;  %v3729_v11 = vld [vmem:[#allocation11 + $0x50] sm:$0xf0]  ;;  %v4500_v14 = vld [vmem:[#allocation11 + $0x54] sm:$0xf0] }
 0x1db   :  { %v1148_v16 = vpack.c.bf16 %v5123_v19, %v5123_v19  ;;  %v3772_v59 = vor.u32 %v4506_v35, %v3769_v29 }
 0x1dc   :  { %1711 = vmatpush.bf16.msra.mxu3 %v3820_v36  ;;  %1674 = vmatpush.bf16.msra.mxu0 %v3776_v10  ;;  %v3743_v36 = vld [vmem:[#allocation11 + $0x60] sm:$0xf] }
 0x1dd   :  { %1349 = vmatmul.bf16.vlgmr.msrb.gmra.mxu0 %v1148_v16  ;;  %1362 = vmatmul.bf16.vlgmr.msrb.gmra.mxu1 %v1148_v16  ;;  %v3744_v18 = vor.u32 %v4503_v39, %v3743_v36  ;;  %v3713_v36 = vld [vmem:[#allocation11 + $0x30] sm:$0xf0]  ;;  %v3719_v39 = vld [vmem:[#allocation11 + $0x28] sm:$0xf] }
 0x1de   :  { %1375 = vmatmul.bf16.vlgmr.msrb.gmra.mxu2 %v1148_v16  ;;  %1388 = vmatmul.bf16.vlgmr.msrb.gmra.mxu3 %v1148_v16  ;;  %v3759_v16 = vld [vmem:[#allocation11 + $0x80] sm:$0xf] }
 0x1df   :  { %v3760_v55 = vor.u32 %v4507_v28, %v3759_v16  ;;  %1689 = vmatpush.bf16.msra.mxu1 %v3748_v51  ;;  %v4498_v16 = vld [vmem:[#allocation11 + $0x4c] sm:$0xf]  ;;  %v3737_v28 = vld [vmem:[#allocation11 + $0x58] sm:$0xf0]  ;;  %v4491_v51 = vld [vmem:[#allocation11 + $0xc] sm:$0xf0] }
 0x1e0   :  { %1712 = vmatpush.bf16.msra.mxu3 %v3804_v43  ;;  %v3752_v43 = vor.u32 %v4504_v20, %v3751_v44  ;;  %v3740_v31 = vor.u32 %v4498_v16, %v3737_v28 }
 0x1e1   :  { %1675 = vmatpush.bf16.msra.mxu0 %v3760_v55 }
 0x1e2   :  { %1702 = vmatpush.bf16.msra.mxu2 %v3752_v43 }
 0x1e4   :  { %1713 = vmatpush.bf16.msra.mxu3 %v3788_v49 }
 0x1e5   :  { %1676 = vmatpush.bf16.msra.mxu0 %v3744_v18  ;;  %v4494_v18 = vld [vmem:[#allocation11 + $0x2c] sm:$0xf] }
 0x1e6   :  { %v3724_v20 = vor.u32 %v4494_v18, %v3721_v23 }
 0x1e8   :  { %1714 = vmatpush.bf16.msra.mxu3 %v3772_v59  ;;  %v3712_v59 = vor.u32 %v4495_v24, %v3711_v13 }
 0x1e9   :  { %1677 = vmatpush.bf16.msra.mxu0 %v3728_v9 }
 0x1ec   :  { %1715 = vmatpush.bf16.msra.mxu3 %v3756_v57  ;;  %v3697_v57 = vld [vmem:[#allocation11 + $0x10] sm:$0xf0] }
 0x1ed   :  { %1678 = vmatpush.bf16.msra.mxu0 %v3712_v59 }
 0x1f0   :  { %1716 = vmatpush.bf16.msra.mxu3 %v3740_v31 }
 0x1f4   :  { %1717 = vmatpush.bf16.msra.mxu3 %v3724_v20 }
 0x25a   :  { %v1350_v26 = vpop.f32.mrf.mxu0  ;;  %v1363_v27 = vpop.f32.mrf.mxu1 }
 0x25b   :  { %v1393_v15 = vadd.f32 %v1350_v26, %v5018_v30  ;;  %v1394_v22 = vadd.f32 %v1363_v27, %v5021_v32  ;;  %v3735_v30 = vld [vmem:[#allocation11 + $0x48] sm:$0xf]  ;;  %v3732_v32 = vor.u32 %v4497_v8, %v3729_v11  ;;  %v3716_v26 = vor.u32 %v4493_v17, %v3713_v36  ;;  %v4490_v8 = vld [vmem:[#allocation11 + $0xc] sm:$0xf] }
 0x25c   :  { %v3736_v49 = vor.u32 %v4500_v14, %v3735_v30  ;;  %v3720_v27 = vor.u32 %v4496_v41, %v3719_v39  ;;  %v3705_v30 = vld [vmem:[#allocation11 + $0x18] sm:$0xf0]  ;;  %v3704_v14 = vor.u32 %v4492_v0, %v3703_v63 }
 0x25d   :  { %v3689_v10 = vmul.f32 -1.442695, %v1393_v15  ;;  %v3690_v60 = vmul.f32 -1.442695, %v1394_v22  ;;  %1690 = vmatpush.bf16.msra.mxu1 %v3732_v32  ;;  %v3695_v22 = vld [vmem:[#allocation11] sm:$0xf]  ;;  %v3708_v32 = vor.u32 %v4490_v8, %v3705_v30 }
 0x25e   :  { %1703 = vmatpush.bf16.msra.mxu2 %v3736_v49  ;;  %v3696_v52 = vor.u32 %v4491_v51, %v3695_v22 }
 0x25f   :  { %4694 = vpow2.f32 %v3689_v10  ;;  %1718 = vmatpush.bf16.msra.mxu3 %v3708_v32 }
 0x260   :  { %4696 = vpow2.f32 %v3690_v60  ;;  %1679 = vmatpush.bf16.msra.mxu0 %v3696_v52  ;;  %v1466_v52 = vpop.permute.xlu1 %1465 }
 0x261   :  { %v1376_v1 = vpop.f32.mrf.mxu2  ;;  %v1389_v55 = vpop.f32.mrf.mxu3  ;;  %1691 = vmatpush.bf16.msra.mxu1 %v3716_v26  ;;  %vm1467_vm8 = vcmp.eq.s32.totalorder %v1466_v52, 1  ;;  %v3909_v52 = vld [vmem:[#allocation11 + $0xb0] sm:$0xf0] }
 0x262   :  { %v1395_v33 = vadd.f32 %v1376_v1, %v5024_v34  ;;  %v1352_v35 = vpop.f32.mrf.mxu0  ;;  %v1365_v29 = vpop.f32.mrf.mxu1  ;;  %v4489_v34 = vld [vmem:[#allocation11 + $0x4] sm:$0xf]  ;;  %1704 = vmatpush.bf16.msra.mxu2 %v3720_v27  ;;  %v1396_v1 = vadd.f32 %v1389_v55, %v5027_v37 }
 0x263   :  { %v3700_v60 = vor.u32 %v4489_v34, %v3697_v57 }
 0x264   :  { %v3691_v44 = vmul.f32 -1.442695, %v1395_v33 }
 0x265   :  { %v4695_v15 = vpop.eup %4694  ;;  %1692 = vmatpush.bf16.msra.mxu1 %v3700_v60 }
 0x266   :  { %v4697_v43 = vpop.eup %4696  ;;  %v1406_v47 = vadd.f32 1.0, %v4695_v15  ;;  %4698 = vpow2.f32 %v3691_v44  ;;  %1705 = vmatpush.bf16.msra.mxu2 %v3704_v14 }
 0x267   :  { %v1407_v10 = vadd.f32 1.0, %v4697_v43 }
 0x268   :  { %4700 = vrcp.f32 %v1406_v47  ;;  %v1420_v35 = vand.u32 2147483648, %v1406_v47  ;;  %v1418_v59 = vand.u32 2147483647, %v1406_v47  ;;  %vm1414_vm2 = vweird.f32 %v1406_v47 }
 0x269   :  { %4702 = vrcp.f32 %v1407_v10  ;;  %v1378_v9 = vpop.f32.mrf.mxu2  ;;  %v1391_v11 = vpop.f32.mrf.mxu3  ;;  %v1435_v36 = vand.u32 2147483648, %v1407_v10  ;;  %v1433_v41 = vand.u32 2147483647, %v1407_v10  ;;  %vm1429_vm4 = vweird.f32 %v1407_v10 }
 0x26a   :  { %v1421_v37 = vor.u32 1.1754944e-38, %v1420_v35  ;;  %vm1419_vm5 = vcmp.eq.f32.partialorder %v1418_v59, 8.507059e+37  ;;  %v3949_v59 = vld [vmem:[#allocation11 + $0xf8] sm:$0xf0] }
 0x26b   :  { %v1436_v44 = vor.u32 1.1754944e-38, %v1435_v36  ;;  %vm1434_vm7 = vcmp.eq.f32.partialorder %v1433_v41, 8.507059e+37  ;;  %v3923_v36 = vld [vmem:[#allocation11 + $0xc0] sm:$0xf]  ;;  %v4545_v41 = vld [vmem:[#allocation11 + $0xc4] sm:$0xf] }
 0x26c   :  { %v4699_v49 = vpop.eup %4698 }
 0x26d   :  { %v1408_v16 = vadd.f32 1.0, %v4699_v49 }
 0x26e   :  { %v4701_v28 = vpop.eup %4700 }
 0x26f   :  { %v4703_v31 = vpop.eup %4702  ;;  %v1410_v13 = vmul.f32 %v4701_v28, %v1406_v47  ;;  %4704 = vrcp.f32 %v1408_v16  ;;  %vm1415_vm0 = vweird.f32 %v4701_v28  ;;  %vm1444_vm10 = vweird.f32 %v1408_v16 }
 0x270   :  { %v1425_v24 = vmul.f32 %v4703_v31, %v1407_v10  ;;  %4706 = vtanh.f32 %v1396_v1  ;;  %vm1430_vm1 = vweird.f32 %v4703_v31  ;;  %vm1416_vm3 = vmor %vm1414_vm2, %vm1415_vm0  ;;  %v1450_v10 = vand.u32 2147483648, %v1408_v16  ;;  %v4549_v1 = vld [vmem:[#allocation11 + $0xe4] sm:$0xf] }
 0x271   :  { %v1411_v17 = vsub.f32 1.0, %v1410_v13  ;;  %vm1431_vm6 = vmor %vm1429_vm4, %vm1430_vm1  ;;  %v1448_v8 = vand.u32 2147483647, %v1408_v16  ;;  %v3941_v13 = vld [vmem:[#allocation11 + $0xf0] sm:$0xf0] }
 0x272   :  { %v1426_v33 = vsub.f32 1.0, %v1425_v24  ;;  %v1451_v11 = vor.u32 1.1754944e-38, %v1450_v10  ;;  %v3947_v24 = vld [vmem:[#allocation11 + $0xe8] sm:$0xf]  ;;  %v4542_v10 = vld [vmem:[#allocation11 + $0xac] sm:$0xf] }
 0x273   :  { %v1412_v29 = vmul.f32 %v4701_v28, %v1411_v17  ;;  %vm1449_vm12 = vcmp.eq.f32.partialorder %v1448_v8, 8.507059e+37  ;;  %v4552_v17 = vld [vmem:[#allocation11 + $0xf4] sm:$0xf0]  ;;  %v3917_v8 = vld [vmem:[#allocation11 + $0xb8] sm:$0xf0] }
 0x274   :  { %v1427_v39 = vmul.f32 %v4703_v31, %v1426_v33  ;;  %v3944_v33 = vor.u32 %v4549_v1, %v3941_v13  ;;  %v3948_v35 = vor.u32 %v4552_v17, %v3947_v24  ;;  %v4538_v13 = vld [vmem:[#allocation11 + $0x8c] sm:$0xf]  ;;  %v3901_v24 = vld [vmem:[#allocation11 + $0x98] sm:$0xf0] }
 0x275   :  { %v4705_v26 = vpop.eup %4704  ;;  %v1413_v27 = vadd.f32 %v4701_v28, %v1412_v29  ;;  %v4550_v29 = vld [vmem:[#allocation11 + $0xec] sm:$0xf]  ;;  %v3904_v17 = vor.u32 %v4538_v13, %v3901_v24  ;;  %v3851_v13 = vld [vmem:[#allocation11 + $0x28] sm:$0xf]  ;;  %v4528_v24 = vld [vmem:[#allocation11 + $0x34] sm:$0xf0] }
 0x276   :  { %v1440_v18 = vmul.f32 %v4705_v26, %v1408_v16  ;;  %v1428_v55 = vadd.f32 %v4703_v31, %v1427_v39  ;;  %v4707_v20 = vpop.eup %4706  ;;  %vm1445_vm9 = vweird.f32 %v4705_v26  ;;  %v4551_v16 = vld [vmem:[#allocation11 + $0xec] sm:$0xf0]  ;;  %2016 = vmatpush.bf16.msrb.mxu1 %v3944_v33  ;;  %2029 = vmatpush.bf16.msrb.mxu2 %v3948_v35  ;;  %v3875_v33 = vld [vmem:[#allocation11 + $0x60] sm:$0xf] }
 0x277   :  { %v1417_v23 = vsel %vm1416_vm3, %v4701_v28, %v1413_v27  ;;  %vm1446_vm11 = vmor %vm1444_vm10, %vm1445_vm9  ;;  %v4547_v39 = vld [vmem:[#allocation11 + $0xcc] sm:$0xf0]  ;;  %v3925_v27 = vld [vmem:[#allocation11 + $0xd0] sm:$0xf0] }
 0x278   :  { %v1441_v15 = vsub.f32 1.0, %v1440_v18  ;;  %v1422_v22 = vsel %vm1419_vm5, %v1421_v37, %v1417_v23  ;;  %v1432_v51 = vsel %vm1431_vm6, %v4703_v31, %v1428_v55  ;;  %v3931_v18 = vld [vmem:[#allocation11 + $0xc8] sm:$0xf]  ;;  %v4548_v37 = vld [vmem:[#allocation11 + $0xd4] sm:$0xf0]  ;;  %v3928_v55 = vor.u32 %v4545_v41, %v3925_v27 }
 0x279   :  { %v1456_v34 = vmul.f32 %v4707_v20, %v1422_v22  ;;  %v1437_v43 = vsel %vm1434_vm7, %v1436_v44, %v1432_v51  ;;  %v3932_v23 = vor.u32 %v4548_v37, %v3931_v18  ;;  %v4546_v44 = vld [vmem:[#allocation11 + $0xcc] sm:$0xf]  ;;  %v3933_v20 = vld [vmem:[#allocation11 + $0xd8] sm:$0xf0]  ;;  %v3907_v22 = vld [vmem:[#allocation11 + $0xa0] sm:$0xf] }
 0x27a   :  { %v1442_v57 = vmul.f32 %v4705_v26, %v1441_v15  ;;  %v1455_v47 = vmul.f32 %v1437_v43, %v5119_v4  ;;  %v3936_v15 = vor.u32 %v4546_v44, %v3933_v20  ;;  %2017 = vmatpush.bf16.msrb.mxu1 %v3928_v55  ;;  %v4543_v51 = vld [vmem:[#allocation11 + $0xac] sm:$0xf0]  ;;  %v3883_v41 = vld [vmem:[#allocation11 + $0x68] sm:$0xf]  ;;  %v3885_v44 = vld [vmem:[#allocation11 + $0x78] sm:$0xf0] }
 0x27b   :  { %2030 = vmatpush.bf16.msrb.mxu2 %v3932_v23  ;;  %v3908_v43 = vor.u32 %v4543_v51, %v3907_v22  ;;  %v4535_v35 = vld [vmem:[#allocation11 + $0x6c] sm:$0xf0]  ;;  %v4534_v23 = vld [vmem:[#allocation11 + $0x6c] sm:$0xf]  ;;  %v3859_v51 = vld [vmem:[#allocation11 + $0x40] sm:$0xf] }
 0x27c   :  { %v1457_v60 = vadd.f32 %v1456_v34, %v1455_v47  ;;  %v1443_v63 = vadd.f32 %v4705_v26, %v1442_v57  ;;  %v4541_v34 = vld [vmem:[#allocation11 + $0xa4] sm:$0xf]  ;;  %v3915_v57 = vld [vmem:[#allocation11 + $0xa8] sm:$0xf]  ;;  %v4544_v47 = vld [vmem:[#allocation11 + $0xb4] sm:$0xf0]  ;;  %v3888_v20 = vor.u32 %v4534_v23, %v3885_v44 }
 0x27e   :  { %4708 = vtanh.f32 %v1457_v60  ;;  %v5134_v0 = vsel %vm1467_vm8, %v1457_v60, %v5119_v4  ;;  %v1447_v9 = vsel %vm1446_vm11, %v4705_v26, %v1443_v63  ;;  %v3939_v4 = vld [vmem:[#allocation11 + $0xe0] sm:$0xf]  ;;  %v3924_v26 = vor.u32 %v4547_v39, %v3923_v36  ;;  %v3877_v39 = vld [vmem:[#allocation11 + $0x70] sm:$0xf0] }
 0x27f   :  { %v1452_v14 = vsel %vm1449_vm12, %v1451_v11, %v1447_v9  ;;  %v3940_v31 = vor.u32 %v4551_v16, %v3939_v4  ;;  %v3912_v60 = vor.u32 %v4541_v34, %v3909_v52  ;;  %v3916_v63 = vor.u32 %v4544_v47, %v3915_v57  ;;  %v3891_v11 = vld [vmem:[#allocation11 + $0x80] sm:$0xf]  ;;  %v3899_v4 = vld [vmem:[#allocation11 + $0x88] sm:$0xf]  ;;  %v4540_v16 = vld [vmem:[#allocation11 + $0x94] sm:$0xf0] }
 0x280   :  { %v3920_v9 = vor.u32 %v4542_v10, %v3917_v8  ;;  %v3876_v36 = vor.u32 %v4535_v35, %v3875_v33  ;;  %v4531_v34 = vld [vmem:[#allocation11 + $0x4c] sm:$0xf0]  ;;  %v3861_v52 = vld [vmem:[#allocation11 + $0x50] sm:$0xf0]  ;;  %v3867_v47 = vld [vmem:[#allocation11 + $0x48] sm:$0xf]  ;;  %v3852_v33 = vor.u32 %v4528_v24, %v3851_v13 }
 0x281   :  { %2003 = vmatpush.bf16.msrb.mxu0 %v3940_v31  ;;  %2018 = vmatpush.bf16.msrb.mxu1 %v3912_v60  ;;  %v3900_v31 = vor.u32 %v4540_v16, %v3899_v4  ;;  %v3860_v57 = vor.u32 %v4531_v34, %v3859_v51  ;;  %v4530_v60 = vld [vmem:[#allocation11 + $0x4c] sm:$0xf]  ;;  %v3869_v10 = vld [vmem:[#allocation11 + $0x58] sm:$0xf0] }
 0x282   :  { %2031 = vmatpush.bf16.msrb.mxu2 %v3916_v63  ;;  %v4526_v35 = vld [vmem:[#allocation11 + $0x2c] sm:$0xf] }
 0x284   :  { %v4709_v30 = vpop.eup %4708 }
 0x285   :  { %v1459_v32 = vmul.f32 %v4709_v30, %v1452_v14  ;;  %2004 = vmatpush.bf16.msrb.mxu0 %v3924_v26  ;;  %v4539_v30 = vld [vmem:[#allocation11 + $0x8c] sm:$0xf0]  ;;  %v4537_v14 = vld [vmem:[#allocation11 + $0x84] sm:$0xf]  ;;  %v4536_v26 = vld [vmem:[#allocation11 + $0x74] sm:$0xf0] }
 0x286   :  { %2032 = vmatpush.bf16.msrb.mxu2 %v3900_v31  ;;  %v3884_v55 = vor.u32 %v4536_v26, %v3883_v41  ;;  %v3845_v31 = vld [vmem:[#allocation11 + $0x30] sm:$0xf0]  ;;  %v4523_v41 = vld [vmem:[#allocation11 + $0xc] sm:$0xf0] }
 0x287   :  { %v5138_v49 = vsel %vm1467_vm8, %v1459_v32, %v5123_v19  ;;  %v3952_v19 = vor.u32 %v4550_v29, %v3949_v59  ;;  %v3892_v32 = vor.u32 %v4539_v30, %v3891_v11  ;;  %v4533_v29 = vld [vmem:[#allocation11 + $0x64] sm:$0xf]  ;;  %v3872_v11 = vor.u32 %v4530_v60, %v3869_v10  ;;  %v3843_v30 = vld [vmem:[#allocation11 + $0x20] sm:$0xf] }
 0x288   :  { %v1479_v28 = vpack.c.bf16 %v5138_v49, %v5138_v49  ;;  %v3880_v37 = vor.u32 %v4533_v29, %v3877_v39  ;;  %v3853_v29 = vld [vmem:[#allocation11 + $0x38] sm:$0xf0]  ;;  %v3827_v39 = vld [vmem:[#allocation11] sm:$0xf] }
 0x289   :  { %2042 = vmatpush.bf16.msrb.mxu3 %v3952_v19  ;;  %2005 = vmatpush.bf16.msrb.mxu0 %v3908_v43  ;;  %v4529_v43 = vld [vmem:[#allocation11 + $0x44] sm:$0xf] }
 0x28a   :  { %1680 = vmatmul.bf16.vlgmr.msra.gmra.mxu0 %v1479_v28  ;;  %1693 = vmatmul.bf16.vlgmr.msra.gmra.mxu1 %v1479_v28 }
 0x28b   :  { %1706 = vmatmul.bf16.vlgmr.msra.gmra.mxu2 %v1479_v28  ;;  %1719 = vmatmul.bf16.vlgmr.msra.gmra.mxu3 %v1479_v28  ;;  %v3893_v28 = vld [vmem:[#allocation11 + $0x90] sm:$0xf0] }
 0x28c   :  { %v3896_v1 = vor.u32 %v4537_v14, %v3893_v28  ;;  %2033 = vmatpush.bf16.msrb.mxu2 %v3884_v55  ;;  %v4527_v14 = vld [vmem:[#allocation11 + $0x2c] sm:$0xf0]  ;;  %v3835_v55 = vld [vmem:[#allocation11 + $0x8] sm:$0xf] }
 0x28d   :  { %2043 = vmatpush.bf16.msrb.mxu3 %v3936_v15  ;;  %2006 = vmatpush.bf16.msrb.mxu0 %v3892_v32  ;;  %v4525_v32 = vld [vmem:[#allocation11 + $0x24] sm:$0xf] }
 0x28e   :  { %2019 = vmatpush.bf16.msrb.mxu1 %v3896_v1  ;;  %v3844_v1 = vor.u32 %v4527_v14, %v3843_v30 }
 0x291   :  { %2044 = vmatpush.bf16.msrb.mxu3 %v3920_v9  ;;  %2007 = vmatpush.bf16.msrb.mxu0 %v3876_v36 }
 0x292   :  { %2020 = vmatpush.bf16.msrb.mxu1 %v3880_v37  ;;  %v3829_v37 = vld [vmem:[#allocation11 + $0x10] sm:$0xf0] }
 0x295   :  { %2045 = vmatpush.bf16.msrb.mxu3 %v3904_v17  ;;  %2008 = vmatpush.bf16.msrb.mxu0 %v3860_v57  ;;  %v3848_v17 = vor.u32 %v4525_v32, %v3845_v31  ;;  %v4790_v57 = vld [vmem:[%s5214_s1] sm:$0xff] }
 0x296   :  { %vm3956_vm13 = vcmp.gt.s32.totalorder %v4790_v57, 4  ;;  %vm4088_vm14 = vcmp.gt.s32.totalorder %v4790_v57, 5  ;;  %v4583_v57 = vld [vmem:[#allocation11 + $0xec] sm:$0xf0] }
 0x299   :  { %2046 = vmatpush.bf16.msrb.mxu3 %v3888_v20  ;;  %2009 = vmatpush.bf16.msrb.mxu0 %v3844_v1  ;;  %v4524_v20 = vld [vmem:[#allocation11 + $0x14] sm:$0xf0] }
 0x29d   :  { %2047 = vmatpush.bf16.msrb.mxu3 %v3872_v11 }
 0x307   :  { %v1681_v59 = vpop.f32.mrf.mxu0  ;;  %v1694_v19 = vpop.f32.mrf.mxu1 }
 0x308   :  { %v1724_v27 = vadd.f32 %v1681_v59, %v5030_v38  ;;  %v1725_v18 = vadd.f32 %v1694_v19, %v5033_v40  ;;  %v3864_v38 = vor.u32 %v4529_v43, %v3861_v52  ;;  %v4532_v40 = vld [vmem:[#allocation11 + $0x54] sm:$0xf0]  ;;  %v3856_v19 = vor.u32 %v4526_v35, %v3853_v29 }
 0x309   :  { %v3868_v63 = vor.u32 %v4532_v40, %v3867_v47  ;;  %v3836_v43 = vor.u32 %v4524_v20, %v3835_v55  ;;  %v2125_v47 = vsel %vm3956_vm13, 1, %v4901_v5 }
 0x30a   :  { %v3821_v15 = vmul.f32 -1.442695, %v1724_v27  ;;  %v3822_v22 = vmul.f32 -1.442695, %v1725_v18  ;;  %2021 = vmatpush.bf16.msrb.mxu1 %v3864_v38  ;;  %v3828_v18 = vor.u32 %v4523_v41, %v3827_v39  ;;  %2048 = vmatpush.bf16.msrb.mxu3 %v3856_v19 }
 0x30b   :  { %2034 = vmatpush.bf16.msrb.mxu2 %v3868_v63  ;;  %2127 = vperm.xlu2 %4661, %v2125_v47  }
 0x30c   :  { %4710 = vpow2.f32 %v3821_v15  ;;  %v4522_v15 = vld [vmem:[#allocation11 + $0xc] sm:$0xf]  ;;  %2010 = vmatpush.bf16.msrb.mxu0 %v3828_v18 }
 0x30d   :  { %4712 = vpow2.f32 %v3822_v22  ;;  %v3837_v22 = vld [vmem:[#allocation11 + $0x18] sm:$0xf0] }
 0x30e   :  { %v1707_v8 = vpop.f32.mrf.mxu2  ;;  %v1720_v9 = vpop.f32.mrf.mxu3  ;;  %2022 = vmatpush.bf16.msrb.mxu1 %v3848_v17  ;;  %v3840_v52 = vor.u32 %v4522_v15, %v3837_v22 }
 0x30f   :  { %v1726_v28 = vadd.f32 %v1707_v8, %v5036_v42  ;;  %v1683_v4 = vpop.f32.mrf.mxu0  ;;  %v1696_v16 = vpop.f32.mrf.mxu1  ;;  %v4521_v42 = vld [vmem:[#allocation11 + $0x4] sm:$0xf]  ;;  %2035 = vmatpush.bf16.msrb.mxu2 %v3852_v33  ;;  %v1727_v63 = vadd.f32 %v1720_v9, %v5039_v45 }
 0x310   :  { %v3832_v44 = vor.u32 %v4521_v42, %v3829_v37  ;;  %2049 = vmatpush.bf16.msrb.mxu3 %v3840_v52 }
 0x311   :  { %v3823_v59 = vmul.f32 -1.442695, %v1726_v28  ;;  %v2456_v28 = vsel %vm4088_vm14, 1, %v4901_v5 }
 0x312   :  { %v4711_v36 = vpop.eup %4710  ;;  %2023 = vmatpush.bf16.msrb.mxu1 %v3832_v44 }
 0x313   :  { %v4713_v26 = vpop.eup %4712  ;;  %v1737_v27 = vadd.f32 1.0, %v4711_v36  ;;  %4714 = vpow2.f32 %v3823_v59  ;;  %2036 = vmatpush.bf16.msrb.mxu2 %v3836_v43  ;;  %2458 = vperm.xlu2 %4661, %v2456_v28   ;;  %v4577_v28 = vld [vmem:[#allocation11 + $0xc4] sm:$0xf] }
 0x314   :  { %v1738_v23 = vadd.f32 1.0, %v4713_v26 }
 0x315   :  { %4716 = vrcp.f32 %v1737_v27  ;;  %v1751_v32 = vand.u32 2147483648, %v1737_v27  ;;  %v1749_v1 = vand.u32 2147483647, %v1737_v27  ;;  %vm1745_vm1 = vweird.f32 %v1737_v27 }
 0x316   :  { %4718 = vrcp.f32 %v1738_v23  ;;  %v1709_v51 = vpop.f32.mrf.mxu2  ;;  %v1722_v34 = vpop.f32.mrf.mxu3  ;;  %v1766_v4 = vand.u32 2147483648, %v1738_v23  ;;  %v1764_v13 = vand.u32 2147483647, %v1738_v23  ;;  %vm1760_vm2 = vweird.f32 %v1738_v23 }
 0x317   :  { %v1752_v17 = vor.u32 1.1754944e-38, %v1751_v32  ;;  %vm1750_vm5 = vcmp.eq.f32.partialorder %v1749_v1, 8.507059e+37  ;;  %v4579_v32 = vld [vmem:[#allocation11 + $0xcc] sm:$0xf0]  ;;  %v4063_v1 = vld [vmem:[#allocation11 + $0xc8] sm:$0xf] }
 0x318   :  { %v1767_v35 = vor.u32 1.1754944e-38, %v1766_v4  ;;  %vm1765_vm6 = vcmp.eq.f32.partialorder %v1764_v13, 8.507059e+37 }
 0x319   :  { %v4715_v38 = vpop.eup %4714 }
 0x31a   :  { %v1739_v40 = vadd.f32 1.0, %v4715_v38  ;;  %v4581_v38 = vld [vmem:[#allocation11 + $0xe4] sm:$0xf] }
 0x31b   :  { %v4717_v60 = vpop.eup %4716 }
 0x31c   :  { %v4719_v10 = vpop.eup %4718  ;;  %v1741_v8 = vmul.f32 %v4717_v60, %v1737_v27  ;;  %4720 = vrcp.f32 %v1739_v40  ;;  %vm1746_vm15 = vweird.f32 %v4717_v60  ;;  %v1797_v27 = vpop.permute.xlu1 %1796  ;;  %v1781_v55 = vand.u32 2147483648, %v1739_v40 }
 0x31d   :  { %v1756_v11 = vmul.f32 %v4719_v10, %v1738_v23  ;;  %4722 = vtanh.f32 %v1727_v63  ;;  %vm1761_vm0 = vweird.f32 %v4719_v10  ;;  %vm1747_vm3 = vmor %vm1745_vm1, %vm1746_vm15  ;;  %vm1798_vm7 = vcmp.eq.s32.totalorder %v1797_v27, 1  ;;  %v4584_v63 = vld [vmem:[#allocation11 + $0xf4] sm:$0xf0] }
 0x31e   :  { %v1742_v30 = vsub.f32 1.0, %v1741_v8  ;;  %vm1762_vm4 = vmor %vm1760_vm2, %vm1761_vm0  ;;  %vm1775_vm9 = vweird.f32 %v1739_v40  ;;  %v1779_v44 = vand.u32 2147483647, %v1739_v40  ;;  %v1782_v15 = vor.u32 1.1754944e-38, %v1781_v55  ;;  %v4569_v55 = vld [vmem:[#allocation11 + $0x84] sm:$0xf] }
 0x31f   :  { %v1757_v14 = vsub.f32 1.0, %v1756_v11  ;;  %v4582_v11 = vld [vmem:[#allocation11 + $0xec] sm:$0xf] }
 0x320   :  { %v1743_v16 = vmul.f32 %v4717_v60, %v1742_v30  ;;  %vm1780_vm11 = vcmp.eq.f32.partialorder %v1779_v44, 8.507059e+37  ;;  %v4081_v30 = vld [vmem:[#allocation11 + $0xf8] sm:$0xf0] }
 0x321   :  { %v1758_v31 = vmul.f32 %v4719_v10, %v1757_v14  ;;  %v4055_v14 = vld [vmem:[#allocation11 + $0xc0] sm:$0xf] }
 0x322   :  { %v4721_v24 = vpop.eup %4720  ;;  %v1744_v45 = vadd.f32 %v4717_v60, %v1743_v16  ;;  %v4056_v4 = vor.u32 %v4579_v32, %v4055_v14  ;;  %v4057_v16 = vld [vmem:[#allocation11 + $0xd0] sm:$0xf0] }
 0x323   :  { %v1771_v9 = vmul.f32 %v4721_v24, %v1739_v40  ;;  %v1759_v33 = vadd.f32 %v4719_v10, %v1758_v31  ;;  %v4723_v5 = vpop.eup %4722  ;;  %vm1776_vm8 = vweird.f32 %v4721_v24  ;;  %v4073_v40 = vld [vmem:[#allocation11 + $0xf0] sm:$0xf0]  ;;  %v4580_v31 = vld [vmem:[#allocation11 + $0xd4] sm:$0xf0]  ;;  %v4060_v13 = vor.u32 %v4577_v28, %v4057_v16  ;;  %v4017_v16 = vld [vmem:[#allocation11 + $0x78] sm:$0xf0] }
 0x324   :  { %v1748_v29 = vsel %vm1747_vm3, %v4717_v60, %v1744_v45  ;;  %vm1777_vm10 = vmor %vm1775_vm9, %vm1776_vm8  ;;  %v4079_v60 = vld [vmem:[#allocation11 + $0xe8] sm:$0xf]  ;;  %v4578_v45 = vld [vmem:[#allocation11 + $0xcc] sm:$0xf] }
 0x325   :  { %v1772_v59 = vsub.f32 1.0, %v1771_v9  ;;  %v1753_v19 = vsel %vm1750_vm5, %v1752_v17, %v1748_v29  ;;  %v1763_v36 = vsel %vm1762_vm4, %v4719_v10, %v1759_v33  ;;  %v4076_v10 = vor.u32 %v4581_v38, %v4073_v40  ;;  %v4065_v9 = vld [vmem:[#allocation11 + $0xd8] sm:$0xf0]  ;;  %v4039_v33 = vld [vmem:[#allocation11 + $0xa0] sm:$0xf] }
 0x326   :  { %v1768_v39 = vsel %vm1765_vm6, %v1767_v35, %v1763_v36  ;;  %v1787_v41 = vmul.f32 %v4723_v5, %v1753_v19  ;;  %v4080_v8 = vor.u32 %v4584_v63, %v4079_v60  ;;  %v4068_v17 = vor.u32 %v4578_v45, %v4065_v9  ;;  %v4575_v35 = vld [vmem:[#allocation11 + $0xac] sm:$0xf0]  ;;  %v4573_v29 = vld [vmem:[#allocation11 + $0xa4] sm:$0xf]  ;;  %v4047_v19 = vld [vmem:[#allocation11 + $0xa8] sm:$0xf] }
 0x327   :  { %v1773_v42 = vmul.f32 %v4721_v24, %v1772_v59  ;;  %v1786_v26 = vmul.f32 %v1768_v39, %v5134_v0  ;;  %2347 = vmatpush.bf16.msra.mxu1 %v4076_v10  ;;  %v4040_v5 = vor.u32 %v4575_v35, %v4039_v33  ;;  %v4041_v59 = vld [vmem:[#allocation11 + $0xb0] sm:$0xf0]  ;;  %v4576_v36 = vld [vmem:[#allocation11 + $0xb4] sm:$0xf0]  ;;  %v4007_v38 = vld [vmem:[#allocation11 + $0x60] sm:$0xf] }
 0x328   :  { %2360 = vmatpush.bf16.msra.mxu2 %v4080_v8  ;;  %v4044_v39 = vor.u32 %v4573_v29, %v4041_v59  ;;  %v4565_v40 = vld [vmem:[#allocation11 + $0x64] sm:$0xf]  ;;  %v4009_v8 = vld [vmem:[#allocation11 + $0x70] sm:$0xf0]  ;;  %v4563_v45 = vld [vmem:[#allocation11 + $0x4c] sm:$0xf0] }
 0x329   :  { %v1788_v18 = vadd.f32 %v1787_v41, %v1786_v26  ;;  %v1774_v37 = vadd.f32 %v4721_v24, %v1773_v42  ;;  %v4048_v41 = vor.u32 %v4576_v36, %v4047_v19  ;;  %v4574_v42 = vld [vmem:[#allocation11 + $0xac] sm:$0xf]  ;;  %v4049_v26 = vld [vmem:[#allocation11 + $0xb8] sm:$0xf0]  ;;  %v4012_v32 = vor.u32 %v4565_v40, %v4009_v8  ;;  %v4561_v9 = vld [vmem:[#allocation11 + $0x44] sm:$0xf] }
 0x32a   :  { %v4052_v27 = vor.u32 %v4574_v42, %v4049_v26  ;;  %v3993_v33 = vld [vmem:[#allocation11 + $0x50] sm:$0xf0]  ;;  %v4564_v35 = vld [vmem:[#allocation11 + $0x54] sm:$0xf0]  ;;  %v4001_v59 = vld [vmem:[#allocation11 + $0x58] sm:$0xf0] }
 0x32b   :  { %4724 = vtanh.f32 %v1788_v18  ;;  %v5153_v23 = vsel %vm1798_vm7, %v1788_v18, %v5134_v0  ;;  %v1778_v20 = vsel %vm1777_vm10, %v4721_v24, %v1774_v37  ;;  %v4071_v0 = vld [vmem:[#allocation11 + $0xe0] sm:$0xf]  ;;  %v4064_v24 = vor.u32 %v4580_v31, %v4063_v1  ;;  %2348 = vmatpush.bf16.msra.mxu1 %v4060_v13  ;;  %v4571_v37 = vld [vmem:[#allocation11 + $0x8c] sm:$0xf0]  ;;  %v4557_v26 = vld [vmem:[#allocation11 + $0x24] sm:$0xf] }
 0x32c   :  { %v1783_v51 = vsel %vm1780_vm11, %v1782_v15, %v1778_v20  ;;  %v4072_v47 = vor.u32 %v4583_v57, %v4071_v0  ;;  %v4023_v18 = vld [vmem:[#allocation11 + $0x80] sm:$0xf]  ;;  %v4025_v20 = vld [vmem:[#allocation11 + $0x90] sm:$0xf0]  ;;  %v4031_v15 = vld [vmem:[#allocation11 + $0x88] sm:$0xf] }
 0x32d   :  { %2361 = vmatpush.bf16.msra.mxu2 %v4064_v24  ;;  %v4024_v44 = vor.u32 %v4571_v37, %v4023_v18  ;;  %v4033_v0 = vld [vmem:[#allocation11 + $0x98] sm:$0xf0]  ;;  %v3991_v24 = vld [vmem:[#allocation11 + $0x40] sm:$0xf]  ;;  %v4559_v42 = vld [vmem:[#allocation11 + $0x2c] sm:$0xf0] }
 0x32e   :  { %2334 = vmatpush.bf16.msra.mxu0 %v4072_v47  ;;  %v4567_v47 = vld [vmem:[#allocation11 + $0x6c] sm:$0xf0]  ;;  %v3961_v8 = vld [vmem:[#allocation11 + $0x10] sm:$0xf0] }
 0x32f   :  { %2349 = vmatpush.bf16.msra.mxu1 %v4044_v39  ;;  %v4008_v10 = vor.u32 %v4567_v47, %v4007_v38  ;;  %v3959_v47 = vld [vmem:[#allocation11] sm:$0xf]  ;;  %v4555_v40 = vld [vmem:[#allocation11 + $0xc] sm:$0xf0] }
 0x331   :  { %v4725_v22 = vpop.eup %4724  ;;  %2362 = vmatpush.bf16.msra.mxu2 %v4048_v41  ;;  %v3975_v41 = vld [vmem:[#allocation11 + $0x20] sm:$0xf] }
 0x332   :  { %v1790_v34 = vmul.f32 %v4725_v22, %v1783_v51  ;;  %2335 = vmatpush.bf16.msra.mxu0 %v4056_v4  ;;  %v4572_v22 = vld [vmem:[#allocation11 + $0x94] sm:$0xf0]  ;;  %v4028_v51 = vor.u32 %v4569_v55, %v4025_v20  ;;  %v4566_v4 = vld [vmem:[#allocation11 + $0x6c] sm:$0xf]  ;;  %v3976_v55 = vor.u32 %v4559_v42, %v3975_v41  ;;  %v3983_v20 = vld [vmem:[#allocation11 + $0x28] sm:$0xf] }
 0x333   :  { %v4020_v1 = vor.u32 %v4566_v4, %v4017_v16 }
 0x334   :  { %v5156_v43 = vsel %vm1798_vm7, %v1790_v34, %v5138_v49  ;;  %v4084_v49 = vor.u32 %v4582_v11, %v4081_v30  ;;  %v4032_v34 = vor.u32 %v4572_v22, %v4031_v15  ;;  %2350 = vmatpush.bf16.msra.mxu1 %v4028_v51  ;;  %v4015_v11 = vld [vmem:[#allocation11 + $0x68] sm:$0xf]  ;;  %v4568_v30 = vld [vmem:[#allocation11 + $0x74] sm:$0xf0] }
 0x335   :  { %v1810_v52 = vpack.c.bf16 %v5156_v43, %v5156_v43  ;;  %v4016_v28 = vor.u32 %v4568_v30, %v4015_v11  ;;  %v4560_v15 = vld [vmem:[#allocation11 + $0x34] sm:$0xf0]  ;;  %v3967_v11 = vld [vmem:[#allocation11 + $0x8] sm:$0xf] }
 0x336   :  { %2373 = vmatpush.bf16.msra.mxu3 %v4084_v49  ;;  %2336 = vmatpush.bf16.msra.mxu0 %v4040_v5  ;;  %v4562_v5 = vld [vmem:[#allocation11 + $0x4c] sm:$0xf]  ;;  %v3984_v51 = vor.u32 %v4560_v15, %v3983_v20 }
 0x337   :  { %2011 = vmatmul.bf16.vlgmr.msrb.gmra.mxu0 %v1810_v52  ;;  %2024 = vmatmul.bf16.vlgmr.msrb.gmra.mxu1 %v1810_v52  ;;  %v4004_v39 = vor.u32 %v4562_v5, %v4001_v59 }
 0x338   :  { %2037 = vmatmul.bf16.vlgmr.msrb.gmra.mxu2 %v1810_v52  ;;  %2050 = vmatmul.bf16.vlgmr.msrb.gmra.mxu3 %v1810_v52  ;;  %v4570_v52 = vld [vmem:[#allocation11 + $0x8c] sm:$0xf] }
 0x339   :  { %v4036_v57 = vor.u32 %v4570_v52, %v4033_v0  ;;  %2363 = vmatpush.bf16.msra.mxu2 %v4032_v34  ;;  %2351 = vmatpush.bf16.msra.mxu1 %v4012_v32  ;;  %v4558_v34 = vld [vmem:[#allocation11 + $0x2c] sm:$0xf]  ;;  %v3985_v52 = vld [vmem:[#allocation11 + $0x38] sm:$0xf0] }
 0x33a   :  { %2374 = vmatpush.bf16.msra.mxu3 %v4068_v17  ;;  %2337 = vmatpush.bf16.msra.mxu0 %v4024_v44  ;;  %v3992_v17 = vor.u32 %v4563_v45, %v3991_v24  ;;  %v3977_v44 = vld [vmem:[#allocation11 + $0x30] sm:$0xf0]  ;;  %v4554_v32 = vld [vmem:[#allocation11 + $0xc] sm:$0xf] }
 0x33b   :  { %v3980_v22 = vor.u32 %v4557_v26, %v3977_v44 }
 0x33d   :  { %2364 = vmatpush.bf16.msra.mxu2 %v4016_v28  ;;  %v3969_v28 = vld [vmem:[#allocation11 + $0x18] sm:$0xf0] }
 0x33e   :  { %2375 = vmatpush.bf16.msra.mxu3 %v4052_v27  ;;  %2338 = vmatpush.bf16.msra.mxu0 %v4008_v10  ;;  %v3960_v10 = vor.u32 %v4555_v40, %v3959_v47 }
 0x342   :  { %2376 = vmatpush.bf16.msra.mxu3 %v4036_v57  ;;  %2339 = vmatpush.bf16.msra.mxu0 %v3992_v17  ;;  %v3988_v57 = vor.u32 %v4558_v34, %v3985_v52 }
 0x346   :  { %2377 = vmatpush.bf16.msra.mxu3 %v4020_v1  ;;  %2340 = vmatpush.bf16.msra.mxu0 %v3976_v55 }
 0x34a   :  { %2378 = vmatpush.bf16.msra.mxu3 %v4004_v39  ;;  %2341 = vmatpush.bf16.msra.mxu0 %v3960_v10 }
 0x34e   :  { %2379 = vmatpush.bf16.msra.mxu3 %v3988_v57 }
 0x365   :  { %v2128_v15 = vpop.permute.xlu2 %2127 }
 0x366   :  { %vm2129_vm4 = vcmp.eq.s32.totalorder %v2128_v15, 1  ;;  %v4181_v15 = vld [vmem:[#allocation11 + $0xb8] sm:$0xf0] }
 0x3b4   :  { %v2012_v60 = vpop.f32.mrf.mxu0  ;;  %v2025_v63 = vpop.f32.mrf.mxu1 }
 0x3b5   :  { %v2055_v49 = vadd.f32 %v2012_v60, %v5042_v46  ;;  %v2056_v14 = vadd.f32 %v2025_v63, %v5045_v48  ;;  %v3999_v46 = vld [vmem:[#allocation11 + $0x48] sm:$0xf]  ;;  %v3996_v48 = vor.u32 %v4561_v9, %v3993_v33 }
 0x3b6   :  { %v4000_v29 = vor.u32 %v4564_v35, %v3999_v46 }
 0x3b7   :  { %v3953_v31 = vmul.f32 -1.442695, %v2055_v49  ;;  %v3954_v13 = vmul.f32 -1.442695, %v2056_v14  ;;  %2352 = vmatpush.bf16.msra.mxu1 %v3996_v48  ;;  %v4556_v14 = vld [vmem:[#allocation11 + $0x14] sm:$0xf0] }
 0x3b8   :  { %2365 = vmatpush.bf16.msra.mxu2 %v4000_v29  ;;  %v3968_v1 = vor.u32 %v4556_v14, %v3967_v11  ;;  %v4615_v14 = vld [vmem:[#allocation11 + $0xec] sm:$0xf0] }
 0x3b9   :  { %4726 = vpow2.f32 %v3953_v31  ;;  %v3972_v31 = vor.u32 %v4554_v32, %v3969_v28  ;;  %v4613_v32 = vld [vmem:[#allocation11 + $0xe4] sm:$0xf] }
 0x3ba   :  { %4728 = vpow2.f32 %v3954_v13 }
 0x3bb   :  { %v2038_v19 = vpop.f32.mrf.mxu2  ;;  %v2051_v36 = vpop.f32.mrf.mxu3  ;;  %2353 = vmatpush.bf16.msra.mxu1 %v3980_v22  ;;  %2380 = vmatpush.bf16.msra.mxu3 %v3972_v31 }
 0x3bc   :  { %v2057_v27 = vadd.f32 %v2038_v19, %v5048_v50  ;;  %v2014_v18 = vpop.f32.mrf.mxu0  ;;  %v2027_v37 = vpop.f32.mrf.mxu1  ;;  %v4553_v50 = vld [vmem:[#allocation11 + $0x4] sm:$0xf]  ;;  %2366 = vmatpush.bf16.msra.mxu2 %v3984_v51  ;;  %v2058_v9 = vadd.f32 %v2051_v36, %v5051_v53 }
 0x3bd   :  { %v3964_v49 = vor.u32 %v4553_v50, %v3961_v8 }
 0x3be   :  { %v3955_v0 = vmul.f32 -1.442695, %v2057_v27 }
 0x3bf   :  { %v4727_v38 = vpop.eup %4726  ;;  %2354 = vmatpush.bf16.msra.mxu1 %v3964_v49 }
 0x3c0   :  { %v4729_v60 = vpop.eup %4728  ;;  %v2068_v63 = vadd.f32 1.0, %v4727_v38  ;;  %4730 = vpow2.f32 %v3955_v0  ;;  %2367 = vmatpush.bf16.msra.mxu2 %v3968_v1  ;;  %v4616_v1 = vld [vmem:[#allocation11 + $0xf4] sm:$0xf0] }
 0x3c1   :  { %v2069_v30 = vadd.f32 1.0, %v4729_v60 }
 0x3c2   :  { %4732 = vrcp.f32 %v2068_v63  ;;  %v2082_v29 = vand.u32 2147483648, %v2068_v63  ;;  %v2080_v59 = vand.u32 2147483647, %v2068_v63  ;;  %vm2076_vm14 = vweird.f32 %v2068_v63 }
 0x3c3   :  { %4734 = vrcp.f32 %v2069_v30  ;;  %v2040_v4 = vpop.f32.mrf.mxu2  ;;  %v2053_v16 = vpop.f32.mrf.mxu3  ;;  %v2097_v19 = vand.u32 2147483648, %v2069_v30  ;;  %v2095_v41 = vand.u32 2147483647, %v2069_v30  ;;  %vm2091_vm0 = vweird.f32 %v2069_v30 }
 0x3c4   :  { %v2083_v53 = vor.u32 1.1754944e-38, %v2082_v29  ;;  %vm2081_vm1 = vcmp.eq.f32.partialorder %v2080_v59, 8.507059e+37  ;;  %v4205_v4 = vld [vmem:[#allocation11 + $0xf0] sm:$0xf0]  ;;  %v4211_v16 = vld [vmem:[#allocation11 + $0xe8] sm:$0xf] }
 0x3c5   :  { %v2098_v37 = vor.u32 1.1754944e-38, %v2097_v19  ;;  %vm2096_vm3 = vcmp.eq.f32.partialorder %v2095_v41, 8.507059e+37  ;;  %v4208_v31 = vor.u32 %v4613_v32, %v4205_v4  ;;  %v4612_v29 = vld [vmem:[#allocation11 + $0xd4] sm:$0xf0]  ;;  %v4610_v19 = vld [vmem:[#allocation11 + $0xcc] sm:$0xf] }
 0x3c6   :  { %v4731_v13 = vpop.eup %4730  ;;  %v4141_v4 = vld [vmem:[#allocation11 + $0x70] sm:$0xf0] }
 0x3c7   :  { %v2070_v24 = vadd.f32 1.0, %v4731_v13  ;;  %v4212_v13 = vor.u32 %v4616_v1, %v4211_v16  ;;  %2678 = vmatpush.bf16.msrb.mxu1 %v4208_v31  ;;  %v4147_v16 = vld [vmem:[#allocation11 + $0x68] sm:$0xf]  ;;  %v4600_v1 = vld [vmem:[#allocation11 + $0x74] sm:$0xf0] }
 0x3c8   :  { %v4733_v45 = vpop.eup %4732 }
 0x3c9   :  { %v4735_v17 = vpop.eup %4734  ;;  %v2072_v33 = vmul.f32 %v4733_v45, %v2068_v63  ;;  %4736 = vrcp.f32 %v2070_v24  ;;  %vm2077_vm12 = vweird.f32 %v4733_v45  ;;  %v2112_v47 = vand.u32 2147483648, %v2070_v24  ;;  %2691 = vmatpush.bf16.msrb.mxu2 %v4212_v13 }
 0x3ca   :  { %v2087_v46 = vmul.f32 %v4735_v17, %v2069_v30  ;;  %4738 = vtanh.f32 %v2058_v9  ;;  %vm2092_vm13 = vweird.f32 %v4735_v17  ;;  %vm2078_vm15 = vmor %vm2076_vm14, %vm2077_vm12  ;;  %vm2106_vm6 = vweird.f32 %v2070_v24  ;;  %v4187_v9 = vld [vmem:[#allocation11 + $0xc0] sm:$0xf] }
 0x3cb   :  { %v2073_v35 = vsub.f32 1.0, %v2072_v33  ;;  %vm2093_vm2 = vmor %vm2091_vm0, %vm2092_vm13  ;;  %v2110_v50 = vand.u32 2147483647, %v2070_v24  ;;  %v2113_v63 = vor.u32 1.1754944e-38, %v2112_v47  ;;  %v4609_v33 = vld [vmem:[#allocation11 + $0xc4] sm:$0xf] }
 0x3cc   :  { %v2088_v48 = vsub.f32 1.0, %v2087_v46  ;;  %v4604_v47 = vld [vmem:[#allocation11 + $0x94] sm:$0xf0] }
 0x3cd   :  { %v2074_v5 = vmul.f32 %v4733_v45, %v2073_v35  ;;  %vm2111_vm8 = vcmp.eq.f32.partialorder %v2110_v50, 8.507059e+37  ;;  %v4189_v35 = vld [vmem:[#allocation11 + $0xd0] sm:$0xf0] }
 0x3ce   :  { %v2089_v39 = vmul.f32 %v4735_v17, %v2088_v48  ;;  %v4195_v48 = vld [vmem:[#allocation11 + $0xc8] sm:$0xf] }
 0x3cf   :  { %v4737_v42 = vpop.eup %4736  ;;  %v2075_v26 = vadd.f32 %v4733_v45, %v2074_v5  ;;  %v4192_v5 = vor.u32 %v4609_v33, %v4189_v35  ;;  %v4196_v59 = vor.u32 %v4612_v29, %v4195_v48  ;;  %v4123_v35 = vld [vmem:[#allocation11 + $0x40] sm:$0xf]  ;;  %v4595_v48 = vld [vmem:[#allocation11 + $0x4c] sm:$0xf0]  ;;  %v4593_v29 = vld [vmem:[#allocation11 + $0x44] sm:$0xf] }
 0x3d0   :  { %v2102_v27 = vmul.f32 %v4737_v42, %v2070_v24  ;;  %v2090_v36 = vadd.f32 %v4735_v17, %v2089_v39  ;;  %v4739_v55 = vpop.eup %4738  ;;  %vm2107_vm5 = vweird.f32 %v4737_v42  ;;  %v4614_v24 = vld [vmem:[#allocation11 + $0xec] sm:$0xf]  ;;  %v4197_v39 = vld [vmem:[#allocation11 + $0xd8] sm:$0xf0] }
 0x3d1   :  { %v2079_v18 = vsel %vm2078_vm15, %v4733_v45, %v2075_v26  ;;  %vm2108_vm7 = vmor %vm2106_vm6, %vm2107_vm5  ;;  %v4213_v45 = vld [vmem:[#allocation11 + $0xf8] sm:$0xf0]  ;;  %v4200_v41 = vor.u32 %v4610_v19, %v4197_v39  ;;  %2679 = vmatpush.bf16.msrb.mxu1 %v4192_v5  ;;  %2692 = vmatpush.bf16.msrb.mxu2 %v4196_v59  ;;  %v4607_v26 = vld [vmem:[#allocation11 + $0xac] sm:$0xf0]  ;;  %v4124_v59 = vor.u32 %v4595_v48, %v4123_v35 }
 0x3d2   :  { %v2103_v44 = vsub.f32 1.0, %v2102_v27  ;;  %v2084_v20 = vsel %vm2081_vm1, %v2083_v53, %v2079_v18  ;;  %v2094_v22 = vsel %vm2093_vm2, %v4735_v17, %v2090_v36  ;;  %v4611_v17 = vld [vmem:[#allocation11 + $0xcc] sm:$0xf0]  ;;  %v4605_v27 = vld [vmem:[#allocation11 + $0xa4] sm:$0xf] }
 0x3d3   :  { %v2118_v51 = vmul.f32 %v4739_v55, %v2084_v20  ;;  %v2099_v34 = vsel %vm2096_vm3, %v2098_v37, %v2094_v22  ;;  %v4188_v46 = vor.u32 %v4611_v17, %v4187_v9  ;;  %v4173_v36 = vld [vmem:[#allocation11 + $0xb0] sm:$0xf0]  ;;  %v4179_v18 = vld [vmem:[#allocation11 + $0xa8] sm:$0xf]  ;;  %v4608_v37 = vld [vmem:[#allocation11 + $0xb4] sm:$0xf0] }
 0x3d4   :  { %v2104_v52 = vmul.f32 %v4737_v42, %v2103_v44  ;;  %v2117_v0 = vmul.f32 %v2099_v34, %v5153_v23  ;;  %v4176_v55 = vor.u32 %v4605_v27, %v4173_v36  ;;  %v4180_v44 = vor.u32 %v4608_v37, %v4179_v18  ;;  %v4606_v20 = vld [vmem:[#allocation11 + $0xac] sm:$0xf]  ;;  %v4603_v34 = vld [vmem:[#allocation11 + $0x8c] sm:$0xf0]  ;;  %v4149_v9 = vld [vmem:[#allocation11 + $0x78] sm:$0xf0] }
 0x3d5   :  { %v4184_v22 = vor.u32 %v4606_v20, %v4181_v15  ;;  %v4125_v5 = vld [vmem:[#allocation11 + $0x50] sm:$0xf0]  ;;  %v4131_v19 = vld [vmem:[#allocation11 + $0x48] sm:$0xf]  ;;  %v4594_v39 = vld [vmem:[#allocation11 + $0x4c] sm:$0xf] }
 0x3d6   :  { %v2119_v57 = vadd.f32 %v2118_v51, %v2117_v0  ;;  %v2105_v38 = vadd.f32 %v4737_v42, %v2104_v52  ;;  %2680 = vmatpush.bf16.msrb.mxu1 %v4176_v55  ;;  %2693 = vmatpush.bf16.msrb.mxu2 %v4180_v44  ;;  %v4155_v51 = vld [vmem:[#allocation11 + $0x80] sm:$0xf]  ;;  %v4601_v52 = vld [vmem:[#allocation11 + $0x84] sm:$0xf]  ;;  %v4591_v18 = vld [vmem:[#allocation11 + $0x2c] sm:$0xf0] }
 0x3d7   :  { %v4156_v0 = vor.u32 %v4603_v34, %v4155_v51  ;;  %v4107_v36 = vld [vmem:[#allocation11 + $0x20] sm:$0xf]  ;;  %v4589_v37 = vld [vmem:[#allocation11 + $0x24] sm:$0xf]  ;;  %v4115_v51 = vld [vmem:[#allocation11 + $0x28] sm:$0xf] }
 0x3d8   :  { %4740 = vtanh.f32 %v2119_v57  ;;  %v5167_v40 = vsel %vm2129_vm4, %v2119_v57, %v5153_v23  ;;  %v2109_v60 = vsel %vm2108_vm7, %v4737_v42, %v2105_v38  ;;  %v4203_v23 = vld [vmem:[#allocation11 + $0xe0] sm:$0xf]  ;;  %v4157_v57 = vld [vmem:[#allocation11 + $0x90] sm:$0xf0]  ;;  %v4163_v38 = vld [vmem:[#allocation11 + $0x88] sm:$0xf]  ;;  %v4108_v15 = vor.u32 %v4591_v18, %v4107_v36 }
 0x3d9   :  { %v2114_v8 = vsel %vm2111_vm8, %v2113_v63, %v2109_v60  ;;  %v4204_v28 = vor.u32 %v4615_v14, %v4203_v23  ;;  %v4171_v42 = vld [vmem:[#allocation11 + $0xa0] sm:$0xf]  ;;  %v4160_v50 = vor.u32 %v4601_v52, %v4157_v57  ;;  %v4164_v60 = vor.u32 %v4604_v47, %v4163_v38  ;;  %v4602_v63 = vld [vmem:[#allocation11 + $0x8c] sm:$0xf]  ;;  %v4597_v23 = vld [vmem:[#allocation11 + $0x64] sm:$0xf] }
 0x3da   :  { %v4172_v53 = vor.u32 %v4607_v26, %v4171_v42  ;;  %v4133_v42 = vld [vmem:[#allocation11 + $0x58] sm:$0xf0]  ;;  %v4592_v34 = vld [vmem:[#allocation11 + $0x34] sm:$0xf0]  ;;  %v4590_v57 = vld [vmem:[#allocation11 + $0x2c] sm:$0xf] }
 0x3db   :  { %2665 = vmatpush.bf16.msrb.mxu0 %v4204_v28  ;;  %2681 = vmatpush.bf16.msrb.mxu1 %v4160_v50  ;;  %v4117_v38 = vld [vmem:[#allocation11 + $0x38] sm:$0xf0] }
 0x3dc   :  { %2694 = vmatpush.bf16.msrb.mxu2 %v4164_v60  ;;  %v4120_v50 = vor.u32 %v4590_v57, %v4117_v38 }
 0x3de   :  { %v4741_v10 = vpop.eup %4740 }
 0x3df   :  { %v2121_v11 = vmul.f32 %v4741_v10, %v2114_v8  ;;  %2666 = vmatpush.bf16.msrb.mxu0 %v4188_v46  ;;  %v4165_v10 = vld [vmem:[#allocation11 + $0x98] sm:$0xf0] }
 0x3e0   :  { %v4168_v8 = vor.u32 %v4602_v63, %v4165_v10  ;;  %v4091_v63 = vld [vmem:[#allocation11] sm:$0xf]  ;;  %v4587_v10 = vld [vmem:[#allocation11 + $0xc] sm:$0xf0] }
 0x3e1   :  { %v5171_v30 = vsel %vm2129_vm4, %v2121_v11, %v5156_v43  ;;  %v4216_v43 = vor.u32 %v4614_v24, %v4213_v45  ;;  %v4139_v11 = vld [vmem:[#allocation11 + $0x60] sm:$0xf]  ;;  %v4144_v24 = vor.u32 %v4597_v23, %v4141_v4  ;;  %v4148_v45 = vor.u32 %v4600_v1, %v4147_v16  ;;  %v4093_v23 = vld [vmem:[#allocation11 + $0x10] sm:$0xf0]  ;;  %v4588_v4 = vld [vmem:[#allocation11 + $0x14] sm:$0xf0] }
 0x3e2   :  { %v2141_v49 = vpack.c.bf16 %v5171_v30, %v5171_v30  ;;  %v4586_v16 = vld [vmem:[#allocation11 + $0xc] sm:$0xf]  ;;  %v4101_v1 = vld [vmem:[#allocation11 + $0x18] sm:$0xf0] }
 0x3e3   :  { %2704 = vmatpush.bf16.msrb.mxu3 %v4216_v43  ;;  %2667 = vmatpush.bf16.msrb.mxu0 %v4172_v53  ;;  %v4598_v43 = vld [vmem:[#allocation11 + $0x6c] sm:$0xf]  ;;  %v4136_v53 = vor.u32 %v4594_v39, %v4133_v42 }
 0x3e4   :  { %2342 = vmatmul.bf16.vlgmr.msra.gmra.mxu0 %v2141_v49  ;;  %2355 = vmatmul.bf16.vlgmr.msra.gmra.mxu1 %v2141_v49  ;;  %v4152_v17 = vor.u32 %v4598_v43, %v4149_v9 }
 0x3e5   :  { %2368 = vmatmul.bf16.vlgmr.msra.gmra.mxu2 %v2141_v49  ;;  %2381 = vmatmul.bf16.vlgmr.msra.gmra.mxu3 %v2141_v49  ;;  %v4599_v49 = vld [vmem:[#allocation11 + $0x6c] sm:$0xf0] }
 0x3e6   :  { %v4140_v28 = vor.u32 %v4599_v49, %v4139_v11  ;;  %2682 = vmatpush.bf16.msrb.mxu1 %v4144_v24  ;;  %2695 = vmatpush.bf16.msrb.mxu2 %v4148_v45  ;;  %v4092_v49 = vor.u32 %v4587_v10, %v4091_v63  ;;  %v4104_v45 = vor.u32 %v4586_v16, %v4101_v1  ;;  %v4648_v16 = vld [vmem:[#allocation11 + $0xf4] sm:$0xf0] }
 0x3e7   :  { %2705 = vmatpush.bf16.msrb.mxu3 %v4200_v41  ;;  %2668 = vmatpush.bf16.msrb.mxu0 %v4156_v0  ;;  %v4116_v0 = vor.u32 %v4592_v34, %v4115_v51  ;;  %v2459_v51 = vpop.permute.xlu2 %2458 }
 0x3e8   :  { %vm2460_vm1 = vcmp.eq.s32.totalorder %v2459_v51, 1  ;;  %v4295_v51 = vld [vmem:[#allocation11 + $0x88] sm:$0xf] }
 0x3eb   :  { %2706 = vmatpush.bf16.msrb.mxu3 %v4184_v22  ;;  %2669 = vmatpush.bf16.msrb.mxu0 %v4140_v28  ;;  %v4109_v22 = vld [vmem:[#allocation11 + $0x30] sm:$0xf0] }
 0x3ec   :  { %v4112_v52 = vor.u32 %v4589_v37, %v4109_v22 }
 0x3ef   :  { %2707 = vmatpush.bf16.msrb.mxu3 %v4168_v8  ;;  %2670 = vmatpush.bf16.msrb.mxu0 %v4124_v59 }
 0x3f3   :  { %2708 = vmatpush.bf16.msrb.mxu3 %v4152_v17  ;;  %2671 = vmatpush.bf16.msrb.mxu0 %v4108_v15 }
 0x3f7   :  { %2709 = vmatpush.bf16.msrb.mxu3 %v4136_v53  ;;  %2672 = vmatpush.bf16.msrb.mxu0 %v4092_v49 }
 0x3fb   :  { %2710 = vmatpush.bf16.msrb.mxu3 %v4120_v50 }
 0x3ff   :  { %2711 = vmatpush.bf16.msrb.mxu3 %v4104_v45  ;;  %v4319_v45 = vld [vmem:[#allocation11 + $0xc0] sm:$0xf] }
 0x461   :  { %v2343_v14 = vpop.f32.mrf.mxu0  ;;  %v2356_v32 = vpop.f32.mrf.mxu1 }
 0x462   :  { %v2386_v31 = vadd.f32 %v2343_v14, %v5054_v54  ;;  %v2387_v13 = vadd.f32 %v2356_v32, %v5057_v56  ;;  %v4128_v54 = vor.u32 %v4593_v29, %v4125_v5  ;;  %v4596_v56 = vld [vmem:[#allocation11 + $0x54] sm:$0xf0]  ;;  %v4099_v14 = vld [vmem:[#allocation11 + $0x8] sm:$0xf] }
 0x463   :  { %v4132_v41 = vor.u32 %v4596_v56, %v4131_v19  ;;  %v4100_v24 = vor.u32 %v4588_v4, %v4099_v14  ;;  %v4645_v14 = vld [vmem:[#allocation11 + $0xe4] sm:$0xf]  ;;  %v4343_v4 = vld [vmem:[#allocation11 + $0xe8] sm:$0xf] }
 0x464   :  { %v4085_v33 = vmul.f32 -1.442695, %v2386_v31  ;;  %v4086_v46 = vmul.f32 -1.442695, %v2387_v13  ;;  %2683 = vmatpush.bf16.msrb.mxu1 %v4128_v54 }
 0x465   :  { %2696 = vmatpush.bf16.msrb.mxu2 %v4132_v41 }
 0x466   :  { %4742 = vpow2.f32 %v4085_v33 }
 0x467   :  { %4744 = vpow2.f32 %v4086_v46 }
 0x468   :  { %v2369_v26 = vpop.f32.mrf.mxu2  ;;  %v2382_v27 = vpop.f32.mrf.mxu3  ;;  %2684 = vmatpush.bf16.msrb.mxu1 %v4112_v52 }
 0x469   :  { %v2388_v55 = vadd.f32 %v2369_v26, %v5060_v61  ;;  %v2345_v44 = vpop.f32.mrf.mxu0  ;;  %v2358_v20 = vpop.f32.mrf.mxu1  ;;  %v4585_v61 = vld [vmem:[#allocation11 + $0x4] sm:$0xf]  ;;  %2697 = vmatpush.bf16.msrb.mxu2 %v4116_v0  ;;  %v2389_v33 = vadd.f32 %v2382_v27, %v5063_v6 }
 0x46a   :  { %v4096_v28 = vor.u32 %v4585_v61, %v4093_v23  ;;  %v4647_v23 = vld [vmem:[#allocation11 + $0xec] sm:$0xf0] }
 0x46b   :  { %v4087_v47 = vmul.f32 -1.442695, %v2388_v55 }
 0x46c   :  { %v4743_v60 = vpop.eup %4742  ;;  %2685 = vmatpush.bf16.msrb.mxu1 %v4096_v28  ;;  %v4337_v28 = vld [vmem:[#allocation11 + $0xf0] sm:$0xf0] }
 0x46d   :  { %v4745_v8 = vpop.eup %4744  ;;  %v2399_v11 = vadd.f32 1.0, %v4743_v60  ;;  %4746 = vpow2.f32 %v4087_v47  ;;  %2698 = vmatpush.bf16.msrb.mxu2 %v4100_v24  ;;  %v4340_v1 = vor.u32 %v4645_v14, %v4337_v28  ;;  %v4345_v24 = vld [vmem:[#allocation11 + $0xf8] sm:$0xf0]  ;;  %v4632_v14 = vld [vmem:[#allocation11 + $0x74] sm:$0xf0] }
 0x46e   :  { %v2400_v32 = vadd.f32 1.0, %v4745_v8 }
 0x46f   :  { %4748 = vrcp.f32 %v2399_v11  ;;  %v2413_v59 = vand.u32 2147483648, %v2399_v11  ;;  %v2411_v56 = vand.u32 2147483647, %v2399_v11  ;;  %vm2407_vm11 = vweird.f32 %v2399_v11 }
 0x470   :  { %4750 = vrcp.f32 %v2400_v32  ;;  %v2371_v31 = vpop.f32.mrf.mxu2  ;;  %v2384_v13 = vpop.f32.mrf.mxu3  ;;  %v2428_v54 = vand.u32 2147483648, %v2400_v32  ;;  %v2426_v41 = vand.u32 2147483647, %v2400_v32  ;;  %vm2422_vm12 = vweird.f32 %v2400_v32  ;;  %3009 = vmatpush.bf16.msra.mxu1 %v4340_v1  ;;  %v4630_v1 = vld [vmem:[#allocation11 + $0x6c] sm:$0xf] }
 0x471   :  { %v2414_v27 = vor.u32 1.1754944e-38, %v2413_v59  ;;  %vm2412_vm15 = vcmp.eq.f32.partialorder %v2411_v56, 8.507059e+37  ;;  %v4344_v31 = vor.u32 %v4648_v16, %v4343_v4  ;;  %v4646_v13 = vld [vmem:[#allocation11 + $0xec] sm:$0xf]  ;;  %v4329_v59 = vld [vmem:[#allocation11 + $0xd8] sm:$0xf0] }
 0x472   :  { %v2429_v36 = vor.u32 1.1754944e-38, %v2428_v54  ;;  %vm2427_vm0 = vcmp.eq.f32.partialorder %v2426_v41, 8.507059e+37  ;;  %v4639_v56 = vld [vmem:[#allocation11 + $0xac] sm:$0xf0] }
 0x473   :  { %v4747_v43 = vpop.eup %4746  ;;  %3022 = vmatpush.bf16.msra.mxu2 %v4344_v31  ;;  %v4281_v31 = vld [vmem:[#allocation11 + $0x78] sm:$0xf0] }
 0x474   :  { %v2401_v9 = vadd.f32 1.0, %v4747_v43  ;;  %v4643_v43 = vld [vmem:[#allocation11 + $0xcc] sm:$0xf0] }
 0x475   :  { %v4749_v17 = vpop.eup %4748 }
 0x476   :  { %v4751_v46 = vpop.eup %4750  ;;  %v2403_v35 = vmul.f32 %v4749_v17, %v2399_v11  ;;  %4752 = vrcp.f32 %v2401_v9  ;;  %vm2408_vm9 = vweird.f32 %v4749_v17  ;;  %v2443_v38 = vand.u32 2147483648, %v2401_v9 }
 0x477   :  { %v2418_v48 = vmul.f32 %v4751_v46, %v2400_v32  ;;  %4754 = vtanh.f32 %v2389_v33  ;;  %vm2423_vm10 = vweird.f32 %v4751_v46  ;;  %vm2409_vm13 = vmor %vm2407_vm11, %vm2408_vm9  ;;  %vm2437_vm3 = vweird.f32 %v2401_v9  ;;  %v4321_v33 = vld [vmem:[#allocation11 + $0xd0] sm:$0xf0] }
 0x478   :  { %v2404_v29 = vsub.f32 1.0, %v2403_v35  ;;  %vm2424_vm14 = vmor %vm2422_vm12, %vm2423_vm10  ;;  %v2441_v50 = vand.u32 2147483647, %v2401_v9  ;;  %v2444_v63 = vor.u32 1.1754944e-38, %v2443_v38  ;;  %v4644_v35 = vld [vmem:[#allocation11 + $0xd4] sm:$0xf0] }
 0x479   :  { %v2419_v5 = vsub.f32 1.0, %v2418_v48  ;;  %v4297_v38 = vld [vmem:[#allocation11 + $0x98] sm:$0xf0] }
 0x47a   :  { %v2405_v19 = vmul.f32 %v4749_v17, %v2404_v29  ;;  %vm2442_vm5 = vcmp.eq.f32.partialorder %v2441_v50, 8.507059e+37 }
 0x47b   :  { %v2420_v39 = vmul.f32 %v4751_v46, %v2419_v5  ;;  %v4642_v5 = vld [vmem:[#allocation11 + $0xcc] sm:$0xf] }
 0x47c   :  { %v4753_v42 = vpop.eup %4752  ;;  %v2406_v26 = vadd.f32 %v4749_v17, %v2405_v19  ;;  %v4332_v54 = vor.u32 %v4642_v5, %v4329_v59  ;;  %v4303_v19 = vld [vmem:[#allocation11 + $0xa0] sm:$0xf] }
 0x47d   :  { %v2433_v6 = vmul.f32 %v4753_v42, %v2401_v9  ;;  %v2421_v53 = vadd.f32 %v4751_v46, %v2420_v39  ;;  %v4755_v37 = vpop.eup %4754  ;;  %vm2438_vm2 = vweird.f32 %v4753_v42  ;;  %v4641_v9 = vld [vmem:[#allocation11 + $0xc4] sm:$0xf]  ;;  %v4304_v41 = vor.u32 %v4639_v56, %v4303_v19  ;;  %v4239_v19 = vld [vmem:[#allocation11 + $0x20] sm:$0xf]  ;;  %v4623_v56 = vld [vmem:[#allocation11 + $0x2c] sm:$0xf0] }
 0x47e   :  { %v2410_v18 = vsel %vm2409_vm13, %v4749_v17, %v2406_v26  ;;  %vm2439_vm4 = vmor %vm2437_vm3, %vm2438_vm2  ;;  %v4320_v17 = vor.u32 %v4643_v43, %v4319_v45  ;;  %v4324_v48 = vor.u32 %v4641_v9, %v4321_v33  ;;  %v4637_v39 = vld [vmem:[#allocation11 + $0xa4] sm:$0xf]  ;;  %v4311_v26 = vld [vmem:[#allocation11 + $0xa8] sm:$0xf] }
 0x47f   :  { %v2434_v55 = vsub.f32 1.0, %v2433_v6  ;;  %v2415_v44 = vsel %vm2412_vm15, %v2414_v27, %v2410_v18  ;;  %v2425_v20 = vsel %vm2424_vm14, %v4751_v46, %v2421_v53  ;;  %v4327_v46 = vld [vmem:[#allocation11 + $0xc8] sm:$0xf]  ;;  %v4640_v6 = vld [vmem:[#allocation11 + $0xb4] sm:$0xf0] }
 0x480   :  { %v2430_v15 = vsel %vm2427_vm0, %v2429_v36, %v2425_v20  ;;  %v2449_v22 = vmul.f32 %v4755_v37, %v2415_v44  ;;  %v4328_v29 = vor.u32 %v4644_v35, %v4327_v46  ;;  %3010 = vmatpush.bf16.msra.mxu1 %v4324_v48  ;;  %v4312_v53 = vor.u32 %v4640_v6, %v4311_v26  ;;  %v4638_v36 = vld [vmem:[#allocation11 + $0xac] sm:$0xf]  ;;  %v4313_v18 = vld [vmem:[#allocation11 + $0xb8] sm:$0xf0]  ;;  %v4635_v44 = vld [vmem:[#allocation11 + $0x8c] sm:$0xf0] }
 0x481   :  { %v2435_v34 = vmul.f32 %v4753_v42, %v2434_v55  ;;  %v2448_v52 = vmul.f32 %v2430_v15, %v5167_v40  ;;  %v4316_v37 = vor.u32 %v4638_v36, %v4313_v18  ;;  %v4287_v55 = vld [vmem:[#allocation11 + $0x80] sm:$0xf]  ;;  %v4633_v20 = vld [vmem:[#allocation11 + $0x84] sm:$0xf]  ;;  %v4627_v43 = vld [vmem:[#allocation11 + $0x4c] sm:$0xf0]  ;;  %v4240_v6 = vor.u32 %v4623_v56, %v4239_v19 }
 0x482   :  { %3023 = vmatpush.bf16.msra.mxu2 %v4328_v29  ;;  %v4288_v15 = vor.u32 %v4635_v44, %v4287_v55  ;;  %v4255_v45 = vld [vmem:[#allocation11 + $0x40] sm:$0xf]  ;;  %v4625_v9 = vld [vmem:[#allocation11 + $0x44] sm:$0xf]  ;;  %v4263_v46 = vld [vmem:[#allocation11 + $0x48] sm:$0xf] }
 0x483   :  { %v2450_v0 = vadd.f32 %v2449_v22, %v2448_v52  ;;  %v2436_v57 = vadd.f32 %v4753_v42, %v2435_v34  ;;  %v4289_v22 = vld [vmem:[#allocation11 + $0x90] sm:$0xf0]  ;;  %v4636_v34 = vld [vmem:[#allocation11 + $0x94] sm:$0xf0]  ;;  %v4256_v33 = vor.u32 %v4627_v43, %v4255_v45  ;;  %v4626_v35 = vld [vmem:[#allocation11 + $0x4c] sm:$0xf] }
 0x484   :  { %v4292_v52 = vor.u32 %v4633_v20, %v4289_v22  ;;  %v4265_v29 = vld [vmem:[#allocation11 + $0x58] sm:$0xf0]  ;;  %v4624_v36 = vld [vmem:[#allocation11 + $0x34] sm:$0xf0]  ;;  %v4622_v55 = vld [vmem:[#allocation11 + $0x2c] sm:$0xf] }
 0x485   :  { %4756 = vtanh.f32 %v2450_v0  ;;  %v5181_v47 = vsel %vm2460_vm1, %v2450_v0, %v5167_v40  ;;  %v2440_v60 = vsel %vm2439_vm4, %v4753_v42, %v2436_v57  ;;  %v4335_v40 = vld [vmem:[#allocation11 + $0xe0] sm:$0xf]  ;;  %v4305_v42 = vld [vmem:[#allocation11 + $0xb0] sm:$0xf0]  ;;  %v4296_v0 = vor.u32 %v4636_v34, %v4295_v51  ;;  %v4634_v57 = vld [vmem:[#allocation11 + $0x8c] sm:$0xf] }
 0x486   :  { %v2445_v61 = vsel %vm2442_vm5, %v2444_v63, %v2440_v60  ;;  %v4336_v32 = vor.u32 %v4647_v23, %v4335_v40  ;;  %v4308_v27 = vor.u32 %v4637_v39, %v4305_v42  ;;  %3024 = vmatpush.bf16.msra.mxu2 %v4312_v53  ;;  %v4300_v50 = vor.u32 %v4634_v57, %v4297_v38  ;;  %v4271_v60 = vld [vmem:[#allocation11 + $0x60] sm:$0xf]  ;;  %v4631_v63 = vld [vmem:[#allocation11 + $0x6c] sm:$0xf0]  ;;  %v4273_v40 = vld [vmem:[#allocation11 + $0x70] sm:$0xf0] }
 0x487   :  { %v4279_v23 = vld [vmem:[#allocation11 + $0x68] sm:$0xf]  ;;  %v4621_v39 = vld [vmem:[#allocation11 + $0x24] sm:$0xf]  ;;  %v4249_v44 = vld [vmem:[#allocation11 + $0x38] sm:$0xf0] }
 0x488   :  { %2996 = vmatpush.bf16.msra.mxu0 %v4336_v32  ;;  %3011 = vmatpush.bf16.msra.mxu1 %v4308_v27  ;;  %v4280_v16 = vor.u32 %v4632_v14, %v4279_v23  ;;  %v4241_v27 = vld [vmem:[#allocation11 + $0x30] sm:$0xf0]  ;;  %v4247_v53 = vld [vmem:[#allocation11 + $0x28] sm:$0xf]  ;;  %v4223_v51 = vld [vmem:[#allocation11] sm:$0xf] }
 0x489   :  { %v4244_v18 = vor.u32 %v4621_v39, %v4241_v27  ;;  %v4619_v34 = vld [vmem:[#allocation11 + $0xc] sm:$0xf0]  ;;  %v4225_v38 = vld [vmem:[#allocation11 + $0x10] sm:$0xf0] }
 0x48a   :  { %3025 = vmatpush.bf16.msra.mxu2 %v4296_v0  ;;  %v4224_v57 = vor.u32 %v4619_v34, %v4223_v51 }
 0x48b   :  { %v4757_v10 = vpop.eup %4756 }
 0x48c   :  { %v2452_v8 = vmul.f32 %v4757_v10, %v2445_v61  ;;  %2997 = vmatpush.bf16.msra.mxu0 %v4320_v17  ;;  %3012 = vmatpush.bf16.msra.mxu1 %v4292_v52  ;;  %v4629_v10 = vld [vmem:[#allocation11 + $0x64] sm:$0xf]  ;;  %v4257_v17 = vld [vmem:[#allocation11 + $0x50] sm:$0xf0] }
 0x48d   :  { %v4276_v4 = vor.u32 %v4629_v10, %v4273_v40  ;;  %v4620_v10 = vld [vmem:[#allocation11 + $0x14] sm:$0xf0] }
 0x48e   :  { %v5184_v11 = vsel %vm2460_vm1, %v2452_v8, %v5171_v30  ;;  %v4348_v30 = vor.u32 %v4646_v13, %v4345_v24  ;;  %v4284_v13 = vor.u32 %v4630_v1, %v4281_v31  ;;  %3026 = vmatpush.bf16.msra.mxu2 %v4280_v16 }
 0x48f   :  { %v2472_v49 = vpack.c.bf16 %v5184_v11, %v5184_v11 }
 0x490   :  { %3035 = vmatpush.bf16.msra.mxu3 %v4348_v30  ;;  %2998 = vmatpush.bf16.msra.mxu0 %v4304_v41 }
 0x491   :  { %2673 = vmatmul.bf16.vlgmr.msrb.gmra.mxu0 %v2472_v49  ;;  %2686 = vmatmul.bf16.vlgmr.msrb.gmra.mxu1 %v2472_v49 }
 0x492   :  { %2699 = vmatmul.bf16.vlgmr.msrb.gmra.mxu2 %v2472_v49  ;;  %2712 = vmatmul.bf16.vlgmr.msrb.gmra.mxu3 %v2472_v49  ;;  %v4272_v49 = vor.u32 %v4631_v63, %v4271_v60 }
 0x493   :  { %3013 = vmatpush.bf16.msra.mxu1 %v4276_v4 }
 0x494   :  { %3036 = vmatpush.bf16.msra.mxu3 %v4332_v54  ;;  %2999 = vmatpush.bf16.msra.mxu0 %v4288_v15  ;;  %v4268_v54 = vor.u32 %v4626_v35, %v4265_v29  ;;  %v4252_v15 = vor.u32 %v4622_v55, %v4249_v44 }
 0x498   :  { %3037 = vmatpush.bf16.msra.mxu3 %v4316_v37  ;;  %3000 = vmatpush.bf16.msra.mxu0 %v4272_v49  ;;  %v4248_v37 = vor.u32 %v4624_v36, %v4247_v53 }
 0x49c   :  { %3038 = vmatpush.bf16.msra.mxu3 %v4300_v50  ;;  %3001 = vmatpush.bf16.msra.mxu0 %v4256_v33  ;;  %v4231_v50 = vld [vmem:[#allocation11 + $0x8] sm:$0xf] }
 0x49d   :  { %v4232_v23 = vor.u32 %v4620_v10, %v4231_v50 }
 0x4a0   :  { %3039 = vmatpush.bf16.msra.mxu3 %v4284_v13  ;;  %3002 = vmatpush.bf16.msra.mxu0 %v4240_v6 }
 0x4a4   :  { %3040 = vmatpush.bf16.msra.mxu3 %v4268_v54  ;;  %3003 = vmatpush.bf16.msra.mxu0 %v4224_v57 }
 0x4a8   :  { %3041 = vmatpush.bf16.msra.mxu3 %v4252_v15 }
 0x50e   :  { %v2674_v61 = vpop.f32.mrf.mxu0  ;;  %v2687_v8 = vpop.f32.mrf.mxu1 }
 0x50f   :  { %v2717_v32 = vadd.f32 %v2674_v61, %v5066_v7  ;;  %v2718_v28 = vadd.f32 %v2687_v8, %v5069_v21  ;;  %v4260_v7 = vor.u32 %v4625_v9, %v4257_v17  ;;  %v4628_v21 = vld [vmem:[#allocation11 + $0x54] sm:$0xf0]  ;;  %v4618_v61 = vld [vmem:[#allocation11 + $0xc] sm:$0xf]  ;;  %v4233_v8 = vld [vmem:[#allocation11 + $0x18] sm:$0xf0] }
 0x510   :  { %v4264_v48 = vor.u32 %v4628_v21, %v4263_v46  ;;  %v4236_v14 = vor.u32 %v4618_v61, %v4233_v8 }
 0x511   :  { %v4217_v24 = vmul.f32 -1.442695, %v2717_v32  ;;  %v4218_v30 = vmul.f32 -1.442695, %v2718_v28  ;;  %3014 = vmatpush.bf16.msra.mxu1 %v4260_v7 }
 0x512   :  { %3027 = vmatpush.bf16.msra.mxu2 %v4264_v48  ;;  %3042 = vmatpush.bf16.msra.mxu3 %v4236_v14 }
 0x513   :  { %4758 = vpow2.f32 %v4217_v24 }
 0x514   :  { %4760 = vpow2.f32 %v4218_v30 }
 0x515   :  { %v2700_v5 = vpop.f32.mrf.mxu2  ;;  %v2713_v59 = vpop.f32.mrf.mxu3  ;;  %3015 = vmatpush.bf16.msra.mxu1 %v4244_v18 }
 0x516   :  { %v2719_v41 = vadd.f32 %v2700_v5, %v5072_v58  ;;  %v2676_v42 = vpop.f32.mrf.mxu0  ;;  %v2689_v26 = vpop.f32.mrf.mxu1  ;;  %v4617_v58 = vld [vmem:[#allocation11 + $0x4] sm:$0xf]  ;;  %3028 = vmatpush.bf16.msra.mxu2 %v4248_v37  ;;  %v2720_v16 = vadd.f32 %v2713_v59, %v5075_v2 }
 0x517   :  { %v4228_v63 = vor.u32 %v4617_v58, %v4225_v38  ;;  %v2790_v42 = vpop.permute.xlu0 %2789 }
 0x518   :  { %v4219_v20 = vmul.f32 -1.442695, %v2719_v41  ;;  %vm2791_vm14 = vcmp.eq.s32.totalorder %v2790_v42, 1 }
 0x519   :  { %v4759_v22 = vpop.eup %4758  ;;  %3016 = vmatpush.bf16.msra.mxu1 %v4228_v63 }
 0x51a   :  { %v4761_v52 = vpop.eup %4760  ;;  %v2730_v0 = vadd.f32 1.0, %v4759_v22  ;;  %4762 = vpow2.f32 %v4219_v20  ;;  %3029 = vmatpush.bf16.msra.mxu2 %v4232_v23 }
 0x51b   :  { %v2731_v60 = vadd.f32 1.0, %v4761_v52 }
 0x51c   :  { %4764 = vrcp.f32 %v2730_v0  ;;  %v2744_v45 = vand.u32 2147483648, %v2730_v0  ;;  %v2742_v17 = vand.u32 2147483647, %v2730_v0  ;;  %vm2738_vm8 = vweird.f32 %v2730_v0 }
 0x51d   :  { %4766 = vrcp.f32 %v2731_v60  ;;  %v2702_v49 = vpop.f32.mrf.mxu2  ;;  %v2715_v40 = vpop.f32.mrf.mxu3  ;;  %v2759_v43 = vand.u32 2147483648, %v2731_v60  ;;  %v2757_v7 = vand.u32 2147483647, %v2731_v60  ;;  %vm2753_vm9 = vweird.f32 %v2731_v60 }
 0x51e   :  { %v2745_v35 = vor.u32 1.1754944e-38, %v2744_v45  ;;  %vm2743_vm12 = vcmp.eq.f32.partialorder %v2742_v17, 8.507059e+37 }
 0x51f   :  { %v2760_v29 = vor.u32 1.1754944e-38, %v2759_v43  ;;  %vm2758_vm13 = vcmp.eq.f32.partialorder %v2757_v7, 8.507059e+37 }
 0x520   :  { %v4763_v32 = vpop.eup %4762 }
 0x521   :  { %v2732_v28 = vadd.f32 1.0, %v4763_v32 }
 0x522   :  { %v4765_v4 = vpop.eup %4764 }
 0x523   :  { %v4767_v1 = vpop.eup %4766  ;;  %v2734_v31 = vmul.f32 %v4765_v4, %v2730_v0  ;;  %4768 = vrcp.f32 %v2732_v28  ;;  %vm2739_vm6 = vweird.f32 %v4765_v4  ;;  %v2774_v36 = vand.u32 2147483648, %v2732_v28 }
 0x524   :  { %v2749_v13 = vmul.f32 %v4767_v1, %v2731_v60  ;;  %4770 = vtanh.f32 %v2720_v16  ;;  %vm2754_vm7 = vweird.f32 %v4767_v1  ;;  %vm2740_vm10 = vmor %vm2738_vm8, %vm2739_vm6  ;;  %vm2768_vm0 = vweird.f32 %v2732_v28 }
 0x525   :  { %v2735_v24 = vsub.f32 1.0, %v2734_v31  ;;  %vm2755_vm11 = vmor %vm2753_vm9, %vm2754_vm7  ;;  %v2772_v37 = vand.u32 2147483647, %v2732_v28  ;;  %v2775_v44 = vor.u32 1.1754944e-38, %v2774_v36 }
 0x526   :  { %v2750_v30 = vsub.f32 1.0, %v2749_v13 }
 0x527   :  { %v2736_v9 = vmul.f32 %v4765_v4, %v2735_v24  ;;  %vm2773_vm2 = vcmp.eq.f32.partialorder %v2772_v37, 8.507059e+37 }
 0x528   :  { %v2751_v33 = vmul.f32 %v4767_v1, %v2750_v30 }
 0x529   :  { %v4769_v46 = vpop.eup %4768  ;;  %v2737_v21 = vadd.f32 %v4765_v4, %v2736_v9 }
 0x52a   :  { %v2764_v2 = vmul.f32 %v4769_v46, %v2732_v28  ;;  %v2752_v48 = vadd.f32 %v4767_v1, %v2751_v33  ;;  %v4771_v59 = vpop.eup %4770  ;;  %vm2769_vm15 = vweird.f32 %v4769_v46 }
 0x52b   :  { %v2741_v5 = vsel %vm2740_vm10, %v4765_v4, %v2737_v21  ;;  %vm2770_vm1 = vmor %vm2768_vm0, %vm2769_vm15 }
 0x52c   :  { %v2765_v54 = vsub.f32 1.0, %v2764_v2  ;;  %v2746_v19 = vsel %vm2743_vm12, %v2745_v35, %v2741_v5  ;;  %v2756_v56 = vsel %vm2755_vm11, %v4767_v1, %v2752_v48 }
 0x52d   :  { %v2761_v39 = vsel %vm2758_vm13, %v2760_v29, %v2756_v56  ;;  %v2780_v41 = vmul.f32 %v4771_v59, %v2746_v19  ;;  %v3121_v56 = vpop.permute.xlu1 %3120 }
 0x52e   :  { %v2766_v26 = vmul.f32 %v4769_v46, %v2765_v54  ;;  %v2779_v6 = vmul.f32 %v2761_v39, %v5181_v47  ;;  %vm3122_vm11 = vcmp.eq.s32.totalorder %v3121_v56, 1 }
 0x530   :  { %v2781_v27 = vadd.f32 %v2780_v41, %v2779_v6  ;;  %v2767_v53 = vadd.f32 %v4769_v46, %v2766_v26 }
 0x532   :  { %4772 = vtanh.f32 %v2781_v27  ;;  %v5194_v18 = vsel %vm2791_vm14, %v2781_v27, %v5181_v47  ;;  %v2771_v55 = vsel %vm2770_vm1, %v4769_v46, %v2767_v53 }
 0x533   :  { %v2776_v15 = vsel %vm2773_vm2, %v2775_v44, %v2771_v55 }
 0x538   :  { %v4773_v20 = vpop.eup %4772 }
 0x539   :  { %v2783_v22 = vmul.f32 %v4773_v20, %v2776_v15 }
 0x53b   :  { %v5197_v51 = vsel %vm2791_vm14, %v2783_v22, %v5184_v11 }
 0x53c   :  { %v2803_v34 = vpack.c.bf16 %v5197_v51, %v5197_v51 }
 0x53e   :  { %3004 = vmatmul.bf16.vlgmr.msra.gmra.mxu0 %v2803_v34  ;;  %3017 = vmatmul.bf16.vlgmr.msra.gmra.mxu1 %v2803_v34 }
 0x53f   :  { %3030 = vmatmul.bf16.vlgmr.msra.gmra.mxu2 %v2803_v34  ;;  %3043 = vmatmul.bf16.vlgmr.msra.gmra.mxu3 %v2803_v34 }
 0x5bb   :  { %v3005_v47 = vpop.f32.mrf.mxu0  ;;  %v3018_v58 = vpop.f32.mrf.mxu1 }
 0x5bc   :  { %v3048_v52 = vadd.f32 %v3005_v47, %v5078_v3  ;;  %v3049_v0 = vadd.f32 %v3018_v58, %v5081_v25 }
 0x5be   :  { %v4349_v57 = vmul.f32 -1.442695, %v3048_v52  ;;  %v4350_v38 = vmul.f32 -1.442695, %v3049_v0 }
 0x5c0   :  { %4774 = vpow2.f32 %v4349_v57 }
 0x5c1   :  { %4776 = vpow2.f32 %v4350_v38 }
 0x5c2   :  { %v3031_v50 = vpop.f32.mrf.mxu2  ;;  %v3044_v11 = vpop.f32.mrf.mxu3 }
 0x5c3   :  { %v3050_v60 = vadd.f32 %v3031_v50, %v5088_v62  ;;  %v3007_v63 = vpop.f32.mrf.mxu0  ;;  %v3020_v10 = vpop.f32.mrf.mxu1  ;;  %v3051_v4 = vadd.f32 %v3044_v11, %v5091_v12 }
 0x5c5   :  { %v4351_v61 = vmul.f32 -1.442695, %v3050_v60 }
 0x5c6   :  { %v4775_v8 = vpop.eup %4774 }
 0x5c7   :  { %v4777_v49 = vpop.eup %4776  ;;  %v3061_v40 = vadd.f32 1.0, %v4775_v8  ;;  %4778 = vpow2.f32 %v4351_v61 }
 0x5c8   :  { %v3062_v23 = vadd.f32 1.0, %v4777_v49 }
 0x5c9   :  { %4780 = vrcp.f32 %v3061_v40  ;;  %v3075_v24 = vand.u32 2147483648, %v3061_v40  ;;  %v3073_v43 = vand.u32 2147483647, %v3061_v40  ;;  %vm3069_vm5 = vweird.f32 %v3061_v40 }
 0x5ca   :  { %4782 = vrcp.f32 %v3062_v23  ;;  %v3033_v3 = vpop.f32.mrf.mxu2  ;;  %v3046_v25 = vpop.f32.mrf.mxu3  ;;  %v3090_v30 = vand.u32 2147483648, %v3062_v23  ;;  %v3088_v17 = vand.u32 2147483647, %v3062_v23  ;;  %vm3084_vm6 = vweird.f32 %v3062_v23 }
 0x5cb   :  { %v3076_v46 = vor.u32 1.1754944e-38, %v3075_v24  ;;  %vm3074_vm9 = vcmp.eq.f32.partialorder %v3073_v43, 8.507059e+37 }
 0x5cc   :  { %v3091_v2 = vor.u32 1.1754944e-38, %v3090_v30  ;;  %vm3089_vm10 = vcmp.eq.f32.partialorder %v3088_v17, 8.507059e+37 }
 0x5cd   :  { %v4779_v14 = vpop.eup %4778 }
 0x5ce   :  { %v3063_v32 = vadd.f32 1.0, %v4779_v14 }
 0x5cf   :  { %v4781_v28 = vpop.eup %4780 }
 0x5d0   :  { %v4783_v16 = vpop.eup %4782  ;;  %v3065_v1 = vmul.f32 %v4781_v28, %v3061_v40  ;;  %4784 = vrcp.f32 %v3063_v32  ;;  %vm3070_vm3 = vweird.f32 %v4781_v28  ;;  %v3105_v6 = vand.u32 2147483648, %v3063_v32 }
 0x5d1   :  { %v3080_v62 = vmul.f32 %v4783_v16, %v3062_v23  ;;  %4786 = vtanh.f32 %v3051_v4  ;;  %vm3085_vm4 = vweird.f32 %v4783_v16  ;;  %vm3071_vm7 = vmor %vm3069_vm5, %vm3070_vm3  ;;  %vm3099_vm13 = vweird.f32 %v3063_v32 }
 0x5d2   :  { %v3066_v31 = vsub.f32 1.0, %v3065_v1  ;;  %vm3086_vm8 = vmor %vm3084_vm6, %vm3085_vm4  ;;  %v3103_v53 = vand.u32 2147483647, %v3063_v32  ;;  %v3106_v37 = vor.u32 1.1754944e-38, %v3105_v6 }
 0x5d3   :  { %v3081_v13 = vsub.f32 1.0, %v3080_v62 }
 0x5d4   :  { %v3067_v45 = vmul.f32 %v4781_v28, %v3066_v31  ;;  %vm3104_vm15 = vcmp.eq.f32.partialorder %v3103_v53, 8.507059e+37 }
 0x5d5   :  { %v3082_v9 = vmul.f32 %v4783_v16, %v3081_v13 }
 0x5d6   :  { %v4785_v33 = vpop.eup %4784  ;;  %v3068_v7 = vadd.f32 %v4781_v28, %v3067_v45 }
 0x5d7   :  { %v3095_v12 = vmul.f32 %v4785_v33, %v3063_v32  ;;  %v3083_v21 = vadd.f32 %v4783_v16, %v3082_v9  ;;  %v4787_v48 = vpop.eup %4786  ;;  %vm3100_vm12 = vweird.f32 %v4785_v33 }
 0x5d8   :  { %v3072_v35 = vsel %vm3071_vm7, %v4781_v28, %v3068_v7  ;;  %vm3101_vm14 = vmor %vm3099_vm13, %vm3100_vm12 }
 0x5d9   :  { %v3096_v29 = vsub.f32 1.0, %v3095_v12  ;;  %v3077_v5 = vsel %vm3074_vm9, %v3076_v46, %v3072_v35  ;;  %v3087_v59 = vsel %vm3086_vm8, %v4783_v16, %v3083_v21 }
 0x5da   :  { %v3092_v54 = vsel %vm3089_vm10, %v3091_v2, %v3087_v59  ;;  %v3111_v19 = vmul.f32 %v4787_v48, %v3077_v5 }
 0x5db   :  { %v3097_v39 = vmul.f32 %v4785_v33, %v3096_v29  ;;  %v3110_v41 = vmul.f32 %v3092_v54, %v5194_v18 }
 0x5dd   :  { %v3112_v42 = vadd.f32 %v3111_v19, %v3110_v41  ;;  %v3098_v26 = vadd.f32 %v4785_v33, %v3097_v39 }
 0x5df   :  { %4788 = vtanh.f32 %v3112_v42  ;;  %v3125_v27 = vsel %vm3122_vm11, %v3112_v42, %v5194_v18  ;;  %v3102_v36 = vsel %vm3101_vm14, %v4785_v33, %v3098_v26 }
 0x5e0   :  { %3126 = vst [vmem:[#allocation2] sm:$0xff] %v3125_v27  ;;  %v3107_v44 = vsel %vm3104_vm15, %v3106_v37, %v3102_v36 }
 0x5e5   :  { %v4789_v55 = vpop.eup %4788 }
 0x5e6   :  { %v3114_v20 = vmul.f32 %v4789_v55, %v3107_v44 }
 0x5e8   :  { %v3123_v15 = vsel %vm3122_vm11, %v3114_v20, %v5197_v51 }
 0x5e9   :  { %3124 = vst [vmem:[#allocation12] sm:$0xff] %v3123_v15 }
 0x5ea PF:  { %s3134_s8 = sshll.u32 %s5219_s6, 4  ;;  %s4902_s3 = smov [#allocation12]   ;;  %s3135_s8 = int_to_ptr.hbm [resolvable:$true] %s3134_s8 }
 0x5eb   :  { %s3132_s9 = sshll.u32 %s4902_s3, 4  ;;  %s3133_s9 = int_to_ptr.vmem [resolvable:$true] %s3132_s9 }
 0x5ec   :  { %3137 = dma.vmem_to_hbm [thread:$0]  %s3133_s9, 128, %s3135_s8, [#allocation8]  }
 0x5ed   :  { %4891 = dma.done.wait [#allocation8], 128  }
 0x5ee   :  { %4892 = vsyncadd [#allocation8], 4294967168 }
 0x5ef   :  { %3142 = vsyncpa [#allocation7], 1 }
 0x5f0   :  { %3143 = vsyncpa [#allocation10], 1 }
 0x5f1   :  { %3144 = vsyncpa [#allocation8], 1 }

</bundles_post_ra>
